<compile_context>
chip_gen: v6e
topology: v6e:2x2x1
jax: 0.10.0
libtpu: 0.0.40
codegen_flags: <defaults>
</compile_context>

<pallas_src>
import functools

import jax
import jax.numpy as jnp
import numpy as np
from jax import lax
from jax.experimental import pallas as pl
from jax.experimental.pallas import tpu as pltpu

LANES = 128  # TPU lane width; every channel dimension is padded to this.


def _round_up(x, m):
    return (x + m - 1) // m * m


# ---------------------------------------------------------------------------
# Fused forward kernel (whole network, single grid point, VMEM resident)
# ---------------------------------------------------------------------------
def _fused_forward_kernel(
    B, size, G,
    # inputs
    x_ref,            # (Rpad, 128) bf16  spatially padded NHWC rows, channels padded
    mask_ref,         # (Rpad, 128) f32   1.0 on interior pixels, 0.0 on the halo
    sel_ref,          # (Qpad, Rpad) bf16 0/1 row-gather: interior rows -> dense rows
    w1_ref, b1_ref,   # (9*128, 128) bf16 , (1, 128) f32
    w2_ref, b2_ref,
    w3_ref, b3_ref,
    w4_ref, b4_ref,   # (128, 128) bf16 , (1, 128) f32
    wf1_ref, bf1_ref, # (KF1, 128) bf16 , (1, 128) f32
    wf2_ref, bf2_ref, # (128, 128) bf16 , (1, 128) f32
    # output
    out_ref,          # (Bpad, 128) f32  (valid: [:B, :3])
    # scratch
    buf_a, buf_b,     # (Rbuf, 128) bf16 activation ping-pong (with guard rows)
    fcin_ref,         # (Bpad, KF1) f32  flattened features for fc1
):
    Hp = Wp = size + 2
    Rpad = B * Hp * Wp
    SS = size * size

    # --- init: zero both halo buffers once, load the padded input rows ------
    buf_a[...] = jnp.zeros_like(buf_a)
    buf_b[...] = jnp.zeros_like(buf_b)
    buf_a[G:G + Rpad, :] = x_ref[...]

    # --- 3x3 conv + bias + ReLU as nine shifted GEMMs ------------------------
    # Output at padded flat row r takes input at row r + d, d = (kh-1)*Wp+(kw-1);
    # guard rows around the data region keep every static slice in bounds.
    def conv3x3_relu(in_buf, out_buf, w_ref, b_ref):
        acc = None
        for t in range(9):
            kh, kw = divmod(t, 3)
            d = (kh - 1) * Wp + (kw - 1)
            a = in_buf[G + d:G + d + Rpad, :]              # (Rpad, 128) bf16
            w = w_ref[t * LANES:(t + 1) * LANES, :]        # (128, 128) bf16
            p = jnp.dot(a, w, preferred_element_type=jnp.float32)
            acc = p if acc is None else acc + p
        val = jnp.maximum(acc + b_ref[...], 0.0)           # bias + ReLU in f32
        val = jnp.where(mask_ref[...] > 0.0, val, 0.0)     # re-zero the conv halo
        out_buf[G:G + Rpad, :] = val.astype(jnp.bfloat16)

    conv3x3_relu(buf_a, buf_b, w1_ref, b1_ref)   # 3   -> 32
    conv3x3_relu(buf_b, buf_a, w2_ref, b2_ref)   # 32  -> 64
    conv3x3_relu(buf_a, buf_b, w3_ref, b3_ref)   # 64  -> 128

    # --- gather interior pixels into dense (b*S*S + h*S + w) rows (on MXU) ---
    dense = jnp.dot(sel_ref[...], buf_b[G:G + Rpad, :],
                    preferred_element_type=jnp.float32)    # (Qpad, 128) f32

    # --- conv4: 1x1 conv + bias + ReLU ---------------------------------------
    y4 = jnp.dot(dense.astype(jnp.bfloat16), w4_ref[...],
                 preferred_element_type=jnp.float32) + b4_ref[...]
    y4 = jnp.maximum(y4, 0.0)                              # (Qpad, 128); lanes 0..1 valid

    # --- flatten in NCHW order: fc_in[b, c*S*S + p] = y4[b*S*S + p, c] -------
    y4t = y4.T                                             # (128, Qpad)
    fcin_ref[...] = jnp.zeros_like(fcin_ref)
    for b in range(B):
        for c in range(2):
            fcin_ref[b:b + 1, c * SS:(c + 1) * SS] = (
                y4t[c:c + 1, b * SS:(b + 1) * SS])

    # --- fc1 + ReLU, fc2 ------------------------------------------------------
    h = jnp.dot(fcin_ref[...].astype(jnp.bfloat16), wf1_ref[...],
                preferred_element_type=jnp.float32) + bf1_ref[...]
    h = jnp.maximum(h, 0.0)
    out_ref[...] = jnp.dot(h.astype(jnp.bfloat16), wf2_ref[...],
                           preferred_element_type=jnp.float32) + bf2_ref[...]


# ---------------------------------------------------------------------------
# One-time parameter packing (outside the hot path)
# ---------------------------------------------------------------------------
def init_params(key, size):
    """Deterministic synthetic parameters with the same shapes as the module."""
    def dense(k, shape, fan_in):
        return jax.random.normal(k, shape, jnp.float32) / jnp.sqrt(fan_in)

    ks = jax.random.split(key, 12)
    return {
        "conv1_w": dense(ks[0], (32, 3, 3, 3), 3 * 9),
        "conv1_b": dense(ks[1], (32,), 3 * 9),
        "conv2_w": dense(ks[2], (64, 32, 3, 3), 32 * 9),
        "conv2_b": dense(ks[3], (64,), 32 * 9),
        "conv3_w": dense(ks[4], (128, 64, 3, 3), 64 * 9),
        "conv3_b": dense(ks[5], (128,), 64 * 9),
        "conv4_w": dense(ks[6], (2, 128, 1, 1), 128),
        "conv4_b": dense(ks[7], (2,), 128),
        "fc1_w": dense(ks[8], (64, 2 * size * size), 2 * size * size),
        "fc1_b": dense(ks[9], (64,), 2 * size * size),
        "fc2_w": dense(ks[10], (3, 64), 64),
        "fc2_b": dense(ks[11], (3,), 64),
    }


def prepare_params(params, size, batch):
    """Pad / transpose all parameters into MXU-friendly tiles (called once)."""
    S = size
    Hp = Wp = S + 2
    SS = S * S
    Rpad = batch * Hp * Wp
    Qpad = _round_up(batch * SS, 8)
    KF1 = _round_up(2 * SS, LANES)

    def pack_conv3x3(w, b):                           # w: (O, C, 3, 3) OIHW
        O, C = int(w.shape[0]), int(w.shape[1])
        wt = jnp.transpose(w, (2, 3, 1, 0)).reshape(9, C, O)     # (tap, cin, cout)
        wp = jnp.zeros((9, LANES, LANES), jnp.float32).at[:, :C, :O].set(wt)
        bp = jnp.zeros((1, LANES), jnp.float32).at[0, :O].set(b)
        return wp.reshape(9 * LANES, LANES).astype(jnp.bfloat16), bp

    def pack_dense(w, b, k_rows):                     # torch: y = x @ w.T + b
        O, K = int(w.shape[0]), int(w.shape[1])
        wp = jnp.zeros((k_rows, LANES), jnp.float32).at[:K, :O].set(w.T)
        bp = jnp.zeros((1, LANES), jnp.float32).at[0, :O].set(b)
        return wp.astype(jnp.bfloat16), bp

    w1, b1 = pack_conv3x3(params["conv1_w"], params["conv1_b"])
    w2, b2 = pack_conv3x3(params["conv2_w"], params["conv2_b"])
    w3, b3 = pack_conv3x3(params["conv3_w"], params["conv3_b"])
    w4, b4 = pack_dense(params["conv4_w"].reshape(2, -1), params["conv4_b"], LANES)
    wf1, bf1 = pack_dense(params["fc1_w"], params["fc1_b"], KF1)
    wf2, bf2 = pack_dense(params["fc2_w"], params["fc2_b"], LANES)

    # Interior-pixel mask and the 0/1 row-gather matrix (dense NCHW-pixel order).
    mask = np.zeros((Rpad, LANES), np.float32)
    sel = np.zeros((Qpad, Rpad), np.float32)
    for b in range(batch):
        for h in range(S):
            for w in range(S):
                r = b * Hp * Wp + (h + 1) * Wp + (w + 1)
                q = b * SS + h * S + w
                mask[r, :] = 1.0
                sel[q, r] = 1.0

    return {
        "w1": w1, "b1": b1, "w2": w2, "b2": b2, "w3": w3, "b3": b3,
        "w4": w4, "b4": b4, "wf1": wf1, "bf1": bf1, "wf2": wf2, "bf2": bf2,
        "mask": jnp.asarray(mask),
        "sel": jnp.asarray(sel, dtype=jnp.bfloat16),
    }


# ---------------------------------------------------------------------------
# Forward (single fused pallas_call)
# ---------------------------------------------------------------------------
@functools.partial(jax.jit, static_argnames=("size",))
def gomoku_forward(prep, x_nchw, *, size):
    B, C, H, W = x_nchw.shape
    Hp = Wp = size + 2
    SS = size * size
    Rpad = B * Hp * Wp
    Qpad = _round_up(B * SS, 8)
    Bpad = _round_up(B, 8)
    KF1 = _round_up(2 * SS, LANES)
    G = _round_up(Wp + 1, 8)          # guard rows so every shifted slice is in bounds
    Rbuf = 2 * G + Rpad

    # Input-only glue: NCHW -> spatially padded NHWC rows, channels padded, bf16.
    x = jnp.transpose(x_nchw, (0, 2, 3, 1))
    x = jnp.pad(x, ((0, 0), (1, 1), (1, 1), (0, 0)))
    x = x.reshape(Rpad, C)
    x = jnp.pad(x, ((0, 0), (0, LANES - C))).astype(jnp.bfloat16)

    kernel = functools.partial(_fused_forward_kernel, B, size, G)

    flops = (3 * 9 * 2 * Rpad * LANES * LANES        # conv1..conv3 shifted GEMMs
             + 2 * Qpad * Rpad * LANES               # interior row gather
             + 2 * Qpad * LANES * LANES              # conv4
             + 2 * Bpad * KF1 * LANES                # fc1
             + 2 * Bpad * LANES * LANES)             # fc2
    bytes_accessed = (
        x.size * 2 + prep["mask"].size * 4 + prep["sel"].size * 2
        + sum(int(prep[k].size) * 2 for k in ("w1", "w2", "w3", "w4", "wf1", "wf2"))
        + sum(int(prep[k].size) * 4 for k in ("b1", "b2", "b3", "b4", "bf1", "bf2"))
        + Bpad * LANES * 4)

    vmem_spec = pl.BlockSpec(memory_space=pltpu.MemorySpace.VMEM)
    out = pl.pallas_call(
        kernel,
        out_shape=jax.ShapeDtypeStruct((Bpad, LANES), jnp.float32),
        in_specs=[vmem_spec] * 15,
        out_specs=vmem_spec,
        scratch_shapes=[
            pltpu.VMEM((Rbuf, LANES), jnp.bfloat16),   # activation ping
            pltpu.VMEM((Rbuf, LANES), jnp.bfloat16),   # activation pong
            pltpu.VMEM((Bpad, KF1), jnp.float32),      # flattened fc1 input
        ],
        compiler_params=pltpu.CompilerParams(vmem_limit_bytes=64 * 1024 * 1024),
        cost_estimate=pl.CostEstimate(flops=flops, transcendentals=0,
                                      bytes_accessed=bytes_accessed),
    )(x, prep["mask"], prep["sel"],
      prep["w1"], prep["b1"], prep["w2"], prep["b2"], prep["w3"], prep["b3"],
      prep["w4"], prep["b4"], prep["wf1"], prep["bf1"], prep["wf2"], prep["bf2"])
    return out[:B, :3]


# ---------------------------------------------------------------------------
# Pure-JAX reference (matches the PyTorch module)
# ---------------------------------------------------------------------------
def reference_forward(params, x_nchw, size):
    dn = ("NCHW", "OIHW", "NCHW")
    act = x_nchw
    for i in (1, 2, 3):
        w, b = params[f"conv{i}_w"], params[f"conv{i}_b"]
        act = lax.conv_general_dilated(act, w, (1, 1), ((1, 1), (1, 1)),
                                       dimension_numbers=dn)
        act = jnp.maximum(act + b[None, :, None, None], 0.0)
    act = lax.conv_general_dilated(act, params["conv4_w"], (1, 1), "VALID",
                                   dimension_numbers=dn)
    act = jnp.maximum(act + params["conv4_b"][None, :, None, None], 0.0)
    flat = act.reshape(act.shape[0], 2 * size * size)        # NCHW flatten (= .view)
    h = jnp.maximum(flat @ params["fc1_w"].T + params["fc1_b"], 0.0)
    return h @ params["fc2_w"].T + params["fc2_b"]


if __name__ == "__main__":
    size = 8      # small board
    batch = 2
    key = jax.random.PRNGKey(0)
    kx, kp = jax.random.split(key)

    x = jax.random.normal(kx, (batch, 3, size, size), jnp.float32)
    params = init_params(kp, size)
    prep = prepare_params(params, size, batch)   # one-time packing (not in hot path)

    out = gomoku_forward(prep, x, size=size)
    out = jax.block_until_ready(out)
    assert out.shape == (batch, 3), out.shape
    assert out.dtype == jnp.float32

    # Loose sanity check vs. f32 reference (kernel uses bf16 MXU operands).
    ref = reference_forward(params, x, size)
    max_diff = float(jnp.max(jnp.abs(out - ref)))
    assert max_diff < 0.3, f"kernel/reference mismatch: {max_diff}"

    print("KERNEL_OK")
</pallas_src>

<mosaic_0001>
module attributes {stable_mosaic.version = 11 : i64} {
  func.func @_fused_forward_kernel(%arg0: memref<200x128xbf16, #tpu.memory_space<vmem>>, %arg1: memref<200x128xf32, #tpu.memory_space<vmem>>, %arg2: memref<128x200xbf16, #tpu.memory_space<vmem>>, %arg3: memref<1152x128xbf16, #tpu.memory_space<vmem>>, %arg4: memref<1x128xf32, #tpu.memory_space<vmem>>, %arg5: memref<1152x128xbf16, #tpu.memory_space<vmem>>, %arg6: memref<1x128xf32, #tpu.memory_space<vmem>>, %arg7: memref<1152x128xbf16, #tpu.memory_space<vmem>>, %arg8: memref<1x128xf32, #tpu.memory_space<vmem>>, %arg9: memref<128x128xbf16, #tpu.memory_space<vmem>>, %arg10: memref<1x128xf32, #tpu.memory_space<vmem>>, %arg11: memref<128x128xbf16, #tpu.memory_space<vmem>>, %arg12: memref<1x128xf32, #tpu.memory_space<vmem>>, %arg13: memref<128x128xbf16, #tpu.memory_space<vmem>>, %arg14: memref<1x128xf32, #tpu.memory_space<vmem>>, %arg15: memref<8x128xf32, #tpu.memory_space<vmem>>, %arg16: memref<232x128xbf16, #tpu.memory_space<vmem>>, %arg17: memref<232x128xbf16, #tpu.memory_space<vmem>>, %arg18: memref<8x128xf32, #tpu.memory_space<vmem>>) attributes {dimension_semantics = [], scalar_prefetch = 0 : i64, scratch_operands = 3 : i64, tpu.core_type = #tpu.core_type<tc>} {
    %cst = arith.constant 0.000000e+00 : bf16
    %0 = vector.broadcast %cst : bf16 to vector<232x128xbf16>
    %c0 = arith.constant 0 : index
    %c0_0 = arith.constant 0 : index
    %1 = vector.load %arg16[%c0, %c0_0] : memref<232x128xbf16, #tpu.memory_space<vmem>>, vector<232x128xbf16>
    tpu.vector_store %arg16[%c0, %c0_0], %0 {strides = array<i32>} : memref<232x128xbf16, #tpu.memory_space<vmem>>, vector<232x128xbf16>,
    %cst_1 = arith.constant 0.000000e+00 : bf16
    %2 = vector.broadcast %cst_1 : bf16 to vector<232x128xbf16>
    %c0_2 = arith.constant 0 : index
    %c0_3 = arith.constant 0 : index
    %3 = vector.load %arg17[%c0_2, %c0_3] : memref<232x128xbf16, #tpu.memory_space<vmem>>, vector<232x128xbf16>
    tpu.vector_store %arg17[%c0_2, %c0_3], %2 {strides = array<i32>} : memref<232x128xbf16, #tpu.memory_space<vmem>>, vector<232x128xbf16>,
    %c0_4 = arith.constant 0 : index
    %c0_5 = arith.constant 0 : index
    %4 = vector.load %arg0[%c0_4, %c0_5] : memref<200x128xbf16, #tpu.memory_space<vmem>>, vector<200x128xbf16>
    %c16 = arith.constant 16 : index
    %c0_6 = arith.constant 0 : index
    %5 = vector.load %arg16[%c16, %c0_6] : memref<232x128xbf16, #tpu.memory_space<vmem>>, vector<200x128xbf16>
    tpu.vector_store %arg16[%c16, %c0_6], %4 {strides = array<i32>} : memref<232x128xbf16, #tpu.memory_space<vmem>>, vector<200x128xbf16>,
    %c5 = arith.constant 5 : index
    %c0_7 = arith.constant 0 : index
    %6 = vector.load %arg16[%c5, %c0_7] : memref<232x128xbf16, #tpu.memory_space<vmem>>, vector<200x128xbf16>
    %c0_8 = arith.constant 0 : index
    %c0_9 = arith.constant 0 : index
    %7 = vector.load %arg3[%c0_8, %c0_9] : memref<1152x128xbf16, #tpu.memory_space<vmem>>, vector<128x128xbf16>
    %cst_10 = arith.constant dense<0.000000e+00> : vector<200x128xf32>
    %8 = tpu.matmul %6, %7, %cst_10 {dimension_numbers = #tpu.dot_dimension_numbers<[1], [0], [0], [1], [0, 0, 1, 1], [], []>} : vector<200x128xbf16>, vector<128x128xbf16>, vector<200x128xf32> -> vector<200x128xf32>
    %c6 = arith.constant 6 : index
    %c0_11 = arith.constant 0 : index
    %9 = vector.load %arg16[%c6, %c0_11] : memref<232x128xbf16, #tpu.memory_space<vmem>>, vector<200x128xbf16>
    %c128 = arith.constant 128 : index
    %c0_12 = arith.constant 0 : index
    %10 = vector.load %arg3[%c128, %c0_12] : memref<1152x128xbf16, #tpu.memory_space<vmem>>, vector<128x128xbf16>
    %cst_13 = arith.constant dense<0.000000e+00> : vector<200x128xf32>
    %11 = tpu.matmul %9, %10, %cst_13 {dimension_numbers = #tpu.dot_dimension_numbers<[1], [0], [0], [1], [0, 0, 1, 1], [], []>} : vector<200x128xbf16>, vector<128x128xbf16>, vector<200x128xf32> -> vector<200x128xf32>
    %12 = arith.addf %8, %11 : vector<200x128xf32>
    %c7 = arith.constant 7 : index
    %c0_14 = arith.constant 0 : index
    %13 = vector.load %arg16[%c7, %c0_14] : memref<232x128xbf16, #tpu.memory_space<vmem>>, vector<200x128xbf16>
    %c256 = arith.constant 256 : index
    %c0_15 = arith.constant 0 : index
    %14 = vector.load %arg3[%c256, %c0_15] : memref<1152x128xbf16, #tpu.memory_space<vmem>>, vector<128x128xbf16>
    %cst_16 = arith.constant dense<0.000000e+00> : vector<200x128xf32>
    %15 = tpu.matmul %13, %14, %cst_16 {dimension_numbers = #tpu.dot_dimension_numbers<[1], [0], [0], [1], [0, 0, 1, 1], [], []>} : vector<200x128xbf16>, vector<128x128xbf16>, vector<200x128xf32> -> vector<200x128xf32>
    %16 = arith.addf %12, %15 : vector<200x128xf32>
    %c15 = arith.constant 15 : index
    %c0_17 = arith.constant 0 : index
    %17 = vector.load %arg16[%c15, %c0_17] : memref<232x128xbf16, #tpu.memory_space<vmem>>, vector<200x128xbf16>
    %c384 = arith.constant 384 : index
    %c0_18 = arith.constant 0 : index
    %18 = vector.load %arg3[%c384, %c0_18] : memref<1152x128xbf16, #tpu.memory_space<vmem>>, vector<128x128xbf16>
    %cst_19 = arith.constant dense<0.000000e+00> : vector<200x128xf32>
    %19 = tpu.matmul %17, %18, %cst_19 {dimension_numbers = #tpu.dot_dimension_numbers<[1], [0], [0], [1], [0, 0, 1, 1], [], []>} : vector<200x128xbf16>, vector<128x128xbf16>, vector<200x128xf32> -> vector<200x128xf32>
    %20 = arith.addf %16, %19 : vector<200x128xf32>
    %c16_20 = arith.constant 16 : index
    %c0_21 = arith.constant 0 : index
    %21 = vector.load %arg16[%c16_20, %c0_21] : memref<232x128xbf16, #tpu.memory_space<vmem>>, vector<200x128xbf16>
    %c512 = arith.constant 512 : index
    %c0_22 = arith.constant 0 : index
    %22 = vector.load %arg3[%c512, %c0_22] : memref<1152x128xbf16, #tpu.memory_space<vmem>>, vector<128x128xbf16>
    %cst_23 = arith.constant dense<0.000000e+00> : vector<200x128xf32>
    %23 = tpu.matmul %21, %22, %cst_23 {dimension_numbers = #tpu.dot_dimension_numbers<[1], [0], [0], [1], [0, 0, 1, 1], [], []>} : vector<200x128xbf16>, vector<128x128xbf16>, vector<200x128xf32> -> vector<200x128xf32>
    %24 = arith.addf %20, %23 : vector<200x128xf32>
    %c17 = arith.constant 17 : index
    %c0_24 = arith.constant 0 : index
    %25 = vector.load %arg16[%c17, %c0_24] : memref<232x128xbf16, #tpu.memory_space<vmem>>, vector<200x128xbf16>
    %c640 = arith.constant 640 : index
    %c0_25 = arith.constant 0 : index
    %26 = vector.load %arg3[%c640, %c0_25] : memref<1152x128xbf16, #tpu.memory_space<vmem>>, vector<128x128xbf16>
    %cst_26 = arith.constant dense<0.000000e+00> : vector<200x128xf32>
    %27 = tpu.matmul %25, %26, %cst_26 {dimension_numbers = #tpu.dot_dimension_numbers<[1], [0], [0], [1], [0, 0, 1, 1], [], []>} : vector<200x128xbf16>, vector<128x128xbf16>, vector<200x128xf32> -> vector<200x128xf32>
    %28 = arith.addf %24, %27 : vector<200x128xf32>
    %c25 = arith.constant 25 : index
    %c0_27 = arith.constant 0 : index
    %29 = vector.load %arg16[%c25, %c0_27] : memref<232x128xbf16, #tpu.memory_space<vmem>>, vector<200x128xbf16>
    %c768 = arith.constant 768 : index
    %c0_28 = arith.constant 0 : index
    %30 = vector.load %arg3[%c768, %c0_28] : memref<1152x128xbf16, #tpu.memory_space<vmem>>, vector<128x128xbf16>
    %cst_29 = arith.constant dense<0.000000e+00> : vector<200x128xf32>
    %31 = tpu.matmul %29, %30, %cst_29 {dimension_numbers = #tpu.dot_dimension_numbers<[1], [0], [0], [1], [0, 0, 1, 1], [], []>} : vector<200x128xbf16>, vector<128x128xbf16>, vector<200x128xf32> -> vector<200x128xf32>
    %32 = arith.addf %28, %31 : vector<200x128xf32>
    %c26 = arith.constant 26 : index
    %c0_30 = arith.constant 0 : index
    %33 = vector.load %arg16[%c26, %c0_30] : memref<232x128xbf16, #tpu.memory_space<vmem>>, vector<200x128xbf16>
    %c896 = arith.constant 896 : index
    %c0_31 = arith.constant 0 : index
    %34 = vector.load %arg3[%c896, %c0_31] : memref<1152x128xbf16, #tpu.memory_space<vmem>>, vector<128x128xbf16>
    %cst_32 = arith.constant dense<0.000000e+00> : vector<200x128xf32>
    %35 = tpu.matmul %33, %34, %cst_32 {dimension_numbers = #tpu.dot_dimension_numbers<[1], [0], [0], [1], [0, 0, 1, 1], [], []>} : vector<200x128xbf16>, vector<128x128xbf16>, vector<200x128xf32> -> vector<200x128xf32>
    %36 = arith.addf %32, %35 : vector<200x128xf32>
    %c27 = arith.constant 27 : index
    %c0_33 = arith.constant 0 : index
    %37 = vector.load %arg16[%c27, %c0_33] : memref<232x128xbf16, #tpu.memory_space<vmem>>, vector<200x128xbf16>
    %c1024 = arith.constant 1024 : index
    %c0_34 = arith.constant 0 : index
    %38 = vector.load %arg3[%c1024, %c0_34] : memref<1152x128xbf16, #tpu.memory_space<vmem>>, vector<128x128xbf16>
    %cst_35 = arith.constant dense<0.000000e+00> : vector<200x128xf32>
    %39 = tpu.matmul %37, %38, %cst_35 {dimension_numbers = #tpu.dot_dimension_numbers<[1], [0], [0], [1], [0, 0, 1, 1], [], []>} : vector<200x128xbf16>, vector<128x128xbf16>, vector<200x128xf32> -> vector<200x128xf32>
    %40 = arith.addf %36, %39 : vector<200x128xf32>
    %c0_36 = arith.constant 0 : index
    %c0_37 = arith.constant 0 : index
    %41 = vector.load %arg4[%c0_36, %c0_37] : memref<1x128xf32, #tpu.memory_space<vmem>>, vector<1x128xf32>
    %42 = vector.broadcast %41 : vector<1x128xf32> to vector<200x128xf32>
    %43 = arith.addf %40, %42 : vector<200x128xf32>
    %cst_38 = arith.constant 0.000000e+00 : f32
    %44 = vector.broadcast %cst_38 : f32 to vector<200x128xf32>
    %45 = arith.maximumf %43, %44 : vector<200x128xf32>
    %c0_39 = arith.constant 0 : index
    %c0_40 = arith.constant 0 : index
    %46 = vector.load %arg1[%c0_39, %c0_40] : memref<200x128xf32, #tpu.memory_space<vmem>>, vector<200x128xf32>
    %cst_41 = arith.constant 0.000000e+00 : f32
    %47 = vector.broadcast %cst_41 : f32 to vector<200x128xf32>
    %48 = arith.cmpf ogt, %46, %47 : vector<200x128xf32>
    %cst_42 = arith.constant 0.000000e+00 : f32
    %49 = vector.broadcast %cst_42 : f32 to vector<200x128xf32>
    %50 = arith.select %48, %45, %49 : vector<200x128xi1>, vector<200x128xf32>
    %51 = arith.truncf %50 : vector<200x128xf32> to vector<200x128xbf16>
    %c16_43 = arith.constant 16 : index
    %c0_44 = arith.constant 0 : index
    %52 = vector.load %arg17[%c16_43, %c0_44] : memref<232x128xbf16, #tpu.memory_space<vmem>>, vector<200x128xbf16>
    tpu.vector_store %arg17[%c16_43, %c0_44], %51 {strides = array<i32>} : memref<232x128xbf16, #tpu.memory_space<vmem>>, vector<200x128xbf16>,
    %c5_45 = arith.constant 5 : index
    %c0_46 = arith.constant 0 : index
    %53 = vector.load %arg17[%c5_45, %c0_46] : memref<232x128xbf16, #tpu.memory_space<vmem>>, vector<200x128xbf16>
    %c0_47 = arith.constant 0 : index
    %c0_48 = arith.constant 0 : index
    %54 = vector.load %arg5[%c0_47, %c0_48] : memref<1152x128xbf16, #tpu.memory_space<vmem>>, vector<128x128xbf16>
    %cst_49 = arith.constant dense<0.000000e+00> : vector<200x128xf32>
    %55 = tpu.matmul %53, %54, %cst_49 {dimension_numbers = #tpu.dot_dimension_numbers<[1], [0], [0], [1], [0, 0, 1, 1], [], []>} : vector<200x128xbf16>, vector<128x128xbf16>, vector<200x128xf32> -> vector<200x128xf32>
    %c6_50 = arith.constant 6 : index
    %c0_51 = arith.constant 0 : index
    %56 = vector.load %arg17[%c6_50, %c0_51] : memref<232x128xbf16, #tpu.memory_space<vmem>>, vector<200x128xbf16>
    %c128_52 = arith.constant 128 : index
    %c0_53 = arith.constant 0 : index
    %57 = vector.load %arg5[%c128_52, %c0_53] : memref<1152x128xbf16, #tpu.memory_space<vmem>>, vector<128x128xbf16>
    %cst_54 = arith.constant dense<0.000000e+00> : vector<200x128xf32>
    %58 = tpu.matmul %56, %57, %cst_54 {dimension_numbers = #tpu.dot_dimension_numbers<[1], [0], [0], [1], [0, 0, 1, 1], [], []>} : vector<200x128xbf16>, vector<128x128xbf16>, vector<200x128xf32> -> vector<200x128xf32>
    %59 = arith.addf %55, %58 : vector<200x128xf32>
    %c7_55 = arith.constant 7 : index
    %c0_56 = arith.constant 0 : index
    %60 = vector.load %arg17[%c7_55, %c0_56] : memref<232x128xbf16, #tpu.memory_space<vmem>>, vector<200x128xbf16>
    %c256_57 = arith.constant 256 : index
    %c0_58 = arith.constant 0 : index
    %61 = vector.load %arg5[%c256_57, %c0_58] : memref<1152x128xbf16, #tpu.memory_space<vmem>>, vector<128x128xbf16>
    %cst_59 = arith.constant dense<0.000000e+00> : vector<200x128xf32>
    %62 = tpu.matmul %60, %61, %cst_59 {dimension_numbers = #tpu.dot_dimension_numbers<[1], [0], [0], [1], [0, 0, 1, 1], [], []>} : vector<200x128xbf16>, vector<128x128xbf16>, vector<200x128xf32> -> vector<200x128xf32>
    %63 = arith.addf %59, %62 : vector<200x128xf32>
    %c15_60 = arith.constant 15 : index
    %c0_61 = arith.constant 0 : index
    %64 = vector.load %arg17[%c15_60, %c0_61] : memref<232x128xbf16, #tpu.memory_space<vmem>>, vector<200x128xbf16>
    %c384_62 = arith.constant 384 : index
    %c0_63 = arith.constant 0 : index
    %65 = vector.load %arg5[%c384_62, %c0_63] : memref<1152x128xbf16, #tpu.memory_space<vmem>>, vector<128x128xbf16>
    %cst_64 = arith.constant dense<0.000000e+00> : vector<200x128xf32>
    %66 = tpu.matmul %64, %65, %cst_64 {dimension_numbers = #tpu.dot_dimension_numbers<[1], [0], [0], [1], [0, 0, 1, 1], [], []>} : vector<200x128xbf16>, vector<128x128xbf16>, vector<200x128xf32> -> vector<200x128xf32>
    %67 = arith.addf %63, %66 : vector<200x128xf32>
    %c16_65 = arith.constant 16 : index
    %c0_66 = arith.constant 0 : index
    %68 = vector.load %arg17[%c16_65, %c0_66] : memref<232x128xbf16, #tpu.memory_space<vmem>>, vector<200x128xbf16>
    %c512_67 = arith.constant 512 : index
    %c0_68 = arith.constant 0 : index
    %69 = vector.load %arg5[%c512_67, %c0_68] : memref<1152x128xbf16, #tpu.memory_space<vmem>>, vector<128x128xbf16>
    %cst_69 = arith.constant dense<0.000000e+00> : vector<200x128xf32>
    %70 = tpu.matmul %68, %69, %cst_69 {dimension_numbers = #tpu.dot_dimension_numbers<[1], [0], [0], [1], [0, 0, 1, 1], [], []>} : vector<200x128xbf16>, vector<128x128xbf16>, vector<200x128xf32> -> vector<200x128xf32>
    %71 = arith.addf %67, %70 : vector<200x128xf32>
    %c17_70 = arith.constant 17 : index
    %c0_71 = arith.constant 0 : index
    %72 = vector.load %arg17[%c17_70, %c0_71] : memref<232x128xbf16, #tpu.memory_space<vmem>>, vector<200x128xbf16>
    %c640_72 = arith.constant 640 : index
    %c0_73 = arith.constant 0 : index
    %73 = vector.load %arg5[%c640_72, %c0_73] : memref<1152x128xbf16, #tpu.memory_space<vmem>>, vector<128x128xbf16>
    %cst_74 = arith.constant dense<0.000000e+00> : vector<200x128xf32>
    %74 = tpu.matmul %72, %73, %cst_74 {dimension_numbers = #tpu.dot_dimension_numbers<[1], [0], [0], [1], [0, 0, 1, 1], [], []>} : vector<200x128xbf16>, vector<128x128xbf16>, vector<200x128xf32> -> vector<200x128xf32>
    %75 = arith.addf %71, %74 : vector<200x128xf32>
    %c25_75 = arith.constant 25 : index
    %c0_76 = arith.constant 0 : index
    %76 = vector.load %arg17[%c25_75, %c0_76] : memref<232x128xbf16, #tpu.memory_space<vmem>>, vector<200x128xbf16>
    %c768_77 = arith.constant 768 : index
    %c0_78 = arith.constant 0 : index
    %77 = vector.load %arg5[%c768_77, %c0_78] : memref<1152x128xbf16, #tpu.memory_space<vmem>>, vector<128x128xbf16>
    %cst_79 = arith.constant dense<0.000000e+00> : vector<200x128xf32>
    %78 = tpu.matmul %76, %77, %cst_79 {dimension_numbers = #tpu.dot_dimension_numbers<[1], [0], [0], [1], [0, 0, 1, 1], [], []>} : vector<200x128xbf16>, vector<128x128xbf16>, vector<200x128xf32> -> vector<200x128xf32>
    %79 = arith.addf %75, %78 : vector<200x128xf32>
    %c26_80 = arith.constant 26 : index
    %c0_81 = arith.constant 0 : index
    %80 = vector.load %arg17[%c26_80, %c0_81] : memref<232x128xbf16, #tpu.memory_space<vmem>>, vector<200x128xbf16>
    %c896_82 = arith.constant 896 : index
    %c0_83 = arith.constant 0 : index
    %81 = vector.load %arg5[%c896_82, %c0_83] : memref<1152x128xbf16, #tpu.memory_space<vmem>>, vector<128x128xbf16>
    %cst_84 = arith.constant dense<0.000000e+00> : vector<200x128xf32>
    %82 = tpu.matmul %80, %81, %cst_84 {dimension_numbers = #tpu.dot_dimension_numbers<[1], [0], [0], [1], [0, 0, 1, 1], [], []>} : vector<200x128xbf16>, vector<128x128xbf16>, vector<200x128xf32> -> vector<200x128xf32>
    %83 = arith.addf %79, %82 : vector<200x128xf32>
    %c27_85 = arith.constant 27 : index
    %c0_86 = arith.constant 0 : index
    %84 = vector.load %arg17[%c27_85, %c0_86] : memref<232x128xbf16, #tpu.memory_space<vmem>>, vector<200x128xbf16>
    %c1024_87 = arith.constant 1024 : index
    %c0_88 = arith.constant 0 : index
    %85 = vector.load %arg5[%c1024_87, %c0_88] : memref<1152x128xbf16, #tpu.memory_space<vmem>>, vector<128x128xbf16>
    %cst_89 = arith.constant dense<0.000000e+00> : vector<200x128xf32>
    %86 = tpu.matmul %84, %85, %cst_89 {dimension_numbers = #tpu.dot_dimension_numbers<[1], [0], [0], [1], [0, 0, 1, 1], [], []>} : vector<200x128xbf16>, vector<128x128xbf16>, vector<200x128xf32> -> vector<200x128xf32>
    %87 = arith.addf %83, %86 : vector<200x128xf32>
    %c0_90 = arith.constant 0 : index
    %c0_91 = arith.constant 0 : index
    %88 = vector.load %arg6[%c0_90, %c0_91] : memref<1x128xf32, #tpu.memory_space<vmem>>, vector<1x128xf32>
    %89 = vector.broadcast %88 : vector<1x128xf32> to vector<200x128xf32>
    %90 = arith.addf %87, %89 : vector<200x128xf32>
    %cst_92 = arith.constant 0.000000e+00 : f32
    %91 = vector.broadcast %cst_92 : f32 to vector<200x128xf32>
    %92 = arith.maximumf %90, %91 : vector<200x128xf32>
    %c0_93 = arith.constant 0 : index
    %c0_94 = arith.constant 0 : index
    %93 = vector.load %arg1[%c0_93, %c0_94] : memref<200x128xf32, #tpu.memory_space<vmem>>, vector<200x128xf32>
    %cst_95 = arith.constant 0.000000e+00 : f32
    %94 = vector.broadcast %cst_95 : f32 to vector<200x128xf32>
    %95 = arith.cmpf ogt, %93, %94 : vector<200x128xf32>
    %cst_96 = arith.constant 0.000000e+00 : f32
    %96 = vector.broadcast %cst_96 : f32 to vector<200x128xf32>
    %97 = arith.select %95, %92, %96 : vector<200x128xi1>, vector<200x128xf32>
    %98 = arith.truncf %97 : vector<200x128xf32> to vector<200x128xbf16>
    %c16_97 = arith.constant 16 : index
    %c0_98 = arith.constant 0 : index
    %99 = vector.load %arg16[%c16_97, %c0_98] : memref<232x128xbf16, #tpu.memory_space<vmem>>, vector<200x128xbf16>
    tpu.vector_store %arg16[%c16_97, %c0_98], %98 {strides = array<i32>} : memref<232x128xbf16, #tpu.memory_space<vmem>>, vector<200x128xbf16>,
    %c5_99 = arith.constant 5 : index
    %c0_100 = arith.constant 0 : index
    %100 = vector.load %arg16[%c5_99, %c0_100] : memref<232x128xbf16, #tpu.memory_space<vmem>>, vector<200x128xbf16>
    %c0_101 = arith.constant 0 : index
    %c0_102 = arith.constant 0 : index
    %101 = vector.load %arg7[%c0_101, %c0_102] : memref<1152x128xbf16, #tpu.memory_space<vmem>>, vector<128x128xbf16>
    %cst_103 = arith.constant dense<0.000000e+00> : vector<200x128xf32>
    %102 = tpu.matmul %100, %101, %cst_103 {dimension_numbers = #tpu.dot_dimension_numbers<[1], [0], [0], [1], [0, 0, 1, 1], [], []>} : vector<200x128xbf16>, vector<128x128xbf16>, vector<200x128xf32> -> vector<200x128xf32>
    %c6_104 = arith.constant 6 : index
    %c0_105 = arith.constant 0 : index
    %103 = vector.load %arg16[%c6_104, %c0_105] : memref<232x128xbf16, #tpu.memory_space<vmem>>, vector<200x128xbf16>
    %c128_106 = arith.constant 128 : index
    %c0_107 = arith.constant 0 : index
    %104 = vector.load %arg7[%c128_106, %c0_107] : memref<1152x128xbf16, #tpu.memory_space<vmem>>, vector<128x128xbf16>
    %cst_108 = arith.constant dense<0.000000e+00> : vector<200x128xf32>
    %105 = tpu.matmul %103, %104, %cst_108 {dimension_numbers = #tpu.dot_dimension_numbers<[1], [0], [0], [1], [0, 0, 1, 1], [], []>} : vector<200x128xbf16>, vector<128x128xbf16>, vector<200x128xf32> -> vector<200x128xf32>
    %106 = arith.addf %102, %105 : vector<200x128xf32>
    %c7_109 = arith.constant 7 : index
    %c0_110 = arith.constant 0 : index
    %107 = vector.load %arg16[%c7_109, %c0_110] : memref<232x128xbf16, #tpu.memory_space<vmem>>, vector<200x128xbf16>
    %c256_111 = arith.constant 256 : index
    %c0_112 = arith.constant 0 : index
    %108 = vector.load %arg7[%c256_111, %c0_112] : memref<1152x128xbf16, #tpu.memory_space<vmem>>, vector<128x128xbf16>
    %cst_113 = arith.constant dense<0.000000e+00> : vector<200x128xf32>
    %109 = tpu.matmul %107, %108, %cst_113 {dimension_numbers = #tpu.dot_dimension_numbers<[1], [0], [0], [1], [0, 0, 1, 1], [], []>} : vector<200x128xbf16>, vector<128x128xbf16>, vector<200x128xf32> -> vector<200x128xf32>
    %110 = arith.addf %106, %109 : vector<200x128xf32>
    %c15_114 = arith.constant 15 : index
    %c0_115 = arith.constant 0 : index
    %111 = vector.load %arg16[%c15_114, %c0_115] : memref<232x128xbf16, #tpu.memory_space<vmem>>, vector<200x128xbf16>
    %c384_116 = arith.constant 384 : index
    %c0_117 = arith.constant 0 : index
    %112 = vector.load %arg7[%c384_116, %c0_117] : memref<1152x128xbf16, #tpu.memory_space<vmem>>, vector<128x128xbf16>
    %cst_118 = arith.constant dense<0.000000e+00> : vector<200x128xf32>
    %113 = tpu.matmul %111, %112, %cst_118 {dimension_numbers = #tpu.dot_dimension_numbers<[1], [0], [0], [1], [0, 0, 1, 1], [], []>} : vector<200x128xbf16>, vector<128x128xbf16>, vector<200x128xf32> -> vector<200x128xf32>
    %114 = arith.addf %110, %113 : vector<200x128xf32>
    %c16_119 = arith.constant 16 : index
    %c0_120 = arith.constant 0 : index
    %115 = vector.load %arg16[%c16_119, %c0_120] : memref<232x128xbf16, #tpu.memory_space<vmem>>, vector<200x128xbf16>
    %c512_121 = arith.constant 512 : index
    %c0_122 = arith.constant 0 : index
    %116 = vector.load %arg7[%c512_121, %c0_122] : memref<1152x128xbf16, #tpu.memory_space<vmem>>, vector<128x128xbf16>
    %cst_123 = arith.constant dense<0.000000e+00> : vector<200x128xf32>
    %117 = tpu.matmul %115, %116, %cst_123 {dimension_numbers = #tpu.dot_dimension_numbers<[1], [0], [0], [1], [0, 0, 1, 1], [], []>} : vector<200x128xbf16>, vector<128x128xbf16>, vector<200x128xf32> -> vector<200x128xf32>
    %118 = arith.addf %114, %117 : vector<200x128xf32>
    %c17_124 = arith.constant 17 : index
    %c0_125 = arith.constant 0 : index
    %119 = vector.load %arg16[%c17_124, %c0_125] : memref<232x128xbf16, #tpu.memory_space<vmem>>, vector<200x128xbf16>
    %c640_126 = arith.constant 640 : index
    %c0_127 = arith.constant 0 : index
    %120 = vector.load %arg7[%c640_126, %c0_127] : memref<1152x128xbf16, #tpu.memory_space<vmem>>, vector<128x128xbf16>
    %cst_128 = arith.constant dense<0.000000e+00> : vector<200x128xf32>
    %121 = tpu.matmul %119, %120, %cst_128 {dimension_numbers = #tpu.dot_dimension_numbers<[1], [0], [0], [1], [0, 0, 1, 1], [], []>} : vector<200x128xbf16>, vector<128x128xbf16>, vector<200x128xf32> -> vector<200x128xf32>
    %122 = arith.addf %118, %121 : vector<200x128xf32>
    %c25_129 = arith.constant 25 : index
    %c0_130 = arith.constant 0 : index
    %123 = vector.load %arg16[%c25_129, %c0_130] : memref<232x128xbf16, #tpu.memory_space<vmem>>, vector<200x128xbf16>
    %c768_131 = arith.constant 768 : index
    %c0_132 = arith.constant 0 : index
    %124 = vector.load %arg7[%c768_131, %c0_132] : memref<1152x128xbf16, #tpu.memory_space<vmem>>, vector<128x128xbf16>
    %cst_133 = arith.constant dense<0.000000e+00> : vector<200x128xf32>
    %125 = tpu.matmul %123, %124, %cst_133 {dimension_numbers = #tpu.dot_dimension_numbers<[1], [0], [0], [1], [0, 0, 1, 1], [], []>} : vector<200x128xbf16>, vector<128x128xbf16>, vector<200x128xf32> -> vector<200x128xf32>
    %126 = arith.addf %122, %125 : vector<200x128xf32>
    %c26_134 = arith.constant 26 : index
    %c0_135 = arith.constant 0 : index
    %127 = vector.load %arg16[%c26_134, %c0_135] : memref<232x128xbf16, #tpu.memory_space<vmem>>, vector<200x128xbf16>
    %c896_136 = arith.constant 896 : index
    %c0_137 = arith.constant 0 : index
    %128 = vector.load %arg7[%c896_136, %c0_137] : memref<1152x128xbf16, #tpu.memory_space<vmem>>, vector<128x128xbf16>
    %cst_138 = arith.constant dense<0.000000e+00> : vector<200x128xf32>
    %129 = tpu.matmul %127, %128, %cst_138 {dimension_numbers = #tpu.dot_dimension_numbers<[1], [0], [0], [1], [0, 0, 1, 1], [], []>} : vector<200x128xbf16>, vector<128x128xbf16>, vector<200x128xf32> -> vector<200x128xf32>
    %130 = arith.addf %126, %129 : vector<200x128xf32>
    %c27_139 = arith.constant 27 : index
    %c0_140 = arith.constant 0 : index
    %131 = vector.load %arg16[%c27_139, %c0_140] : memref<232x128xbf16, #tpu.memory_space<vmem>>, vector<200x128xbf16>
    %c1024_141 = arith.constant 1024 : index
    %c0_142 = arith.constant 0 : index
    %132 = vector.load %arg7[%c1024_141, %c0_142] : memref<1152x128xbf16, #tpu.memory_space<vmem>>, vector<128x128xbf16>
    %cst_143 = arith.constant dense<0.000000e+00> : vector<200x128xf32>
    %133 = tpu.matmul %131, %132, %cst_143 {dimension_numbers = #tpu.dot_dimension_numbers<[1], [0], [0], [1], [0, 0, 1, 1], [], []>} : vector<200x128xbf16>, vector<128x128xbf16>, vector<200x128xf32> -> vector<200x128xf32>
    %134 = arith.addf %130, %133 : vector<200x128xf32>
    %c0_144 = arith.constant 0 : index
    %c0_145 = arith.constant 0 : index
    %135 = vector.load %arg8[%c0_144, %c0_145] : memref<1x128xf32, #tpu.memory_space<vmem>>, vector<1x128xf32>
    %136 = vector.broadcast %135 : vector<1x128xf32> to vector<200x128xf32>
    %137 = arith.addf %134, %136 : vector<200x128xf32>
    %cst_146 = arith.constant 0.000000e+00 : f32
    %138 = vector.broadcast %cst_146 : f32 to vector<200x128xf32>
    %139 = arith.maximumf %137, %138 : vector<200x128xf32>
    %c0_147 = arith.constant 0 : index
    %c0_148 = arith.constant 0 : index
    %140 = vector.load %arg1[%c0_147, %c0_148] : memref<200x128xf32, #tpu.memory_space<vmem>>, vector<200x128xf32>
    %cst_149 = arith.constant 0.000000e+00 : f32
    %141 = vector.broadcast %cst_149 : f32 to vector<200x128xf32>
    %142 = arith.cmpf ogt, %140, %141 : vector<200x128xf32>
    %cst_150 = arith.constant 0.000000e+00 : f32
    %143 = vector.broadcast %cst_150 : f32 to vector<200x128xf32>
    %144 = arith.select %142, %139, %143 : vector<200x128xi1>, vector<200x128xf32>
    %145 = arith.truncf %144 : vector<200x128xf32> to vector<200x128xbf16>
    %c16_151 = arith.constant 16 : index
    %c0_152 = arith.constant 0 : index
    %146 = vector.load %arg17[%c16_151, %c0_152] : memref<232x128xbf16, #tpu.memory_space<vmem>>, vector<200x128xbf16>
    tpu.vector_store %arg17[%c16_151, %c0_152], %145 {strides = array<i32>} : memref<232x128xbf16, #tpu.memory_space<vmem>>, vector<200x128xbf16>,
    %c0_153 = arith.constant 0 : index
    %c0_154 = arith.constant 0 : index
    %147 = vector.load %arg2[%c0_153, %c0_154] : memref<128x200xbf16, #tpu.memory_space<vmem>>, vector<128x200xbf16>
    %c16_155 = arith.constant 16 : index
    %c0_156 = arith.constant 0 : index
    %148 = vector.load %arg17[%c16_155, %c0_156] : memref<232x128xbf16, #tpu.memory_space<vmem>>, vector<200x128xbf16>
    %cst_157 = arith.constant dense<0.000000e+00> : vector<128x128xf32>
    %149 = tpu.matmul %147, %148, %cst_157 {dimension_numbers = #tpu.dot_dimension_numbers<[1], [0], [0], [1], [0, 0, 1, 1], [], []>} : vector<128x200xbf16>, vector<200x128xbf16>, vector<128x128xf32> -> vector<128x128xf32>
    %150 = arith.truncf %149 : vector<128x128xf32> to vector<128x128xbf16>
    %c0_158 = arith.constant 0 : index
    %c0_159 = arith.constant 0 : index
    %151 = vector.load %arg9[%c0_158, %c0_159] : memref<128x128xbf16, #tpu.memory_space<vmem>>, vector<128x128xbf16>
    %cst_160 = arith.constant dense<0.000000e+00> : vector<128x128xf32>
    %152 = tpu.matmul %150, %151, %cst_160 {dimension_numbers = #tpu.dot_dimension_numbers<[1], [0], [0], [1], [0, 0, 1, 1], [], []>} : vector<128x128xbf16>, vector<128x128xbf16>, vector<128x128xf32> -> vector<128x128xf32>
    %c0_161 = arith.constant 0 : index
    %c0_162 = arith.constant 0 : index
    %153 = vector.load %arg10[%c0_161, %c0_162] : memref<1x128xf32, #tpu.memory_space<vmem>>, vector<1x128xf32>
    %154 = vector.broadcast %153 : vector<1x128xf32> to vector<128x128xf32>
    %155 = arith.addf %152, %154 : vector<128x128xf32>
    %cst_163 = arith.constant 0.000000e+00 : f32
    %156 = vector.broadcast %cst_163 : f32 to vector<128x128xf32>
    %157 = arith.maximumf %155, %156 : vector<128x128xf32>
    %158 = tpu.transpose %157, [1, 0] : vector<128x128xf32> -> vector<128x128xf32>
    %cst_164 = arith.constant 0.000000e+00 : f32
    %159 = vector.broadcast %cst_164 : f32 to vector<8x128xf32>
    %c0_165 = arith.constant 0 : index
    %c0_166 = arith.constant 0 : index
    %160 = vector.load %arg18[%c0_165, %c0_166] : memref<8x128xf32, #tpu.memory_space<vmem>>, vector<8x128xf32>
    tpu.vector_store %arg18[%c0_165, %c0_166], %159 {strides = array<i32>} : memref<8x128xf32, #tpu.memory_space<vmem>>, vector<8x128xf32>,
    %161 = vector.extract_strided_slice %158 {offsets = [0, 0], sizes = [1, 64], strides = [1, 1]} : vector<128x128xf32> to vector<1x64xf32>
    %c0_167 = arith.constant 0 : index
    %c0_168 = arith.constant 0 : index
    %162 = vector.load %arg18[%c0_167, %c0_168] : memref<8x128xf32, #tpu.memory_space<vmem>>, vector<1x64xf32>
    tpu.vector_store %arg18[%c0_167, %c0_168], %161 {strides = array<i32>} : memref<8x128xf32, #tpu.memory_space<vmem>>, vector<1x64xf32>,
    %163 = vector.extract_strided_slice %158 {offsets = [1, 0], sizes = [1, 64], strides = [1, 1]} : vector<128x128xf32> to vector<1x64xf32>
    %c0_169 = arith.constant 0 : index
    %c64 = arith.constant 64 : index
    %164 = vector.load %arg18[%c0_169, %c64] : memref<8x128xf32, #tpu.memory_space<vmem>>, vector<1x64xf32>
    tpu.vector_store %arg18[%c0_169, %c64], %163 {strides = array<i32>} : memref<8x128xf32, #tpu.memory_space<vmem>>, vector<1x64xf32>,
    %165 = vector.extract_strided_slice %158 {offsets = [0, 64], sizes = [1, 64], strides = [1, 1]} : vector<128x128xf32> to vector<1x64xf32>
    %c1 = arith.constant 1 : index
    %c0_170 = arith.constant 0 : index
    %166 = vector.load %arg18[%c1, %c0_170] : memref<8x128xf32, #tpu.memory_space<vmem>>, vector<1x64xf32>
    tpu.vector_store %arg18[%c1, %c0_170], %165 {strides = array<i32>} : memref<8x128xf32, #tpu.memory_space<vmem>>, vector<1x64xf32>,
    %167 = vector.extract_strided_slice %158 {offsets = [1, 64], sizes = [1, 64], strides = [1, 1]} : vector<128x128xf32> to vector<1x64xf32>
    %c1_171 = arith.constant 1 : index
    %c64_172 = arith.constant 64 : index
    %168 = vector.load %arg18[%c1_171, %c64_172] : memref<8x128xf32, #tpu.memory_space<vmem>>, vector<1x64xf32>
    tpu.vector_store %arg18[%c1_171, %c64_172], %167 {strides = array<i32>} : memref<8x128xf32, #tpu.memory_space<vmem>>, vector<1x64xf32>,
    %c0_173 = arith.constant 0 : index
    %c0_174 = arith.constant 0 : index
    %169 = vector.load %arg18[%c0_173, %c0_174] : memref<8x128xf32, #tpu.memory_space<vmem>>, vector<8x128xf32>
    %170 = arith.truncf %169 : vector<8x128xf32> to vector<8x128xbf16>
    %c0_175 = arith.constant 0 : index
    %c0_176 = arith.constant 0 : index
    %171 = vector.load %arg11[%c0_175, %c0_176] : memref<128x128xbf16, #tpu.memory_space<vmem>>, vector<128x128xbf16>
    %cst_177 = arith.constant dense<0.000000e+00> : vector<8x128xf32>
    %172 = tpu.matmul %170, %171, %cst_177 {dimension_numbers = #tpu.dot_dimension_numbers<[1], [0], [0], [1], [0, 0, 1, 1], [], []>} : vector<8x128xbf16>, vector<128x128xbf16>, vector<8x128xf32> -> vector<8x128xf32>
    %c0_178 = arith.constant 0 : index
    %c0_179 = arith.constant 0 : index
    %173 = vector.load %arg12[%c0_178, %c0_179] : memref<1x128xf32, #tpu.memory_space<vmem>>, vector<1x128xf32>
    %174 = vector.broadcast %173 : vector<1x128xf32> to vector<8x128xf32>
    %175 = arith.addf %172, %174 : vector<8x128xf32>
    %cst_180 = arith.constant 0.000000e+00 : f32
    %176 = vector.broadcast %cst_180 : f32 to vector<8x128xf32>
    %177 = arith.maximumf %175, %176 : vector<8x128xf32>
    %178 = arith.truncf %177 : vector<8x128xf32> to vector<8x128xbf16>
    %c0_181 = arith.constant 0 : index
    %c0_182 = arith.constant 0 : index
    %179 = vector.load %arg13[%c0_181, %c0_182] : memref<128x128xbf16, #tpu.memory_space<vmem>>, vector<128x128xbf16>
    %cst_183 = arith.constant dense<0.000000e+00> : vector<8x128xf32>
    %180 = tpu.matmul %178, %179, %cst_183 {dimension_numbers = #tpu.dot_dimension_numbers<[1], [0], [0], [1], [0, 0, 1, 1], [], []>} : vector<8x128xbf16>, vector<128x128xbf16>, vector<8x128xf32> -> vector<8x128xf32>
    %c0_184 = arith.constant 0 : index
    %c0_185 = arith.constant 0 : index
    %181 = vector.load %arg14[%c0_184, %c0_185] : memref<1x128xf32, #tpu.memory_space<vmem>>, vector<1x128xf32>
    %182 = vector.broadcast %181 : vector<1x128xf32> to vector<8x128xf32>
    %183 = arith.addf %180, %182 : vector<8x128xf32>
    %c0_186 = arith.constant 0 : index
    %c0_187 = arith.constant 0 : index
    %184 = vector.load %arg15[%c0_186, %c0_187] : memref<8x128xf32, #tpu.memory_space<vmem>>, vector<8x128xf32>
    tpu.vector_store %arg15[%c0_186, %c0_187], %183 {strides = array<i32>} : memref<8x128xf32, #tpu.memory_space<vmem>>, vector<8x128xf32>,
    return
  }
}

</mosaic_0001>

<bundles_post_ra>
// kernel: gomoku_forward.1
= control target key start
LH: loop header
LB: loop body
LE: loop exit
PB: predicated region body
PF: predicated region fallthrough
CT: control target
= control target key end

     0   :  { %20 = vsyncpa [#allocation6], 0  ;;  %s19256_s0 = inlined_call_operand.vmem [shape: bf16[200,128], index: 0, kind: input, shape index: {}]   ;;  %s19257_s1 = inlined_call_operand.vmem [shape: f32[200,128], index: 1, kind: input, shape index: {}]   ;;  %s19258_s2 = inlined_call_operand.vmem [shape: bf16[128,200], index: 2, kind: input, shape index: {}]   ;;  %s19259_s3 = inlined_call_operand.vmem [shape: bf16[1152,128], index: 3, kind: input, shape index: {}]   ;;  %s19260_s4 = inlined_call_operand.vmem [shape: f32[1,128], index: 4, kind: input, shape index: {}]   ;;  %s19261_s5 = inlined_call_operand.hbm [shape: bf16[1152,128], index: 5, kind: input, shape index: {}]   ;;  %s19262_s6 = inlined_call_operand.vmem [shape: f32[1,128], index: 6, kind: input, shape index: {}]   ;;  %s19263_s7 = inlined_call_operand.hbm [shape: bf16[1152,128], index: 7, kind: input, shape index: {}]   ;;  %s19264_s8 = inlined_call_operand.vmem [shape: f32[1,128], index: 8, kind: input, shape index: {}]   ;;  %s19265_s9 = inlined_call_operand.hbm [shape: bf16[128,128], index: 9, kind: input, shape index: {}]   ;;  %s19266_s10 = inlined_call_operand.vmem [shape: f32[1,128], index: 10, kind: input, shape index: {}]   ;;  %s19267_s11 = inlined_call_operand.hbm [shape: bf16[128,128], index: 11, kind: input, shape index: {}]   ;;  %s19268_s12 = inlined_call_operand.vmem [shape: f32[1,128], index: 12, kind: input, shape index: {}]   ;;  %s19269_s13 = inlined_call_operand.hbm [shape: bf16[128,128], index: 13, kind: input, shape index: {}]   ;;  %s19270_s14 = inlined_call_operand.vmem [shape: f32[1,128], index: 14, kind: input, shape index: {}]   ;;  %s19271_s15 = inlined_call_operand.vmem [shape: f32[8,128], index: 15, kind: output, shape index: {}]  }
   0x1   :  { %21 = vsyncpa [#allocation8], 0 }
   0x2   :  { %22 = vsyncpa [#allocation11], 0  ;;  %s15105_s18 = smov [#allocation7]   ;;  %s15106_s20 = smov [#allocation10]  }
   0x3   :  { %s52_s19 = sshll.u32 %s15105_s18, 4  ;;  %s80_s21 = sshll.u32 %s15106_s20, 4  ;;  %s53_s19 = int_to_ptr.vmem [resolvable:$true] %s52_s19  ;;  %s81_s21 = int_to_ptr.vmem [resolvable:$true] %s80_s21 }
   0x4   :  { %s15007_s22 = scalar_lea.vmem %s53_s19, 9216  ;;  %p15012_p1 = scmp.lt.s32.totalorder %s53_s19, %s53_s19 }
   0x5   :  { %p15008_p0 = scmp.ne.s32.totalorder %s53_s19, %s15007_s22  ;;  %p15013_p2 = scmp.lt.s32.totalorder %s15007_s22, %s15007_s22 }
   0x7   :  { %p15014_p3 = por %p15013_p2, %p15012_p1 }
   0x9   :  { %p15015_p4 = pnand %p15014_p3, %p15008_p0 }
   0xb   :  { %15018 = shalt.err (!%p15015_p4)
}
   0xc   :  { %s15107_s23 = smov 64   ;;  %s15108_s24 = smov 4  }
   0xd   :  { %58 = dma.hbm_to_vmem [thread:$0]  %s19263_s7, 9216, %s53_s19, [#allocation8], %s15107_s23, %s15107_s23, %s15108_s24  }
   0xe   :  { %s15027_s27 = scalar_lea.vmem %s81_s21, 1024  ;;  %p15032_p6 = scmp.lt.s32.totalorder %s81_s21, %s81_s21 }
   0xf   :  { %p15028_p5 = scmp.ne.s32.totalorder %s81_s21, %s15027_s27  ;;  %p15033_p7 = scmp.lt.s32.totalorder %s15027_s27, %s15027_s27 }
  0x11   :  { %p15034_p8 = por %p15033_p7, %p15032_p6 }
  0x13   :  { %p15035_p9 = pnand %p15034_p8, %p15028_p5 }
  0x15   :  { %15038 = shalt.err (!%p15035_p9)
}
  0x16   :  { %86 = dma.hbm_to_vmem [thread:$0]  %s19267_s11, 1024, %s81_s21, [#allocation11], %s15107_s23, %s15107_s23, %s15108_s24  }
  0x17   :  { %s15109_s30 = smov [#allocation5]   ;;  %s15110_s17 = smov [#allocation9]  }
  0x18   :  { %s38_s16 = sshll.u32 %s15109_s30, 4  ;;  %s66_s18 = sshll.u32 %s15110_s17, 4  ;;  %s39_s16 = int_to_ptr.vmem [resolvable:$true] %s38_s16  ;;  %s67_s18 = int_to_ptr.vmem [resolvable:$true] %s66_s18 }
  0x19   :  { %s15047_s7 = scalar_lea.vmem %s39_s16, 9216  ;;  %p15052_p11 = scmp.lt.s32.totalorder %s39_s16, %s39_s16 }
  0x1a   :  { %p15048_p10 = scmp.ne.s32.totalorder %s39_s16, %s15047_s7  ;;  %p15053_p12 = scmp.lt.s32.totalorder %s15047_s7, %s15047_s7 }
  0x1c   :  { %p15054_p13 = por %p15053_p12, %p15052_p11 }
  0x1e   :  { %p15055_p0 = pnand %p15054_p13, %p15048_p10 }
  0x20   :  { %15058 = shalt.err (!%p15055_p0)
}
  0x21   :  { %44 = dma.hbm_to_vmem [thread:$0]  %s19261_s5, 9216, %s39_s16, [#allocation6], %s15107_s23, %s15107_s23, %s15108_s24  }
  0x22   :  { %s15067_s11 = scalar_lea.vmem %s67_s18, 1024  ;;  %p15072_p2 = scmp.lt.s32.totalorder %s67_s18, %s67_s18 }
  0x23   :  { %p15068_p1 = scmp.ne.s32.totalorder %s67_s18, %s15067_s11  ;;  %p15073_p3 = scmp.lt.s32.totalorder %s15067_s11, %s15067_s11 }
  0x25   :  { %p15074_p4 = por %p15073_p3, %p15072_p2 }
  0x27   :  { %p15075_p5 = pnand %p15074_p4, %p15068_p1 }
  0x29   :  { %15078 = shalt.err (!%p15075_p5)
}
  0x2a   :  { %72 = dma.hbm_to_vmem [thread:$0]  %s19265_s9, 1024, %s67_s18, [#allocation8], %s15107_s23, %s15107_s23, %s15108_s24  }
  0x2b   :  { %s15111_s25 = smov [#allocation12]  }
  0x2c   :  { %s94_s26 = sshll.u32 %s15111_s25, 4  ;;  %s95_s26 = int_to_ptr.vmem [resolvable:$true] %s94_s26 }
  0x2d   :  { %s15087_s27 = scalar_lea.vmem %s95_s26, 1024  ;;  %p15092_p7 = scmp.lt.s32.totalorder %s95_s26, %s95_s26 }
  0x2e   :  { %p15088_p6 = scmp.ne.s32.totalorder %s95_s26, %s15087_s27  ;;  %p15093_p8 = scmp.lt.s32.totalorder %s15087_s27, %s15087_s27 }
  0x30   :  { %p15094_p9 = por %p15093_p8, %p15092_p7 }
  0x32   :  { %p15095_p10 = pnand %p15094_p9, %p15088_p6 }
  0x34   :  { %15098 = shalt.err (!%p15095_p10)
}
  0x35   :  { %100 = dma.hbm_to_vmem [thread:$0]  %s19269_s13, 1024, %s95_s26, [#allocation11], %s15107_s23, %s15107_s23, %s15108_s24  }
  0x36   :  { %15099 = dma.done.wait [#allocation6], 9216  }
  0x37   :  { %15100 = vsyncadd [#allocation6], 4294958080 }
  0x38   :  { %15101 = dma.done.wait [#allocation8], 10240  }
  0x39   :  { %15102 = vsyncadd [#allocation8], 4294957056 }
  0x3a   :  { %15103 = dma.done.wait [#allocation11], 2048  }
  0x3b   :  { %15104 = vsyncadd [#allocation11], 4294965248  ;;  %v15112_v0 = vmov 0.0   ;;  %v19272_v1 = vmov 0   ;;  %vm15114_vm0 = vmmov 0   ;;  %v14450_v2 = vld [vmem:[%s19259_s3 + $0x78] sm:$0xff]  }
  0x3c   :  { %12532 = vmatprep.subr.bf16.mxu0 %v15112_v0  ;;  %10830 = vst [vmem:[#allocation4] sm:$0xff] %v15112_v0  ;;  %12600 = vmatprep.subr.bf16.mxu1 %v15112_v0  ;;  %119 = vst [vmem:[#allocation2] sm:$0xf] %v19272_v1  ;;  %v14451_v3 = vld [vmem:[%s19259_s3 + $0x38] sm:$0xff]   ;;  %v14452_v4 = vld [vmem:[%s19259_s3 + $0x70] sm:$0xff]   ;;  %vm351_vm1 = vcmask 1044480  }
  0x3d   :  { %120 = vst [vmem:[#allocation2 + $0x4] sm:$0xf] %v19272_v1  ;;  %121 = vst [vmem:[#allocation2 + $0x8] sm:$0xf] %v19272_v1  ;;  %12548 = vmatprep.mubr.msk.bf16.mxu0 %vm15114_vm0, %v15112_v0  ;;  %12616 = vmatprep.mubr.msk.bf16.mxu1 %vm15114_vm0, %v15112_v0  ;;  %v14453_v5 = vld [vmem:[%s19259_s3 + $0x30] sm:$0xff]   ;;  %v14454_v6 = vld [vmem:[%s19259_s3 + $0x68] sm:$0xff]  }
  0x3e   :  { %122 = vst [vmem:[#allocation2 + $0xc] sm:$0xf] %v19272_v1  ;;  %123 = vst [vmem:[#allocation2 + $0x10] sm:$0xf] %v19272_v1  ;;  %12533 = vmatpush3.bf16.msra.mxu0 %v14450_v2  ;;  %12601 = vmatpush3.bf16.msra.mxu1 %v14451_v3  ;;  %v14455_v7 = vld [vmem:[%s19259_s3 + $0x28] sm:$0xff]   ;;  %v14456_v8 = vld [vmem:[%s19259_s3 + $0x60] sm:$0xff]  }
  0x3f   :  { %124 = vst [vmem:[#allocation2 + $0x14] sm:$0xf] %v19272_v1  ;;  %125 = vst [vmem:[#allocation2 + $0x18] sm:$0xf] %v19272_v1  ;;  %12534 = vmatprep.subr.bf16.mxu0 %v15112_v0  ;;  %12602 = vmatprep.subr.bf16.mxu1 %v15112_v0  ;;  %v14457_v9 = vld [vmem:[%s19259_s3 + $0x20] sm:$0xff]   ;;  %v14458_v10 = vld [vmem:[%s19259_s3 + $0x58] sm:$0xff]  }
  0x40   :  { %126 = vst [vmem:[#allocation2 + $0x1c] sm:$0xf] %v19272_v1  ;;  %127 = vst [vmem:[#allocation2 + $0x20] sm:$0xf] %v19272_v1  ;;  %v14459_v11 = vld [vmem:[%s19259_s3 + $0x18] sm:$0xff]   ;;  %v14460_v12 = vld [vmem:[%s19259_s3 + $0x50] sm:$0xff]  }
  0x41   :  { %128 = vst [vmem:[#allocation2 + $0x24] sm:$0xf] %v19272_v1  ;;  %129 = vst [vmem:[#allocation2 + $0x28] sm:$0xf] %v19272_v1  ;;  %v177_v13 = vld [vmem:[%s19256_s0] sm:$0xff]   ;;  %v14461_v15 = vld [vmem:[%s19259_s3 + $0x10] sm:$0xff]  }
  0x42   :  { %130 = vst [vmem:[#allocation2 + $0x2c] sm:$0xf] %v19272_v1  ;;  %131 = vst [vmem:[#allocation2 + $0x30] sm:$0xf] %v19272_v1  ;;  %12535 = vmatpush3.bf16.msra.mxu0 %v14452_v4  ;;  %12603 = vmatpush3.bf16.msra.mxu1 %v14453_v5  ;;  %v179_v18 = vld [vmem:[%s19256_s0 + $0x8] sm:$0xff]   ;;  %v181_v19 = vld [vmem:[%s19256_s0 + $0x10] sm:$0xff]  }
  0x43   :  { %132 = vst [vmem:[#allocation2 + $0x34] sm:$0xf] %v19272_v1  ;;  %133 = vst [vmem:[#allocation2 + $0x38] sm:$0xf] %v19272_v1  ;;  %12536 = vmatprep.subr.bf16.mxu0 %v15112_v0  ;;  %12604 = vmatprep.subr.bf16.mxu1 %v15112_v0  ;;  %v269_v16 = vld [vmem:[#allocation2] sm:$0x8] }
  0x44   :  { %134 = vst [vmem:[#allocation2 + $0x3c] sm:$0xf] %v19272_v1  ;;  %135 = vst [vmem:[#allocation2 + $0x40] sm:$0xf] %v19272_v1  ;;  %v228_v14 = vld [vmem:[#allocation2 + $0x4] sm:$0xf] }
  0x45   :  { %136 = vst [vmem:[#allocation2 + $0x44] sm:$0xf] %v19272_v1  ;;  %137 = vst [vmem:[#allocation2 + $0x48] sm:$0xf] %v19272_v1  ;;  %v227_v17 = vld [vmem:[#allocation2] sm:$0xc]  ;;  %v15369_v31 = vcombine.low %v269_v16, %v228_v14 }
  0x46   :  { %138 = vst [vmem:[#allocation2 + $0x4c] sm:$0xf] %v19272_v1  ;;  %139 = vst [vmem:[#allocation2 + $0x50] sm:$0xf] %v19272_v1  ;;  %12537 = vmatpush3.bf16.msra.mxu0 %v14454_v6  ;;  %12605 = vmatpush3.bf16.msra.mxu1 %v14455_v7  ;;  %v11096_v20 = vcombine.low %v227_v17, %v228_v14  ;;  %v183_v21 = vld [vmem:[%s19256_s0 + $0x18] sm:$0xff]   ;;  %v185_v22 = vld [vmem:[%s19256_s0 + $0x20] sm:$0xff]  }
  0x47   :  { %140 = vst [vmem:[#allocation2 + $0x54] sm:$0xf] %v19272_v1  ;;  %141 = vst [vmem:[#allocation2 + $0x58] sm:$0xf] %v19272_v1  ;;  %12538 = vmatprep.subr.bf16.mxu0 %v15112_v0  ;;  %12606 = vmatprep.subr.bf16.mxu1 %v15112_v0  ;;  %v187_v23 = vld [vmem:[%s19256_s0 + $0x28] sm:$0xff]   ;;  %v189_v24 = vld [vmem:[%s19256_s0 + $0x30] sm:$0xff]  }
  0x48   :  { %142 = vst [vmem:[#allocation2 + $0x5c] sm:$0xf] %v19272_v1  ;;  %143 = vst [vmem:[#allocation2 + $0x60] sm:$0xf] %v19272_v1  ;;  %v579_v25 = vshrl.u32 %v11096_v20, 16  ;;  %v582_v26 = vshll.u32 %v11096_v20, 16 }
  0x49   :  { %144 = vst [vmem:[#allocation2 + $0x64] sm:$0xf] %v19272_v1  ;;  %145 = vst [vmem:[#allocation2 + $0x68] sm:$0xf] %v19272_v1  ;;  %v191_v27 = vld [vmem:[%s19256_s0 + $0x38] sm:$0xff]   ;;  %v14462_v28 = vld [vmem:[%s19259_s3 + $0x48] sm:$0xff]  }
  0x4a   :  { %146 = vst [vmem:[#allocation2 + $0x6c] sm:$0xf] %v19272_v1  ;;  %147 = vst [vmem:[#allocation2 + $0x70] sm:$0xf] %v19272_v1  ;;  %12539 = vmatpush3.bf16.msra.mxu0 %v14456_v8  ;;  %12607 = vmatpush3.bf16.msra.mxu1 %v14457_v9  ;;  %v193_v29 = vld [vmem:[%s19256_s0 + $0x40] sm:$0xff]   ;;  %v14463_v30 = vld [vmem:[%s19259_s3 + $0x8] sm:$0xff]  }
  0x4b   :  { %148 = vst [vmem:[#allocation3] sm:$0xf] %v19272_v1  ;;  %149 = vst [vmem:[#allocation3 + $0x4] sm:$0xf] %v19272_v1  ;;  %12540 = vmatprep.subr.bf16.mxu0 %v15112_v0  ;;  %12608 = vmatprep.subr.bf16.mxu1 %v15112_v0  ;;  %v581_v32 = vrot.slane %v579_v25, 2  ;;  %v195_v33 = vld [vmem:[%s19256_s0 + $0x48] sm:$0xff]  }
  0x4c   :  { %150 = vst [vmem:[#allocation3 + $0x8] sm:$0xf] %v19272_v1  ;;  %151 = vst [vmem:[#allocation3 + $0xc] sm:$0xf] %v19272_v1  ;;  %v14464_v34 = vld [vmem:[%s19259_s3 + $0x40] sm:$0xff]   ;;  %v584_v36 = vrot.slane %v582_v26, 3 }
  0x4d   :  { %152 = vst [vmem:[#allocation3 + $0x10] sm:$0xf] %v19272_v1  ;;  %153 = vst [vmem:[#allocation3 + $0x14] sm:$0xf] %v19272_v1  ;;  %v352_v38 = vrot.slane %v15369_v31, 3  ;;  %v14465_v42 = vld [vmem:[%s19259_s3] sm:$0xff]  }
  0x4e   :  { %154 = vst [vmem:[#allocation3 + $0x18] sm:$0xf] %v19272_v1  ;;  %155 = vst [vmem:[#allocation3 + $0x1c] sm:$0xf] %v19272_v1  ;;  %12541 = vmatpush3.bf16.msra.mxu0 %v14458_v10  ;;  %12609 = vmatpush3.bf16.msra.mxu1 %v14459_v11  ;;  %v585_v45 = vor.u32 %v584_v36, %v581_v32  ;;  %vm577_vm2 = vsmask.f32 5376 }
  0x4f   :  { %156 = vst [vmem:[#allocation3 + $0x20] sm:$0xf] %v19272_v1  ;;  %157 = vst [vmem:[#allocation3 + $0x24] sm:$0xf] %v19272_v1  ;;  %12542 = vmatprep.subr.bf16.mxu0 %v15112_v0  ;;  %12610 = vmatprep.subr.bf16.mxu1 %v15112_v0  ;;  %v14475_v53 = vld [vmem:[%s19259_s3 + $0xb8] sm:$0xff]   ;;  %v14477_v59 = vld [vmem:[%s19259_s3 + $0xb0] sm:$0xff]  }
  0x50   :  { %158 = vst [vmem:[#allocation3 + $0x28] sm:$0xf] %v19272_v1  ;;  %159 = vst [vmem:[#allocation3 + $0x2c] sm:$0xf] %v19272_v1  ;;  %v14481_v62 = vld [vmem:[%s19259_s3 + $0xf8] sm:$0xff]   ;;  %v913_v63 = vshrl.u32 %v15369_v31, 16 }
  0x51   :  { %160 = vst [vmem:[#allocation3 + $0x30] sm:$0xf] %v19272_v1  ;;  %161 = vst [vmem:[#allocation3 + $0x34] sm:$0xf] %v19272_v1  ;;  %v14480_v5 = vld [vmem:[%s19259_s3 + $0xa8] sm:$0xff]   ;;  %v197_v6 = vld [vmem:[%s19256_s0 + $0x50] sm:$0xff]  }
  0x52   :  { %162 = vst [vmem:[#allocation3 + $0x38] sm:$0xf] %v19272_v1  ;;  %163 = vst [vmem:[#allocation3 + $0x3c] sm:$0xf] %v19272_v1  ;;  %12543 = vmatpush3.bf16.msra.mxu0 %v14460_v12  ;;  %12611 = vmatpush3.bf16.msra.mxu1 %v14461_v15  ;;  %v14482_v7 = vld [vmem:[%s19259_s3 + $0xf0] sm:$0xff]   ;;  %v916_v8 = vshll.u32 %v15369_v31, 16 }
  0x53   :  { %164 = vst [vmem:[#allocation3 + $0x40] sm:$0xf] %v19272_v1  ;;  %165 = vst [vmem:[#allocation3 + $0x44] sm:$0xf] %v19272_v1  ;;  %12544 = vmatprep.subr.bf16.mxu0 %v15112_v0  ;;  %12612 = vmatprep.subr.bf16.mxu1 %v15112_v0  ;;  %v199_v14 = vld [vmem:[%s19256_s0 + $0x58] sm:$0xff]   ;;  %v915_v15 = vrot.slane %v913_v63, 3 }
  0x54   :  { %166 = vst [vmem:[#allocation3 + $0x48] sm:$0xf] %v19272_v1  ;;  %167 = vst [vmem:[#allocation3 + $0x4c] sm:$0xf] %v19272_v1  ;;  %v14484_v16 = vld [vmem:[%s19259_s3 + $0xe8] sm:$0xff]   ;;  %v918_v17 = vrot.slane %v916_v8, 4 }
  0x55   :  { %168 = vst [vmem:[#allocation3 + $0x50] sm:$0xf] %v19272_v1  ;;  %169 = vst [vmem:[#allocation3 + $0x54] sm:$0xf] %v19272_v1  ;;  %v14486_v26 = vld [vmem:[%s19259_s3 + $0xe0] sm:$0xff]   ;;  %v14489_v36 = vld [vmem:[%s19259_s3 + $0xd8] sm:$0xff]  }
  0x56   :  { %170 = vst [vmem:[#allocation3 + $0x58] sm:$0xf] %v19272_v1  ;;  %171 = vst [vmem:[#allocation3 + $0x5c] sm:$0xf] %v19272_v1  ;;  %12545 = vmatpush3.bf16.msra.mxu0 %v14462_v28  ;;  %12613 = vmatpush3.bf16.msra.mxu1 %v14463_v30  ;;  %vm911_vm3 = vsmask.f32 4352 }
  0x57   :  { %172 = vst [vmem:[#allocation3 + $0x60] sm:$0xf] %v19272_v1  ;;  %173 = vst [vmem:[#allocation3 + $0x64] sm:$0xf] %v19272_v1  ;;  %12546 = vmatprep.subr.bf16.mxu0 %v15112_v0  ;;  %12614 = vmatprep.subr.bf16.mxu1 %v15112_v0  ;;  %vm1998_vm4 = vsmask.f32 7424 }
  0x58   :  { %174 = vst [vmem:[#allocation3 + $0x68] sm:$0xf] %v19272_v1  ;;  %175 = vst [vmem:[#allocation3 + $0x6c] sm:$0xf] %v19272_v1  ;;  %vm2776_vm5 = vcmask 1046528  }
  0x59   :  { %176 = vst [vmem:[#allocation3 + $0x70] sm:$0xf] %v19272_v1  ;;  %202 = vst [vmem:[#allocation2 + $0x8] sm:$0xff] %v177_v13   ;;  %v14485_v13 = vld [vmem:[%s19259_s3 + $0xa0] sm:$0xff]   ;;  %vm3044_vm6 = vsmask.f32 6400 }
  0x5a   :  { %204 = vst [vmem:[#allocation2 + $0x10] sm:$0xff] %v179_v18   ;;  %206 = vst [vmem:[#allocation2 + $0x18] sm:$0xff] %v181_v19   ;;  %12547 = vmatpush3.bf16.msra.mxu0 %v14464_v34  ;;  %12615 = vmatpush3.bf16.msra.mxu1 %v14465_v42 }
  0x5b   :  { %208 = vst [vmem:[#allocation2 + $0x20] sm:$0xff] %v183_v21   ;;  %210 = vst [vmem:[#allocation2 + $0x28] sm:$0xff] %v185_v22   ;;  %12668 = vmatprep.subr.bf16.mxu0 %v15112_v0  ;;  %12736 = vmatprep.subr.bf16.mxu1 %v15112_v0 }
  0x5c   :  { %212 = vst [vmem:[#allocation2 + $0x30] sm:$0xff] %v187_v23   ;;  %214 = vst [vmem:[#allocation2 + $0x38] sm:$0xff] %v189_v24   ;;  %v14488_v24 = vld [vmem:[%s19259_s3 + $0x98] sm:$0xff]  }
  0x5d   :  { %216 = vst [vmem:[#allocation2 + $0x40] sm:$0xff] %v191_v27   ;;  %218 = vst [vmem:[#allocation2 + $0x48] sm:$0xff] %v193_v29   ;;  %v919_v27 = vor.u32 %v918_v17, %v915_v15 }
  0x5e   :  { %220 = vst [vmem:[#allocation2 + $0x50] sm:$0xff] %v195_v33   ;;  %222 = vst [vmem:[#allocation2 + $0x58] sm:$0xff] %v197_v6  }
  0x5f   :  { %224 = vst [vmem:[#allocation2 + $0x60] sm:$0xff] %v199_v14  }
  0x60   :  { %v15379_v35 = vld [vmem:[#allocation2 + $0x8] sm:$0xff]  }
  0x61   :  { %v15381_v37 = vld [vmem:[#allocation2 + $0x10] sm:$0xff]   ;;  %v353_v39 = vrot.slane %v15379_v35, 3  ;;  %v587_v40 = vshrl.u32 %v15379_v35, 16  ;;  %v590_v41 = vshll.u32 %v15379_v35, 16  ;;  %v15403_v52 = vld [vmem:[#allocation2 + $0x18] sm:$0xff]  }
  0x62   :  { %v596_v43 = vshrl.u32 %v15381_v37, 16  ;;  %v599_v44 = vshll.u32 %v15381_v37, 16  ;;  %v355_v55 = vrot.slane %v15381_v37, 3  ;;  %v605_v57 = vshrl.u32 %v15403_v52, 16  ;;  %v15422_v60 = vld [vmem:[#allocation2 + $0x20] sm:$0xff]   ;;  %v15465_v19 = vld [vmem:[#allocation2 + $0x28] sm:$0xff]  }
  0x63   :  { %v589_v46 = vrot.slane %v587_v40, 2  ;;  %v592_v47 = vrot.slane %v590_v41, 3  ;;  %v354_v48 = vsel %vm351_vm1, %v352_v38, %v353_v39  ;;  %v608_v58 = vshll.u32 %v15403_v52, 16  ;;  %v14490_v35 = vld [vmem:[%s19259_s3 + $0x90] sm:$0xff]  }
  0x64   :  { %v598_v50 = vrot.slane %v596_v43, 2  ;;  %v601_v51 = vrot.slane %v599_v44, 3  ;;  %12549 = vmatmul.mubr.bf16.vlgmr.msra.gmra.mxu0 %v354_v48  ;;  %v356_v61 = vsel %vm351_vm1, %v353_v39, %v355_v55  ;;  %v607_v3 = vrot.slane %v605_v57, 2 }
  0x65   :  { %v593_v49 = vor.u32 %v592_v47, %v589_v46  ;;  %12552 = vmatprep.mubr.msk.bf16.mxu0 %vm15114_vm0, %v15112_v0  ;;  %12669 = vmatpush3.bf16.msra.mxu0 %v14475_v53  ;;  %v610_v4 = vrot.slane %v608_v58, 3  ;;  %v614_v9 = vshrl.u32 %v15422_v60, 16  ;;  %v357_v10 = vrot.slane %v15403_v52, 3  ;;  %v15515_v46 = vld [vmem:[#allocation2 + $0x30] sm:$0xff]   ;;  %v14492_v47 = vld [vmem:[%s19259_s3 + $0x88] sm:$0xff]  }
  0x66   :  { %v602_v56 = vor.u32 %v601_v51, %v598_v50  ;;  %12670 = vmatprep.subr.bf16.mxu0 %v15112_v0  ;;  %v617_v11 = vshll.u32 %v15422_v60, 16  ;;  %v920_v22 = vrot.slane %v587_v40, 3  ;;  %v921_v25 = vrot.slane %v590_v41, 4 }
  0x67   :  { %v594_v54 = vsel %vm577_vm2, %v585_v45, %v593_v49  ;;  %v611_v12 = vor.u32 %v610_v4, %v607_v3  ;;  %v616_v18 = vrot.slane %v614_v9, 2  ;;  %v358_v20 = vsel %vm351_vm1, %v355_v55, %v357_v10  ;;  %v14494_v55 = vld [vmem:[%s19259_s3 + $0x80] sm:$0xff]  }
  0x68   :  { %12617 = vmatmul.mubr.bf16.vlgmr.msra.gmra.mxu1 %v594_v54  ;;  %v603_v2 = vsel %vm577_vm2, %v593_v49, %v602_v56  ;;  %v619_v21 = vrot.slane %v617_v11, 3  ;;  %v924_v28 = vrot.slane %v596_v43, 3  ;;  %v359_v29 = vrot.slane %v15422_v60, 3  ;;  %v14491_v49 = vld [vmem:[%s19259_s3 + $0xd0] sm:$0xff]   ;;  %v14495_v3 = vld [vmem:[%s19259_s3 + $0xc0] sm:$0xff]  }
  0x69   :  { %12620 = vmatprep.mubr.msk.bf16.mxu1 %vm15114_vm0, %v15112_v0  ;;  %12671 = vmatpush3.bf16.msra.mxu0 %v14477_v59  ;;  %v612_v23 = vsel %vm577_vm2, %v602_v56, %v611_v12  ;;  %v922_v30 = vor.u32 %v921_v25, %v920_v22  ;;  %v925_v31 = vrot.slane %v599_v44, 4  ;;  %v623_v33 = vshrl.u32 %v15465_v19, 16  ;;  %v14493_v56 = vld [vmem:[%s19259_s3 + $0xc8] sm:$0xff]   ;;  %v15546_v59 = vld [vmem:[#allocation2 + $0x38] sm:$0xff]  }
  0x6a   :  { %12672 = vmatprep.subr.bf16.mxu0 %v15112_v0  ;;  %12737 = vmatpush3.bf16.msra.mxu1 %v14481_v62  ;;  %v620_v32 = vor.u32 %v619_v21, %v616_v18  ;;  %v626_v34 = vshll.u32 %v15465_v19, 16  ;;  %v928_v39 = vrot.slane %v605_v57, 3  ;;  %v929_v40 = vrot.slane %v608_v58, 4 }
  0x6b   :  { %12738 = vmatprep.subr.bf16.mxu1 %v15112_v0  ;;  %v15503_v37 = vsel %vm911_vm3, %v919_v27, %v922_v30  ;;  %v926_v38 = vor.u32 %v925_v31, %v924_v28  ;;  %v360_v41 = vsel %vm351_vm1, %v357_v10, %v359_v29  ;;  %v625_v44 = vrot.slane %v623_v33, 2 }
  0x6c   :  { %12553 = vmatmul.mubr.bf16.gmra.mxu0 %v356_v61  ;;  %v621_v43 = vsel %vm577_vm2, %v611_v12, %v620_v32  ;;  %v628_v45 = vrot.slane %v626_v34, 3  ;;  %v930_v48 = vor.u32 %v929_v40, %v928_v39  ;;  %v361_v51 = vrot.slane %v15465_v19, 3  ;;  %v15595_v40 = vld [vmem:[#allocation2 + $0x58] sm:$0xff]  }
  0x6d   :  { %12556 = vmatprep.mubr.msk.bf16.mxu0 %vm15114_vm0, %v15112_v0  ;;  %12673 = vmatpush3.bf16.msra.mxu0 %v14480_v5  ;;  %v15512_v42 = vsel %vm911_vm3, %v922_v30, %v926_v38  ;;  %v632_v53 = vshrl.u32 %v15515_v46, 16  ;;  %v635_v54 = vshll.u32 %v15515_v46, 16  ;;  %v932_v57 = vrot.slane %v614_v9, 3 }
  0x6e   :  { %12739 = vmatpush3.bf16.msra.mxu1 %v14482_v7  ;;  %12674 = vmatprep.subr.bf16.mxu0 %v15112_v0  ;;  %v15526_v50 = vsel %vm911_vm3, %v926_v38, %v930_v48  ;;  %v629_v52 = vor.u32 %v628_v45, %v625_v44  ;;  %v362_v58 = vsel %vm351_vm1, %v359_v29, %v361_v51  ;;  %v933_v61 = vrot.slane %v617_v11, 4 }
  0x6f   :  { %12740 = vmatprep.subr.bf16.mxu1 %v15112_v0  ;;  %v634_v63 = vrot.slane %v632_v53, 2  ;;  %v936_v5 = vrot.slane %v623_v33, 3  ;;  %v937_v6 = vrot.slane %v626_v34, 4  ;;  %v363_v7 = vrot.slane %v15515_v46, 3 }
  0x70   :  { %12621 = vmatmul.mubr.bf16.gmra.mxu1 %v603_v2  ;;  %v630_v62 = vsel %vm577_vm2, %v620_v32, %v629_v52  ;;  %v637_v2 = vrot.slane %v635_v54, 3  ;;  %v934_v4 = vor.u32 %v933_v61, %v932_v57  ;;  %v641_v60 = vshrl.u32 %v15546_v59, 16 }
  0x71   :  { %12624 = vmatprep.mubr.msk.bf16.mxu1 %vm15114_vm0, %v15112_v0  ;;  %12675 = vmatpush3.bf16.msra.mxu0 %v14485_v13  ;;  %v938_v9 = vor.u32 %v937_v6, %v936_v5  ;;  %v940_v10 = vrot.slane %v632_v53, 3  ;;  %v644_v12 = vshll.u32 %v15546_v59, 16  ;;  %v15566_v13 = vld [vmem:[#allocation2 + $0x40] sm:$0xff]   ;;  %v941_v15 = vrot.slane %v635_v54, 4 }
  0x72   :  { %12741 = vmatpush3.bf16.msra.mxu1 %v14484_v16  ;;  %12676 = vmatprep.subr.bf16.mxu0 %v15112_v0  ;;  %v15561_v8 = vsel %vm911_vm3, %v930_v48, %v934_v4  ;;  %v638_v11 = vor.u32 %v637_v2, %v634_v63  ;;  %v15571_v16 = vld [vmem:[#allocation2 + $0x48] sm:$0xff]   ;;  %v944_v17 = vrot.slane %v641_v60, 3  ;;  %v364_v18 = vsel %vm351_vm1, %v361_v51, %v363_v7  ;;  %v201_v63 = vld [vmem:[%s19256_s0 + $0x60] sm:$0xf] }
  0x73   :  { %12742 = vmatprep.subr.bf16.mxu1 %v15112_v0  ;;  %v15569_v14 = vsel %vm911_vm3, %v934_v4, %v938_v9  ;;  %v643_v19 = vrot.slane %v641_v60, 2  ;;  %v942_v21 = vor.u32 %v941_v15, %v940_v10  ;;  %v945_v22 = vrot.slane %v644_v12, 4  ;;  %226 = vst [vmem:[#allocation2 + $0x68] sm:$0xf] %v201_v63  ;;  %v15633_v15 = vld [vmem:[#allocation2 + $0x60] sm:$0xf] }
  0x74   :  { %12557 = vmatmul.mubr.bf16.gmra.mxu0 %v358_v20  ;;  %v15575_v20 = vld [vmem:[#allocation2 + $0x50] sm:$0xff]   ;;  %v650_v25 = vshrl.u32 %v15566_v13, 16  ;;  %v659_v29 = vshrl.u32 %v15571_v16, 16  ;;  %v365_v31 = vrot.slane %v15546_v59, 3  ;;  %v677_v54 = vshrl.u32 %v15595_v40, 16 }
  0x75   :  { %12560 = vmatprep.mubr.msk.bf16.mxu0 %vm15114_vm0, %v15112_v0  ;;  %12677 = vmatpush3.bf16.msra.mxu0 %v14488_v24  ;;  %v646_v24 = vrot.slane %v644_v12, 3  ;;  %v15581_v27 = vsel %vm911_vm3, %v938_v9, %v942_v21  ;;  %v946_v28 = vor.u32 %v945_v22, %v944_v17  ;;  %v671_v39 = vshll.u32 %v15575_v20, 16 }
  0x76   :  { %12743 = vmatpush3.bf16.msra.mxu1 %v14486_v26  ;;  %12678 = vmatprep.subr.bf16.mxu0 %v15112_v0  ;;  %v653_v26 = vshll.u32 %v15566_v13, 16  ;;  %v948_v30 = vrot.slane %v650_v25, 3  ;;  %v952_v38 = vrot.slane %v659_v29, 3  ;;  %v366_v45 = vsel %vm351_vm1, %v363_v7, %v365_v31 }
  0x77   :  { %12744 = vmatprep.subr.bf16.mxu1 %v15112_v0  ;;  %v15588_v32 = vsel %vm911_vm3, %v942_v21, %v946_v28  ;;  %v647_v34 = vor.u32 %v646_v24, %v643_v19  ;;  %v367_v57 = vrot.slane %v15566_v13, 3  ;;  %v960_v61 = vrot.slane %v677_v54, 3  ;;  %v15636_v19 = vld [vmem:[#allocation4] sm:$0xff] }
  0x78   :  { %12625 = vmatmul.mubr.bf16.gmra.mxu1 %v612_v23  ;;  %v639_v23 = vsel %vm577_vm2, %v629_v52, %v638_v11  ;;  %v949_v33 = vrot.slane %v653_v26, 4  ;;  %v655_v51 = vrot.slane %v653_v26, 3  ;;  %v661_v4 = vrot.slane %v659_v29, 2  ;;  %v1195_v29 = vld [vmem:[#allocation2 + $0x4] sm:$0x8] }
  0x79   :  { %12628 = vmatprep.mubr.msk.bf16.mxu1 %vm15114_vm0, %v15112_v0  ;;  %12679 = vmatpush3.bf16.msra.mxu0 %v14490_v35  ;;  %v662_v35 = vshll.u32 %v15571_v16, 16  ;;  %v648_v48 = vsel %vm577_vm2, %v638_v11, %v647_v34  ;;  %v369_v60 = vrot.slane %v15571_v16, 3  ;;  %v673_v13 = vrot.slane %v671_v39, 3 }
  0x7a   :  { %12745 = vmatpush3.bf16.msra.mxu1 %v14489_v36  ;;  %12680 = vmatprep.subr.bf16.mxu0 %v15112_v0  ;;  %v668_v36 = vshrl.u32 %v15575_v20, 16  ;;  %v371_v17 = vrot.slane %v15575_v20, 3  ;;  %v373_v16 = vrot.slane %v15595_v40, 3  ;;  %v679_v20 = vrot.slane %v677_v54, 2  ;;  %v1201_v54 = vld [vmem:[#allocation2 + $0x1c] sm:$0xf] }
  0x7b   :  { %12746 = vmatprep.subr.bf16.mxu1 %v15112_v0  ;;  %v664_v5 = vrot.slane %v662_v35, 3  ;;  %v370_v10 = vsel %vm351_vm1, %v367_v57, %v369_v60 }
  0x7c   :  { %12561 = vmatmul.mubr.bf16.gmra.mxu0 %v360_v41  ;;  %v950_v41 = vor.u32 %v949_v33, %v948_v30  ;;  %v956_v44 = vrot.slane %v668_v36, 3  ;;  %v670_v12 = vrot.slane %v668_v36, 2  ;;  %v372_v22 = vsel %vm351_vm1, %v369_v60, %v371_v17  ;;  %v1196_v30 = vld [vmem:[#allocation2 + $0x8] sm:$0xf]  ;;  %v1198_v33 = vld [vmem:[#allocation2 + $0x10] sm:$0xf] }
  0x7d   :  { %12564 = vmatprep.mubr.msk.bf16.mxu0 %vm15114_vm0, %v15112_v0  ;;  %12681 = vmatpush3.bf16.msra.mxu0 %v14492_v47  ;;  %v957_v47 = vrot.slane %v671_v39, 4  ;;  %v665_v9 = vor.u32 %v664_v5, %v661_v4 }
  0x7e   :  { %12747 = vmatpush3.bf16.msra.mxu1 %v14491_v49  ;;  %12682 = vmatprep.subr.bf16.mxu0 %v15112_v0  ;;  %v15599_v46 = vsel %vm911_vm3, %v946_v28, %v950_v41  ;;  %v652_v49 = vrot.slane %v650_v25, 2 }
  0x7f   :  { %12748 = vmatprep.subr.bf16.mxu1 %v15112_v0  ;;  %v958_v53 = vor.u32 %v957_v47, %v956_v44 }
  0x80   :  { %12629 = vmatmul.mubr.bf16.gmra.mxu1 %v621_v43  ;;  %v953_v43 = vrot.slane %v662_v35, 4  ;;  %v656_v59 = vor.u32 %v655_v51, %v652_v49  ;;  %v11114_v35 = vcombine.low %v1195_v29, %v1196_v30  ;;  %v1206_v29 = vld [vmem:[#allocation2 + $0x30] sm:$0xf] }
  0x81   :  { %12632 = vmatprep.mubr.msk.bf16.mxu1 %vm15114_vm0, %v15112_v0  ;;  %12683 = vmatpush3.bf16.msra.mxu0 %v14494_v55  ;;  %v680_v55 = vshll.u32 %v15595_v40, 16  ;;  %v1199_v40 = vld [vmem:[#allocation2 + $0x14] sm:$0xf] }
  0x82   :  { %12749 = vmatpush3.bf16.msra.mxu1 %v14493_v56  ;;  %12804 = vmatprep.subr.bf16.mxu0 %v15112_v0  ;;  %v954_v52 = vor.u32 %v953_v43, %v952_v38  ;;  %v657_v6 = vsel %vm577_vm2, %v647_v34, %v656_v59  ;;  %v666_v11 = vsel %vm577_vm2, %v656_v59, %v665_v9  ;;  %v1306_v47 = vshll.u32 %v11114_v35, 16 }
  0x83   :  { %12750 = vmatprep.subr.bf16.mxu1 %v15112_v0  ;;  %v682_v24 = vrot.slane %v680_v55, 3  ;;  %v374_v34 = vsel %vm351_vm1, %v371_v17, %v373_v16 }
  0x84   :  { %12565 = vmatmul.mubr.bf16.gmra.mxu0 %v362_v58  ;;  %v15605_v56 = vsel %vm911_vm3, %v950_v41, %v954_v52  ;;  %v15611_v58 = vsel %vm911_vm3, %v954_v52, %v958_v53  ;;  %v1200_v41 = vld [vmem:[#allocation2 + $0x18] sm:$0xf] }
  0x85   :  { %12568 = vmatprep.mubr.msk.bf16.mxu0 %vm15114_vm0, %v15112_v0  ;;  %v683_v28 = vor.u32 %v682_v24, %v679_v20  ;;  %v11116_v52 = vcombine.low %v1199_v40, %v1200_v41  ;;  %v14506_v20 = vld [vmem:[%s19259_s3 + $0x130] sm:$0xff]   ;;  %v14517_v40 = vld [vmem:[%s19259_s3 + $0x118] sm:$0xff]  }
  0x86   :  { %12751 = vmatpush3.bf16.msra.mxu1 %v14495_v3  ;;  %v368_v3 = vsel %vm351_vm1, %v365_v31, %v367_v57  ;;  %v1197_v31 = vld [vmem:[#allocation2 + $0xc] sm:$0xf]  ;;  %v14511_v24 = vld [vmem:[%s19259_s3 + $0x170] sm:$0xff]  }
  0x87   :  { %12872 = vmatprep.subr.bf16.mxu1 %v15112_v0  ;;  %v11115_v44 = vcombine.low %v1197_v31, %v1198_v33  ;;  %v1323_v5 = vshll.u32 %v11116_v52, 16  ;;  %v14513_v33 = vld [vmem:[%s19259_s3 + $0x168] sm:$0xff]  }
  0x88   :  { %12633 = vmatmul.mubr.bf16.gmra.mxu1 %v630_v62  ;;  %v961_v62 = vrot.slane %v680_v55, 4  ;;  %v1202_v55 = vld [vmem:[#allocation2 + $0x20] sm:$0xf] }
  0x89   :  { %12636 = vmatprep.mubr.msk.bf16.mxu1 %vm15114_vm0, %v15112_v0  ;;  %v1311_v49 = vshrl.u32 %v11115_v44, 16  ;;  %v1314_v51 = vshll.u32 %v11115_v44, 16  ;;  %v11117_v63 = vcombine.low %v1201_v54, %v1202_v55  ;;  %v14519_v44 = vld [vmem:[%s19259_s3 + $0x158] sm:$0xff]   ;;  %v14522_v54 = vld [vmem:[%s19259_s3 + $0x108] sm:$0xff]  }
  0x8a   :  { %v15618_v2 = vor.u32 %v961_v62, %v960_v61  ;;  %v1308_v61 = vrot.slane %v1306_v47, 4  ;;  %v1320_v62 = vshrl.u32 %v11116_v52, 16  ;;  %v1208_v47 = vld [vmem:[#allocation2 + $0x38] sm:$0xf] }
  0x8b   :  { %v1316_v4 = vrot.slane %v1314_v51, 4  ;;  %v1332_v17 = vshll.u32 %v11117_v63, 16  ;;  %v14521_v51 = vld [vmem:[%s19259_s3 + $0x150] sm:$0xff]  }
  0x8c   :  { %12569 = vmatmul.mubr.bf16.gmra.mxu0 %v364_v18  ;;  %v15624_v7 = vsel %vm911_vm3, %v958_v53, %v15618_v2  ;;  %v252_v18 = vld [vmem:[#allocation2 + $0x64] sm:$0x7]  ;;  %v1322_v60 = vrot.slane %v1320_v62, 3  ;;  %v1210_v62 = vld [vmem:[#allocation2 + $0x40] sm:$0xf] }
  0x8d   :  { %12572 = vmatprep.mubr.msk.bf16.mxu0 %vm15114_vm0, %v15112_v0  ;;  %v11087_v21 = vcombine.low %v15633_v15, %v252_v18  ;;  %v14503_v18 = vld [vmem:[%s19259_s3 + $0x138] sm:$0xff]  }
  0x8f   :  { %v686_v25 = vshrl.u32 %v11087_v21, 16  ;;  %v689_v26 = vshll.u32 %v11087_v21, 16  ;;  %v375_v43 = vrot.slane %v11087_v21, 3  ;;  %v14510_v21 = vld [vmem:[%s19259_s3 + $0x178] sm:$0xff]  }
  0x90   :  { %12637 = vmatmul.mubr.bf16.gmra.mxu1 %v639_v23 }
  0x91   :  { %12640 = vmatprep.mubr.msk.bf16.mxu1 %vm15114_vm0, %v15112_v0  ;;  %v688_v38 = vrot.slane %v686_v25, 2  ;;  %v691_v39 = vrot.slane %v689_v26, 3  ;;  %v376_v53 = vsel %vm351_vm1, %v373_v16, %v375_v43  ;;  %v14509_v26 = vld [vmem:[%s19259_s3 + $0x128] sm:$0xff]  }
  0x94   :  { %12573 = vmatmul.mubr.bf16.gmra.mxu0 %v366_v45  ;;  %v1303_v45 = vshrl.u32 %v11114_v35, 16  ;;  %v14514_v35 = vld [vmem:[%s19259_s3 + $0x120] sm:$0xff]  }
  0x95   :  { %12576 = vmatprep.mubr.msk.bf16.mxu0 %vm15114_vm0, %v15112_v0 }
  0x96   :  { %v1305_v59 = vrot.slane %v1303_v45, 3  ;;  %v1207_v45 = vld [vmem:[#allocation2 + $0x34] sm:$0xf] }
  0x98   :  { %12641 = vmatmul.mubr.bf16.gmra.mxu1 %v648_v48  ;;  %v692_v48 = vor.u32 %v691_v39, %v688_v38 }
  0x99   :  { %12644 = vmatprep.mubr.msk.bf16.mxu1 %vm15114_vm0, %v15112_v0 }
  0x9a   :  { %v693_v57 = vsel %vm577_vm2, %v683_v28, %v692_v48 }
  0x9c   :  { %12577 = vmatmul.mubr.bf16.gmra.mxu0 %v368_v3  ;;  %v1313_v3 = vrot.slane %v1311_v49, 3  ;;  %v14520_v49 = vld [vmem:[%s19259_s3 + $0x110] sm:$0xff]  }
  0x9d   :  { %12580 = vmatprep.mubr.msk.bf16.mxu0 %vm15114_vm0, %v15112_v0 }
  0xa0   :  { %12645 = vmatmul.mubr.bf16.gmra.mxu1 %v657_v6  ;;  %v1329_v6 = vshrl.u32 %v11117_v63, 16 }
  0xa1   :  { %12648 = vmatprep.mubr.msk.bf16.mxu1 %vm15114_vm0, %v15112_v0  ;;  %v674_v0 = vor.u32 %v673_v13, %v670_v12  ;;  %v1204_v12 = vld [vmem:[#allocation2 + $0x28] sm:$0xf]  ;;  %v1325_v13 = vrot.slane %v1323_v5, 4 }
  0xa2   :  { %v1331_v16 = vrot.slane %v1329_v6, 3 }
  0xa3   :  { %v675_v23 = vsel %vm577_vm2, %v665_v9, %v674_v0  ;;  %v684_v36 = vsel %vm577_vm2, %v674_v0, %v683_v28  ;;  %v1309_v9 = vor.u32 %v1308_v61, %v1305_v59  ;;  %v1326_v25 = vor.u32 %v1325_v13, %v1322_v60  ;;  %v1205_v28 = vld [vmem:[#allocation2 + $0x2c] sm:$0xf]  ;;  %v1209_v61 = vld [vmem:[#allocation2 + $0x3c] sm:$0xf] }
  0xa4   :  { %12581 = vmatmul.mubr.bf16.gmra.mxu0 %v370_v10  ;;  %v1317_v10 = vor.u32 %v1316_v4, %v1313_v3  ;;  %v14523_v59 = vld [vmem:[%s19259_s3 + $0x148] sm:$0xff]   ;;  %v14524_v3 = vld [vmem:[%s19259_s3 + $0x100] sm:$0xff]   ;;  %v11121_v6 = vcombine.low %v1209_v61, %v1210_v62 }
  0xa5   :  { %12584 = vmatprep.mubr.msk.bf16.mxu0 %vm15114_vm0, %v15636_v19 }
  0xa6   :  { %v1318_v0 = vsel %vm911_vm3, %v1309_v9, %v1317_v10  ;;  %v1327_v30 = vsel %vm911_vm3, %v1317_v10, %v1326_v25  ;;  %v1365_v13 = vshrl.u32 %v11121_v6, 16 }
  0xa8   :  { %12649 = vmatmul.mubr.bf16.gmra.mxu1 %v666_v11  ;;  %v1203_v11 = vld [vmem:[#allocation2 + $0x24] sm:$0xf] }
  0xa9   :  { %12652 = vmatprep.mubr.msk.bf16.mxu1 %vm15114_vm0, %v15636_v19 }
  0xac   :  { %12585 = vmatmul.mubr.bf16.gmra.mxu0 %v372_v22  ;;  %v1334_v22 = vrot.slane %v1332_v17, 4  ;;  %v1368_v17 = vshll.u32 %v11121_v6, 16 }
  0xad   :  { %12588 = vmatprep.mubr.msk.bf16.mxu0 %vm15114_vm0, %v15636_v19 }
  0xae   :  { %v1335_v38 = vor.u32 %v1334_v22, %v1331_v16  ;;  %v1370_v22 = vrot.slane %v1368_v17, 4 }
  0xb0   :  { %12653 = vmatmul.mubr.bf16.gmra.mxu1 %v675_v23  ;;  %v11118_v23 = vcombine.low %v1203_v11, %v1204_v12  ;;  %v1336_v41 = vsel %vm911_vm3, %v1326_v25, %v1335_v38  ;;  %v1211_v11 = vld [vmem:[#allocation2 + $0x44] sm:$0xf]  ;;  %v1212_v12 = vld [vmem:[#allocation2 + $0x48] sm:$0xf] }
  0xb1   :  { %12656 = vmatprep.mubr.msk.bf16.mxu1 %vm15114_vm0, %v15636_v19 }
  0xb2   :  { %v1341_v31 = vshll.u32 %v11118_v23, 16 }
  0xb4   :  { %12589 = vmatmul.mubr.bf16.gmra.mxu0 %v374_v34  ;;  %v1343_v39 = vrot.slane %v1341_v31, 4  ;;  %v1216_v31 = vld [vmem:[#allocation2 + $0x58] sm:$0xf] }
  0xb5   :  { %12592 = vmatprep.mubr.msk.bf16.mxu0 %vm15114_vm0, %v15636_v19 }
  0xb8   :  { %12657 = vmatmul.mubr.bf16.gmra.mxu1 %v684_v36  ;;  %v14515_v36 = vld [vmem:[%s19259_s3 + $0x160] sm:$0xff]  }
  0xb9   :  { %12660 = vmatprep.mubr.msk.bf16.mxu1 %vm15114_vm0, %v15636_v19 }
  0xbc   :  { %12593 = vmatmul.mubr.bf16.gmra.mxu0 %v376_v53  ;;  %v11120_v53 = vcombine.low %v1207_v45, %v1208_v47 }
  0xbd   :  { %12596 = vmatprep.mubr.msk.bf16.mxu0 %vm15114_vm0, %v15636_v19 }
  0xbe   :  { %v1356_v63 = vshrl.u32 %v11120_v53, 16  ;;  %v1359_v5 = vshll.u32 %v11120_v53, 16  ;;  %v1220_v53 = vld [vmem:[#allocation2 + $0x68] sm:$0xf] }
  0xc0   :  { %12661 = vmatmul.mubr.bf16.gmra.mxu1 %v693_v57  ;;  %v1358_v9 = vrot.slane %v1356_v63, 3  ;;  %v1361_v10 = vrot.slane %v1359_v5, 4  ;;  %v15790_v63 = vld [vmem:[#allocation4] sm:$0xff] }
  0xc1   :  { %12664 = vmatprep.mubr.msk.bf16.mxu1 %vm15114_vm0, %v15636_v19 }
  0xc4   :  { %12597 = vmatmul.mubr.bf16.gmra.mxu0 %v375_v43 }
  0xc5   :  { %12684 = vmatprep.mubr.msk.bf16.mxu0 %vm15114_vm0, %v15636_v19 }
  0xc8   :  { %12665 = vmatmul.mubr.bf16.gmra.mxu1 %v692_v48 }
  0xc9   :  { %12752 = vmatprep.mubr.msk.bf16.mxu1 %vm15114_vm0, %v15636_v19 }
  0xcc   :  { %12685 = vmatmul.mubr.bf16.vlgmr.msra.gmra.mxu0 %v15503_v37  ;;  %v1338_v37 = vshrl.u32 %v11118_v23, 16  ;;  %v1213_v23 = vld [vmem:[#allocation2 + $0x4c] sm:$0xf] }
  0xcd   :  { %12688 = vmatprep.mubr.msk.bf16.mxu0 %vm15114_vm0, %v15636_v19  ;;  %12805 = vmatpush3.bf16.msra.mxu0 %v14503_v18  ;;  %v1362_v18 = vor.u32 %v1361_v10, %v1358_v9 }
  0xce   :  { %12806 = vmatprep.subr.bf16.mxu0 %v15636_v19  ;;  %v1340_v34 = vrot.slane %v1338_v37, 3 }
  0xd0   :  { %12753 = vmatmul.mubr.bf16.vlgmr.msra.gmra.mxu1 %v1318_v0  ;;  %v1344_v52 = vor.u32 %v1343_v39, %v1340_v34  ;;  %v11122_v0 = vcombine.low %v1211_v11, %v1212_v12  ;;  %v1217_v39 = vld [vmem:[#allocation2 + $0x5c] sm:$0xf]  ;;  %v14527_v12 = vld [vmem:[#allocation2 + $0x8] sm:$0xff]  }
  0xd1   :  { %12756 = vmatprep.mubr.msk.bf16.mxu1 %vm15114_vm0, %v15636_v19  ;;  %12873 = vmatpush3.bf16.msra.mxu1 %v14510_v21  ;;  %v1367_v21 = vrot.slane %v1365_v13, 3 }
  0xd2   :  { %12874 = vmatprep.subr.bf16.mxu1 %v15636_v19  ;;  %12807 = vmatpush3.bf16.msra.mxu0 %v14506_v20  ;;  %v1345_v55 = vsel %vm911_vm3, %v1335_v38, %v1344_v52  ;;  %v1214_v20 = vld [vmem:[#allocation2 + $0x50] sm:$0xf] }
  0xd3   :  { %12808 = vmatprep.subr.bf16.mxu0 %v15636_v19  ;;  %v1371_v25 = vor.u32 %v1370_v22, %v1367_v21  ;;  %v11123_v37 = vcombine.low %v1213_v23, %v1214_v20  ;;  %v2000_v22 = vshrl.u32 %v14527_v12, 16 }
  0xd4   :  { %12689 = vmatmul.mubr.bf16.gmra.mxu0 %v15512_v42  ;;  %v11119_v42 = vcombine.low %v1205_v28, %v1206_v29 }
  0xd5   :  { %12875 = vmatpush3.bf16.msra.mxu1 %v14511_v24  ;;  %12692 = vmatprep.mubr.msk.bf16.mxu0 %vm15114_vm0, %v15636_v19  ;;  %v1377_v24 = vshll.u32 %v11122_v0, 16 }
  0xd6   :  { %12876 = vmatprep.subr.bf16.mxu1 %v15636_v19  ;;  %12809 = vmatpush3.bf16.msra.mxu0 %v14509_v26  ;;  %v1347_v43 = vshrl.u32 %v11119_v42, 16  ;;  %v1350_v48 = vshll.u32 %v11119_v42, 16  ;;  %v1372_v26 = vsel %vm911_vm3, %v1362_v18, %v1371_v25 }
  0xd7   :  { %12810 = vmatprep.subr.bf16.mxu0 %v15636_v19  ;;  %v1379_v29 = vrot.slane %v1377_v24, 4 }
  0xd8   :  { %12757 = vmatmul.mubr.bf16.gmra.mxu1 %v1327_v30  ;;  %v1352_v57 = vrot.slane %v1350_v48, 4  ;;  %v1215_v30 = vld [vmem:[#allocation2 + $0x54] sm:$0xf] }
  0xd9   :  { %12760 = vmatprep.mubr.msk.bf16.mxu1 %vm15114_vm0, %v15636_v19  ;;  %12877 = vmatpush3.bf16.msra.mxu1 %v14513_v33  ;;  %v1386_v33 = vshll.u32 %v11123_v37, 16  ;;  %v11124_v38 = vcombine.low %v1215_v30, %v1216_v31 }
  0xda   :  { %12878 = vmatprep.subr.bf16.mxu1 %v15636_v19  ;;  %12811 = vmatpush3.bf16.msra.mxu0 %v14514_v35 }
  0xdb   :  { %12812 = vmatprep.subr.bf16.mxu0 %v15636_v19 }
  0xdc   :  { %12693 = vmatmul.mubr.bf16.gmra.mxu0 %v15526_v50  ;;  %v1349_v50 = vrot.slane %v1347_v43, 3  ;;  %v1395_v43 = vshll.u32 %v11124_v38, 16 }
  0xdd   :  { %12879 = vmatpush3.bf16.msra.mxu1 %v14515_v36  ;;  %12696 = vmatprep.mubr.msk.bf16.mxu0 %vm15114_vm0, %v15636_v19  ;;  %v1388_v36 = vrot.slane %v1386_v33, 4  ;;  %v14530_v33 = vld [vmem:[#allocation2 + $0x18] sm:$0xff]  }
  0xde   :  { %12880 = vmatprep.subr.bf16.mxu1 %v15636_v19  ;;  %12813 = vmatpush3.bf16.msra.mxu0 %v14517_v40  ;;  %v1353_v4 = vor.u32 %v1352_v57, %v1349_v50  ;;  %v1218_v40 = vld [vmem:[#allocation2 + $0x60] sm:$0xf]  ;;  %v1397_v48 = vrot.slane %v1395_v43, 4 }
  0xdf   :  { %12814 = vmatprep.subr.bf16.mxu0 %v15636_v19 }
  0xe0   :  { %12761 = vmatmul.mubr.bf16.gmra.mxu1 %v1336_v41  ;;  %v1354_v60 = vsel %vm911_vm3, %v1344_v52, %v1353_v4  ;;  %v1363_v16 = vsel %vm911_vm3, %v1353_v4, %v1362_v18  ;;  %v15782_v52 = vld [vmem:[#allocation2 + $0x64] sm:$0xf] }
  0xe1   :  { %12764 = vmatprep.mubr.msk.bf16.mxu1 %vm15114_vm0, %v15636_v19  ;;  %12881 = vmatpush3.bf16.msra.mxu1 %v14519_v44  ;;  %v11125_v44 = vcombine.low %v1217_v39, %v1218_v40  ;;  %v14540_v40 = vld [vmem:[%s19259_s3 + $0x1b8] sm:$0xff]  }
  0xe2   :  { %12882 = vmatprep.subr.bf16.mxu1 %v15636_v19  ;;  %12815 = vmatpush3.bf16.msra.mxu0 %v14520_v49 }
  0xe3   :  { %12816 = vmatprep.subr.bf16.mxu0 %v15636_v19  ;;  %v1401_v49 = vshrl.u32 %v11125_v44, 16 }
  0xe4   :  { %12697 = vmatmul.mubr.bf16.gmra.mxu0 %v15561_v8  ;;  %v14525_v8 = vld [vmem:[%s19259_s3 + $0x140] sm:$0xff]  }
  0xe5   :  { %12883 = vmatpush3.bf16.msra.mxu1 %v14521_v51  ;;  %12700 = vmatprep.mubr.msk.bf16.mxu0 %vm15114_vm0, %v15636_v19  ;;  %v1404_v51 = vshll.u32 %v11125_v44, 16  ;;  %v1403_v57 = vrot.slane %v1401_v49, 3 }
  0xe6   :  { %12884 = vmatprep.subr.bf16.mxu1 %v15636_v19  ;;  %12817 = vmatpush3.bf16.msra.mxu0 %v14522_v54 }
  0xe7   :  { %12818 = vmatprep.subr.bf16.mxu0 %v15636_v19 }
  0xe8   :  { %12765 = vmatmul.mubr.bf16.gmra.mxu1 %v1345_v55 }
  0xe9   :  { %12768 = vmatprep.mubr.msk.bf16.mxu1 %vm15114_vm0, %v15636_v19  ;;  %12885 = vmatpush3.bf16.msra.mxu1 %v14523_v59  ;;  %v1406_v59 = vrot.slane %v1404_v51, 4  ;;  %v15828_v51 = vld [vmem:[#allocation2 + $0x20] sm:$0xff]  }
  0xea   :  { %12886 = vmatprep.subr.bf16.mxu1 %v15636_v19  ;;  %12819 = vmatpush3.bf16.msra.mxu0 %v14524_v3 }
  0xeb   :  { %12940 = vmatprep.subr.bf16.mxu0 %v15636_v19 }
  0xec   :  { %12701 = vmatmul.mubr.bf16.gmra.mxu0 %v15569_v14  ;;  %v1374_v14 = vshrl.u32 %v11122_v0, 16  ;;  %v14528_v0 = vld [vmem:[#allocation2 + $0x10] sm:$0xff]  }
  0xed   :  { %12887 = vmatpush3.bf16.msra.mxu1 %v14525_v8  ;;  %12704 = vmatprep.mubr.msk.bf16.mxu0 %vm15114_vm0, %v15636_v19  ;;  %v2011_v39 = vshrl.u32 %v14528_v0, 16 }
  0xee   :  { %13008 = vmatprep.subr.bf16.mxu1 %v15636_v19  ;;  %v1376_v28 = vrot.slane %v1374_v14, 3 }
  0xf0   :  { %12769 = vmatmul.mubr.bf16.gmra.mxu1 %v1354_v60  ;;  %v1380_v34 = vor.u32 %v1379_v29, %v1376_v28 }
  0xf1   :  { %12772 = vmatprep.mubr.msk.bf16.mxu1 %vm15114_vm0, %v15636_v19 }
  0xf2   :  { %v1381_v42 = vsel %vm911_vm3, %v1371_v25, %v1380_v34  ;;  %v2007_v25 = vshll.u32 %v14528_v0, 16 }
  0xf4   :  { %12705 = vmatmul.mubr.bf16.gmra.mxu0 %v15581_v27  ;;  %v1383_v27 = vshrl.u32 %v11123_v37, 16 }
  0xf5   :  { %12708 = vmatprep.mubr.msk.bf16.mxu0 %vm15114_vm0, %v15636_v19 }
  0xf6   :  { %v1385_v35 = vrot.slane %v1383_v27, 3  ;;  %v2009_v27 = vrot.slane %v2007_v25, 1 }
  0xf8   :  { %12773 = vmatmul.mubr.bf16.gmra.mxu1 %v1363_v16  ;;  %v1389_v41 = vor.u32 %v1388_v36, %v1385_v35  ;;  %v2002_v16 = vshll.u32 %v14527_v12, 16  ;;  %v14936_v36 = vld [vmem:[#allocation2 + $0x8] sm:$0xf] }
  0xf9   :  { %12776 = vmatprep.mubr.msk.bf16.mxu1 %vm15114_vm0, %v15636_v19  ;;  %v15855_v12 = vld [vmem:[#allocation2 + $0x28] sm:$0xff]  }
  0xfa   :  { %v1390_v47 = vsel %vm911_vm3, %v1380_v34, %v1389_v41  ;;  %v2004_v24 = vrot.slane %v2002_v16, 1 }
  0xfc   :  { %12709 = vmatmul.mubr.bf16.gmra.mxu0 %v15588_v32  ;;  %v1392_v32 = vshrl.u32 %v11124_v38, 16  ;;  %v2005_v31 = vor.u32 %v2004_v24, %v2000_v22  ;;  %v14937_v38 = vld [vmem:[#allocation2 + $0xc] sm:$0xf]  ;;  %v14941_v24 = vld [vmem:[#allocation2 + $0x1c] sm:$0xf] }
  0xfd   :  { %12712 = vmatprep.mubr.msk.bf16.mxu0 %vm15114_vm0, %v15636_v19 }
  0xfe   :  { %v1394_v45 = vrot.slane %v1392_v32, 3  ;;  %v2010_v44 = vsel %vm1998_vm4, %v2005_v31, %v2009_v27 }
 0x100   :  { %12777 = vmatmul.mubr.bf16.gmra.mxu1 %v1372_v26  ;;  %v1398_v50 = vor.u32 %v1397_v48, %v1394_v45  ;;  %v2015_v45 = vshll.u32 %v14530_v33, 16 }
 0x101   :  { %12780 = vmatprep.mubr.msk.bf16.mxu1 %vm15114_vm0, %v15636_v19 }
 0x102   :  { %v1399_v55 = vsel %vm911_vm3, %v1389_v41, %v1398_v50 }
 0x104   :  { %12713 = vmatmul.mubr.bf16.gmra.mxu0 %v15599_v46  ;;  %v891_v46 = vld [vmem:[#allocation2 + $0x64] sm:$0xf] }
 0x105   :  { %12716 = vmatprep.mubr.msk.bf16.mxu0 %vm15114_vm0, %v15636_v19  ;;  %v11105_v54 = vcombine.low %v15633_v15, %v891_v46  ;;  %v1407_v15 = vor.u32 %v1406_v59, %v1403_v57  ;;  %v14544_v46 = vld [vmem:[%s19259_s3 + $0x1b0] sm:$0xff]   ;;  %v2017_v57 = vrot.slane %v2015_v45, 1 }
 0x106   :  { %v14551_v59 = vld [vmem:[%s19259_s3 + $0x1f0] sm:$0xff]  }
 0x107   :  { %v965_v61 = vshrl.u32 %v11105_v54, 16  ;;  %v968_v62 = vshll.u32 %v11105_v54, 16  ;;  %v1408_v8 = vsel %vm911_vm3, %v1398_v50, %v1407_v15  ;;  %v14562_v45 = vld [vmem:[%s19259_s3 + $0x1d0] sm:$0xff]  }
 0x108   :  { %12781 = vmatmul.mubr.bf16.gmra.mxu1 %v1381_v42  ;;  %v11135_v42 = vcombine.low %v14936_v36, %v14937_v38  ;;  %v15884_v38 = vld [vmem:[#allocation2 + $0x30] sm:$0xff]  }
 0x109   :  { %12784 = vmatprep.mubr.msk.bf16.mxu1 %vm15114_vm0, %v15636_v19  ;;  %v967_v4 = vrot.slane %v965_v61, 3  ;;  %v970_v5 = vrot.slane %v968_v62, 4  ;;  %v14938_v62 = vld [vmem:[#allocation2 + $0x10] sm:$0xf] }
 0x10b   :  { %v971_v60 = vor.u32 %v970_v5, %v967_v4  ;;  %v14549_v4 = vld [vmem:[%s19259_s3 + $0x1a8] sm:$0xff]  }
 0x10c   :  { %12717 = vmatmul.mubr.bf16.gmra.mxu0 %v15605_v56  ;;  %v11126_v56 = vcombine.low %v15782_v52, %v1220_v53 }
 0x10d   :  { %12720 = vmatprep.mubr.msk.bf16.mxu0 %vm15114_vm0, %v15636_v19  ;;  %v972_v10 = vsel %vm911_vm3, %v15618_v2, %v971_v60 }
 0x10e   :  { %v1413_v3 = vshll.u32 %v11126_v56, 16 }
 0x110   :  { %12785 = vmatmul.mubr.bf16.gmra.mxu1 %v1390_v47  ;;  %v14550_v47 = vld [vmem:[%s19259_s3 + $0x1f8] sm:$0xff]  }
 0x111   :  { %12788 = vmatprep.mubr.msk.bf16.mxu1 %vm15114_vm0, %v15636_v19  ;;  %v1410_v19 = vshrl.u32 %v11126_v56, 16 }
 0x113   :  { %v1412_v6 = vrot.slane %v1410_v19, 3 }
 0x114   :  { %12721 = vmatmul.mubr.bf16.gmra.mxu0 %v15611_v58  ;;  %v1415_v58 = vrot.slane %v1413_v3, 4  ;;  %v2019_v3 = vshrl.u32 %v14530_v33, 16  ;;  %v2031_v33 = vshll.u32 %v15855_v12, 16 }
 0x115   :  { %12724 = vmatprep.mubr.msk.bf16.mxu0 %vm15114_vm0, %v15790_v63 }
 0x116   :  { %v1416_v9 = vor.u32 %v1415_v58, %v1412_v6  ;;  %v2021_v16 = vor.u32 %v2019_v3, %v2017_v57 }
 0x118   :  { %12789 = vmatmul.mubr.bf16.gmra.mxu1 %v1399_v55  ;;  %v1417_v11 = vsel %vm911_vm3, %v1407_v15, %v1416_v9  ;;  %v2013_v55 = vor.u32 %v2011_v39, %v2009_v27  ;;  %v14939_v15 = vld [vmem:[#allocation2 + $0x14] sm:$0xf] }
 0x119   :  { %12792 = vmatprep.mubr.msk.bf16.mxu1 %vm15114_vm0, %v15790_v63  ;;  %v11136_v19 = vcombine.low %v14938_v62, %v14939_v15  ;;  %v14565_v62 = vld [vmem:[%s19259_s3 + $0x1c8] sm:$0xff]  }
 0x11a   :  { %v2018_v58 = vsel %vm1998_vm4, %v2013_v55, %v2017_v57 }
 0x11c   :  { %12725 = vmatmul.mubr.bf16.gmra.mxu0 %v15624_v7 }
 0x11d   :  { %12728 = vmatprep.mubr.msk.bf16.mxu0 %vm15114_vm0, %v15790_v63 }
 0x120   :  { %12793 = vmatmul.mubr.bf16.gmra.mxu1 %v1408_v8 }
 0x121   :  { %12796 = vmatprep.mubr.msk.bf16.mxu1 %vm15114_vm0, %v15790_v63 }
 0x124   :  { %v472_v13 = vpop.f32.mrf.mxu0  ;;  %12729 = vmatmul.mubr.bf16.gmra.mxu0 %v972_v10 }
 0x125   :  { %12732 = vmatprep.mubr.msk.bf16.mxu0 %vm15114_vm0, %v15790_v63 }
 0x126   :  { %v12550_v18 = vpop.f32.mrf.mxu0 }
 0x128   :  { %v789_v17 = vpop.f32.mrf.mxu1  ;;  %12797 = vmatmul.mubr.bf16.gmra.mxu1 %v1417_v11  ;;  %v475_v2 = vpop.f32.mrf.mxu0 }
 0x129   :  { %v15807_v7 = vadd.f32 %v789_v17, %v472_v13  ;;  %12800 = vmatprep.mubr.msk.bf16.mxu1 %vm15114_vm0, %v15790_v63  ;;  %v14555_v13 = vld [vmem:[%s19259_s3 + $0x1a0] sm:$0xff]  }
 0x12a   :  { %v12618_v21 = vpop.f32.mrf.mxu1  ;;  %v12551_v14 = vpop.f32.mrf.mxu0 }
 0x12b   :  { %v14940_v14 = vld [vmem:[#allocation2 + $0x18] sm:$0xf] }
 0x12c   :  { %v792_v23 = vpop.f32.mrf.mxu1  ;;  %v480_v26 = vpop.f32.mrf.mxu0  ;;  %12733 = vmatmul.mubr.bf16.gmra.mxu0 %v971_v60  ;;  %v2023_v60 = vshll.u32 %v15828_v51, 16  ;;  %v11137_v25 = vcombine.low %v14940_v14, %v14941_v24 }
 0x12d   :  { %v15811_v20 = vadd.f32 %v792_v23, %v475_v2  ;;  %12820 = vmatprep.mubr.msk.bf16.mxu0 %vm15114_vm0, %v15790_v63  ;;  %v14556_v2 = vld [vmem:[%s19259_s3 + $0x1e0] sm:$0xff]  }
 0x12e   :  { %v12619_v37 = vpop.f32.mrf.mxu1  ;;  %v12554_v30 = vpop.f32.mrf.mxu0  ;;  %v2025_v21 = vrot.slane %v2023_v60, 1 }
 0x12f   :  { %v2027_v37 = vshrl.u32 %v15828_v51, 16  ;;  %v14943_v51 = vld [vmem:[#allocation2 + $0x24] sm:$0xf] }
 0x130   :  { %v797_v28 = vpop.f32.mrf.mxu1  ;;  %12801 = vmatmul.mubr.bf16.gmra.mxu1 %v1416_v9  ;;  %v483_v35 = vpop.f32.mrf.mxu0  ;;  %v14554_v9 = vld [vmem:[%s19259_s3 + $0x1e8] sm:$0xff]   ;;  %v2026_v27 = vsel %vm1998_vm4, %v2021_v16, %v2025_v21 }
 0x131   :  { %v15815_v29 = vadd.f32 %v797_v28, %v480_v26  ;;  %12888 = vmatprep.mubr.msk.bf16.mxu1 %vm15114_vm0, %v15790_v63  ;;  %v14558_v26 = vld [vmem:[%s19259_s3 + $0x198] sm:$0xff]  }
 0x132   :  { %v12622_v34 = vpop.f32.mrf.mxu1  ;;  %v12555_v43 = vpop.f32.mrf.mxu0 }
 0x133   :  { %v14560_v34 = vld [vmem:[%s19259_s3 + $0x1d8] sm:$0xff]   ;;  %v2029_v43 = vor.u32 %v2027_v37, %v2025_v21 }
 0x134   :  { %v800_v32 = vpop.f32.mrf.mxu1  ;;  %v488_v49 = vpop.f32.mrf.mxu0  ;;  %12821 = vmatmul.mubr.bf16.vlgmr.msra.gmra.mxu0 %v11135_v42  ;;  %v14561_v42 = vld [vmem:[%s19259_s3 + $0x190] sm:$0xff]  }
 0x135   :  { %v15822_v41 = vadd.f32 %v800_v32, %v483_v35  ;;  %12824 = vmatprep.mubr.msk.bf16.mxu0 %vm15114_vm0, %v15790_v63  ;;  %12941 = vmatpush3.bf16.msra.mxu0 %v14540_v40 }
 0x136   :  { %v12623_v48 = vpop.f32.mrf.mxu1  ;;  %v12558_v54 = vpop.f32.mrf.mxu0  ;;  %12942 = vmatprep.subr.bf16.mxu0 %v15790_v63 }
 0x137   :  { %v14564_v54 = vld [vmem:[%s19259_s3 + $0x188] sm:$0xff]  }
 0x138   :  { %v805_v50 = vpop.f32.mrf.mxu1  ;;  %12889 = vmatmul.mubr.bf16.vlgmr.msra.gmra.mxu1 %v2010_v44  ;;  %v491_v61 = vpop.f32.mrf.mxu0  ;;  %v2033_v44 = vrot.slane %v2031_v33, 1  ;;  %v14541_v33 = vld [vmem:[#allocation2 + $0x40] sm:$0xff]  }
 0x139   :  { %v15835_v53 = vadd.f32 %v805_v50, %v488_v49  ;;  %12892 = vmatprep.mubr.msk.bf16.mxu1 %vm15114_vm0, %v15790_v63  ;;  %13009 = vmatpush3.bf16.msra.mxu1 %v14550_v47  ;;  %v14942_v49 = vld [vmem:[#allocation2 + $0x20] sm:$0xf]  ;;  %v2035_v50 = vshrl.u32 %v15855_v12, 16 }
 0x13a   :  { %v12626_v56 = vpop.f32.mrf.mxu1  ;;  %13010 = vmatprep.subr.bf16.mxu1 %v15790_v63  ;;  %v12559_v6 = vpop.f32.mrf.mxu0  ;;  %12943 = vmatpush3.bf16.msra.mxu0 %v14544_v46  ;;  %v11138_v46 = vcombine.low %v14942_v49, %v14943_v51 }
 0x13b   :  { %12944 = vmatprep.subr.bf16.mxu0 %v15790_v63  ;;  %v2034_v56 = vsel %vm1998_vm4, %v2029_v43, %v2033_v44 }
 0x13c   :  { %v808_v5 = vpop.f32.mrf.mxu1  ;;  %v496_v11 = vpop.f32.mrf.mxu0  ;;  %12825 = vmatmul.mubr.bf16.gmra.mxu0 %v11136_v19 }
 0x13d   :  { %v15847_v8 = vadd.f32 %v808_v5, %v491_v61  ;;  %13011 = vmatpush3.bf16.msra.mxu1 %v14551_v59  ;;  %12828 = vmatprep.mubr.msk.bf16.mxu0 %vm15114_vm0, %v15790_v63  ;;  %v2039_v61 = vshll.u32 %v15884_v38, 16 }
 0x13e   :  { %v12627_v10 = vpop.f32.mrf.mxu1  ;;  %13012 = vmatprep.subr.bf16.mxu1 %v15790_v63  ;;  %v12562_v0 = vpop.f32.mrf.mxu0  ;;  %12945 = vmatpush3.bf16.msra.mxu0 %v14549_v4  ;;  %v14538_v4 = vld [vmem:[#allocation2 + $0x38] sm:$0xff]  }
 0x13f   :  { %12946 = vmatprep.subr.bf16.mxu0 %v15790_v63  ;;  %v2041_v60 = vrot.slane %v2039_v61, 1  ;;  %v2047_v14 = vshll.u32 %v14538_v4, 16 }
 0x140   :  { %v813_v17 = vpop.f32.mrf.mxu1  ;;  %12893 = vmatmul.mubr.bf16.gmra.mxu1 %v2018_v58  ;;  %v499_v23 = vpop.f32.mrf.mxu0  ;;  %v2037_v58 = vor.u32 %v2035_v50, %v2033_v44 }
 0x141   :  { %v15863_v18 = vadd.f32 %v813_v17, %v496_v11  ;;  %12896 = vmatprep.mubr.msk.bf16.mxu1 %vm15114_vm0, %v15790_v63  ;;  %13013 = vmatpush3.bf16.msra.mxu1 %v14554_v9  ;;  %v14566_v9 = vld [vmem:[%s19259_s3 + $0x180] sm:$0xff]   ;;  %v14945_v17 = vld [vmem:[#allocation2 + $0x2c] sm:$0xf] }
 0x142   :  { %v12630_v22 = vpop.f32.mrf.mxu1  ;;  %13014 = vmatprep.subr.bf16.mxu1 %v15790_v63  ;;  %v12563_v31 = vpop.f32.mrf.mxu0  ;;  %12947 = vmatpush3.bf16.msra.mxu0 %v14555_v13  ;;  %v14567_v11 = vld [vmem:[%s19259_s3 + $0x1c0] sm:$0xff]   ;;  %v14944_v13 = vld [vmem:[#allocation2 + $0x28] sm:$0xf] }
 0x143   :  { %12948 = vmatprep.subr.bf16.mxu0 %v15790_v63  ;;  %v11139_v0 = vcombine.low %v14944_v13, %v14945_v17  ;;  %v2042_v22 = vsel %vm1998_vm4, %v2037_v58, %v2041_v60 }
 0x144   :  { %v816_v28 = vpop.f32.mrf.mxu1  ;;  %v504_v36 = vpop.f32.mrf.mxu0  ;;  %12829 = vmatmul.mubr.bf16.gmra.mxu0 %v11137_v25 }
 0x145   :  { %v15876_v30 = vadd.f32 %v816_v28, %v499_v23  ;;  %13015 = vmatpush3.bf16.msra.mxu1 %v14556_v2  ;;  %12832 = vmatprep.mubr.msk.bf16.mxu0 %vm15114_vm0, %v15790_v63  ;;  %v2043_v23 = vshrl.u32 %v15884_v38, 16  ;;  %v14947_v38 = vld [vmem:[#allocation2 + $0x34] sm:$0xf] }
 0x146   :  { %v12631_v35 = vpop.f32.mrf.mxu1  ;;  %13016 = vmatprep.subr.bf16.mxu1 %v15790_v63  ;;  %v12566_v32 = vpop.f32.mrf.mxu0  ;;  %12949 = vmatpush3.bf16.msra.mxu0 %v14558_v26 }
 0x147   :  { %12950 = vmatprep.subr.bf16.mxu0 %v15790_v63  ;;  %v2045_v31 = vor.u32 %v2043_v23, %v2041_v60  ;;  %v2059_v60 = vshrl.u32 %v14541_v33, 16 }
 0x148   :  { %v821_v39 = vpop.f32.mrf.mxu1  ;;  %12897 = vmatmul.mubr.bf16.gmra.mxu1 %v2026_v27  ;;  %v507_v48 = vpop.f32.mrf.mxu0  ;;  %v2049_v27 = vrot.slane %v2047_v14, 1  ;;  %v14950_v14 = vld [vmem:[#allocation2 + $0x40] sm:$0xf] }
 0x149   :  { %v15892_v40 = vadd.f32 %v821_v39, %v504_v36  ;;  %12900 = vmatprep.mubr.msk.bf16.mxu1 %vm15114_vm0, %v15790_v63  ;;  %13017 = vmatpush3.bf16.msra.mxu1 %v14560_v34  ;;  %v14946_v36 = vld [vmem:[#allocation2 + $0x30] sm:$0xf] }
 0x14a   :  { %v12634_v47 = vpop.f32.mrf.mxu1  ;;  %13018 = vmatprep.subr.bf16.mxu1 %v15790_v63  ;;  %v12567_v59 = vpop.f32.mrf.mxu0  ;;  %12951 = vmatpush3.bf16.msra.mxu0 %v14561_v42  ;;  %v11140_v42 = vcombine.low %v14946_v36, %v14947_v38  ;;  %v2050_v44 = vsel %vm1998_vm4, %v2045_v31, %v2049_v27 }
 0x14b   :  { %12952 = vmatprep.subr.bf16.mxu0 %v15790_v63  ;;  %v2055_v47 = vshll.u32 %v14541_v33, 16  ;;  %v14543_v59 = vld [vmem:[#allocation2 + $0x48] sm:$0xff]  }
 0x14c   :  { %v824_v55 = vpop.f32.mrf.mxu1  ;;  %v512_v19 = vpop.f32.mrf.mxu0  ;;  %12833 = vmatmul.mubr.bf16.gmra.mxu0 %v11138_v46  ;;  %v2067_v33 = vshrl.u32 %v14543_v59, 16 }
 0x14d   :  { %v15905_v57 = vadd.f32 %v824_v55, %v507_v48  ;;  %13019 = vmatpush3.bf16.msra.mxu1 %v14562_v45  ;;  %12836 = vmatprep.mubr.msk.bf16.mxu0 %vm15114_vm0, %v15790_v63  ;;  %v2051_v45 = vshrl.u32 %v14538_v4, 16  ;;  %v2057_v55 = vrot.slane %v2055_v47, 1 }
 0x14e   :  { %v12635_v15 = vpop.f32.mrf.mxu1  ;;  %13020 = vmatprep.subr.bf16.mxu1 %v15790_v63  ;;  %v12570_v6 = vpop.f32.mrf.mxu0  ;;  %12953 = vmatpush3.bf16.msra.mxu0 %v14564_v54 }
 0x14f   :  { %12954 = vmatprep.subr.bf16.mxu0 %v15790_v63  ;;  %v2053_v54 = vor.u32 %v2051_v45, %v2049_v27  ;;  %v14949_v15 = vld [vmem:[#allocation2 + $0x3c] sm:$0xf] }
 0x150   :  { %v829_v3 = vpop.f32.mrf.mxu1  ;;  %12901 = vmatmul.mubr.bf16.gmra.mxu1 %v2034_v56  ;;  %v515_v12 = vpop.f32.mrf.mxu0  ;;  %v14548_v45 = vld [vmem:[#allocation2 + $0x58] sm:$0xff]  }
 0x151   :  { %v15916_v5 = vadd.f32 %v829_v3, %v512_v19  ;;  %12904 = vmatprep.mubr.msk.bf16.mxu1 %vm15114_vm0, %v15790_v63  ;;  %13021 = vmatpush3.bf16.msra.mxu1 %v14565_v62  ;;  %v14948_v62 = vld [vmem:[#allocation2 + $0x38] sm:$0xf]  ;;  %v2058_v58 = vsel %vm1998_vm4, %v2053_v54, %v2057_v55 }
 0x152   :  { %v12638_v10 = vpop.f32.mrf.mxu1  ;;  %13022 = vmatprep.subr.bf16.mxu1 %v15790_v63  ;;  %v12571_v2 = vpop.f32.mrf.mxu0  ;;  %12955 = vmatpush3.bf16.msra.mxu0 %v14566_v9  ;;  %v11141_v19 = vcombine.low %v14948_v62, %v14949_v15  ;;  %v2063_v9 = vshll.u32 %v14543_v59, 16  ;;  %v2079_v62 = vshll.u32 %v14548_v45, 16 }
 0x153   :  { %13076 = vmatprep.subr.bf16.mxu0 %v15790_v63  ;;  %v14546_v2 = vld [vmem:[#allocation2 + $0x50] sm:$0xff]  }
 0x154   :  { %v832_v16 = vpop.f32.mrf.mxu1  ;;  %v520_v25 = vpop.f32.mrf.mxu0  ;;  %12837 = vmatmul.mubr.bf16.gmra.mxu0 %v11139_v0  ;;  %v2061_v0 = vor.u32 %v2059_v60, %v2057_v55 }
 0x155   :  { %v15928_v21 = vadd.f32 %v832_v16, %v515_v12  ;;  %13023 = vmatpush3.bf16.msra.mxu1 %v14567_v11  ;;  %12840 = vmatprep.mubr.msk.bf16.mxu0 %vm15114_vm0, %v15790_v63  ;;  %v2065_v16 = vrot.slane %v2063_v9, 1  ;;  %v2081_v9 = vrot.slane %v2079_v62, 1 }
 0x156   :  { %v12639_v24 = vpop.f32.mrf.mxu1  ;;  %13144 = vmatprep.subr.bf16.mxu1 %v15790_v63  ;;  %v12574_v28 = vpop.f32.mrf.mxu0 }
 0x157   :  { %v14951_v24 = vld [vmem:[#allocation2 + $0x44] sm:$0xf]  ;;  %v2066_v27 = vsel %vm1998_vm4, %v2061_v0, %v2065_v16  ;;  %v14955_v0 = vld [vmem:[#allocation2 + $0x54] sm:$0xf] }
 0x158   :  { %v837_v37 = vpop.f32.mrf.mxu1  ;;  %12905 = vmatmul.mubr.bf16.gmra.mxu1 %v2042_v22  ;;  %v523_v35 = vpop.f32.mrf.mxu0 }
 0x159   :  { %v15936_v26 = vadd.f32 %v837_v37, %v520_v25  ;;  %12908 = vmatprep.mubr.msk.bf16.mxu1 %vm15114_vm0, %v15790_v63  ;;  %v11142_v25 = vcombine.low %v14950_v14, %v14951_v24  ;;  %v2083_v24 = vshrl.u32 %v14548_v45, 16  ;;  %v14957_v45 = vld [vmem:[#allocation2 + $0x5c] sm:$0xf] }
 0x15a   :  { %v12642_v34 = vpop.f32.mrf.mxu1  ;;  %v12575_v43 = vpop.f32.mrf.mxu0 }
 0x15b   :  { %v2071_v34 = vshll.u32 %v14546_v2, 16  ;;  %v2069_v43 = vor.u32 %v2067_v33, %v2065_v16 }
 0x15c   :  { %v840_v39 = vpop.f32.mrf.mxu1  ;;  %v528_v49 = vpop.f32.mrf.mxu0  ;;  %12841 = vmatmul.mubr.bf16.gmra.mxu0 %v11140_v42 }
 0x15d   :  { %v15940_v32 = vadd.f32 %v840_v39, %v523_v35  ;;  %12844 = vmatprep.mubr.msk.bf16.mxu0 %vm15114_vm0, %v15790_v63 }
 0x15e   :  { %v12643_v48 = vpop.f32.mrf.mxu1  ;;  %v12578_v50 = vpop.f32.mrf.mxu0 }
 0x160   :  { %v845_v51 = vpop.f32.mrf.mxu1  ;;  %12909 = vmatmul.mubr.bf16.gmra.mxu1 %v2050_v44  ;;  %v531_v61 = vpop.f32.mrf.mxu0  ;;  %v2073_v44 = vrot.slane %v2071_v34, 1 }
 0x161   :  { %v15945_v46 = vadd.f32 %v845_v51, %v528_v49  ;;  %12912 = vmatprep.mubr.msk.bf16.mxu1 %vm15114_vm0, %v15790_v63  ;;  %v14952_v49 = vld [vmem:[#allocation2 + $0x48] sm:$0xf]  ;;  %v14953_v51 = vld [vmem:[#allocation2 + $0x4c] sm:$0xf] }
 0x162   :  { %v12646_v56 = vpop.f32.mrf.mxu1  ;;  %v12579_v6 = vpop.f32.mrf.mxu0  ;;  %v11143_v50 = vcombine.low %v14952_v49, %v14953_v51 }
 0x163   :  { %v2074_v56 = vsel %vm1998_vm4, %v2069_v43, %v2073_v44 }
 0x164   :  { %v848_v3 = vpop.f32.mrf.mxu1  ;;  %v536_v11 = vpop.f32.mrf.mxu0  ;;  %12845 = vmatmul.mubr.bf16.gmra.mxu0 %v11141_v19 }
 0x165   :  { %v15949_v4 = vadd.f32 %v848_v3, %v531_v61  ;;  %12848 = vmatprep.mubr.msk.bf16.mxu0 %vm15114_vm0, %v15790_v63  ;;  %v2075_v61 = vshrl.u32 %v14546_v2, 16 }
 0x166   :  { %v12647_v10 = vpop.f32.mrf.mxu1  ;;  %v12582_v17 = vpop.f32.mrf.mxu0 }
 0x167   :  { %v2077_v60 = vor.u32 %v2075_v61, %v2073_v44  ;;  %v14553_v10 = vld [vmem:[#allocation2 + $0x60] sm:$0xff]   ;;  %v14954_v17 = vld [vmem:[#allocation2 + $0x50] sm:$0xf]  ;;  %v14956_v44 = vld [vmem:[#allocation2 + $0x58] sm:$0xf] }
 0x168   :  { %v853_v12 = vpop.f32.mrf.mxu1  ;;  %12913 = vmatmul.mubr.bf16.gmra.mxu1 %v2058_v58  ;;  %v539_v23 = vpop.f32.mrf.mxu0  ;;  %v11144_v16 = vcombine.low %v14954_v17, %v14955_v0 }
 0x169   :  { %v15954_v13 = vadd.f32 %v853_v12, %v536_v11  ;;  %12916 = vmatprep.mubr.msk.bf16.mxu1 %vm15114_vm0, %v15790_v63  ;;  %v2082_v14 = vsel %vm1998_vm4, %v2077_v60, %v2081_v9  ;;  %v2324_v60 = vld [vmem:[#allocation2 + $0xc] sm:$0xf] }
 0x16a   :  { %v12650_v22 = vpop.f32.mrf.mxu1  ;;  %v12583_v31 = vpop.f32.mrf.mxu0 }
 0x16c   :  { %v856_v37 = vpop.f32.mrf.mxu1  ;;  %v544_v36 = vpop.f32.mrf.mxu0  ;;  %12849 = vmatmul.mubr.bf16.gmra.mxu0 %v11142_v25  ;;  %v2087_v25 = vshll.u32 %v14553_v10, 16 }
 0x16d   :  { %v15958_v28 = vadd.f32 %v856_v37, %v539_v23  ;;  %12852 = vmatprep.mubr.msk.bf16.mxu0 %vm15114_vm0, %v15790_v63 }
 0x16e   :  { %v12651_v35 = vpop.f32.mrf.mxu1  ;;  %v12586_v39 = vpop.f32.mrf.mxu0 }
 0x16f   :  { %v2085_v35 = vor.u32 %v2083_v24, %v2081_v9  ;;  %v2325_v9 = vld [vmem:[#allocation2 + $0x10] sm:$0xf] }
 0x170   :  { %v861_v38 = vpop.f32.mrf.mxu1  ;;  %12917 = vmatmul.mubr.bf16.gmra.mxu1 %v2066_v27  ;;  %v547_v48 = vpop.f32.mrf.mxu0 }
 0x171   :  { %v15963_v42 = vadd.f32 %v861_v38, %v544_v36  ;;  %12920 = vmatprep.mubr.msk.bf16.mxu1 %vm15114_vm0, %v15790_v63  ;;  %v2089_v36 = vrot.slane %v2087_v25, 1  ;;  %v14559_v38 = vld [vmem:[#allocation2 + $0x68] sm:$0x1f]  }
 0x172   :  { %v12654_v47 = vpop.f32.mrf.mxu1  ;;  %v12587_v59 = vpop.f32.mrf.mxu0  ;;  %v2099_v25 = vshrl.u32 %v14559_v38, 16 }
 0x173   :  { %v11145_v47 = vcombine.low %v14956_v44, %v14957_v45  ;;  %v2095_v59 = vshll.u32 %v14559_v38, 16  ;;  %v14959_v38 = vld [vmem:[#allocation2 + $0x68] sm:$0xf] }
 0x174   :  { %v864_v54 = vpop.f32.mrf.mxu1  ;;  %v552_v19 = vpop.f32.mrf.mxu0  ;;  %12853 = vmatmul.mubr.bf16.gmra.mxu0 %v11143_v50  ;;  %v2090_v50 = vsel %vm1998_vm4, %v2085_v35, %v2089_v36  ;;  %v11147_v44 = vcombine.low %v14959_v38, %v14959_v38  ;;  %v16043_v38 = vld [vmem:[#allocation2 + $0x24] sm:$0xff]  }
 0x175   :  { %v15967_v55 = vadd.f32 %v864_v54, %v547_v48  ;;  %12856 = vmatprep.mubr.msk.bf16.mxu0 %vm15114_vm0, %v15790_v63  ;;  %v2091_v54 = vshrl.u32 %v14553_v10, 16 }
 0x176   :  { %v12655_v15 = vpop.f32.mrf.mxu1  ;;  %v12590_v58 = vpop.f32.mrf.mxu0 }
 0x177   :  { %v2097_v58 = vrot.slane %v2095_v59, 1 }
 0x178   :  { %v869_v3 = vpop.f32.mrf.mxu1  ;;  %12921 = vmatmul.mubr.bf16.gmra.mxu1 %v2074_v56  ;;  %v555_v12 = vpop.f32.mrf.mxu0 }
 0x179   :  { %v15972_v6 = vadd.f32 %v869_v3, %v552_v19  ;;  %12924 = vmatprep.mubr.msk.bf16.mxu1 %vm15114_vm0, %v15790_v63  ;;  %v2093_v3 = vor.u32 %v2091_v54, %v2089_v36 }
 0x17a   :  { %v12658_v11 = vpop.f32.mrf.mxu1  ;;  %v12591_v23 = vpop.f32.mrf.mxu0 }
 0x17b   :  { %v2098_v23 = vsel %vm1998_vm4, %v2093_v3, %v2097_v58 }
 0x17c   :  { %v872_v2 = vpop.f32.mrf.mxu1  ;;  %v560_v31 = vpop.f32.mrf.mxu0  ;;  %12857 = vmatmul.mubr.bf16.gmra.mxu0 %v11144_v16  ;;  %v11177_v16 = vcombine.low %v2324_v60, %v2325_v9  ;;  %v16016_v60 = vld [vmem:[#allocation2 + $0x1c] sm:$0xff]  }
 0x17d   :  { %v15976_v22 = vadd.f32 %v872_v2, %v555_v12  ;;  %12860 = vmatprep.mubr.msk.bf16.mxu0 %vm15114_vm0, %v15790_v63  ;;  %v14958_v12 = vld [vmem:[#allocation2 + $0x60] sm:$0xf] }
 0x17e   :  { %v12659_v37 = vpop.f32.mrf.mxu1  ;;  %v12594_v34 = vpop.f32.mrf.mxu0  ;;  %v11146_v17 = vcombine.low %v14958_v12, %v15782_v52 }
 0x17f   :  { %v2434_v34 = vshll.u32 %v11177_v16, 16 }
 0x180   :  { %v877_v27 = vpop.f32.mrf.mxu1  ;;  %12925 = vmatmul.mubr.bf16.gmra.mxu1 %v2082_v14  ;;  %v563_v43 = vpop.f32.mrf.mxu0 }
 0x181   :  { %v15981_v33 = vadd.f32 %v877_v27, %v560_v31  ;;  %12928 = vmatprep.mubr.msk.bf16.mxu1 %vm15114_vm0, %v15790_v63  ;;  %v15999_v27 = vld [vmem:[#allocation2 + $0x14] sm:$0xff]  }
 0x182   :  { %v12662_v39 = vpop.f32.mrf.mxu1  ;;  %v12595_v51 = vpop.f32.mrf.mxu0 }
 0x183   :  { %v2756_v39 = vld [vmem:[#allocation2 + $0xc] sm:$0xe]  ;;  %v2436_v51 = vrot.slane %v2434_v34, 1 }
 0x184   :  { %v880_v48 = vpop.f32.mrf.mxu1  ;;  %v568_v61 = vpop.f32.mrf.mxu0  ;;  %12861 = vmatmul.mubr.bf16.gmra.mxu0 %v11145_v47  ;;  %v16007_v59 = vcombine.low %v2756_v39, %v2325_v9 }
 0x185   :  { %v15985_v49 = vadd.f32 %v880_v48, %v563_v43  ;;  %12864 = vmatprep.mubr.msk.bf16.mxu0 %vm15114_vm0, %v15790_v63  ;;  %v2432_v48 = vshrl.u32 %v11177_v16, 16 }
 0x186   :  { %v12663_v56 = vpop.f32.mrf.mxu1  ;;  %v12598_v19 = vpop.f32.mrf.mxu0 }
 0x188   :  { %v885_v62 = vpop.f32.mrf.mxu1  ;;  %12929 = vmatmul.mubr.bf16.gmra.mxu1 %v2090_v50  ;;  %v571_v11 = vpop.f32.mrf.mxu0  ;;  %v2439_v50 = vshll.u32 %v15999_v27, 16 }
 0x189   :  { %v15990_v15 = vadd.f32 %v885_v62, %v568_v61  ;;  %12932 = vmatprep.mubr.msk.bf16.mxu1 %vm15114_vm0, %v15790_v63  ;;  %v2777_v11 = vrot.slane %v16007_v59, 1 }
 0x18a   :  { %v12666_v10 = vpop.f32.mrf.mxu1  ;;  %v12599_v2 = vpop.f32.mrf.mxu0 }
 0x18b   :  { %v16018_v10 = vld [vmem:[#allocation4] sm:$0xff] }
 0x18c   :  { %v888_v0 = vpop.f32.mrf.mxu1  ;;  %v1068_v24 = vpop.f32.mrf.mxu0  ;;  %12865 = vmatmul.mubr.bf16.gmra.mxu0 %v11146_v17 }
 0x18d   :  { %v1170_v37 = vadd.f32 %v1068_v24, %v15807_v7  ;;  %12868 = vmatprep.mubr.msk.bf16.mxu0 %vm15114_vm0, %v15790_v63  ;;  %v2101_v7 = vor.u32 %v2099_v25, %v2097_v58  ;;  %v2441_v58 = vrot.slane %v2439_v50, 1 }
 0x18e   :  { %v12667_v14 = vpop.f32.mrf.mxu1  ;;  %v12686_v52 = vpop.f32.mrf.mxu0 }
 0x18f   :  { %v2447_v14 = vshll.u32 %v16016_v60, 16 }
 0x190   :  { %v1513_v31 = vpop.f32.mrf.mxu1  ;;  %12933 = vmatmul.mubr.bf16.gmra.mxu1 %v2098_v23  ;;  %v1071_v43 = vpop.f32.mrf.mxu0  ;;  %v2443_v23 = vshrl.u32 %v15999_v27, 16 }
 0x191   :  { %12936 = vmatprep.mubr.msk.bf16.mxu1 %vm15114_vm0, %v15790_v63  ;;  %v16003_v35 = vadd.f32 %v1513_v31, %v1170_v37  ;;  %v1171_v45 = vadd.f32 %v1071_v43, %v15811_v20  ;;  %v2437_v20 = vor.u32 %v2436_v51, %v2432_v48  ;;  %v14577_v37 = vld [vmem:[%s19259_s3 + $0x238] sm:$0xff]   ;;  %v2449_v43 = vrot.slane %v2447_v14, 1 }
 0x192   :  { %v12754_v36 = vpop.f32.mrf.mxu1  ;;  %v12687_v54 = vpop.f32.mrf.mxu0  ;;  %v2445_v39 = vor.u32 %v2443_v23, %v2441_v58 }
 0x193   :  { %v2442_v2 = vsel %vm1998_vm4, %v2437_v20, %v2441_v58  ;;  %v14582_v58 = vld [vmem:[%s19259_s3 + $0x228] sm:$0xff]  }
 0x194   :  { %v1516_v47 = vpop.f32.mrf.mxu1  ;;  %v1076_v62 = vpop.f32.mrf.mxu0  ;;  %12869 = vmatmul.mubr.bf16.gmra.mxu0 %v11147_v44 }
 0x195   :  { %v16009_v56 = vadd.f32 %v1516_v47, %v1171_v45  ;;  %v1172_v19 = vadd.f32 %v1076_v62, %v15815_v29  ;;  %12956 = vmatprep.mubr.msk.bf16.mxu0 %vm15114_vm0, %v15790_v63  ;;  %v2778_v29 = vrot.slane %v15999_v27, 1  ;;  %v2451_v62 = vshrl.u32 %v16016_v60, 16 }
 0x196   :  { %v12755_v61 = vpop.f32.mrf.mxu1  ;;  %v12690_v9 = vpop.f32.mrf.mxu0 }
 0x197   :  { %v2779_v25 = vsel %vm2776_vm5, %v2777_v11, %v2778_v29  ;;  %v2450_v61 = vsel %vm1998_vm4, %v2445_v39, %v2449_v43  ;;  %v2459_v39 = vshrl.u32 %v16043_v38, 16 }
 0x198   :  { %v1521_v3 = vpop.f32.mrf.mxu1  ;;  %12937 = vmatmul.mubr.bf16.gmra.mxu1 %v2101_v7  ;;  %v1079_v63 = vpop.f32.mrf.mxu0  ;;  %v2780_v7 = vrot.slane %v16016_v60, 1 }
 0x199   :  { %13024 = vmatprep.mubr.msk.bf16.mxu1 %vm15114_vm0, %v16018_v10  ;;  %v16024_v12 = vadd.f32 %v1521_v3, %v1172_v19  ;;  %v1173_v0 = vadd.f32 %v1079_v63, %v15822_v41  ;;  %v2455_v19 = vshll.u32 %v16043_v38, 16 }
 0x19a   :  { %v12758_v17 = vpop.f32.mrf.mxu1  ;;  %v12691_v24 = vpop.f32.mrf.mxu0  ;;  %v2781_v20 = vsel %vm2776_vm5, %v2778_v29, %v2780_v7  ;;  %v2453_v29 = vor.u32 %v2451_v62, %v2449_v43 }
 0x19b   :  { %v2782_v24 = vrot.slane %v16043_v38, 1 }
 0x19c   :  { %v1524_v16 = vpop.f32.mrf.mxu1  ;;  %v1084_v52 = vpop.f32.mrf.mxu0  ;;  %12957 = vmatmul.mubr.bf16.vlgmr.msra.gmra.mxu0 %v2442_v2 }
 0x19d   :  { %v16034_v31 = vadd.f32 %v1524_v16, %v1173_v0  ;;  %v1174_v41 = vadd.f32 %v1084_v52, %v15835_v53  ;;  %12960 = vmatprep.mubr.msk.bf16.mxu0 %vm15114_vm0, %v16018_v10  ;;  %13077 = vmatpush3.bf16.msra.mxu0 %v14577_v37  ;;  %v14579_v53 = vld [vmem:[%s19259_s3 + $0x230] sm:$0xff]   ;;  %v2457_v0 = vrot.slane %v2455_v19, 1 }
 0x19e   :  { %v12759_v34 = vpop.f32.mrf.mxu1  ;;  %v12694_v44 = vpop.f32.mrf.mxu0  ;;  %13078 = vmatprep.subr.bf16.mxu0 %v16018_v10  ;;  %v16072_v16 = vld [vmem:[#allocation2 + $0x2c] sm:$0xff]  }
 0x19f   :  { %v19287_v43 = vshll.u32 %v16072_v16, 16 }
 0x1a0   :  { %v1529_v36 = vpop.f32.mrf.mxu1  ;;  %13025 = vmatmul.mubr.bf16.vlgmr.msra.gmra.mxu1 %v2779_v25  ;;  %v1087_v48 = vpop.f32.mrf.mxu0 }
 0x1a1   :  { %13028 = vmatprep.mubr.msk.bf16.mxu1 %vm15114_vm0, %v16018_v10  ;;  %v16051_v45 = vadd.f32 %v1529_v36, %v1174_v41  ;;  %v1175_v51 = vadd.f32 %v1087_v48, %v15847_v8  ;;  %13079 = vmatpush3.bf16.msra.mxu0 %v14579_v53  ;;  %v2458_v36 = vsel %vm1998_vm4, %v2453_v29, %v2457_v0 }
 0x1a2   :  { %v12762_v47 = vpop.f32.mrf.mxu1  ;;  %v12695_v3 = vpop.f32.mrf.mxu0  ;;  %13080 = vmatprep.subr.bf16.mxu0 %v16018_v10  ;;  %v2783_v53 = vsel %vm2776_vm5, %v2780_v7, %v2782_v24  ;;  %v2461_v7 = vor.u32 %v2459_v39, %v2457_v0 }
 0x1a3   :  { %v14586_v47 = vld [vmem:[%s19259_s3 + $0x218] sm:$0xff]   ;;  %v2465_v3 = vrot.slane %v19287_v43, 1 }
 0x1a4   :  { %v1532_v54 = vpop.f32.mrf.mxu1  ;;  %v1092_v8 = vpop.f32.mrf.mxu0  ;;  %12961 = vmatmul.mubr.bf16.gmra.mxu0 %v2450_v61 }
 0x1a5   :  { %v16062_v9 = vadd.f32 %v1532_v54, %v1175_v51  ;;  %v1176_v17 = vadd.f32 %v1092_v8, %v15863_v18  ;;  %12964 = vmatprep.mubr.msk.bf16.mxu0 %vm15114_vm0, %v16018_v10  ;;  %13081 = vmatpush3.bf16.msra.mxu0 %v14582_v58  ;;  %v14584_v18 = vld [vmem:[%s19259_s3 + $0x220] sm:$0xff]  }
 0x1a6   :  { %v12763_v11 = vpop.f32.mrf.mxu1  ;;  %v12698_v2 = vpop.f32.mrf.mxu0  ;;  %13082 = vmatprep.subr.bf16.mxu0 %v16018_v10 }
 0x1a7   :  { %v2784_v11 = vrot.slane %v16072_v16, 1  ;;  %v2466_v2 = vsel %vm1998_vm4, %v2461_v7, %v2465_v3 }
 0x1a8   :  { %v1537_v63 = vpop.f32.mrf.mxu1  ;;  %13029 = vmatmul.mubr.bf16.gmra.mxu1 %v2781_v20  ;;  %v1095_v34 = vpop.f32.mrf.mxu0  ;;  %v16101_v20 = vld [vmem:[#allocation2 + $0x34] sm:$0xff]  }
 0x1a9   :  { %13032 = vmatprep.mubr.msk.bf16.mxu1 %vm15114_vm0, %v16018_v10  ;;  %v16080_v25 = vadd.f32 %v1537_v63, %v1176_v17  ;;  %v1177_v52 = vadd.f32 %v1095_v34, %v15876_v30  ;;  %13083 = vmatpush3.bf16.msra.mxu0 %v14584_v18  ;;  %v19288_v18 = vshrl.u32 %v16072_v16, 16 }
 0x1aa   :  { %v12766_v37 = vpop.f32.mrf.mxu1  ;;  %v12699_v44 = vpop.f32.mrf.mxu0  ;;  %13084 = vmatprep.subr.bf16.mxu0 %v16018_v10 }
 0x1ab   :  { %v19281_v37 = vshll.u32 %v16101_v20, 16 }
 0x1ac   :  { %v1540_v41 = vpop.f32.mrf.mxu1  ;;  %v1100_v30 = vpop.f32.mrf.mxu0  ;;  %12965 = vmatmul.mubr.bf16.gmra.mxu0 %v2458_v36 }
 0x1ad   :  { %v16091_v48 = vadd.f32 %v1540_v41, %v1177_v52  ;;  %v1178_v54 = vadd.f32 %v1100_v30, %v15892_v40  ;;  %12968 = vmatprep.mubr.msk.bf16.mxu0 %vm15114_vm0, %v16018_v10  ;;  %13085 = vmatpush3.bf16.msra.mxu0 %v14586_v47  ;;  %v14587_v40 = vld [vmem:[%s19259_s3 + $0x210] sm:$0xff]   ;;  %v2785_v52 = vsel %vm2776_vm5, %v2782_v24, %v2784_v11  ;;  %v14588_v41 = vld [vmem:[%s19259_s3 + $0x208] sm:$0xff]   ;;  %v16130_v30 = vld [vmem:[#allocation2 + $0x3c] sm:$0xff]  }
 0x1ae   :  { %v12767_v51 = vpop.f32.mrf.mxu1  ;;  %v12702_v58 = vpop.f32.mrf.mxu0  ;;  %13086 = vmatprep.subr.bf16.mxu0 %v16018_v10  ;;  %v2469_v24 = vor.u32 %v19288_v18, %v2465_v3 }
 0x1af   :  { %v2473_v51 = vrot.slane %v19281_v37, 1 }
 0x1b0   :  { %v1545_v61 = vpop.f32.mrf.mxu1  ;;  %13033 = vmatmul.mubr.bf16.gmra.mxu1 %v2783_v53  ;;  %v1103_v63 = vpop.f32.mrf.mxu0 }
 0x1b1   :  { %13036 = vmatprep.mubr.msk.bf16.mxu1 %vm15114_vm0, %v16018_v10  ;;  %v16109_v8 = vadd.f32 %v1545_v61, %v1178_v54  ;;  %v1179_v29 = vadd.f32 %v1103_v63, %v15905_v57  ;;  %13087 = vmatpush3.bf16.msra.mxu0 %v14587_v40  ;;  %v2786_v61 = vrot.slane %v16101_v20, 1  ;;  %v2474_v63 = vsel %vm1998_vm4, %v2469_v24, %v2473_v51 }
 0x1b2   :  { %v12770_v17 = vpop.f32.mrf.mxu1  ;;  %v12703_v34 = vpop.f32.mrf.mxu0  ;;  %13088 = vmatprep.subr.bf16.mxu0 %v16018_v10 }
 0x1b3   :  { %v2787_v34 = vsel %vm2776_vm5, %v2784_v11, %v2786_v61 }
 0x1b4   :  { %v1548_v0 = vpop.f32.mrf.mxu1  ;;  %v1108_v57 = vpop.f32.mrf.mxu0  ;;  %12969 = vmatmul.mubr.bf16.gmra.mxu0 %v2466_v2 }
 0x1b5   :  { %v16120_v36 = vadd.f32 %v1548_v0, %v1179_v29  ;;  %v1180_v53 = vadd.f32 %v1108_v57, %v15916_v5  ;;  %12972 = vmatprep.mubr.msk.bf16.mxu0 %vm15114_vm0, %v16018_v10  ;;  %13089 = vmatpush3.bf16.msra.mxu0 %v14588_v41  ;;  %v14589_v5 = vld [vmem:[%s19259_s3 + $0x200] sm:$0xff]   ;;  %v19284_v29 = vshrl.u32 %v16101_v20, 16  ;;  %v19275_v0 = vshll.u32 %v16130_v30, 16 }
 0x1b6   :  { %v12771_v44 = vpop.f32.mrf.mxu1  ;;  %v12706_v54 = vpop.f32.mrf.mxu0  ;;  %13090 = vmatprep.subr.bf16.mxu0 %v16018_v10 }
 0x1b7   :  { %v2481_v11 = vrot.slane %v19275_v0, 1  ;;  %v2788_v54 = vrot.slane %v16130_v30, 1 }
 0x1b8   :  { %v1553_v47 = vpop.f32.mrf.mxu1  ;;  %13037 = vmatmul.mubr.bf16.gmra.mxu1 %v2785_v52  ;;  %v1111_v3 = vpop.f32.mrf.mxu0 }
 0x1b9   :  { %13040 = vmatprep.mubr.msk.bf16.mxu1 %vm15114_vm0, %v16018_v10  ;;  %v16138_v7 = vadd.f32 %v1553_v47, %v1180_v53  ;;  %v1181_v40 = vadd.f32 %v1111_v3, %v15928_v21  ;;  %13091 = vmatpush3.bf16.msra.mxu0 %v14589_v5  ;;  %v2477_v53 = vor.u32 %v19284_v29, %v2473_v51  ;;  %v16156_v47 = vld [vmem:[#allocation2 + $0x44] sm:$0xff]  }
 0x1ba   :  { %v12774_v58 = vpop.f32.mrf.mxu1  ;;  %v12707_v2 = vpop.f32.mrf.mxu0  ;;  %13212 = vmatprep.subr.bf16.mxu0 %v16018_v10 }
 0x1bb   :  { %v2482_v51 = vsel %vm1998_vm4, %v2477_v53, %v2481_v11 }
 0x1bc   :  { %v1556_v17 = vpop.f32.mrf.mxu1  ;;  %v1116_v44 = vpop.f32.mrf.mxu0  ;;  %12973 = vmatmul.mubr.bf16.gmra.mxu0 %v2474_v63  ;;  %v19274_v63 = vshll.u32 %v16156_v47, 16 }
 0x1bd   :  { %v16146_v52 = vadd.f32 %v1556_v17, %v1181_v40  ;;  %v1182_v21 = vadd.f32 %v1116_v44, %v15936_v26  ;;  %12976 = vmatprep.mubr.msk.bf16.mxu0 %vm15114_vm0, %v16018_v10  ;;  %v19278_v17 = vshrl.u32 %v16130_v30, 16 }
 0x1be   :  { %v12775_v41 = vpop.f32.mrf.mxu1  ;;  %v12710_v24 = vpop.f32.mrf.mxu0  ;;  %v2489_v53 = vrot.slane %v19274_v63, 1 }
 0x1c0   :  { %v1561_v57 = vpop.f32.mrf.mxu1  ;;  %13041 = vmatmul.mubr.bf16.gmra.mxu1 %v2787_v34  ;;  %v1119_v58 = vpop.f32.mrf.mxu0  ;;  %v2789_v34 = vsel %vm2776_vm5, %v2786_v61, %v2788_v54 }
 0x1c1   :  { %13044 = vmatprep.mubr.msk.bf16.mxu1 %vm15114_vm0, %v16018_v10  ;;  %v16161_v26 = vadd.f32 %v1561_v57, %v1182_v21  ;;  %v1183_v3 = vadd.f32 %v1119_v58, %v15940_v32  ;;  %v2485_v32 = vor.u32 %v19278_v17, %v2481_v11  ;;  %v2790_v58 = vrot.slane %v16156_v47, 1 }
 0x1c2   :  { %v12778_v5 = vpop.f32.mrf.mxu1  ;;  %v12711_v2 = vpop.f32.mrf.mxu0 }
 0x1c3   :  { %v16177_v5 = vld [vmem:[#allocation2 + $0x4c] sm:$0xff]   ;;  %v2490_v11 = vsel %vm1998_vm4, %v2485_v32, %v2489_v53 }
 0x1c4   :  { %v1564_v40 = vpop.f32.mrf.mxu1  ;;  %v1124_v24 = vpop.f32.mrf.mxu0  ;;  %12977 = vmatmul.mubr.bf16.gmra.mxu0 %v2482_v51 }
 0x1c5   :  { %v16168_v41 = vadd.f32 %v1564_v40, %v1183_v3  ;;  %v1184_v21 = vadd.f32 %v1124_v24, %v15945_v46  ;;  %12980 = vmatprep.mubr.msk.bf16.mxu0 %vm15114_vm0, %v16018_v10 }
 0x1c6   :  { %v12779_v44 = vpop.f32.mrf.mxu1  ;;  %v12714_v61 = vpop.f32.mrf.mxu0 }
 0x1c7   :  { %v19276_v44 = vshll.u32 %v16177_v5, 16  ;;  %v2791_v61 = vsel %vm2776_vm5, %v2788_v54, %v2790_v58 }
 0x1c8   :  { %v1569_v57 = vpop.f32.mrf.mxu1  ;;  %13045 = vmatmul.mubr.bf16.gmra.mxu1 %v2789_v34  ;;  %v1127_v40 = vpop.f32.mrf.mxu0  ;;  %v19277_v34 = vshrl.u32 %v16156_v47, 16 }
 0x1c9   :  { %13048 = vmatprep.mubr.msk.bf16.mxu1 %vm15114_vm0, %v16018_v10  ;;  %v16182_v46 = vadd.f32 %v1569_v57, %v1184_v21  ;;  %v1185_v51 = vadd.f32 %v1127_v40, %v15949_v4  ;;  %v2497_v32 = vrot.slane %v19276_v44, 1 }
 0x1ca   :  { %v12782_v3 = vpop.f32.mrf.mxu1  ;;  %v12715_v24 = vpop.f32.mrf.mxu0  ;;  %v2493_v4 = vor.u32 %v19277_v34, %v2489_v53 }
 0x1cb   :  { %v16198_v3 = vld [vmem:[#allocation2 + $0x54] sm:$0xff]  }
 0x1cc   :  { %v1572_v2 = vpop.f32.mrf.mxu1  ;;  %v1132_v0 = vpop.f32.mrf.mxu0  ;;  %12981 = vmatmul.mubr.bf16.gmra.mxu0 %v2490_v11  ;;  %v2498_v53 = vsel %vm1998_vm4, %v2493_v4, %v2497_v32  ;;  %v19280_v11 = vshrl.u32 %v16177_v5, 16  ;;  %v19279_v24 = vshll.u32 %v16198_v3, 16 }
 0x1cd   :  { %v16189_v1 = vadd.f32 %v1572_v2, %v1185_v51  ;;  %v1186_v21 = vadd.f32 %v1132_v0, %v15954_v13  ;;  %12984 = vmatprep.mubr.msk.bf16.mxu0 %vm15114_vm0, %v16018_v10 }
 0x1ce   :  { %v12783_v63 = vpop.f32.mrf.mxu1  ;;  %v12718_v54 = vpop.f32.mrf.mxu0  ;;  %v2505_v4 = vrot.slane %v19279_v24, 1 }
 0x1cf   :  { %v2792_v63 = vrot.slane %v16177_v5, 1 }
 0x1d0   :  { %v1577_v57 = vpop.f32.mrf.mxu1  ;;  %13049 = vmatmul.mubr.bf16.gmra.mxu1 %v2791_v61  ;;  %v1135_v40 = vpop.f32.mrf.mxu0 }
 0x1d1   :  { %13052 = vmatprep.mubr.msk.bf16.mxu1 %vm15114_vm0, %v16018_v10  ;;  %v16203_v13 = vadd.f32 %v1577_v57, %v1186_v21  ;;  %v1187_v51 = vadd.f32 %v1135_v40, %v15958_v28  ;;  %v2793_v54 = vsel %vm2776_vm5, %v2790_v58, %v2792_v63  ;;  %v2501_v28 = vor.u32 %v19280_v11, %v2497_v32 }
 0x1d2   :  { %v12786_v0 = vpop.f32.mrf.mxu1  ;;  %v12719_v61 = vpop.f32.mrf.mxu0 }
 0x1d3   :  { %v16219_v0 = vld [vmem:[#allocation2 + $0x5c] sm:$0xff]   ;;  %v2506_v32 = vsel %vm1998_vm4, %v2501_v28, %v2505_v4 }
 0x1d4   :  { %v1580_v2 = vpop.f32.mrf.mxu1  ;;  %v1140_v17 = vpop.f32.mrf.mxu0  ;;  %12985 = vmatmul.mubr.bf16.gmra.mxu0 %v2498_v53  ;;  %v19283_v53 = vshrl.u32 %v16198_v3, 16  ;;  %v19282_v61 = vshll.u32 %v16219_v0, 16 }
 0x1d5   :  { %v16210_v44 = vadd.f32 %v1580_v2, %v1187_v51  ;;  %v1188_v21 = vadd.f32 %v1140_v17, %v15963_v42  ;;  %12988 = vmatprep.mubr.msk.bf16.mxu0 %vm15114_vm0, %v16018_v10 }
 0x1d6   :  { %v12787_v34 = vpop.f32.mrf.mxu1  ;;  %v12722_v58 = vpop.f32.mrf.mxu0  ;;  %v2513_v28 = vrot.slane %v19282_v61, 1  ;;  %v16252_v61 = vld [vmem:[#allocation2 + $0x6c] sm:$0xf] }
 0x1d7   :  { %v2794_v34 = vrot.slane %v16198_v3, 1 }
 0x1d8   :  { %v1585_v57 = vpop.f32.mrf.mxu1  ;;  %13053 = vmatmul.mubr.bf16.gmra.mxu1 %v2793_v54  ;;  %v1143_v40 = vpop.f32.mrf.mxu0 }
 0x1d9   :  { %13056 = vmatprep.mubr.msk.bf16.mxu1 %vm15114_vm0, %v16018_v10  ;;  %v16224_v42 = vadd.f32 %v1585_v57, %v1188_v21  ;;  %v1189_v51 = vadd.f32 %v1143_v40, %v15967_v55  ;;  %v2795_v58 = vsel %vm2776_vm5, %v2792_v63, %v2794_v34  ;;  %v2509_v55 = vor.u32 %v19283_v53, %v2505_v4  ;;  %v2349_v53 = vld [vmem:[#allocation2 + $0x70] sm:$0x1] }
 0x1da   :  { %v12790_v17 = vpop.f32.mrf.mxu1  ;;  %v12723_v54 = vpop.f32.mrf.mxu0 }
 0x1db   :  { %v16240_v17 = vld [vmem:[#allocation2 + $0x64] sm:$0xff]   ;;  %v2514_v4 = vsel %vm1998_vm4, %v2509_v55, %v2513_v28 }
 0x1dc   :  { %v1588_v2 = vpop.f32.mrf.mxu1  ;;  %v1148_v37 = vpop.f32.mrf.mxu0  ;;  %12989 = vmatmul.mubr.bf16.gmra.mxu0 %v2506_v32  ;;  %v19286_v32 = vshrl.u32 %v16219_v0, 16  ;;  %v19285_v54 = vshll.u32 %v16240_v17, 16 }
 0x1dd   :  { %v16231_v24 = vadd.f32 %v1588_v2, %v1189_v51  ;;  %v1190_v21 = vadd.f32 %v1148_v37, %v15972_v6  ;;  %12992 = vmatprep.mubr.msk.bf16.mxu0 %vm15114_vm0, %v16018_v10 }
 0x1de   :  { %v12791_v11 = vpop.f32.mrf.mxu1  ;;  %v12726_v63 = vpop.f32.mrf.mxu0  ;;  %v2517_v55 = vor.u32 %v19286_v32, %v2513_v28 }
 0x1df   :  { %v2796_v11 = vrot.slane %v16219_v0, 1 }
 0x1e0   :  { %v1593_v57 = vpop.f32.mrf.mxu1  ;;  %13057 = vmatmul.mubr.bf16.gmra.mxu1 %v2795_v58  ;;  %v1151_v40 = vpop.f32.mrf.mxu0 }
 0x1e1   :  { %13060 = vmatprep.mubr.msk.bf16.mxu1 %vm15114_vm0, %v16018_v10  ;;  %v16245_v6 = vadd.f32 %v1593_v57, %v1190_v21  ;;  %v1191_v51 = vadd.f32 %v1151_v40, %v15976_v22  ;;  %v2797_v63 = vsel %vm2776_vm5, %v2794_v34, %v2796_v11  ;;  %v2521_v34 = vrot.slane %v19285_v54, 1 }
 0x1e2   :  { %v12794_v37 = vpop.f32.mrf.mxu1  ;;  %v12727_v58 = vpop.f32.mrf.mxu0  ;;  %v16264_v40 = vcombine.low %v16252_v61, %v2349_v53 }
 0x1e3   :  { %v2522_v28 = vsel %vm1998_vm4, %v2517_v55, %v2521_v34 }
 0x1e4   :  { %v1596_v2 = vpop.f32.mrf.mxu1  ;;  %v1156_v57 = vpop.f32.mrf.mxu0  ;;  %12993 = vmatmul.mubr.bf16.gmra.mxu0 %v2514_v4  ;;  %v2527_v53 = vshll.u32 %v16264_v40, 16 }
 0x1e5   :  { %v16254_v29 = vadd.f32 %v1596_v2, %v1191_v51  ;;  %v1192_v22 = vadd.f32 %v1156_v57, %v15981_v33  ;;  %12996 = vmatprep.mubr.msk.bf16.mxu0 %vm15114_vm0, %v16018_v10  ;;  %v2798_v33 = vrot.slane %v16240_v17, 1  ;;  %v2523_v57 = vshrl.u32 %v16240_v17, 16 }
 0x1e6   :  { %v12795_v21 = vpop.f32.mrf.mxu1  ;;  %v12730_v51 = vpop.f32.mrf.mxu0  ;;  %v2529_v55 = vrot.slane %v2527_v53, 1 }
 0x1e7   :  { %v2799_v51 = vsel %vm2776_vm5, %v2796_v11, %v2798_v33  ;;  %v2800_v11 = vrot.slane %v16264_v40, 1 }
 0x1e8   :  { %v1601_v37 = vpop.f32.mrf.mxu1  ;;  %13061 = vmatmul.mubr.bf16.gmra.mxu1 %v2797_v63  ;;  %v1159_v58 = vpop.f32.mrf.mxu0 }
 0x1e9   :  { %13064 = vmatprep.mubr.msk.bf16.mxu1 %vm15114_vm0, %v16018_v10  ;;  %v16269_v2 = vadd.f32 %v1601_v37, %v1192_v22  ;;  %v1193_v63 = vadd.f32 %v1159_v58, %v15985_v49  ;;  %v2525_v49 = vor.u32 %v2523_v57, %v2521_v34  ;;  %v2531_v34 = vshrl.u32 %v16264_v40, 16 }
 0x1ea   :  { %v12798_v4 = vpop.f32.mrf.mxu1  ;;  %v12731_v54 = vpop.f32.mrf.mxu0  ;;  %v3053_v40 = vrot.slane %v2443_v23, 1 }
 0x1ec   :  { %v1604_v21 = vpop.f32.mrf.mxu1  ;;  %v1164_v18 = vpop.f32.mrf.mxu0  ;;  %12997 = vmatmul.mubr.bf16.gmra.mxu0 %v2522_v28 }
 0x1ed   :  { %v16276_v32 = vadd.f32 %v1604_v21, %v1193_v63  ;;  %v1194_v22 = vadd.f32 %v1164_v18, %v15990_v15  ;;  %13000 = vmatprep.mubr.msk.bf16.mxu0 %vm15114_vm0, %v16018_v10  ;;  %v2530_v18 = vsel %vm1998_vm4, %v2525_v49, %v2529_v55  ;;  %v2801_v21 = vsel %vm2776_vm5, %v2798_v33, %v2800_v11 }
 0x1ee   :  { %v12799_v43 = vpop.f32.mrf.mxu1  ;;  %v12734_v4 = vpop.f32.mrf.mxu0 }
 0x1f0   :  { %v1609_v37 = vpop.f32.mrf.mxu1  ;;  %13065 = vmatmul.mubr.bf16.gmra.mxu1 %v2799_v51  ;;  %v1167_v58 = vpop.f32.mrf.mxu0 }
 0x1f1   :  { %13068 = vmatprep.mubr.msk.bf16.mxu1 %vm15114_vm0, %v16018_v10  ;;  %v16286_v43 = vadd.f32 %v1609_v37, %v1194_v22  ;;  %v3046_v22 = vshrl.u32 %v16007_v59, 16  ;;  %v3049_v37 = vshll.u32 %v16007_v59, 16  ;;  %v2533_v58 = vor.u32 %v2531_v34, %v2529_v55 }
 0x1f2   :  { %v12802_v54 = vpop.f32.mrf.mxu1  ;;  %v12735_v63 = vpop.f32.mrf.mxu0  ;;  %v3054_v59 = vrot.slane %v2439_v50, 2 }
 0x1f3   :  { %v3048_v63 = vrot.slane %v3046_v22, 1 }
 0x1f4   :  { %v1612_v15 = vpop.f32.mrf.mxu1  ;;  %v1764_v51 = vpop.f32.mrf.mxu0  ;;  %13001 = vmatmul.mubr.bf16.gmra.mxu0 %v2530_v18  ;;  %v3055_v23 = vor.u32 %v3054_v59, %v3053_v40  ;;  %v3058_v40 = vrot.slane %v2447_v14, 2 }
 0x1f5   :  { %v1866_v53 = vadd.f32 %v1764_v51, %v16003_v35  ;;  %13004 = vmatprep.mubr.msk.bf16.mxu0 %vm15114_vm0, %v16018_v10 }
 0x1f6   :  { %v12803_v28 = vpop.f32.mrf.mxu1  ;;  %v12822_v49 = vpop.f32.mrf.mxu0 }
 0x1f8   :  { %v2197_v4 = vpop.f32.mrf.mxu1  ;;  %13069 = vmatmul.mubr.bf16.gmra.mxu1 %v2801_v21  ;;  %v1767_v35 = vpop.f32.mrf.mxu0  ;;  %v3051_v21 = vrot.slane %v3049_v37, 2 }
 0x1f9   :  { %13072 = vmatprep.mubr.msk.bf16.mxu1 %vm15114_vm0, %v16018_v10  ;;  %v16298_v33 = vadd.f32 %v2197_v4, %v1866_v53  ;;  %v1867_v15 = vadd.f32 %v1767_v35, %v16009_v56 }
 0x1fa   :  { %v12890_v54 = vpop.f32.mrf.mxu1  ;;  %v12823_v28 = vpop.f32.mrf.mxu0  ;;  %v3052_v56 = vor.u32 %v3051_v21, %v3048_v63 }
 0x1fc   :  { %v2200_v18 = vpop.f32.mrf.mxu1  ;;  %v1772_v53 = vpop.f32.mrf.mxu0  ;;  %13005 = vmatmul.mubr.bf16.gmra.mxu0 %v2533_v58 }
 0x1fd   :  { %v16305_v51 = vadd.f32 %v2200_v18, %v1867_v15  ;;  %v1868_v4 = vadd.f32 %v1772_v53, %v16024_v12  ;;  %13092 = vmatprep.mubr.msk.bf16.mxu0 %vm15114_vm0, %v16018_v10  ;;  %v3056_v12 = vsel %vm3044_vm6, %v3052_v56, %v3055_v23 }
 0x1fe   :  { %v12891_v49 = vpop.f32.mrf.mxu1  ;;  %v12826_v55 = vpop.f32.mrf.mxu0 }
 0x200   :  { %v2205_v54 = vpop.f32.mrf.mxu1  ;;  %13073 = vmatmul.mubr.bf16.gmra.mxu1 %v2800_v11  ;;  %v1775_v34 = vpop.f32.mrf.mxu0  ;;  %v3057_v11 = vrot.slane %v2451_v62, 1 }
 0x201   :  { %13160 = vmatprep.mubr.msk.bf16.mxu1 %vm15114_vm0, %v16018_v10  ;;  %v16312_v27 = vadd.f32 %v2205_v54, %v1868_v4  ;;  %v1869_v22 = vadd.f32 %v1775_v34, %v16034_v31  ;;  %v3061_v4 = vrot.slane %v2459_v39, 1 }
 0x202   :  { %v12894_v50 = vpop.f32.mrf.mxu1  ;;  %v12827_v35 = vpop.f32.mrf.mxu0  ;;  %v3059_v31 = vor.u32 %v3058_v40, %v3057_v11  ;;  %v19314_v40 = vshrl.u32 %v16072_v16, 16 }
 0x204   :  { %v2208_v37 = vpop.f32.mrf.mxu1  ;;  %v1780_v18 = vpop.f32.mrf.mxu0  ;;  %13093 = vmatmul.mubr.bf16.vlgmr.msra.gmra.mxu0 %v3056_v12  ;;  %v3060_v53 = vsel %vm3044_vm6, %v3055_v23, %v3059_v31  ;;  %v3065_v35 = vrot.slane %v19314_v40, 1 }
 0x205   :  { %v16320_v58 = vadd.f32 %v2208_v37, %v1869_v22  ;;  %v1870_v63 = vadd.f32 %v1780_v18, %v16051_v45  ;;  %13096 = vmatprep.mubr.msk.bf16.mxu0 %vm15114_vm0, %v16018_v10  ;;  %v3062_v45 = vrot.slane %v2455_v19, 2 }
 0x206   :  { %v12895_v15 = vpop.f32.mrf.mxu1  ;;  %v12830_v59 = vpop.f32.mrf.mxu0 }
 0x208   :  { %v2213_v21 = vpop.f32.mrf.mxu1  ;;  %v1783_v49 = vpop.f32.mrf.mxu0 }
 0x209   :  { %v16325_v28 = vadd.f32 %v2213_v21, %v1870_v63  ;;  %v1871_v60 = vadd.f32 %v1783_v49, %v16062_v9  ;;  %v3063_v9 = vor.u32 %v3062_v45, %v3061_v4 }
 0x20a   :  { %v12898_v62 = vpop.f32.mrf.mxu1  ;;  %v12831_v54 = vpop.f32.mrf.mxu0 }
 0x20b   :  { %v3064_v11 = vsel %vm3044_vm6, %v3059_v31, %v3063_v9  ;;  %v19316_v54 = vshrl.u32 %v16101_v20, 16 }
 0x20c   :  { %v2216_v14 = vpop.f32.mrf.mxu1  ;;  %v1788_v50 = vpop.f32.mrf.mxu0  ;;  %13097 = vmatmul.mubr.bf16.gmra.mxu0 %v3060_v53 }
 0x20d   :  { %v16333_v56 = vadd.f32 %v2216_v14, %v1871_v60  ;;  %v1872_v34 = vadd.f32 %v1788_v50, %v16080_v25  ;;  %13100 = vmatprep.mubr.msk.bf16.mxu0 %vm15114_vm0, %v16018_v10  ;;  %v19315_v25 = vshll.u32 %v16072_v16, 16 }
 0x20e   :  { %v12899_v55 = vpop.f32.mrf.mxu1  ;;  %v12834_v23 = vpop.f32.mrf.mxu0 }
 0x20f   :  { %v3066_v15 = vrot.slane %v19315_v25, 2  ;;  %v3069_v55 = vrot.slane %v19316_v54, 1 }
 0x210   :  { %v2221_v22 = vpop.f32.mrf.mxu1  ;;  %v1791_v12 = vpop.f32.mrf.mxu0 }
 0x211   :  { %v16338_v37 = vadd.f32 %v2221_v22, %v1872_v34  ;;  %v1873_v38 = vadd.f32 %v1791_v12, %v16091_v48  ;;  %v3067_v48 = vor.u32 %v3066_v15, %v3065_v35  ;;  %v19318_v15 = vshrl.u32 %v16130_v30, 16 }
 0x212   :  { %v12902_v39 = vpop.f32.mrf.mxu1  ;;  %v12835_v18 = vpop.f32.mrf.mxu0 }
 0x213   :  { %v3068_v45 = vsel %vm3044_vm6, %v3063_v9, %v3067_v48  ;;  %v3073_v18 = vrot.slane %v19318_v15, 1 }
 0x214   :  { %v2224_v19 = vpop.f32.mrf.mxu1  ;;  %v1796_v59 = vpop.f32.mrf.mxu0  ;;  %13101 = vmatmul.mubr.bf16.gmra.mxu0 %v3064_v11 }
 0x215   :  { %v16346_v63 = vadd.f32 %v2224_v19, %v1873_v38  ;;  %v1874_v62 = vadd.f32 %v1796_v59, %v16109_v8  ;;  %13104 = vmatprep.mubr.msk.bf16.mxu0 %vm15114_vm0, %v16018_v10  ;;  %v19317_v8 = vshll.u32 %v16101_v20, 16 }
 0x216   :  { %v12903_v21 = vpop.f32.mrf.mxu1  ;;  %v12838_v31 = vpop.f32.mrf.mxu0 }
 0x217   :  { %v3070_v50 = vrot.slane %v19317_v8, 2 }
 0x218   :  { %v2229_v49 = vpop.f32.mrf.mxu1  ;;  %v1799_v53 = vpop.f32.mrf.mxu0 }
 0x219   :  { %v16351_v60 = vadd.f32 %v2229_v49, %v1874_v62  ;;  %v1875_v16 = vadd.f32 %v1799_v53, %v16120_v36  ;;  %v3071_v36 = vor.u32 %v3070_v50, %v3069_v55  ;;  %v19320_v50 = vshrl.u32 %v16156_v47, 16 }
 0x21a   :  { %v12906_v14 = vpop.f32.mrf.mxu1  ;;  %v12839_v34 = vpop.f32.mrf.mxu0 }
 0x21b   :  { %v3072_v25 = vsel %vm3044_vm6, %v3067_v48, %v3071_v36  ;;  %v3077_v34 = vrot.slane %v19320_v50, 1 }
 0x21c   :  { %v2232_v4 = vpop.f32.mrf.mxu1  ;;  %v1804_v39 = vpop.f32.mrf.mxu0  ;;  %13105 = vmatmul.mubr.bf16.gmra.mxu0 %v3068_v45  ;;  %v14591_v45 = vld [vmem:[#allocation5 + $0x78] sm:$0xff]  }
 0x21d   :  { %v16359_v22 = vadd.f32 %v2232_v4, %v1875_v16  ;;  %v1876_v12 = vadd.f32 %v1804_v39, %v16138_v7  ;;  %13108 = vmatprep.mubr.msk.bf16.mxu0 %vm15114_vm0, %v16018_v10  ;;  %v19319_v7 = vshll.u32 %v16130_v30, 16  ;;  %13145 = vmatpush3.bf16.msra.mxu1 %v14591_v45 }
 0x21e   :  { %v12907_v23 = vpop.f32.mrf.mxu1  ;;  %v12842_v9 = vpop.f32.mrf.mxu0  ;;  %13146 = vmatprep.subr.bf16.mxu1 %v16018_v10 }
 0x21f   :  { %v3074_v21 = vrot.slane %v19319_v7, 2  ;;  %v19322_v7 = vshrl.u32 %v16177_v5, 16 }
 0x220   :  { %v2237_v38 = vpop.f32.mrf.mxu1  ;;  %v1807_v40 = vpop.f32.mrf.mxu0 }
 0x221   :  { %v16364_v19 = vadd.f32 %v2237_v38, %v1876_v12  ;;  %v1877_v20 = vadd.f32 %v1807_v40, %v16146_v52  ;;  %v3075_v52 = vor.u32 %v3074_v21, %v3073_v18  ;;  %v3081_v21 = vrot.slane %v19322_v7, 1 }
 0x222   :  { %v12910_v11 = vpop.f32.mrf.mxu1  ;;  %v12843_v59 = vpop.f32.mrf.mxu0 }
 0x223   :  { %v3076_v8 = vsel %vm3044_vm6, %v3071_v36, %v3075_v52 }
 0x224   :  { %v2240_v35 = vpop.f32.mrf.mxu1  ;;  %v1812_v31 = vpop.f32.mrf.mxu0  ;;  %13109 = vmatmul.mubr.bf16.gmra.mxu0 %v3072_v25 }
 0x225   :  { %v16372_v62 = vadd.f32 %v2240_v35, %v1877_v20  ;;  %v1878_v14 = vadd.f32 %v1812_v31, %v16161_v26  ;;  %13112 = vmatprep.mubr.msk.bf16.mxu0 %vm15114_vm0, %v16018_v10  ;;  %v19321_v26 = vshll.u32 %v16156_v47, 16 }
 0x226   :  { %v12911_v49 = vpop.f32.mrf.mxu1  ;;  %v12846_v48 = vpop.f32.mrf.mxu0 }
 0x227   :  { %v3078_v23 = vrot.slane %v19321_v26, 2  ;;  %v19325_v26 = vshll.u32 %v16198_v3, 16 }
 0x228   :  { %v2245_v53 = vpop.f32.mrf.mxu1  ;;  %v1815_v30 = vpop.f32.mrf.mxu0 }
 0x229   :  { %v16377_v16 = vadd.f32 %v2245_v53, %v1878_v14  ;;  %v1879_v54 = vadd.f32 %v1815_v30, %v16168_v41  ;;  %v3079_v36 = vor.u32 %v3078_v23, %v3077_v34  ;;  %v3086_v23 = vrot.slane %v19325_v26, 2 }
 0x22a   :  { %v12914_v4 = vpop.f32.mrf.mxu1  ;;  %v12847_v39 = vpop.f32.mrf.mxu0  ;;  %v19328_v26 = vshll.u32 %v16240_v17, 16 }
 0x22b   :  { %v3080_v18 = vsel %vm3044_vm6, %v3075_v52, %v3079_v36  ;;  %v14592_v52 = vld [vmem:[#allocation5 + $0x70] sm:$0xff]  }
 0x22c   :  { %v2248_v55 = vpop.f32.mrf.mxu1  ;;  %v1820_v9 = vpop.f32.mrf.mxu0  ;;  %13113 = vmatmul.mubr.bf16.gmra.mxu0 %v3076_v8  ;;  %13147 = vmatpush3.bf16.msra.mxu1 %v14592_v52 }
 0x22d   :  { %v16386_v12 = vadd.f32 %v2248_v55, %v1879_v54  ;;  %v1880_v41 = vadd.f32 %v1820_v9, %v16182_v46  ;;  %13116 = vmatprep.mubr.msk.bf16.mxu0 %vm15114_vm0, %v16018_v10  ;;  %v19323_v46 = vshll.u32 %v16177_v5, 16  ;;  %13148 = vmatprep.subr.bf16.mxu1 %v16018_v10 }
 0x22e   :  { %v12915_v38 = vpop.f32.mrf.mxu1  ;;  %v12850_v40 = vpop.f32.mrf.mxu0 }
 0x22f   :  { %v3082_v59 = vrot.slane %v19323_v46, 2 }
 0x230   :  { %v2253_v11 = vpop.f32.mrf.mxu1  ;;  %v1823_v35 = vpop.f32.mrf.mxu0 }
 0x231   :  { %v16391_v20 = vadd.f32 %v2253_v11, %v1880_v41  ;;  %v1881_v25 = vadd.f32 %v1823_v35, %v16189_v1  ;;  %v3083_v1 = vor.u32 %v3082_v59, %v3081_v21  ;;  %v14593_v21 = vld [vmem:[#allocation5 + $0x68] sm:$0xff]  }
 0x232   :  { %v12918_v47 = vpop.f32.mrf.mxu1  ;;  %v12851_v49 = vpop.f32.mrf.mxu0  ;;  %13149 = vmatpush3.bf16.msra.mxu1 %v14593_v21 }
 0x233   :  { %v3084_v50 = vsel %vm3044_vm6, %v3079_v36, %v3083_v1  ;;  %13150 = vmatprep.subr.bf16.mxu1 %v16018_v10 }
 0x234   :  { %v2256_v15 = vpop.f32.mrf.mxu1  ;;  %v1828_v53 = vpop.f32.mrf.mxu0  ;;  %13117 = vmatmul.mubr.bf16.gmra.mxu0 %v3080_v18  ;;  %v19327_v18 = vshll.u32 %v16219_v0, 16 }
 0x235   :  { %v16399_v31 = vadd.f32 %v2256_v15, %v1881_v25  ;;  %v1882_v48 = vadd.f32 %v1828_v53, %v16203_v13  ;;  %13120 = vmatprep.mubr.msk.bf16.mxu0 %vm15114_vm0, %v16018_v10  ;;  %v19324_v13 = vshrl.u32 %v16198_v3, 16  ;;  %v19326_v3 = vshrl.u32 %v16219_v0, 16 }
 0x236   :  { %v12919_v14 = vpop.f32.mrf.mxu1  ;;  %v12854_v45 = vpop.f32.mrf.mxu0  ;;  %v3090_v7 = vrot.slane %v19327_v18, 2 }
 0x237   :  { %v3085_v34 = vrot.slane %v19324_v13, 1  ;;  %v3089_v15 = vrot.slane %v19326_v3, 1  ;;  %v14594_v14 = vld [vmem:[#allocation5 + $0x38] sm:$0xff]  }
 0x238   :  { %v2261_v4 = vpop.f32.mrf.mxu1  ;;  %v1831_v5 = vpop.f32.mrf.mxu0  ;;  %13213 = vmatpush3.bf16.msra.mxu0 %v14594_v14  ;;  %v14598_v3 = vld [vmem:[#allocation5 + $0x58] sm:$0xff]  }
 0x239   :  { %v16404_v30 = vadd.f32 %v2261_v4, %v1882_v48  ;;  %v1883_v55 = vadd.f32 %v1831_v5, %v16210_v44  ;;  %v3087_v44 = vor.u32 %v3086_v23, %v3085_v34  ;;  %v3091_v52 = vor.u32 %v3090_v7, %v3089_v15  ;;  %13214 = vmatprep.subr.bf16.mxu0 %v16018_v10  ;;  %v14599_v15 = vld [vmem:[#allocation5 + $0x20] sm:$0xff]  }
 0x23a   :  { %v12922_v54 = vpop.f32.mrf.mxu1  ;;  %v12855_v39 = vpop.f32.mrf.mxu0  ;;  %v3094_v23 = vrot.slane %v19328_v26, 2 }
 0x23b   :  { %v3088_v59 = vsel %vm3044_vm6, %v3083_v1, %v3087_v44  ;;  %v3024_v1 = vld [vmem:[#allocation2 + $0x70] sm:$0x3]  ;;  %v14595_v54 = vld [vmem:[#allocation5 + $0x30] sm:$0xff]  }
 0x23c   :  { %v2264_v8 = vpop.f32.mrf.mxu1  ;;  %v1836_v41 = vpop.f32.mrf.mxu0  ;;  %13121 = vmatmul.mubr.bf16.gmra.mxu0 %v3084_v50  ;;  %v3092_v50 = vsel %vm3044_vm6, %v3087_v44, %v3091_v52  ;;  %v11207_v39 = vcombine.low %v16252_v61, %v3024_v1 }
 0x23d   :  { %v16413_v38 = vadd.f32 %v2264_v8, %v1883_v55  ;;  %v1884_v11 = vadd.f32 %v1836_v41, %v16224_v42  ;;  %13124 = vmatprep.mubr.msk.bf16.mxu0 %vm15114_vm0, %v16018_v10  ;;  %13215 = vmatpush3.bf16.msra.mxu0 %v14595_v54  ;;  %v14596_v41 = vld [vmem:[#allocation5 + $0x60] sm:$0xff]  }
 0x23e   :  { %v12923_v9 = vpop.f32.mrf.mxu1  ;;  %v12858_v36 = vpop.f32.mrf.mxu0  ;;  %13151 = vmatpush3.bf16.msra.mxu1 %v14596_v41 }
 0x23f   :  { %v16442_v9 = vld [vmem:[#allocation4] sm:$0xff]  ;;  %v3098_v36 = vshrl.u32 %v11207_v39, 16 }
 0x240   :  { %v2269_v40 = vpop.f32.mrf.mxu1  ;;  %v1839_v25 = vpop.f32.mrf.mxu0  ;;  %13216 = vmatprep.subr.bf16.mxu0 %v16442_v9  ;;  %13152 = vmatprep.subr.bf16.mxu1 %v16442_v9 }
 0x241   :  { %v16418_v47 = vadd.f32 %v2269_v40, %v1884_v11  ;;  %v1885_v46 = vadd.f32 %v1839_v25, %v16231_v24  ;;  %v14597_v11 = vld [vmem:[#allocation5 + $0x28] sm:$0xff]  }
 0x242   :  { %v12926_v35 = vpop.f32.mrf.mxu1  ;;  %v12859_v49 = vpop.f32.mrf.mxu0  ;;  %13217 = vmatpush3.bf16.msra.mxu0 %v14597_v11  ;;  %13153 = vmatpush3.bf16.msra.mxu1 %v14598_v3 }
 0x243   :  { %v3101_v35 = vshll.u32 %v11207_v39, 16  ;;  %13218 = vmatprep.subr.bf16.mxu0 %v16442_v9  ;;  %13154 = vmatprep.subr.bf16.mxu1 %v16442_v9  ;;  %v14605_v39 = vld [vmem:[#allocation5 + $0x8] sm:$0xff]  }
 0x244   :  { %v2272_v42 = vpop.f32.mrf.mxu1  ;;  %v1844_v4 = vpop.f32.mrf.mxu0  ;;  %13125 = vmatmul.mubr.bf16.gmra.mxu0 %v3088_v59  ;;  %v3100_v59 = vrot.slane %v3098_v36, 1 }
 0x245   :  { %v16426_v53 = vadd.f32 %v2272_v42, %v1885_v46  ;;  %v1886_v0 = vadd.f32 %v1844_v4, %v16245_v6  ;;  %13128 = vmatprep.mubr.msk.bf16.mxu0 %vm15114_vm0, %v16018_v10  ;;  %v3093_v6 = vrot.slane %v2523_v57, 1  ;;  %v3103_v49 = vrot.slane %v3101_v35, 2  ;;  %v14601_v4 = vld [vmem:[#allocation5 + $0x18] sm:$0xff]  }
 0x246   :  { %v12927_v48 = vpop.f32.mrf.mxu1  ;;  %v12862_v24 = vpop.f32.mrf.mxu0  ;;  %13219 = vmatpush3.bf16.msra.mxu0 %v14599_v15 }
 0x247   :  { %v3095_v61 = vor.u32 %v3094_v23, %v3093_v6  ;;  %13220 = vmatprep.subr.bf16.mxu0 %v16442_v9  ;;  %v14600_v48 = vld [vmem:[#allocation5 + $0x50] sm:$0xff]   ;;  %v14604_v23 = vld [vmem:[#allocation5 + $0x40] sm:$0xff]  }
 0x248   :  { %v2277_v45 = vpop.f32.mrf.mxu1  ;;  %v1847_v8 = vpop.f32.mrf.mxu0  ;;  %13155 = vmatpush3.bf16.msra.mxu1 %v14600_v48 }
 0x249   :  { %v16433_v5 = vadd.f32 %v2277_v45, %v1886_v0  ;;  %v1887_v13 = vadd.f32 %v1847_v8, %v16254_v29  ;;  %v3096_v42 = vsel %vm3044_vm6, %v3091_v52, %v3095_v61  ;;  %v3104_v52 = vor.u32 %v3103_v49, %v3100_v59  ;;  %13156 = vmatprep.subr.bf16.mxu1 %v16442_v9  ;;  %v14603_v8 = vld [vmem:[#allocation5 + $0x10] sm:$0xff]  }
 0x24a   :  { %v12930_v55 = vpop.f32.mrf.mxu1  ;;  %v12863_v10 = vpop.f32.mrf.mxu0  ;;  %13221 = vmatpush3.bf16.msra.mxu0 %v14601_v4 }
 0x24b   :  { %13222 = vmatprep.subr.bf16.mxu0 %v16442_v9  ;;  %v14602_v55 = vld [vmem:[#allocation5 + $0x48] sm:$0xff]  }
 0x24c   :  { %v2280_v34 = vpop.f32.mrf.mxu1  ;;  %v1852_v44 = vpop.f32.mrf.mxu0  ;;  %13129 = vmatmul.mubr.bf16.gmra.mxu0 %v3092_v50  ;;  %13157 = vmatpush3.bf16.msra.mxu1 %v14602_v55 }
 0x24d   :  { %v16445_v40 = vadd.f32 %v2280_v34, %v1887_v13  ;;  %v1888_v57 = vadd.f32 %v1852_v44, %v16269_v2  ;;  %13132 = vmatprep.mubr.msk.bf16.mxu0 %vm15114_vm0, %v16442_v9  ;;  %13158 = vmatprep.subr.bf16.mxu1 %v16442_v9 }
 0x24e   :  { %v12931_v29 = vpop.f32.mrf.mxu1  ;;  %v12866_v25 = vpop.f32.mrf.mxu0  ;;  %13223 = vmatpush3.bf16.msra.mxu0 %v14603_v8 }
 0x24f   :  { %13224 = vmatprep.subr.bf16.mxu0 %v16442_v9 }
 0x250   :  { %v2285_v17 = vpop.f32.mrf.mxu1  ;;  %v1855_v21 = vpop.f32.mrf.mxu0  ;;  %13159 = vmatpush3.bf16.msra.mxu1 %v14604_v23 }
 0x251   :  { %v16452_v18 = vadd.f32 %v2285_v17, %v1888_v57  ;;  %v1889_v2 = vadd.f32 %v1855_v21, %v16276_v32  ;;  %v14608_v57 = vld [vmem:[#allocation5] sm:$0xff]   ;;  %13280 = vmatprep.subr.bf16.mxu1 %v16442_v9 }
 0x252   :  { %v12934_v7 = vpop.f32.mrf.mxu1  ;;  %v12867_v14 = vpop.f32.mrf.mxu0  ;;  %13225 = vmatpush3.bf16.msra.mxu0 %v14605_v39 }
 0x253   :  { %13226 = vmatprep.subr.bf16.mxu0 %v16442_v9 }
 0x254   :  { %v2288_v46 = vpop.f32.mrf.mxu1  ;;  %v1860_v24 = vpop.f32.mrf.mxu0  ;;  %13133 = vmatmul.mubr.bf16.gmra.mxu0 %v3096_v42 }
 0x255   :  { %v16458_v0 = vadd.f32 %v2288_v46, %v1889_v2  ;;  %v1890_v32 = vadd.f32 %v1860_v24, %v16286_v43  ;;  %13136 = vmatprep.mubr.msk.bf16.mxu0 %vm15114_vm0, %v16442_v9  ;;  %v3105_v43 = vsel %vm3044_vm6, %v3095_v61, %v3104_v52 }
 0x256   :  { %v12935_v45 = vpop.f32.mrf.mxu1  ;;  %v12870_v54 = vpop.f32.mrf.mxu0  ;;  %13227 = vmatpush3.bf16.msra.mxu0 %v14608_v57 }
 0x257   :  { %13348 = vmatprep.subr.bf16.mxu0 %v16442_v9 }
 0x258   :  { %v2293_v1 = vpop.f32.mrf.mxu1  ;;  %v1863_v34 = vpop.f32.mrf.mxu0 }
 0x259   :  { %v16465_v50 = vadd.f32 %v2293_v1, %v1890_v32 }
 0x25a   :  { %v12938_v13 = vpop.f32.mrf.mxu1  ;;  %v12871_v26 = vpop.f32.mrf.mxu0 }
 0x25c   :  { %v2296_v6 = vpop.f32.mrf.mxu1  ;;  %v2629_v41 = vpop.f32.mrf.mxu0  ;;  %13137 = vmatmul.mubr.bf16.gmra.mxu0 %v3105_v43 }
 0x25d   :  { %v2731_v11 = vadd.f32 %v2629_v41, %v16298_v33  ;;  %13140 = vmatprep.mubr.msk.bf16.mxu0 %vm15114_vm0, %v16442_v9 }
 0x25e   :  { %v12939_v10 = vpop.f32.mrf.mxu1  ;;  %v12958_v44 = vpop.f32.mrf.mxu0 }
 0x260   :  { %v2897_v29 = vpop.f32.mrf.mxu1  ;;  %v2632_v36 = vpop.f32.mrf.mxu0 }
 0x261   :  { %v16475_v17 = vadd.f32 %v2897_v29, %v2731_v11  ;;  %v2732_v35 = vadd.f32 %v2632_v36, %v16305_v51 }
 0x262   :  { %v13026_v61 = vpop.f32.mrf.mxu1  ;;  %v12959_v33 = vpop.f32.mrf.mxu0 }
 0x264   :  { %v2900_v25 = vpop.f32.mrf.mxu1  ;;  %v2637_v7 = vpop.f32.mrf.mxu0  ;;  %13141 = vmatmul.mubr.bf16.gmra.mxu0 %v3104_v52 }
 0x265   :  { %v16479_v3 = vadd.f32 %v2900_v25, %v2732_v35  ;;  %v2733_v21 = vadd.f32 %v2637_v7, %v16312_v27  ;;  %13228 = vmatprep.mubr.msk.bf16.mxu0 %vm15114_vm0, %v16442_v9 }
 0x266   :  { %v13027_v15 = vpop.f32.mrf.mxu1  ;;  %v12962_v46 = vpop.f32.mrf.mxu0 }
 0x268   :  { %v2905_v2 = vpop.f32.mrf.mxu1  ;;  %v2640_v59 = vpop.f32.mrf.mxu0 }
 0x269   :  { %v16484_v42 = vadd.f32 %v2905_v2, %v2733_v21  ;;  %v2734_v49 = vadd.f32 %v2640_v59, %v16320_v58 }
 0x26a   :  { %v13030_v51 = vpop.f32.mrf.mxu1  ;;  %v12963_v48 = vpop.f32.mrf.mxu0 }
 0x26c   :  { %v2908_v14 = vpop.f32.mrf.mxu1  ;;  %v2645_v24 = vpop.f32.mrf.mxu0 }
 0x26d   :  { %v16487_v4 = vadd.f32 %v2908_v14, %v2734_v49  ;;  %v2735_v32 = vadd.f32 %v2645_v24, %v16325_v28 }
 0x26e   :  { %v13031_v45 = vpop.f32.mrf.mxu1  ;;  %v12966_v1 = vpop.f32.mrf.mxu0 }
 0x270   :  { %v2913_v27 = vpop.f32.mrf.mxu1  ;;  %v2648_v55 = vpop.f32.mrf.mxu0 }
 0x271   :  { %v16490_v52 = vadd.f32 %v2913_v27, %v2735_v32  ;;  %v2736_v8 = vadd.f32 %v2648_v55, %v16333_v56 }
 0x272   :  { %v13034_v54 = vpop.f32.mrf.mxu1  ;;  %v12967_v34 = vpop.f32.mrf.mxu0 }
 0x274   :  { %v2916_v13 = vpop.f32.mrf.mxu1  ;;  %v2653_v43 = vpop.f32.mrf.mxu0 }
 0x275   :  { %v16493_v6 = vadd.f32 %v2916_v13, %v2736_v8  ;;  %v2737_v26 = vadd.f32 %v2653_v43, %v16338_v37 }
 0x276   :  { %v13035_v58 = vpop.f32.mrf.mxu1  ;;  %v12970_v39 = vpop.f32.mrf.mxu0 }
 0x278   :  { %v2921_v23 = vpop.f32.mrf.mxu1  ;;  %v2656_v41 = vpop.f32.mrf.mxu0 }
 0x279   :  { %v16496_v10 = vadd.f32 %v2921_v23, %v2737_v26  ;;  %v2738_v11 = vadd.f32 %v2656_v41, %v16346_v63 }
 0x27a   :  { %v13038_v28 = vpop.f32.mrf.mxu1  ;;  %v12971_v44 = vpop.f32.mrf.mxu0 }
 0x27c   :  { %v2924_v29 = vpop.f32.mrf.mxu1  ;;  %v2661_v61 = vpop.f32.mrf.mxu0 }
 0x27d   :  { %v16499_v57 = vadd.f32 %v2924_v29, %v2738_v11  ;;  %v2739_v36 = vadd.f32 %v2661_v61, %v16351_v60 }
 0x27e   :  { %v13039_v56 = vpop.f32.mrf.mxu1  ;;  %v12974_v25 = vpop.f32.mrf.mxu0 }
 0x280   :  { %v2929_v35 = vpop.f32.mrf.mxu1  ;;  %v2664_v15 = vpop.f32.mrf.mxu0 }
 0x281   :  { %v16502_v33 = vadd.f32 %v2929_v35, %v2739_v36  ;;  %v2740_v7 = vadd.f32 %v2664_v15, %v16359_v22 }
 0x282   :  { %v13042_v37 = vpop.f32.mrf.mxu1  ;;  %v12975_v2 = vpop.f32.mrf.mxu0 }
 0x284   :  { %v2932_v21 = vpop.f32.mrf.mxu1  ;;  %v2669_v51 = vpop.f32.mrf.mxu0 }
 0x285   :  { %v16505_v46 = vadd.f32 %v2932_v21, %v2740_v7  ;;  %v2741_v59 = vadd.f32 %v2669_v51, %v16364_v19 }
 0x286   :  { %v13043_v63 = vpop.f32.mrf.mxu1  ;;  %v12978_v14 = vpop.f32.mrf.mxu0 }
 0x288   :  { %v2937_v49 = vpop.f32.mrf.mxu1  ;;  %v2672_v45 = vpop.f32.mrf.mxu0 }
 0x289   :  { %v16508_v48 = vadd.f32 %v2937_v49, %v2741_v59  ;;  %v2742_v24 = vadd.f32 %v2672_v45, %v16372_v62 }
 0x28a   :  { %v13046_v60 = vpop.f32.mrf.mxu1  ;;  %v12979_v27 = vpop.f32.mrf.mxu0 }
 0x28c   :  { %v2940_v32 = vpop.f32.mrf.mxu1  ;;  %v2677_v54 = vpop.f32.mrf.mxu0 }
 0x28d   :  { %v16511_v1 = vadd.f32 %v2940_v32, %v2742_v24  ;;  %v2743_v55 = vadd.f32 %v2677_v54, %v16377_v16 }
 0x28e   :  { %v13047_v22 = vpop.f32.mrf.mxu1  ;;  %v12982_v13 = vpop.f32.mrf.mxu0 }
 0x290   :  { %v2945_v8 = vpop.f32.mrf.mxu1  ;;  %v2680_v58 = vpop.f32.mrf.mxu0 }
 0x291   :  { %v16514_v34 = vadd.f32 %v2945_v8, %v2743_v55  ;;  %v2744_v43 = vadd.f32 %v2680_v58, %v16386_v12 }
 0x292   :  { %v13050_v19 = vpop.f32.mrf.mxu1  ;;  %v12983_v23 = vpop.f32.mrf.mxu0 }
 0x294   :  { %v2948_v26 = vpop.f32.mrf.mxu1  ;;  %v2685_v28 = vpop.f32.mrf.mxu0 }
 0x295   :  { %v16517_v39 = vadd.f32 %v2948_v26, %v2744_v43  ;;  %v2745_v41 = vadd.f32 %v2685_v28, %v16391_v20 }
 0x296   :  { %v13051_v62 = vpop.f32.mrf.mxu1  ;;  %v12986_v29 = vpop.f32.mrf.mxu0 }
 0x298   :  { %v2953_v11 = vpop.f32.mrf.mxu1  ;;  %v2688_v56 = vpop.f32.mrf.mxu0 }
 0x299   :  { %v16520_v44 = vadd.f32 %v2953_v11, %v2745_v41  ;;  %v2746_v61 = vadd.f32 %v2688_v56, %v16399_v31 }
 0x29a   :  { %v13054_v16 = vpop.f32.mrf.mxu1  ;;  %v12987_v35 = vpop.f32.mrf.mxu0 }
 0x29c   :  { %v2956_v36 = vpop.f32.mrf.mxu1  ;;  %v2693_v37 = vpop.f32.mrf.mxu0 }
 0x29d   :  { %v16523_v25 = vadd.f32 %v2956_v36, %v2746_v61  ;;  %v2747_v15 = vadd.f32 %v2693_v37, %v16404_v30 }
 0x29e   :  { %v13055_v12 = vpop.f32.mrf.mxu1  ;;  %v12990_v21 = vpop.f32.mrf.mxu0 }
 0x2a0   :  { %v2961_v7 = vpop.f32.mrf.mxu1  ;;  %v2696_v63 = vpop.f32.mrf.mxu0 }
 0x2a1   :  { %v16526_v2 = vadd.f32 %v2961_v7, %v2747_v15  ;;  %v2748_v51 = vadd.f32 %v2696_v63, %v16413_v38 }
 0x2a2   :  { %v13058_v20 = vpop.f32.mrf.mxu1  ;;  %v12991_v49 = vpop.f32.mrf.mxu0 }
 0x2a4   :  { %v2964_v59 = vpop.f32.mrf.mxu1  ;;  %v2701_v60 = vpop.f32.mrf.mxu0 }
 0x2a5   :  { %v16529_v14 = vadd.f32 %v2964_v59, %v2748_v51  ;;  %v2749_v45 = vadd.f32 %v2701_v60, %v16418_v47 }
 0x2a6   :  { %v13059_v31 = vpop.f32.mrf.mxu1  ;;  %v12994_v32 = vpop.f32.mrf.mxu0 }
 0x2a8   :  { %v2969_v24 = vpop.f32.mrf.mxu1  ;;  %v2704_v22 = vpop.f32.mrf.mxu0 }
 0x2a9   :  { %v16532_v27 = vadd.f32 %v2969_v24, %v2749_v45  ;;  %v2750_v54 = vadd.f32 %v2704_v22, %v16426_v53 }
 0x2aa   :  { %v13062_v30 = vpop.f32.mrf.mxu1  ;;  %v12995_v8 = vpop.f32.mrf.mxu0 }
 0x2ac   :  { %v2972_v55 = vpop.f32.mrf.mxu1  ;;  %v2709_v19 = vpop.f32.mrf.mxu0 }
 0x2ad   :  { %v16535_v13 = vadd.f32 %v2972_v55, %v2750_v54  ;;  %v2751_v58 = vadd.f32 %v2709_v19, %v16433_v5  ;;  %v3385_v55 = vld [vmem:[%s19257_s1] sm:$0xff] }
 0x2ae   :  { %v13063_v38 = vpop.f32.mrf.mxu1  ;;  %v12998_v26 = vpop.f32.mrf.mxu0  ;;  %vm3410_vm7 = vcmp.gt.f32.partialorder %v3385_v55, 0.0 }
 0x2af   :  { %v3386_v38 = vld [vmem:[%s19257_s1 + $0x8] sm:$0xff] }
 0x2b0   :  { %v2977_v43 = vpop.f32.mrf.mxu1  ;;  %v2712_v62 = vpop.f32.mrf.mxu0  ;;  %vm3411_vm8 = vcmp.gt.f32.partialorder %v3386_v38, 0.0 }
 0x2b1   :  { %v16538_v23 = vadd.f32 %v2977_v43, %v2751_v58  ;;  %v2752_v28 = vadd.f32 %v2712_v62, %v16445_v40  ;;  %v3587_v62 = vld [vmem:[#allocation3 + $0x4] sm:$0xf] }
 0x2b2   :  { %v13066_v47 = vpop.f32.mrf.mxu1  ;;  %v12999_v11 = vpop.f32.mrf.mxu0 }
 0x2b4   :  { %v2980_v41 = vpop.f32.mrf.mxu1  ;;  %v2717_v16 = vpop.f32.mrf.mxu0 }
 0x2b5   :  { %v16541_v29 = vadd.f32 %v2980_v41, %v2752_v28  ;;  %v2753_v56 = vadd.f32 %v2717_v16, %v16452_v18  ;;  %v3586_v28 = vld [vmem:[#allocation3] sm:$0xc] }
 0x2b6   :  { %v13067_v53 = vpop.f32.mrf.mxu1  ;;  %v13002_v36 = vpop.f32.mrf.mxu0  ;;  %v3628_v16 = vld [vmem:[#allocation3] sm:$0x8] }
 0x2b7   :  { %v11263_v36 = vcombine.low %v3586_v28, %v3587_v62 }
 0x2b8   :  { %v2985_v61 = vpop.f32.mrf.mxu1  ;;  %v2720_v12 = vpop.f32.mrf.mxu0 }
 0x2b9   :  { %v16544_v35 = vadd.f32 %v2985_v61, %v2753_v56  ;;  %v2754_v37 = vadd.f32 %v2720_v12, %v16458_v0  ;;  %v16555_v0 = vld [vmem:[%s19260_s4] ss:$0 sm:$0xff] }
 0x2ba   :  { %v13070_v5 = vpop.f32.mrf.mxu1  ;;  %v13003_v7 = vpop.f32.mrf.mxu0 }
 0x2bb   :  { %v3387_v5 = vld [vmem:[%s19257_s1 + $0x10] sm:$0xff] }
 0x2bc   :  { %v2988_v15 = vpop.f32.mrf.mxu1  ;;  %v2725_v20 = vpop.f32.mrf.mxu0  ;;  %vm3412_vm9 = vcmp.gt.f32.partialorder %v3387_v5, 0.0 }
 0x2bd   :  { %v16547_v21 = vadd.f32 %v2988_v15, %v2754_v37  ;;  %v2755_v63 = vadd.f32 %v2725_v20, %v16465_v50  ;;  %v11242_v15 = vcombine.low %v3628_v16, %v3587_v62 }
 0x2be   :  { %v13071_v40 = vpop.f32.mrf.mxu1  ;;  %v13006_v59 = vpop.f32.mrf.mxu0 }
 0x2c0   :  { %v2993_v51 = vpop.f32.mrf.mxu1  ;;  %v2728_v31 = vpop.f32.mrf.mxu0 }
 0x2c1   :  { %v16550_v49 = vadd.f32 %v2993_v51, %v2755_v63  ;;  %v3936_v63 = vshrl.u32 %v11263_v36, 16  ;;  %v3939_v51 = vshll.u32 %v11263_v36, 16 }
 0x2c2   :  { %v13074_v18 = vpop.f32.mrf.mxu1  ;;  %v13007_v45 = vpop.f32.mrf.mxu0 }
 0x2c3   :  { %v3938_v55 = vrot.slane %v3936_v63, 2 }
 0x2c4   :  { %v2996_v60 = vpop.f32.mrf.mxu1  ;;  %v3201_v32 = vpop.f32.mrf.mxu0 }
 0x2c5   :  { %v3303_v30 = vadd.f32 %v3201_v32, %v16475_v17  ;;  %v4272_v60 = vshll.u32 %v11242_v15, 16 }
 0x2c6   :  { %v13075_v24 = vpop.f32.mrf.mxu1  ;;  %v13094_v22 = vpop.f32.mrf.mxu0 }
 0x2c7   :  { %v3335_v50 = vadd.f32 %v16555_v0, %v3303_v30  ;;  %v3389_v22 = vld [vmem:[%s19257_s1 + $0x20] sm:$0xff] }
 0x2c8   :  { %v3204_v54 = vpop.f32.mrf.mxu0  ;;  %vm3414_vm11 = vcmp.gt.f32.partialorder %v3389_v22, 0.0 }
 0x2c9   :  { %v3304_v8 = vadd.f32 %v3204_v54, %v16479_v3  ;;  %v3360_v58 = vmax.f32 %v3335_v50, 0.0  ;;  %v3390_v54 = vld [vmem:[%s19257_s1 + $0x28] sm:$0xff] }
 0x2ca   :  { %v13095_v19 = vpop.f32.mrf.mxu0  ;;  %vm3415_vm12 = vcmp.gt.f32.partialorder %v3390_v54, 0.0 }
 0x2cb   :  { %v3336_v43 = vadd.f32 %v16555_v0, %v3304_v8  ;;  %v3435_v11 = vsel %vm3410_vm7, %v3360_v58, 0.0  ;;  %v3941_v8 = vrot.slane %v3939_v51, 3  ;;  %v3710_v19 = vrot.slane %v11242_v15, 3 }
 0x2cc   :  { %v3209_v17 = vpop.f32.mrf.mxu0 }
 0x2cd   :  { %v3361_v26 = vmax.f32 %v3336_v43, 0.0  ;;  %v3305_v47 = vadd.f32 %v3209_v17, %v16484_v42  ;;  %v3388_v42 = vld [vmem:[%s19257_s1 + $0x18] sm:$0xff]  ;;  %v4274_v17 = vrot.slane %v4272_v60, 4 }
 0x2ce   :  { %v13098_v41 = vpop.f32.mrf.mxu0  ;;  %vm3413_vm10 = vcmp.gt.f32.partialorder %v3388_v42, 0.0 }
 0x2cf   :  { %v3436_v53 = vsel %vm3411_vm8, %v3361_v26, 0.0  ;;  %v3337_v3 = vadd.f32 %v16555_v0, %v3305_v47  ;;  %v14616_v41 = vld [vmem:[#allocation5 + $0xb8] sm:$0xff]  }
 0x2d0   :  { %v11718_v56 = vpack.c.bf16 %v3436_v53, %v3435_v11  ;;  %v3212_v61 = vpop.f32.mrf.mxu0  ;;  %v3942_v53 = vor.u32 %v3941_v8, %v3938_v55 }
 0x2d1   :  { %v3306_v12 = vadd.f32 %v3212_v61, %v16487_v4  ;;  %v3362_v7 = vmax.f32 %v3337_v3, 0.0  ;;  %v4269_v4 = vshrl.u32 %v11242_v15, 16 }
 0x2d2   :  { %11895 = vst [vmem:[#allocation3 + $0x8] sm:$0xff] %v11718_v56   ;;  %v13099_v37 = vpop.f32.mrf.mxu0 }
 0x2d3   :  { %v3338_v40 = vadd.f32 %v16555_v0, %v3306_v12  ;;  %v3437_v45 = vsel %vm3412_vm9, %v3362_v7, 0.0  ;;  %v4271_v43 = vrot.slane %v4269_v4, 3 }
 0x2d4   :  { %v3217_v20 = vpop.f32.mrf.mxu0 }
 0x2d5   :  { %v3363_v59 = vmax.f32 %v3338_v40, 0.0  ;;  %v3307_v18 = vadd.f32 %v3217_v20, %v16490_v52  ;;  %v4275_v12 = vor.u32 %v4274_v17, %v4271_v43  ;;  %v14618_v20 = vld [vmem:[#allocation5 + $0xb0] sm:$0xff]  }
 0x2d6   :  { %v13102_v31 = vpop.f32.mrf.mxu0  ;;  %v14624_v17 = vld [vmem:[#allocation5 + $0xf0] sm:$0xff]  }
 0x2d7   :  { %v3438_v24 = vsel %vm3413_vm10, %v3363_v59, 0.0  ;;  %v3339_v32 = vadd.f32 %v16555_v0, %v3307_v18  ;;  %v3392_v59 = vld [vmem:[%s19257_s1 + $0x38] sm:$0xff]  ;;  %v14622_v31 = vld [vmem:[#allocation5 + $0xf8] sm:$0xff]  }
 0x2d8   :  { %v11723_v30 = vpack.c.bf16 %v3438_v24, %v3437_v45  ;;  %v3220_v50 = vpop.f32.mrf.mxu0  ;;  %vm3417_vm14 = vcmp.gt.f32.partialorder %v3392_v59, 0.0 }
 0x2d9   :  { %v3308_v52 = vadd.f32 %v3220_v50, %v16493_v6  ;;  %v16586_v38 = vld [vmem:[#allocation3 + $0x8] sm:$0xff]   ;;  %v3364_v26 = vmax.f32 %v3339_v32, 0.0 }
 0x2da   :  { %11896 = vst [vmem:[#allocation3 + $0x10] sm:$0xff] %v11723_v30   ;;  %v13103_v58 = vpop.f32.mrf.mxu0  ;;  %v3711_v62 = vrot.slane %v16586_v38, 3  ;;  %v3944_v28 = vshrl.u32 %v16586_v38, 16  ;;  %v3947_v6 = vshll.u32 %v16586_v38, 16 }
 0x2db   :  { %v3340_v47 = vadd.f32 %v16555_v0, %v3308_v52  ;;  %v3439_v15 = vsel %vm3414_vm11, %v3364_v26, 0.0 }
 0x2dc   :  { %v3225_v11 = vpop.f32.mrf.mxu0  ;;  %v3712_v56 = vsel %vm351_vm1, %v3710_v19, %v3711_v62  ;;  %v3946_v61 = vrot.slane %v3944_v28, 2  ;;  %v3949_v5 = vrot.slane %v3947_v6, 3  ;;  %v4276_v42 = vrot.slane %v3944_v28, 3 }
 0x2dd   :  { %v3365_v3 = vmax.f32 %v3340_v47, 0.0  ;;  %v3309_v16 = vadd.f32 %v3225_v11, %v16496_v10  ;;  %13161 = vmatmul.mubr.bf16.vlgmr.msra.gmra.mxu1 %v3712_v56  ;;  %v4277_v37 = vrot.slane %v3947_v6, 4  ;;  %v3391_v10 = vld [vmem:[%s19257_s1 + $0x30] sm:$0xff]  ;;  %v3394_v56 = vld [vmem:[%s19257_s1 + $0x48] sm:$0xff] }
 0x2de   :  { %v13106_v36 = vpop.f32.mrf.mxu0  ;;  %13164 = vmatprep.mubr.msk.bf16.mxu1 %vm15114_vm0, %v16442_v9  ;;  %13281 = vmatpush3.bf16.msra.mxu1 %v14616_v41  ;;  %v3950_v18 = vor.u32 %v3949_v5, %v3946_v61  ;;  %vm3416_vm13 = vcmp.gt.f32.partialorder %v3391_v10, 0.0  ;;  %vm3419_vm7 = vcmp.gt.f32.partialorder %v3394_v56, 0.0 }
 0x2df   :  { %v3440_v7 = vsel %vm3415_vm12, %v3365_v3, 0.0  ;;  %v3341_v40 = vadd.f32 %v16555_v0, %v3309_v16  ;;  %13282 = vmatprep.subr.bf16.mxu1 %v16442_v9  ;;  %v16604_v4 = vor.u32 %v4277_v37, %v4276_v42  ;;  %v14626_v36 = vld [vmem:[#allocation5 + $0xe8] sm:$0xff]  }
 0x2e0   :  { %v11728_v63 = vpack.c.bf16 %v3440_v7, %v3439_v15  ;;  %v3228_v51 = vpop.f32.mrf.mxu0  ;;  %v3951_v32 = vsel %vm577_vm2, %v3942_v53, %v3950_v18 }
 0x2e1   :  { %v3310_v60 = vadd.f32 %v3228_v51, %v16499_v57  ;;  %v16607_v45 = vld [vmem:[#allocation3 + $0x10] sm:$0xff]   ;;  %v16612_v30 = vsel %vm911_vm3, %v4275_v12, %v16604_v4  ;;  %v3366_v22 = vmax.f32 %v3341_v40, 0.0  ;;  %13229 = vmatmul.mubr.bf16.vlgmr.msra.gmra.mxu0 %v3951_v32  ;;  %v14621_v57 = vld [vmem:[#allocation5 + $0xa8] sm:$0xff]  }
 0x2e2   :  { %11897 = vst [vmem:[#allocation3 + $0x18] sm:$0xff] %v11728_v63   ;;  %v13107_v24 = vpop.f32.mrf.mxu0  ;;  %v3713_v54 = vrot.slane %v16607_v45, 3  ;;  %v3953_v55 = vshrl.u32 %v16607_v45, 16  ;;  %13283 = vmatpush3.bf16.msra.mxu1 %v14618_v20  ;;  %13232 = vmatprep.mubr.msk.bf16.mxu0 %vm15114_vm0, %v16442_v9  ;;  %v3956_v52 = vshll.u32 %v16607_v45, 16  ;;  %v14628_v63 = vld [vmem:[#allocation5 + $0x98] sm:$0xff]  }
 0x2e3   :  { %v3342_v50 = vadd.f32 %v16555_v0, %v3310_v60  ;;  %13284 = vmatprep.subr.bf16.mxu1 %v16442_v9  ;;  %13349 = vmatpush3.bf16.msra.mxu0 %v14622_v31  ;;  %v3441_v41 = vsel %vm3416_vm13, %v3366_v22, 0.0  ;;  %v14629_v24 = vld [vmem:[#allocation5 + $0xe0] sm:$0xff]  }
 0x2e4   :  { %v3233_v8 = vpop.f32.mrf.mxu0  ;;  %v3714_v58 = vsel %vm351_vm1, %v3711_v62, %v3713_v54  ;;  %v3955_v43 = vrot.slane %v3953_v55, 2  ;;  %v3958_v47 = vrot.slane %v3956_v52, 3  ;;  %13350 = vmatprep.subr.bf16.mxu0 %v16442_v9  ;;  %v4280_v28 = vrot.slane %v3953_v55, 3  ;;  %v14625_v62 = vld [vmem:[#allocation5 + $0xa0] sm:$0xff]  }
 0x2e5   :  { %v3367_v38 = vmax.f32 %v3342_v50, 0.0  ;;  %v3311_v19 = vadd.f32 %v3233_v8, %v16502_v33  ;;  %13165 = vmatmul.mubr.bf16.gmra.mxu1 %v3714_v58  ;;  %v3393_v33 = vld [vmem:[%s19257_s1 + $0x40] sm:$0xff]  ;;  %v4281_v6 = vrot.slane %v3956_v52, 4 }
 0x2e6   :  { %v13110_v26 = vpop.f32.mrf.mxu0  ;;  %13168 = vmatprep.mubr.msk.bf16.mxu1 %vm15114_vm0, %v16442_v9  ;;  %13285 = vmatpush3.bf16.msra.mxu1 %v14621_v57  ;;  %v3959_v61 = vor.u32 %v3958_v47, %v3955_v43  ;;  %vm3418_vm15 = vcmp.gt.f32.partialorder %v3393_v33, 0.0  ;;  %v14631_v43 = vld [vmem:[#allocation5 + $0xd8] sm:$0xff]  }
 0x2e7   :  { %v3442_v11 = vsel %vm3417_vm14, %v3367_v38, 0.0  ;;  %v3343_v53 = vadd.f32 %v16555_v0, %v3311_v19  ;;  %13286 = vmatprep.subr.bf16.mxu1 %v16442_v9  ;;  %13351 = vmatpush3.bf16.msra.mxu0 %v14624_v17  ;;  %v16639_v42 = vor.u32 %v4281_v6, %v4280_v28  ;;  %v3396_v19 = vld [vmem:[%s19257_s1 + $0x58] sm:$0xff] }
 0x2e8   :  { %v11733_v3 = vpack.c.bf16 %v3442_v11, %v3441_v41  ;;  %v3236_v16 = vpop.f32.mrf.mxu0  ;;  %v3960_v15 = vsel %vm577_vm2, %v3950_v18, %v3959_v61  ;;  %13352 = vmatprep.subr.bf16.mxu0 %v16442_v9  ;;  %vm3421_vm9 = vcmp.gt.f32.partialorder %v3396_v19, 0.0 }
 0x2e9   :  { %v3312_v5 = vadd.f32 %v3236_v16, %v16505_v46  ;;  %v16637_v12 = vld [vmem:[#allocation3 + $0x18] sm:$0xff]   ;;  %v3368_v7 = vmax.f32 %v3343_v53, 0.0  ;;  %13233 = vmatmul.mubr.bf16.gmra.mxu0 %v3960_v15  ;;  %v16653_v59 = vsel %vm911_vm3, %v16604_v4, %v16639_v42 }
 0x2ea   :  { %11898 = vst [vmem:[#allocation3 + $0x20] sm:$0xff] %v11733_v3   ;;  %v13111_v37 = vpop.f32.mrf.mxu0  ;;  %v3715_v20 = vrot.slane %v16637_v12, 3  ;;  %v3962_v46 = vshrl.u32 %v16637_v12, 16  ;;  %13287 = vmatpush3.bf16.msra.mxu1 %v14625_v62  ;;  %13236 = vmatprep.mubr.msk.bf16.mxu0 %vm15114_vm0, %v16442_v9  ;;  %v3965_v51 = vshll.u32 %v16637_v12, 16  ;;  %v14632_v62 = vld [vmem:[#allocation5 + $0x88] sm:$0xff]   ;;  %v14633_v12 = vld [vmem:[#allocation5 + $0xd0] sm:$0xff]  }
 0x2eb   :  { %v3344_v40 = vadd.f32 %v16555_v0, %v3312_v5  ;;  %13288 = vmatprep.subr.bf16.mxu1 %v16442_v9  ;;  %13353 = vmatpush3.bf16.msra.mxu0 %v14626_v36  ;;  %v3443_v55 = vsel %vm3418_vm15, %v3368_v7, 0.0 }
 0x2ec   :  { %v3241_v10 = vpop.f32.mrf.mxu0  ;;  %v3716_v60 = vsel %vm351_vm1, %v3713_v54, %v3715_v20  ;;  %v3964_v45 = vrot.slane %v3962_v46, 2  ;;  %v3967_v22 = vrot.slane %v3965_v51, 3  ;;  %13354 = vmatprep.subr.bf16.mxu0 %v16442_v9  ;;  %v4284_v50 = vrot.slane %v3962_v46, 3  ;;  %v14630_v54 = vld [vmem:[#allocation5 + $0x90] sm:$0xff]  }
 0x2ed   :  { %v3369_v18 = vmax.f32 %v3344_v40, 0.0  ;;  %v3313_v31 = vadd.f32 %v3241_v10, %v16508_v48  ;;  %13169 = vmatmul.mubr.bf16.gmra.mxu1 %v3716_v60  ;;  %v3395_v48 = vld [vmem:[%s19257_s1 + $0x50] sm:$0xff]  ;;  %v4285_v8 = vrot.slane %v3965_v51, 4  ;;  %v14635_v60 = vld [vmem:[#allocation5 + $0xc8] sm:$0xff]  }
 0x2ee   :  { %v13114_v32 = vpop.f32.mrf.mxu0  ;;  %13172 = vmatprep.mubr.msk.bf16.mxu1 %vm15114_vm0, %v16442_v9  ;;  %13289 = vmatpush3.bf16.msra.mxu1 %v14628_v63  ;;  %v3968_v58 = vor.u32 %v3967_v22, %v3964_v45  ;;  %vm3420_vm8 = vcmp.gt.f32.partialorder %v3395_v48, 0.0 }
 0x2ef   :  { %v3444_v57 = vsel %vm3419_vm7, %v3369_v18, 0.0  ;;  %v3345_v4 = vadd.f32 %v16555_v0, %v3313_v31  ;;  %13290 = vmatprep.subr.bf16.mxu1 %v16442_v9  ;;  %13355 = vmatpush3.bf16.msra.mxu0 %v14629_v24  ;;  %v16673_v47 = vor.u32 %v4285_v8, %v4284_v50  ;;  %v3398_v18 = vld [vmem:[%s19257_s1 + $0x68] sm:$0xff] }
 0x2f0   :  { %v11738_v52 = vpack.c.bf16 %v3444_v57, %v3443_v55  ;;  %v3244_v38 = vpop.f32.mrf.mxu0  ;;  %v3969_v41 = vsel %vm577_vm2, %v3959_v61, %v3968_v58  ;;  %13356 = vmatprep.subr.bf16.mxu0 %v16442_v9  ;;  %vm3423_vm11 = vcmp.gt.f32.partialorder %v3398_v18, 0.0 }
 0x2f1   :  { %v3314_v17 = vadd.f32 %v3244_v38, %v16511_v1  ;;  %v16671_v26 = vld [vmem:[#allocation3 + $0x20] sm:$0xff]   ;;  %v3370_v11 = vmax.f32 %v3345_v4, 0.0  ;;  %13237 = vmatmul.mubr.bf16.gmra.mxu0 %v3969_v41  ;;  %v16687_v16 = vsel %vm911_vm3, %v16639_v42, %v16673_v47 }
 0x2f2   :  { %11899 = vst [vmem:[#allocation3 + $0x28] sm:$0xff] %v11738_v52   ;;  %v13115_v28 = vpop.f32.mrf.mxu0  ;;  %v3717_v33 = vrot.slane %v16671_v26, 3  ;;  %v3971_v1 = vshrl.u32 %v16671_v26, 16  ;;  %13291 = vmatpush3.bf16.msra.mxu1 %v14630_v54  ;;  %13240 = vmatprep.mubr.msk.bf16.mxu0 %vm15114_vm0, %v16442_v9  ;;  %v3974_v3 = vshll.u32 %v16671_v26, 16 }
 0x2f3   :  { %v3346_v53 = vadd.f32 %v16555_v0, %v3314_v17  ;;  %13292 = vmatprep.subr.bf16.mxu1 %v16442_v9  ;;  %13357 = vmatpush3.bf16.msra.mxu0 %v14631_v43  ;;  %v3445_v40 = vsel %vm3420_vm8, %v3370_v11, 0.0  ;;  %v14636_v43 = vld [vmem:[#allocation5 + $0xc0] sm:$0xff]   ;;  %v16722_v28 = vld [vmem:[#allocation4] sm:$0xff] }
 0x2f4   :  { %v3249_v6 = vpop.f32.mrf.mxu0  ;;  %v3718_v36 = vsel %vm351_vm1, %v3715_v20, %v3717_v33  ;;  %v3973_v5 = vrot.slane %v3971_v1, 2  ;;  %v3976_v15 = vrot.slane %v3974_v3, 3  ;;  %13358 = vmatprep.subr.bf16.mxu0 %v16442_v9  ;;  %v4288_v7 = vrot.slane %v3971_v1, 3  ;;  %v14634_v20 = vld [vmem:[#allocation5 + $0x80] sm:$0xff]  }
 0x2f5   :  { %v3371_v56 = vmax.f32 %v3346_v53, 0.0  ;;  %v3315_v61 = vadd.f32 %v3249_v6, %v16514_v34  ;;  %13173 = vmatmul.mubr.bf16.gmra.mxu1 %v3718_v36  ;;  %v3397_v34 = vld [vmem:[%s19257_s1 + $0x60] sm:$0xff]  ;;  %v4289_v63 = vrot.slane %v3974_v3, 4 }
 0x2f6   :  { %v13118_v37 = vpop.f32.mrf.mxu0  ;;  %13176 = vmatprep.mubr.msk.bf16.mxu1 %vm15114_vm0, %v16442_v9  ;;  %13293 = vmatpush3.bf16.msra.mxu1 %v14632_v62  ;;  %v3977_v31 = vor.u32 %v3976_v15, %v3973_v5  ;;  %vm3422_vm10 = vcmp.gt.f32.partialorder %v3397_v34, 0.0  ;;  %v3400_v62 = vld [vmem:[%s19257_s1 + $0x78] sm:$0xff] }
 0x2f7   :  { %v3446_v46 = vsel %vm3421_vm9, %v3371_v56, 0.0  ;;  %v3347_v42 = vadd.f32 %v16555_v0, %v3315_v61  ;;  %13294 = vmatprep.subr.bf16.mxu1 %v16442_v9  ;;  %13359 = vmatpush3.bf16.msra.mxu0 %v14633_v12  ;;  %v4290_v32 = vor.u32 %v4289_v63, %v4288_v7  ;;  %vm3425_vm13 = vcmp.gt.f32.partialorder %v3400_v62, 0.0 }
 0x2f8   :  { %v11743_v10 = vpack.c.bf16 %v3446_v46, %v3445_v40  ;;  %v3252_v51 = vpop.f32.mrf.mxu0  ;;  %v3978_v50 = vsel %vm577_vm2, %v3968_v58, %v3977_v31  ;;  %13360 = vmatprep.subr.bf16.mxu0 %v16442_v9 }
 0x2f9   :  { %v3316_v45 = vadd.f32 %v3252_v51, %v16517_v39  ;;  %v16705_v24 = vld [vmem:[#allocation3 + $0x28] sm:$0xff]   ;;  %v3372_v55 = vmax.f32 %v3347_v42, 0.0  ;;  %13241 = vmatmul.mubr.bf16.gmra.mxu0 %v3978_v50  ;;  %v16717_v8 = vsel %vm911_vm3, %v16673_v47, %v4290_v32  ;;  %v3402_v50 = vld [vmem:[%s19257_s1 + $0x88] sm:$0xff] }
 0x2fa   :  { %11900 = vst [vmem:[#allocation3 + $0x30] sm:$0xff] %v11743_v10   ;;  %v13119_v22 = vpop.f32.mrf.mxu0  ;;  %v3719_v4 = vrot.slane %v16705_v24, 3  ;;  %v3980_v48 = vshrl.u32 %v16705_v24, 16  ;;  %13295 = vmatpush3.bf16.msra.mxu1 %v14634_v20  ;;  %13244 = vmatprep.mubr.msk.bf16.mxu0 %vm15114_vm0, %v16442_v9  ;;  %v3983_v54 = vshll.u32 %v16705_v24, 16  ;;  %v3401_v24 = vld [vmem:[%s19257_s1 + $0x80] sm:$0xff]  ;;  %vm3427_vm15 = vcmp.gt.f32.partialorder %v3402_v50, 0.0 }
 0x2fb   :  { %v3348_v57 = vadd.f32 %v16555_v0, %v3316_v45  ;;  %13416 = vmatprep.subr.bf16.mxu1 %v16442_v9  ;;  %13361 = vmatpush3.bf16.msra.mxu0 %v14635_v60  ;;  %v3447_v47 = vsel %vm3422_vm10, %v3372_v55, 0.0  ;;  %vm3426_vm14 = vcmp.gt.f32.partialorder %v3401_v24, 0.0  ;;  %v3405_v50 = vld [vmem:[%s19257_s1 + $0xa0] sm:$0xff] }
 0x2fc   :  { %v3257_v39 = vpop.f32.mrf.mxu0  ;;  %v3720_v19 = vsel %vm351_vm1, %v3717_v33, %v3719_v4  ;;  %v3982_v58 = vrot.slane %v3980_v48, 2  ;;  %v3985_v26 = vrot.slane %v3983_v54, 3  ;;  %13362 = vmatprep.subr.bf16.mxu0 %v16722_v28  ;;  %v4292_v41 = vrot.slane %v3980_v48, 3 }
 0x2fd   :  { %v3373_v52 = vmax.f32 %v3348_v57, 0.0  ;;  %v3317_v38 = vadd.f32 %v3257_v39, %v16520_v44  ;;  %13177 = vmatmul.mubr.bf16.gmra.mxu1 %v3720_v19  ;;  %v3399_v44 = vld [vmem:[%s19257_s1 + $0x70] sm:$0xff]  ;;  %v4293_v53 = vrot.slane %v3983_v54, 4  ;;  %vm3430_vm9 = vcmp.gt.f32.partialorder %v3405_v50, 0.0 }
 0x2fe   :  { %v13122_v17 = vpop.f32.mrf.mxu0  ;;  %13180 = vmatprep.mubr.msk.bf16.mxu1 %vm15114_vm0, %v16722_v28  ;;  %v3986_v6 = vor.u32 %v3985_v26, %v3982_v58  ;;  %vm3424_vm12 = vcmp.gt.f32.partialorder %v3399_v44, 0.0 }
 0x2ff   :  { %v3448_v9 = vsel %vm3423_vm11, %v3373_v52, 0.0  ;;  %v3349_v11 = vadd.f32 %v16555_v0, %v3317_v38  ;;  %13363 = vmatpush3.bf16.msra.mxu0 %v14636_v43  ;;  %v4294_v61 = vor.u32 %v4293_v53, %v4292_v41 }
 0x300   :  { %v11748_v33 = vpack.c.bf16 %v3448_v9, %v3447_v47  ;;  %v3260_v1 = vpop.f32.mrf.mxu0  ;;  %v3987_v5 = vsel %vm577_vm2, %v3977_v31, %v3986_v6  ;;  %13484 = vmatprep.subr.bf16.mxu0 %v16722_v28 }
 0x301   :  { %v3318_v3 = vadd.f32 %v3260_v1, %v16523_v25  ;;  %v14614_v56 = vld [vmem:[#allocation3 + $0x30] sm:$0xff]   ;;  %v3374_v12 = vmax.f32 %v3349_v11, 0.0  ;;  %13245 = vmatmul.mubr.bf16.gmra.mxu0 %v3987_v5  ;;  %v16743_v46 = vsel %vm911_vm3, %v4290_v32, %v4294_v61 }
 0x302   :  { %11901 = vst [vmem:[#allocation3 + $0x38] sm:$0xff] %v11748_v33   ;;  %v13123_v36 = vpop.f32.mrf.mxu0  ;;  %v3721_v15 = vrot.slane %v14614_v56, 3  ;;  %v3989_v7 = vshrl.u32 %v14614_v56, 16  ;;  %13248 = vmatprep.mubr.msk.bf16.mxu0 %vm15114_vm0, %v16722_v28  ;;  %v3992_v25 = vshll.u32 %v14614_v56, 16 }
 0x303   :  { %v3350_v37 = vadd.f32 %v16555_v0, %v3318_v3  ;;  %v3449_v31 = vsel %vm3424_vm12, %v3374_v12, 0.0 }
 0x304   :  { %v3265_v40 = vpop.f32.mrf.mxu0  ;;  %v3722_v20 = vsel %vm351_vm1, %v3719_v4, %v3721_v15  ;;  %v3991_v63 = vrot.slane %v3989_v7, 2  ;;  %v3994_v51 = vrot.slane %v3992_v25, 3  ;;  %v4296_v18 = vrot.slane %v3989_v7, 3 }
 0x305   :  { %v3375_v42 = vmax.f32 %v3350_v37, 0.0  ;;  %v3319_v34 = vadd.f32 %v3265_v40, %v16526_v2  ;;  %13181 = vmatmul.mubr.bf16.gmra.mxu1 %v3722_v20  ;;  %v4297_v2 = vrot.slane %v3992_v25, 4 }
 0x306   :  { %v13126_v10 = vpop.f32.mrf.mxu0  ;;  %13184 = vmatprep.mubr.msk.bf16.mxu1 %vm15114_vm0, %v16722_v28  ;;  %v3995_v55 = vor.u32 %v3994_v51, %v3991_v63 }
 0x307   :  { %v3450_v60 = vsel %vm3425_vm13, %v3375_v42, 0.0  ;;  %v3351_v45 = vadd.f32 %v16555_v0, %v3319_v34  ;;  %v4298_v48 = vor.u32 %v4297_v2, %v4296_v18 }
 0x308   :  { %v11753_v32 = vpack.c.bf16 %v3450_v60, %v3449_v31  ;;  %v3268_v22 = vpop.f32.mrf.mxu0  ;;  %v3996_v54 = vsel %vm577_vm2, %v3986_v6, %v3995_v55  ;;  %v3403_v6 = vld [vmem:[%s19257_s1 + $0x90] sm:$0xff] }
 0x309   :  { %v3320_v57 = vadd.f32 %v3268_v22, %v16529_v14  ;;  %v14615_v4 = vld [vmem:[#allocation3 + $0x38] sm:$0xff]   ;;  %v3376_v52 = vmax.f32 %v3351_v45, 0.0  ;;  %13249 = vmatmul.mubr.bf16.gmra.mxu0 %v3996_v54  ;;  %v16763_v14 = vsel %vm911_vm3, %v4294_v61, %v4298_v48  ;;  %v3404_v61 = vld [vmem:[%s19257_s1 + $0x98] sm:$0xff]  ;;  %vm3428_vm7 = vcmp.gt.f32.partialorder %v3403_v6, 0.0 }
 0x30a   :  { %11902 = vst [vmem:[#allocation3 + $0x40] sm:$0xff] %v11753_v32   ;;  %v13127_v39 = vpop.f32.mrf.mxu0  ;;  %v3723_v19 = vrot.slane %v14615_v4, 3  ;;  %v3998_v58 = vshrl.u32 %v14615_v4, 16  ;;  %13252 = vmatprep.mubr.msk.bf16.mxu0 %vm15114_vm0, %v16722_v28  ;;  %v4001_v17 = vshll.u32 %v14615_v4, 16  ;;  %vm3429_vm8 = vcmp.gt.f32.partialorder %v3404_v61, 0.0  ;;  %v3406_v4 = vld [vmem:[%s19257_s1 + $0xa8] sm:$0xff] }
 0x30b   :  { %v3352_v38 = vadd.f32 %v16555_v0, %v3320_v57  ;;  %v3451_v33 = vsel %vm3426_vm14, %v3376_v52, 0.0  ;;  %vm3431_vm10 = vcmp.gt.f32.partialorder %v3406_v4, 0.0 }
 0x30c   :  { %v3273_v43 = vpop.f32.mrf.mxu0  ;;  %v3724_v47 = vsel %vm351_vm1, %v3721_v15, %v3723_v19  ;;  %v4000_v9 = vrot.slane %v3998_v58, 2  ;;  %v4003_v44 = vrot.slane %v4001_v17, 3  ;;  %v4300_v53 = vrot.slane %v3998_v58, 3 }
 0x30d   :  { %v3377_v26 = vmax.f32 %v3352_v38, 0.0  ;;  %v3321_v41 = vadd.f32 %v3273_v43, %v16532_v27  ;;  %13185 = vmatmul.mubr.bf16.gmra.mxu1 %v3724_v47  ;;  %v4301_v27 = vrot.slane %v4001_v17, 4 }
 0x30e   :  { %v13130_v11 = vpop.f32.mrf.mxu0  ;;  %13188 = vmatprep.mubr.msk.bf16.mxu1 %vm15114_vm0, %v16722_v28  ;;  %v4004_v36 = vor.u32 %v4003_v44, %v4000_v9 }
 0x30f   :  { %v3452_v1 = vsel %vm3427_vm15, %v3377_v26, 0.0  ;;  %v3353_v62 = vadd.f32 %v16555_v0, %v3321_v41  ;;  %v4302_v37 = vor.u32 %v4301_v27, %v4300_v53 }
 0x310   :  { %v11758_v3 = vpack.c.bf16 %v3452_v1, %v3451_v33  ;;  %v3276_v56 = vpop.f32.mrf.mxu0  ;;  %v4005_v7 = vsel %vm577_vm2, %v3995_v55, %v4004_v36 }
 0x311   :  { %v3322_v5 = vadd.f32 %v3276_v56, %v16535_v13  ;;  %v14617_v12 = vld [vmem:[#allocation3 + $0x40] sm:$0xff]   ;;  %v3378_v40 = vmax.f32 %v3353_v62, 0.0  ;;  %13253 = vmatmul.mubr.bf16.gmra.mxu0 %v4005_v7  ;;  %v16783_v13 = vsel %vm911_vm3, %v4298_v48, %v4302_v37 }
 0x312   :  { %11903 = vst [vmem:[#allocation3 + $0x48] sm:$0xff] %v11758_v3   ;;  %v13131_v15 = vpop.f32.mrf.mxu0  ;;  %v3725_v42 = vrot.slane %v14617_v12, 3  ;;  %v4007_v34 = vshrl.u32 %v14617_v12, 16  ;;  %13256 = vmatprep.mubr.msk.bf16.mxu0 %vm15114_vm0, %v16722_v28  ;;  %v4010_v63 = vshll.u32 %v14617_v12, 16 }
 0x313   :  { %v3354_v25 = vadd.f32 %v16555_v0, %v3322_v5  ;;  %v3453_v2 = vsel %vm3428_vm7, %v3378_v40, 0.0  ;;  %v3408_v5 = vld [vmem:[%s19257_s1 + $0xb8] sm:$0xff] }
 0x314   :  { %v3281_v20 = vpop.f32.mrf.mxu0  ;;  %v3726_v18 = vsel %vm351_vm1, %v3723_v19, %v3725_v42  ;;  %v4009_v31 = vrot.slane %v4007_v34, 2  ;;  %v4012_v45 = vrot.slane %v4010_v63, 3  ;;  %v4304_v24 = vrot.slane %v4007_v34, 3 }
 0x315   :  { %v3379_v10 = vmax.f32 %v3354_v25, 0.0  ;;  %v3323_v51 = vadd.f32 %v3281_v20, %v16538_v23  ;;  %13189 = vmatmul.mubr.bf16.gmra.mxu1 %v3726_v18  ;;  %v4305_v23 = vrot.slane %v4010_v63, 4  ;;  %vm3433_vm12 = vcmp.gt.f32.partialorder %v3408_v5, 0.0 }
 0x316   :  { %v13134_v60 = vpop.f32.mrf.mxu0  ;;  %13192 = vmatprep.mubr.msk.bf16.mxu1 %vm15114_vm0, %v16722_v28  ;;  %v4013_v48 = vor.u32 %v4012_v45, %v4009_v31 }
 0x317   :  { %v3454_v32 = vsel %vm3429_vm8, %v3379_v10, 0.0  ;;  %v3355_v22 = vadd.f32 %v16555_v0, %v3323_v51  ;;  %v4306_v52 = vor.u32 %v4305_v23, %v4304_v24  ;;  %v3409_v60 = vld [vmem:[%s19257_s1 + $0xc0] sm:$0xff] }
 0x318   :  { %v11763_v55 = vpack.c.bf16 %v3454_v32, %v3453_v2  ;;  %v3284_v57 = vpop.f32.mrf.mxu0  ;;  %v4014_v19 = vsel %vm577_vm2, %v4004_v36, %v4013_v48  ;;  %vm3434_vm13 = vcmp.gt.f32.partialorder %v3409_v60, 0.0  ;;  %v16873_v60 = vld [vmem:[#allocation3 + $0x28] sm:$0xf] }
 0x319   :  { %v3324_v39 = vadd.f32 %v3284_v57, %v16541_v29  ;;  %v14619_v54 = vld [vmem:[#allocation3 + $0x48] sm:$0xff]   ;;  %v3380_v58 = vmax.f32 %v3355_v22, 0.0  ;;  %13257 = vmatmul.mubr.bf16.gmra.mxu0 %v4014_v19  ;;  %v16803_v29 = vsel %vm911_vm3, %v4302_v37, %v4306_v52 }
 0x31a   :  { %11904 = vst [vmem:[#allocation3 + $0x50] sm:$0xff] %v11763_v55   ;;  %v13135_v38 = vpop.f32.mrf.mxu0  ;;  %v3727_v17 = vrot.slane %v14619_v54, 3  ;;  %v4016_v26 = vshrl.u32 %v14619_v54, 16  ;;  %13260 = vmatprep.mubr.msk.bf16.mxu0 %vm15114_vm0, %v16722_v28  ;;  %v4019_v47 = vshll.u32 %v14619_v54, 16 }
 0x31b   :  { %v3356_v43 = vadd.f32 %v16555_v0, %v3324_v39  ;;  %v3455_v6 = vsel %vm3430_vm9, %v3380_v58, 0.0 }
 0x31c   :  { %v3289_v41 = vpop.f32.mrf.mxu0  ;;  %v3728_v44 = vsel %vm351_vm1, %v3725_v42, %v3727_v17  ;;  %v4018_v53 = vrot.slane %v4016_v26, 2  ;;  %v4021_v1 = vrot.slane %v4019_v47, 3  ;;  %v4308_v62 = vrot.slane %v4016_v26, 3 }
 0x31d   :  { %v3381_v9 = vmax.f32 %v3356_v43, 0.0  ;;  %v3325_v11 = vadd.f32 %v3289_v41, %v16544_v35  ;;  %13193 = vmatmul.mubr.bf16.gmra.mxu1 %v3728_v44  ;;  %v4309_v56 = vrot.slane %v4019_v47, 4  ;;  %v3407_v35 = vld [vmem:[%s19257_s1 + $0xb0] sm:$0xff] }
 0x31e   :  { %v13138_v33 = vpop.f32.mrf.mxu0  ;;  %13196 = vmatprep.mubr.msk.bf16.mxu1 %vm15114_vm0, %v16722_v28  ;;  %v4022_v12 = vor.u32 %v4021_v1, %v4018_v53  ;;  %vm3432_vm11 = vcmp.gt.f32.partialorder %v3407_v35, 0.0 }
 0x31f   :  { %v3456_v27 = vsel %vm3431_vm10, %v3381_v9, 0.0  ;;  %v3357_v3 = vadd.f32 %v16555_v0, %v3325_v11  ;;  %v4310_v7 = vor.u32 %v4309_v56, %v4308_v62 }
 0x320   :  { %v11768_v61 = vpack.c.bf16 %v3456_v27, %v3455_v6  ;;  %v3292_v36 = vpop.f32.mrf.mxu0  ;;  %v4023_v25 = vsel %vm577_vm2, %v4013_v48, %v4022_v12 }
 0x321   :  { %v3326_v37 = vadd.f32 %v3292_v36, %v16547_v21  ;;  %v14620_v15 = vld [vmem:[#allocation3 + $0x50] sm:$0xff]   ;;  %v3382_v42 = vmax.f32 %v3357_v3, 0.0  ;;  %13261 = vmatmul.mubr.bf16.gmra.mxu0 %v4023_v25  ;;  %v16823_v21 = vsel %vm911_vm3, %v4306_v52, %v4310_v7  ;;  %v16859_v25 = vld [vmem:[#allocation3 + $0x8] sm:$0xf] }
 0x322   :  { %11905 = vst [vmem:[#allocation3 + $0x58] sm:$0xff] %v11768_v61   ;;  %v13139_v40 = vpop.f32.mrf.mxu0  ;;  %v3729_v20 = vrot.slane %v14620_v15, 3  ;;  %v4025_v63 = vshrl.u32 %v14620_v15, 16  ;;  %13264 = vmatprep.mubr.msk.bf16.mxu0 %vm15114_vm0, %v16722_v28  ;;  %v4028_v51 = vshll.u32 %v14620_v15, 16  ;;  %v16855_v15 = vld [vmem:[#allocation3 + $0x10] sm:$0xf] }
 0x323   :  { %v3358_v34 = vadd.f32 %v16555_v0, %v3326_v37  ;;  %v3457_v50 = vsel %vm3432_vm11, %v3382_v42, 0.0  ;;  %v4551_v40 = vld [vmem:[#allocation3 + $0x4] sm:$0x8]  ;;  %v16861_v42 = vld [vmem:[#allocation3 + $0xc] sm:$0xf] }
 0x324   :  { %v3297_v10 = vpop.f32.mrf.mxu0  ;;  %v3730_v45 = vsel %vm351_vm1, %v3727_v17, %v3729_v20  ;;  %v4027_v24 = vrot.slane %v4025_v63, 2  ;;  %v4030_v2 = vrot.slane %v4028_v51, 3  ;;  %v4312_v32 = vrot.slane %v4025_v63, 3 }
 0x325   :  { %v3383_v18 = vmax.f32 %v3358_v34, 0.0  ;;  %v3327_v31 = vadd.f32 %v3297_v10, %v16550_v49  ;;  %13197 = vmatmul.mubr.bf16.gmra.mxu1 %v3730_v45  ;;  %v4313_v57 = vrot.slane %v4028_v51, 4  ;;  %v11281_v63 = vcombine.low %v4551_v40, %v16859_v25  ;;  %v16869_v10 = vld [vmem:[#allocation3 + $0x18] sm:$0xf]  ;;  %v16871_v51 = vld [vmem:[#allocation3 + $0x20] sm:$0xf] }
 0x326   :  { %v13142_v22 = vpop.f32.mrf.mxu0  ;;  %13200 = vmatprep.mubr.msk.bf16.mxu1 %vm15114_vm0, %v16722_v28  ;;  %v4031_v4 = vor.u32 %v4030_v2, %v4027_v24  ;;  %v16875_v24 = vld [vmem:[#allocation3 + $0x14] sm:$0xf]  ;;  %v16877_v2 = vld [vmem:[#allocation3 + $0x1c] sm:$0xf]  ;;  %v14652_v40 = vld [vmem:[#allocation5 + $0x170] sm:$0xff]  }
 0x327   :  { %v3458_v23 = vsel %vm3433_vm12, %v3383_v18, 0.0  ;;  %v3359_v55 = vadd.f32 %v16555_v0, %v3327_v31  ;;  %v4314_v52 = vor.u32 %v4313_v57, %v4312_v32  ;;  %v4659_v45 = vshrl.u32 %v11281_v63, 16 }
 0x328   :  { %v11773_v49 = vpack.c.bf16 %v3458_v23, %v3457_v50  ;;  %v3300_v48 = vpop.f32.mrf.mxu0  ;;  %v4032_v38 = vsel %vm577_vm2, %v4022_v12, %v4031_v4  ;;  %v4662_v32 = vshll.u32 %v11281_v63, 16  ;;  %v11283_v22 = vcombine.low %v16875_v24, %v16869_v10  ;;  %v16885_v23 = vld [vmem:[#allocation3 + $0x24] sm:$0xf]  ;;  %v16910_v63 = vld [vmem:[#allocation3 + $0x1c] sm:$0xff]  }
 0x329   :  { %v3384_v39 = vmax.f32 %v3359_v55, 0.0  ;;  %v14623_v54 = vld [vmem:[#allocation3 + $0x58] sm:$0xff]   ;;  %13265 = vmatmul.mubr.bf16.gmra.mxu0 %v4032_v38  ;;  %v16837_v41 = vsel %vm911_vm3, %v4310_v7, %v4314_v52  ;;  %v11284_v50 = vcombine.low %v16877_v2, %v16871_v51  ;;  %v11285_v55 = vcombine.low %v16885_v23, %v16873_v60 }
 0x32a   :  { %11906 = vst [vmem:[#allocation3 + $0x60] sm:$0xff] %v11773_v49   ;;  %v13143_v19 = vpop.f32.mrf.mxu0  ;;  %v3731_v43 = vrot.slane %v14623_v54, 3  ;;  %v4034_v17 = vshrl.u32 %v14623_v54, 16  ;;  %v4037_v0 = vshll.u32 %v14623_v54, 16  ;;  %13268 = vmatprep.mubr.msk.bf16.mxu0 %vm15114_vm0, %v16722_v28  ;;  %v4664_v48 = vrot.slane %v4662_v32, 4  ;;  %v14644_v38 = vld [vmem:[#allocation5 + $0x138] sm:$0xff]  }
 0x32b   :  { %v3459_v58 = vsel %vm3434_vm13, %v3384_v39, 0.0  ;;  %v4676_v39 = vshrl.u32 %v11283_v22, 16  ;;  %v4679_v54 = vshll.u32 %v11283_v22, 16  ;;  %v4688_v19 = vshll.u32 %v11284_v50, 16  ;;  %v16918_v22 = vld [vmem:[#allocation3 + $0x24] sm:$0xff]  }
 0x32c   :  { %v11664_v26 = vpack.c.bf16 %v3459_v58, %v3459_v58  ;;  %v3732_v47 = vsel %vm351_vm1, %v3729_v20, %v3731_v43  ;;  %v4036_v9 = vrot.slane %v4034_v17, 2  ;;  %v4039_v11 = vrot.slane %v4037_v0, 3 }
 0x32d   :  { %v4316_v44 = vrot.slane %v4034_v17, 3  ;;  %13201 = vmatmul.mubr.bf16.gmra.mxu1 %v3732_v47  ;;  %v4317_v53 = vrot.slane %v4037_v0, 4  ;;  %v11282_v20 = vcombine.low %v16861_v42, %v16855_v15  ;;  %v4694_v58 = vshrl.u32 %v11285_v55, 16  ;;  %v16891_v0 = vld [vmem:[#allocation3 + $0x30] sm:$0xf] }
 0x32e   :  { %3585 = vst [vmem:[#allocation3 + $0x68] sm:$0xf] %v11664_v26  ;;  %v4040_v33 = vor.u32 %v4039_v11, %v4036_v9  ;;  %13204 = vmatprep.mubr.msk.bf16.mxu1 %vm15114_vm0, %v16722_v28  ;;  %v4678_v47 = vrot.slane %v4676_v39, 3  ;;  %v4681_v9 = vrot.slane %v4679_v54, 4  ;;  %v14655_v39 = vld [vmem:[#allocation5 + $0x168] sm:$0xff]   ;;  %v16937_v54 = vld [vmem:[#allocation3 + $0x3c] sm:$0xff]  }
 0x32f   :  { %v16842_v1 = vor.u32 %v4317_v53, %v4316_v44  ;;  %v4667_v18 = vshrl.u32 %v11282_v20, 16  ;;  %v4670_v31 = vshll.u32 %v11282_v20, 16  ;;  %v16896_v44 = vld [vmem:[#allocation3 + $0x2c] sm:$0xf]  ;;  %v5680_v20 = vld [vmem:[#allocation3 + $0x10] sm:$0xf] }
 0x330   :  { %v4041_v62 = vsel %vm577_vm2, %v4031_v4, %v4040_v33  ;;  %v4661_v4 = vrot.slane %v4659_v45, 3  ;;  %v14647_v53 = vld [vmem:[#allocation5 + $0x130] sm:$0xff]  }
 0x331   :  { %v16845_v6 = vld [vmem:[#allocation3 + $0x60] sm:$0xf]  ;;  %v3611_v27 = vld [vmem:[#allocation3 + $0x64] sm:$0x7]  ;;  %v16850_v56 = vsel %vm911_vm3, %v4314_v52, %v16842_v1  ;;  %13269 = vmatmul.mubr.bf16.gmra.mxu0 %v4041_v62  ;;  %v4669_v57 = vrot.slane %v4667_v18, 3  ;;  %v4672_v49 = vrot.slane %v4670_v31, 4 }
 0x332   :  { %v11254_v3 = vcombine.low %v16845_v6, %v3611_v27  ;;  %13272 = vmatprep.mubr.msk.bf16.mxu0 %vm15114_vm0, %v16722_v28  ;;  %v4685_v52 = vshrl.u32 %v11284_v50, 16  ;;  %v4665_v26 = vor.u32 %v4664_v48, %v4661_v4  ;;  %v4696_v62 = vrot.slane %v4694_v58, 3  ;;  %v16913_v18 = vld [vmem:[#allocation3 + $0x34] sm:$0xf]  ;;  %v16915_v31 = vld [vmem:[#allocation3 + $0x38] sm:$0xf] }
 0x333   :  { %v4673_v17 = vor.u32 %v4672_v49, %v4669_v57  ;;  %v6111_v45 = vld [vmem:[#allocation3 + $0xc] sm:$0xe]  ;;  %v14654_v50 = vld [vmem:[#allocation5 + $0x120] sm:$0xff]   ;;  %v16924_v57 = vld [vmem:[#allocation3 + $0x34] sm:$0xff]  }
 0x334   :  { %v3733_v61 = vrot.slane %v11254_v3, 3  ;;  %v4043_v35 = vshrl.u32 %v11254_v3, 16  ;;  %v4046_v36 = vshll.u32 %v11254_v3, 16  ;;  %v4687_v11 = vrot.slane %v4685_v52, 3  ;;  %v16939_v52 = vld [vmem:[#allocation3 + $0x44] sm:$0xff]  }
 0x335   :  { %v11286_v3 = vcombine.low %v16896_v44, %v16891_v0 }
 0x336   :  { %v3734_v5 = vsel %vm351_vm1, %v3731_v43, %v3733_v61  ;;  %v4045_v12 = vrot.slane %v4043_v35, 2  ;;  %v4048_v37 = vrot.slane %v4046_v36, 3  ;;  %v4697_v43 = vshll.u32 %v11285_v55, 16  ;;  %v16902_v35 = vld [vmem:[#allocation3 + $0x14] sm:$0xff]   ;;  %v14649_v36 = vld [vmem:[#allocation5 + $0x128] sm:$0xff]   ;;  %v16922_v55 = vld [vmem:[#allocation3 + $0x2c] sm:$0xff]  }
 0x337   :  { %13205 = vmatmul.mubr.bf16.gmra.mxu1 %v3734_v5  ;;  %v4682_v5 = vor.u32 %v4681_v9, %v4678_v47  ;;  %v19289_v32 = vshrl.u32 %v16902_v35, 16  ;;  %v19290_v58 = vshll.u32 %v16902_v35, 16  ;;  %v19291_v9 = vshrl.u32 %v16910_v63, 16 }
 0x338   :  { %v4049_v7 = vor.u32 %v4048_v37, %v4045_v12  ;;  %13208 = vmatprep.mubr.msk.bf16.mxu1 %vm15114_vm0, %v16722_v28  ;;  %v4699_v27 = vrot.slane %v4697_v43, 4  ;;  %v16949_v43 = vcombine.low %v6111_v45, %v5680_v20  ;;  %v14660_v20 = vld [vmem:[#allocation5 + $0x110] sm:$0xff]  }
 0x339   :  { %v6406_v47 = vrot.slane %v19289_v32, 1  ;;  %v14661_v32 = vld [vmem:[#allocation5 + $0x158] sm:$0xff]  }
 0x33a   :  { %v4050_v34 = vsel %vm577_vm2, %v4040_v33, %v4049_v7  ;;  %v4690_v33 = vrot.slane %v4688_v19, 4  ;;  %v16906_v37 = vor.u32 %v4699_v27, %v4696_v62  ;;  %v16945_v19 = vcombine.low %v16913_v18, %v16915_v31  ;;  %v14657_v62 = vld [vmem:[#allocation5 + $0x118] sm:$0xff]  }
 0x33b   :  { %13273 = vmatmul.mubr.bf16.gmra.mxu0 %v4050_v34  ;;  %v4706_v34 = vshll.u32 %v11286_v3, 16  ;;  %v19293_v27 = vshrl.u32 %v16918_v22, 16 }
 0x33c   :  { %13276 = vmatprep.mubr.msk.bf16.mxu0 %vm15114_vm0, %v16722_v28  ;;  %v4691_v12 = vor.u32 %v4690_v33, %v4687_v11  ;;  %v19297_v11 = vshll.u32 %v16918_v22, 16  ;;  %v16960_v33 = vld [vmem:[#allocation3 + $0x5c] sm:$0xff]  }
 0x33e   :  { %v16928_v49 = vsel %vm911_vm3, %v4682_v5, %v4691_v12  ;;  %v16932_v4 = vsel %vm911_vm3, %v4691_v12, %v16906_v37 }
 0x33f   :  { %13209 = vmatmul.mubr.bf16.gmra.mxu1 %v3733_v61  ;;  %v4674_v61 = vsel %vm911_vm3, %v4665_v26, %v4673_v17  ;;  %v19292_v26 = vshll.u32 %v16910_v63, 16 }
 0x340   :  { %13296 = vmatprep.mubr.msk.bf16.mxu1 %vm15114_vm0, %v16722_v28 }
 0x343   :  { %13277 = vmatmul.mubr.bf16.gmra.mxu0 %v4049_v7  ;;  %v4703_v7 = vshrl.u32 %v11286_v3, 16  ;;  %v19296_v3 = vshll.u32 %v16922_v55, 16 }
 0x344   :  { %13364 = vmatprep.mubr.msk.bf16.mxu0 %vm15114_vm0, %v16722_v28 }
 0x345   :  { %v16934_v48 = vrot.slane %v4703_v7, 3 }
 0x347   :  { %13297 = vmatmul.mubr.bf16.vlgmr.msra.gmra.mxu1 %v16612_v30  ;;  %v14651_v30 = vld [vmem:[#allocation5 + $0x178] sm:$0xff]  }
 0x348   :  { %13300 = vmatprep.mubr.msk.bf16.mxu1 %vm15114_vm0, %v16722_v28  ;;  %13417 = vmatpush3.bf16.msra.mxu1 %v14644_v38  ;;  %v16941_v38 = vrot.slane %v4706_v34, 4  ;;  %v16973_v34 = vld [vmem:[#allocation3 + $0x64] sm:$0xff]  }
 0x349   :  { %13418 = vmatprep.subr.bf16.mxu1 %v16722_v28 }
 0x34b   :  { %13365 = vmatmul.mubr.bf16.vlgmr.msra.gmra.mxu0 %v4674_v61  ;;  %v6407_v61 = vrot.slane %v19290_v58, 2 }
 0x34c   :  { %13368 = vmatprep.mubr.msk.bf16.mxu0 %vm15114_vm0, %v16722_v28  ;;  %13419 = vmatpush3.bf16.msra.mxu1 %v14647_v53  ;;  %v16958_v53 = vld [vmem:[#allocation3 + $0x54] sm:$0xff]  }
 0x34d   :  { %13420 = vmatprep.subr.bf16.mxu1 %v16722_v28  ;;  %13485 = vmatpush3.bf16.msra.mxu0 %v14651_v30  ;;  %v19294_v30 = vshrl.u32 %v16922_v55, 16  ;;  %v6408_v58 = vor.u32 %v6407_v61, %v6406_v47  ;;  %v14662_v47 = vld [vmem:[#allocation5 + $0x108] sm:$0xff]  }
 0x34e   :  { %13486 = vmatprep.subr.bf16.mxu0 %v16722_v28 }
 0x34f   :  { %13301 = vmatmul.mubr.bf16.gmra.mxu1 %v16653_v59  ;;  %v4683_v59 = vsel %vm911_vm3, %v4673_v17, %v4682_v5  ;;  %v16951_v17 = vld [vmem:[#allocation3 + $0x4c] sm:$0xff]   ;;  %v19295_v5 = vshrl.u32 %v16924_v57, 16 }
 0x350   :  { %13304 = vmatprep.mubr.msk.bf16.mxu1 %vm15114_vm0, %v16722_v28  ;;  %13421 = vmatpush3.bf16.msra.mxu1 %v14649_v36  ;;  %v14658_v36 = vld [vmem:[#allocation5 + $0x160] sm:$0xff]  }
 0x351   :  { %13487 = vmatpush3.bf16.msra.mxu0 %v14652_v40  ;;  %13422 = vmatprep.subr.bf16.mxu1 %v16722_v28 }
 0x352   :  { %13488 = vmatprep.subr.bf16.mxu0 %v16722_v28 }
 0x353   :  { %13369 = vmatmul.mubr.bf16.gmra.mxu0 %v4683_v59  ;;  %v6402_v59 = vshll.u32 %v16949_v43, 16 }
 0x354   :  { %13372 = vmatprep.mubr.msk.bf16.mxu0 %vm15114_vm0, %v16722_v28  ;;  %13423 = vmatpush3.bf16.msra.mxu1 %v14654_v50  ;;  %v6399_v50 = vshrl.u32 %v16949_v43, 16 }
 0x355   :  { %13489 = vmatpush3.bf16.msra.mxu0 %v14655_v39  ;;  %13424 = vmatprep.subr.bf16.mxu1 %v16722_v28  ;;  %v19298_v39 = vshrl.u32 %v16951_v17, 16  ;;  %v6404_v7 = vrot.slane %v6402_v59, 2 }
 0x356   :  { %13490 = vmatprep.subr.bf16.mxu0 %v16722_v28  ;;  %v6401_v45 = vrot.slane %v6399_v50, 1  ;;  %v6414_v50 = vrot.slane %v19293_v27, 1  ;;  %v6422_v27 = vrot.slane %v19295_v5, 1 }
 0x357   :  { %13305 = vmatmul.mubr.bf16.gmra.mxu1 %v16687_v16  ;;  %v6410_v16 = vrot.slane %v19291_v9, 1  ;;  %v6418_v9 = vrot.slane %v19294_v30, 1  ;;  %v14663_v30 = vld [vmem:[#allocation5 + $0x150] sm:$0xff]  }
 0x358   :  { %13308 = vmatprep.mubr.msk.bf16.mxu1 %vm15114_vm0, %v16722_v28  ;;  %13425 = vmatpush3.bf16.msra.mxu1 %v14657_v62  ;;  %v6411_v62 = vrot.slane %v19292_v26, 2  ;;  %v6405_v59 = vor.u32 %v6404_v7, %v6401_v45  ;;  %v6419_v26 = vrot.slane %v19296_v3, 2 }
 0x359   :  { %13491 = vmatpush3.bf16.msra.mxu0 %v14658_v36  ;;  %13426 = vmatprep.subr.bf16.mxu1 %v16722_v28  ;;  %v6415_v36 = vrot.slane %v19297_v11, 2 }
 0x35a   :  { %13492 = vmatprep.subr.bf16.mxu0 %v16722_v28  ;;  %v6412_v40 = vor.u32 %v6411_v62, %v6410_v16  ;;  %v17012_v61 = vsel %vm3044_vm6, %v6405_v59, %v6408_v58  ;;  %v19330_v16 = vshrl.u32 %v16937_v54, 16  ;;  %v6420_v3 = vor.u32 %v6419_v26, %v6418_v9  ;;  %v5703_v26 = vld [vmem:[#allocation3 + $0x6c] sm:$0xf] }
 0x35b   :  { %13373 = vmatmul.mubr.bf16.gmra.mxu0 %v16928_v49  ;;  %v6416_v7 = vor.u32 %v6415_v36, %v6414_v50  ;;  %v19329_v49 = vshll.u32 %v16924_v57, 16  ;;  %v19333_v59 = vshrl.u32 %v16939_v52, 16 }
 0x35c   :  { %13376 = vmatprep.mubr.msk.bf16.mxu0 %vm15114_vm0, %v16722_v28  ;;  %13427 = vmatpush3.bf16.msra.mxu1 %v14660_v20  ;;  %v6426_v62 = vrot.slane %v19330_v16, 1  ;;  %v17020_v5 = vsel %vm3044_vm6, %v6408_v58, %v6412_v40  ;;  %v19332_v20 = vshll.u32 %v16937_v54, 16  ;;  %v6434_v58 = vrot.slane %v19298_v39, 1 }
 0x35d   :  { %v6423_v45 = vrot.slane %v19329_v49, 2  ;;  %13493 = vmatpush3.bf16.msra.mxu0 %v14661_v32  ;;  %13428 = vmatprep.subr.bf16.mxu1 %v16722_v28  ;;  %19331 = vst [vmem:[#allocation16_spill] sm:$0xff] %v17020_v5  ;;  %v6430_v50 = vrot.slane %v19333_v59, 1  ;;  %v17028_v36 = vsel %vm3044_vm6, %v6412_v40, %v6416_v7  ;;  %v19335_v32 = vshll.u32 %v16939_v52, 16 }
 0x35e   :  { %v6427_v11 = vrot.slane %v19332_v20, 2  ;;  %13494 = vmatprep.subr.bf16.mxu0 %v16722_v28  ;;  %19334 = vst [vmem:[#allocation17_spill] sm:$0xff] %v17028_v36  ;;  %v17036_v9 = vsel %vm3044_vm6, %v6416_v7, %v6420_v3  ;;  %v19337_v59 = vshll.u32 %v16951_v17, 16  ;;  %v19338_v40 = vshrl.u32 %v16958_v53, 16 }
 0x35f   :  { %v6424_v49 = vor.u32 %v6423_v45, %v6422_v27  ;;  %v6431_v16 = vrot.slane %v19335_v32, 2  ;;  %13309 = vmatmul.mubr.bf16.gmra.mxu1 %v16717_v8  ;;  %19336 = vst [vmem:[#allocation18_spill] sm:$0xff] %v17036_v9  ;;  %v6378_v27 = vld [vmem:[#allocation3 + $0x70] sm:$0x3]  ;;  %v14664_v45 = vld [vmem:[#allocation5 + $0x100] sm:$0xff]   ;;  %v19340_v7 = vshll.u32 %v16958_v53, 16 }
 0x360   :  { %v6428_v20 = vor.u32 %v6427_v11, %v6426_v62  ;;  %v6435_v12 = vrot.slane %v19337_v59, 2  ;;  %v6438_v36 = vrot.slane %v19338_v40, 1  ;;  %13312 = vmatprep.mubr.msk.bf16.mxu1 %vm15114_vm0, %v16722_v28  ;;  %13429 = vmatpush3.bf16.msra.mxu1 %v14662_v47  ;;  %v19341_v11 = vshrl.u32 %v16960_v33, 16  ;;  %v14665_v59 = vld [vmem:[#allocation5 + $0x148] sm:$0xff]  }
 0x361   :  { %v17045_v32 = vsel %vm3044_vm6, %v6420_v3, %v6424_v49  ;;  %v6432_v8 = vor.u32 %v6431_v16, %v6430_v50  ;;  %v6439_v39 = vrot.slane %v19340_v7, 2  ;;  %13495 = vmatpush3.bf16.msra.mxu0 %v14663_v30  ;;  %13430 = vmatprep.subr.bf16.mxu1 %v16722_v28  ;;  %v19342_v47 = vshll.u32 %v16960_v33, 16 }
 0x362   :  { %19339 = vst [vmem:[#allocation19_spill] sm:$0xff] %v17045_v32  ;;  %v6442_v62 = vrot.slane %v19341_v11, 1  ;;  %v17053_v40 = vsel %vm3044_vm6, %v6424_v49, %v6428_v20  ;;  %v6436_v9 = vor.u32 %v6435_v12, %v6434_v58  ;;  %v19343_v3 = vshrl.u32 %v16973_v34, 16  ;;  %13496 = vmatprep.subr.bf16.mxu0 %v16722_v28 }
 0x363   :  { %v6443_v5 = vrot.slane %v19342_v47, 2  ;;  %v17061_v16 = vsel %vm3044_vm6, %v6428_v20, %v6432_v8  ;;  %v6440_v7 = vor.u32 %v6439_v39, %v6438_v36  ;;  %v19344_v30 = vshll.u32 %v16973_v34, 16  ;;  %13377 = vmatmul.mubr.bf16.gmra.mxu0 %v16932_v4  ;;  %v14667_v4 = vld [vmem:[#allocation5 + $0x140] sm:$0xff]  }
 0x364   :  { %v6446_v50 = vrot.slane %v19343_v3, 1  ;;  %v11374_v32 = vcombine.low %v5703_v26, %v6378_v27  ;;  %v17067_v12 = vsel %vm3044_vm6, %v6432_v8, %v6436_v9  ;;  %13380 = vmatprep.mubr.msk.bf16.mxu0 %vm15114_vm0, %v16722_v28  ;;  %13431 = vmatpush3.bf16.msra.mxu1 %v14664_v45  ;;  %v4709_v36 = vor.u32 %v16941_v38, %v16934_v48  ;;  %v17087_v48 = vld [vmem:[#allocation3 + $0x40] sm:$0xf] }
 0x365   :  { %v6447_v11 = vrot.slane %v19344_v30, 2  ;;  %v6444_v49 = vor.u32 %v6443_v5, %v6442_v62  ;;  %v17072_v58 = vsel %vm3044_vm6, %v6436_v9, %v6440_v7  ;;  %v4712_v26 = vshrl.u32 %v16945_v19, 16  ;;  %13497 = vmatpush3.bf16.msra.mxu0 %v14665_v59  ;;  %13552 = vmatprep.subr.bf16.mxu1 %v16722_v28  ;;  %v17107_v30 = vld [vmem:[#allocation3 + $0x48] sm:$0xf] }
 0x366   :  { %19345 = vst [vmem:[#allocation20_spill] sm:$0xff] %v17072_v58  ;;  %v6451_v47 = vshrl.u32 %v11374_v32, 16  ;;  %v6454_v39 = vshll.u32 %v11374_v32, 16  ;;  %v4715_v27 = vshll.u32 %v16945_v19, 16  ;;  %13498 = vmatprep.subr.bf16.mxu0 %v16722_v28  ;;  %v4710_v8 = vsel %vm911_vm3, %v16906_v37, %v4709_v36  ;;  %v17095_v19 = vld [vmem:[#allocation3 + $0x3c] sm:$0xf] }
 0x367   :  { %v6448_v20 = vor.u32 %v6447_v11, %v6446_v50  ;;  %v17079_v5 = vsel %vm3044_vm6, %v6440_v7, %v6444_v49  ;;  %13313 = vmatmul.mubr.bf16.gmra.mxu1 %v16743_v46  ;;  %v4714_v62 = vrot.slane %v4712_v26, 3  ;;  %v11288_v3 = vcombine.low %v17095_v19, %v17087_v48  ;;  %v17111_v11 = vld [vmem:[#allocation3 + $0x44] sm:$0xf]  ;;  %v17116_v26 = vld [vmem:[#allocation4] sm:$0xff] }
 0x368   :  { %19346 = vst [vmem:[#allocation21_spill] sm:$0xff] %v17079_v5  ;;  %v6453_v45 = vrot.slane %v6451_v47, 1  ;;  %v6456_v32 = vrot.slane %v6454_v39, 2  ;;  %13316 = vmatprep.mubr.msk.bf16.mxu1 %vm15114_vm0, %v16722_v28  ;;  %v4717_v59 = vrot.slane %v4715_v27, 4  ;;  %v11289_v39 = vcombine.low %v17111_v11, %v17107_v30 }
 0x369   :  { %v17084_v9 = vsel %vm3044_vm6, %v6444_v49, %v6448_v20  ;;  %13499 = vmatpush3.bf16.msra.mxu0 %v14667_v4  ;;  %v4721_v37 = vshrl.u32 %v11288_v3, 16  ;;  %v4724_v7 = vshll.u32 %v11288_v3, 16 }
 0x36a   :  { %19347 = vst [vmem:[#allocation22_spill] sm:$0xff] %v17084_v9  ;;  %v17091_v38 = vor.u32 %v6456_v32, %v6453_v45  ;;  %13620 = vmatprep.subr.bf16.mxu0 %v16722_v28  ;;  %v4718_v50 = vor.u32 %v4717_v59, %v4714_v62  ;;  %v4730_v4 = vshrl.u32 %v11289_v39, 16  ;;  %v4733_v27 = vshll.u32 %v11289_v39, 16 }
 0x36b   :  { %13381 = vmatmul.mubr.bf16.gmra.mxu0 %v4710_v8  ;;  %v4726_v47 = vrot.slane %v4724_v7, 4 }
 0x36c   :  { %19348 = vst [vmem:[#allocation23_spill] sm:$0xff] %v17091_v38  ;;  %v17102_v46 = vsel %vm3044_vm6, %v6448_v20, %v17091_v38  ;;  %13384 = vmatprep.mubr.msk.bf16.mxu0 %vm15114_vm0, %v16722_v28  ;;  %v4719_v49 = vsel %vm911_vm3, %v4709_v36, %v4718_v50  ;;  %v4723_v20 = vrot.slane %v4721_v37, 3  ;;  %v17125_v36 = vld [vmem:[#allocation3 + $0x4c] sm:$0xf]  ;;  %v4732_v32 = vrot.slane %v4730_v4, 3 }
 0x36d   :  { %19349 = vst [vmem:[#allocation24_spill] sm:$0xff] %v17102_v46  ;;  %v4735_v8 = vrot.slane %v4733_v27, 4  ;;  %v17132_v37 = vld [vmem:[#allocation3 + $0x58] sm:$0xf] }
 0x36f   :  { %13317 = vmatmul.mubr.bf16.gmra.mxu1 %v16763_v14  ;;  %v4727_v14 = vor.u32 %v4726_v47, %v4723_v20  ;;  %v4736_v59 = vor.u32 %v4735_v8, %v4732_v32  ;;  %v17149_v8 = vld [vmem:[#allocation3 + $0x5c] sm:$0xf] }
 0x370   :  { %13320 = vmatprep.mubr.msk.bf16.mxu1 %vm15114_vm0, %v16722_v28  ;;  %v17121_v28 = vld [vmem:[#allocation3 + $0x50] sm:$0xf] }
 0x371   :  { %v4728_v45 = vsel %vm911_vm3, %v4718_v50, %v4727_v14  ;;  %v11290_v62 = vcombine.low %v17125_v36, %v17121_v28  ;;  %v17137_v50 = vld [vmem:[#allocation3 + $0x54] sm:$0xf] }
 0x372   :  { %v11291_v7 = vcombine.low %v17137_v50, %v17132_v37 }
 0x373   :  { %13385 = vmatmul.mubr.bf16.gmra.mxu0 %v4719_v49  ;;  %v4742_v3 = vshll.u32 %v11290_v62, 16  ;;  %v4737_v49 = vsel %vm911_vm3, %v4727_v14, %v4736_v59 }
 0x374   :  { %13388 = vmatprep.mubr.msk.bf16.mxu0 %vm15114_vm0, %v17116_v26  ;;  %v4748_v39 = vshrl.u32 %v11291_v7, 16  ;;  %v4751_v4 = vshll.u32 %v11291_v7, 16 }
 0x375   :  { %v4744_v47 = vrot.slane %v4742_v3, 4 }
 0x376   :  { %v4753_v32 = vrot.slane %v4751_v4, 4 }
 0x377   :  { %13321 = vmatmul.mubr.bf16.gmra.mxu1 %v16783_v13  ;;  %v4739_v13 = vshrl.u32 %v11290_v62, 16 }
 0x378   :  { %13324 = vmatprep.mubr.msk.bf16.mxu1 %vm15114_vm0, %v17116_v26 }
 0x379   :  { %v4741_v20 = vrot.slane %v4739_v13, 3  ;;  %v4248_v13 = vld [vmem:[#allocation3 + $0x64] sm:$0xf] }
 0x37a   :  { %v11272_v3 = vcombine.low %v16845_v6, %v4248_v13 }
 0x37b   :  { %13389 = vmatmul.mubr.bf16.gmra.mxu0 %v4728_v45  ;;  %v4745_v27 = vor.u32 %v4744_v47, %v4741_v20  ;;  %v4750_v45 = vrot.slane %v4748_v39, 3  ;;  %v17158_v20 = vld [vmem:[#allocation3 + $0x68] sm:$0xf]  ;;  %v17163_v39 = vld [vmem:[#allocation3 + $0x64] sm:$0xf] }
 0x37c   :  { %13392 = vmatprep.mubr.msk.bf16.mxu0 %vm15114_vm0, %v17116_v26  ;;  %v4321_v47 = vshrl.u32 %v11272_v3, 16  ;;  %v4324_v38 = vshll.u32 %v11272_v3, 16  ;;  %v11293_v6 = vcombine.low %v17163_v39, %v17158_v20 }
 0x37d   :  { %v4746_v14 = vsel %vm911_vm3, %v4736_v59, %v4745_v27 }
 0x37e   :  { %v4769_v13 = vshll.u32 %v11293_v6, 16 }
 0x37f   :  { %13325 = vmatmul.mubr.bf16.gmra.mxu1 %v16803_v29  ;;  %v17145_v29 = vld [vmem:[#allocation3 + $0x60] sm:$0xf] }
 0x380   :  { %13328 = vmatprep.mubr.msk.bf16.mxu1 %vm15114_vm0, %v17116_v26  ;;  %v11292_v62 = vcombine.low %v17149_v8, %v17145_v29 }
 0x382   :  { %v4757_v7 = vshrl.u32 %v11292_v62, 16 }
 0x383   :  { %13393 = vmatmul.mubr.bf16.gmra.mxu0 %v4737_v49  ;;  %v4760_v49 = vshll.u32 %v11292_v62, 16  ;;  %v4766_v62 = vshrl.u32 %v11293_v6, 16 }
 0x384   :  { %13396 = vmatprep.mubr.msk.bf16.mxu0 %vm15114_vm0, %v17116_v26  ;;  %v4759_v4 = vrot.slane %v4757_v7, 3 }
 0x385   :  { %v4768_v7 = vrot.slane %v4766_v62, 3 }
 0x387   :  { %13329 = vmatmul.mubr.bf16.gmra.mxu1 %v16823_v21  ;;  %v4754_v21 = vor.u32 %v4753_v32, %v4750_v45  ;;  %v4326_v32 = vrot.slane %v4324_v38, 4 }
 0x388   :  { %13332 = vmatprep.mubr.msk.bf16.mxu1 %vm15114_vm0, %v17116_v26 }
 0x389   :  { %v4755_v59 = vsel %vm911_vm3, %v4745_v27, %v4754_v21 }
 0x38b   :  { %13397 = vmatmul.mubr.bf16.gmra.mxu0 %v4746_v14  ;;  %v4762_v14 = vrot.slane %v4760_v49, 4  ;;  %v4771_v49 = vrot.slane %v4769_v13, 4  ;;  %v14669_v13 = vld [vmem:[#allocation3 + $0x10] sm:$0xff]  }
 0x38c   :  { %13400 = vmatprep.mubr.msk.bf16.mxu0 %vm15114_vm0, %v17116_v26 }
 0x38d   :  { %v4763_v45 = vor.u32 %v4762_v14, %v4759_v4 }
 0x38f   :  { %13333 = vmatmul.mubr.bf16.gmra.mxu1 %v16837_v41  ;;  %v4323_v41 = vrot.slane %v4321_v47, 3  ;;  %v4764_v27 = vsel %vm911_vm3, %v4754_v21, %v4763_v45  ;;  %v4772_v47 = vor.u32 %v4771_v49, %v4768_v7 }
 0x390   :  { %13336 = vmatprep.mubr.msk.bf16.mxu1 %vm15114_vm0, %v17116_v26 }
 0x391   :  { %v4327_v3 = vor.u32 %v4326_v32, %v4323_v41  ;;  %v4773_v21 = vsel %vm911_vm3, %v4763_v45, %v4772_v47  ;;  %v14668_v32 = vld [vmem:[#allocation3 + $0x8] sm:$0xff]  }
 0x392   :  { %v5357_v45 = vshll.u32 %v14668_v32, 16  ;;  %v5355_v46 = vshrl.u32 %v14668_v32, 16 }
 0x393   :  { %13401 = vmatmul.mubr.bf16.gmra.mxu0 %v4755_v59  ;;  %v4328_v38 = vsel %vm911_vm3, %v16842_v1, %v4327_v3 }
 0x394   :  { %13404 = vmatprep.mubr.msk.bf16.mxu0 %vm15114_vm0, %v17116_v26 }
 0x397   :  { %13337 = vmatmul.mubr.bf16.gmra.mxu1 %v16850_v56 }
 0x398   :  { %13340 = vmatprep.mubr.msk.bf16.mxu1 %vm15114_vm0, %v17116_v26 }
 0x39b   :  { %13405 = vmatmul.mubr.bf16.gmra.mxu0 %v4764_v27 }
 0x39c   :  { %13408 = vmatprep.mubr.msk.bf16.mxu0 %vm15114_vm0, %v17116_v26 }
 0x39d   :  { %v3830_v59 = vpop.f32.mrf.mxu1 }
 0x39f   :  { %13341 = vmatmul.mubr.bf16.gmra.mxu1 %v4328_v38  ;;  %v13162_v4 = vpop.f32.mrf.mxu1 }
 0x3a0   :  { %13344 = vmatprep.mubr.msk.bf16.mxu1 %vm15114_vm0, %v17116_v26  ;;  %v5362_v4 = vshll.u32 %v14669_v13, 16 }
 0x3a1   :  { %v3833_v56 = vpop.f32.mrf.mxu1  ;;  %v4146_v14 = vpop.f32.mrf.mxu0 }
 0x3a2   :  { %v17180_v6 = vadd.f32 %v4146_v14, %v3830_v59  ;;  %v5364_v9 = vrot.slane %v5362_v4, 1 }
 0x3a3   :  { %13409 = vmatmul.mubr.bf16.gmra.mxu0 %v4773_v21  ;;  %v13163_v41 = vpop.f32.mrf.mxu1  ;;  %v13230_v62 = vpop.f32.mrf.mxu0 }
 0x3a4   :  { %13412 = vmatprep.mubr.msk.bf16.mxu0 %vm15114_vm0, %v17116_v26  ;;  %v5359_v62 = vrot.slane %v5357_v45, 1  ;;  %v14685_v45 = vld [vmem:[#allocation5 + $0x1b0] sm:$0xff]  }
 0x3a5   :  { %v3838_v1 = vpop.f32.mrf.mxu1  ;;  %v4149_v27 = vpop.f32.mrf.mxu0 }
 0x3a6   :  { %v17184_v7 = vadd.f32 %v4149_v27, %v3833_v56  ;;  %v11302_v27 = vcombine.low %v16859_v25, %v16861_v42  ;;  %v14691_v25 = vld [vmem:[#allocation5 + $0x1f8] sm:$0xff]  }
 0x3a7   :  { %13345 = vmatmul.mubr.bf16.gmra.mxu1 %v4327_v3  ;;  %v13166_v49 = vpop.f32.mrf.mxu1  ;;  %v13231_v38 = vpop.f32.mrf.mxu0  ;;  %v14681_v3 = vld [vmem:[#allocation5 + $0x1b8] sm:$0xff]  }
 0x3a8   :  { %13432 = vmatprep.mubr.msk.bf16.mxu1 %vm15114_vm0, %v17116_v26  ;;  %v17194_v38 = vld [vmem:[#allocation3 + $0x18] sm:$0xff]  }
 0x3a9   :  { %v3841_v59 = vpop.f32.mrf.mxu1  ;;  %v4154_v21 = vpop.f32.mrf.mxu0  ;;  %v5370_v4 = vshll.u32 %v17194_v38, 16 }
 0x3aa   :  { %v17188_v14 = vadd.f32 %v4154_v21, %v3838_v1  ;;  %v5360_v21 = vor.u32 %v5359_v62, %v5355_v46  ;;  %v14689_v46 = vld [vmem:[#allocation5 + $0x1a8] sm:$0xff]  }
 0x3ab   :  { %13413 = vmatmul.mubr.bf16.gmra.mxu0 %v4772_v47  ;;  %v13167_v41 = vpop.f32.mrf.mxu1  ;;  %v13234_v56 = vpop.f32.mrf.mxu0 }
 0x3ac   :  { %13500 = vmatprep.mubr.msk.bf16.mxu0 %vm15114_vm0, %v17116_v26  ;;  %v5365_v32 = vsel %vm1998_vm4, %v5360_v21, %v5364_v9  ;;  %v5366_v21 = vshrl.u32 %v14669_v13, 16  ;;  %v14696_v13 = vld [vmem:[#allocation5 + $0x1e8] sm:$0xff]  }
 0x3ad   :  { %v3846_v49 = vpop.f32.mrf.mxu1  ;;  %v4157_v5 = vpop.f32.mrf.mxu0 }
 0x3ae   :  { %v17196_v47 = vadd.f32 %v4157_v5, %v3841_v59 }
 0x3af   :  { %13433 = vmatmul.mubr.bf16.vlgmr.msra.gmra.mxu1 %v11302_v27  ;;  %v13170_v1 = vpop.f32.mrf.mxu1  ;;  %v13235_v41 = vpop.f32.mrf.mxu0  ;;  %v14693_v27 = vld [vmem:[#allocation5 + $0x1f0] sm:$0xff]  }
 0x3b0   :  { %13436 = vmatprep.mubr.msk.bf16.mxu1 %vm15114_vm0, %v17116_v26  ;;  %13553 = vmatpush3.bf16.msra.mxu1 %v14681_v3  ;;  %v11303_v3 = vcombine.low %v16855_v15, %v16875_v24  ;;  %v5372_v41 = vrot.slane %v5370_v4, 1  ;;  %v14695_v15 = vld [vmem:[#allocation5 + $0x1a0] sm:$0xff]  }
 0x3b1   :  { %13554 = vmatprep.subr.bf16.mxu1 %v17116_v26  ;;  %v3849_v42 = vpop.f32.mrf.mxu1  ;;  %v4162_v56 = vpop.f32.mrf.mxu0 }
 0x3b2   :  { %v17203_v5 = vadd.f32 %v4162_v56, %v3846_v49 }
 0x3b3   :  { %13501 = vmatmul.mubr.bf16.vlgmr.msra.gmra.mxu0 %v5365_v32  ;;  %v13171_v59 = vpop.f32.mrf.mxu1  ;;  %v13238_v62 = vpop.f32.mrf.mxu0  ;;  %v17210_v32 = vld [vmem:[#allocation3 + $0x20] sm:$0xff]  }
 0x3b4   :  { %13504 = vmatprep.mubr.msk.bf16.mxu0 %vm15114_vm0, %v17116_v26  ;;  %13555 = vmatpush3.bf16.msra.mxu1 %v14685_v45  ;;  %v5368_v59 = vor.u32 %v5366_v21, %v5364_v9  ;;  %v5378_v62 = vshll.u32 %v17210_v32, 16  ;;  %v11304_v21 = vcombine.low %v16869_v10, %v16877_v2  ;;  %v14701_v10 = vld [vmem:[#allocation5 + $0x190] sm:$0xff]  }
 0x3b5   :  { %13556 = vmatprep.subr.bf16.mxu1 %v17116_v26  ;;  %13621 = vmatpush3.bf16.msra.mxu0 %v14691_v25  ;;  %v3854_v1 = vpop.f32.mrf.mxu1  ;;  %v4165_v49 = vpop.f32.mrf.mxu0 }
 0x3b6   :  { %13622 = vmatprep.subr.bf16.mxu0 %v17116_v26  ;;  %v17213_v56 = vadd.f32 %v4165_v49, %v3849_v42  ;;  %v5373_v4 = vsel %vm1998_vm4, %v5368_v59, %v5372_v41  ;;  %v14699_v49 = vld [vmem:[#allocation5 + $0x1e0] sm:$0xff]   ;;  %v5374_v59 = vshrl.u32 %v17194_v38, 16  ;;  %v14702_v38 = vld [vmem:[#allocation5 + $0x1d8] sm:$0xff]  }
 0x3b7   :  { %13437 = vmatmul.mubr.bf16.gmra.mxu1 %v11303_v3  ;;  %v13174_v45 = vpop.f32.mrf.mxu1  ;;  %v13239_v24 = vpop.f32.mrf.mxu0 }
 0x3b8   :  { %13440 = vmatprep.mubr.msk.bf16.mxu1 %vm15114_vm0, %v17116_v26  ;;  %13557 = vmatpush3.bf16.msra.mxu1 %v14689_v46  ;;  %v14698_v46 = vld [vmem:[#allocation5 + $0x198] sm:$0xff]   ;;  %v5380_v24 = vrot.slane %v5378_v62, 1 }
 0x3b9   :  { %13623 = vmatpush3.bf16.msra.mxu0 %v14693_v27  ;;  %13558 = vmatprep.subr.bf16.mxu1 %v17116_v26  ;;  %v3857_v25 = vpop.f32.mrf.mxu1  ;;  %v4170_v42 = vpop.f32.mrf.mxu0 }
 0x3ba   :  { %13624 = vmatprep.subr.bf16.mxu0 %v17116_v26  ;;  %v17221_v9 = vadd.f32 %v4170_v42, %v3854_v1  ;;  %v17229_v1 = vld [vmem:[#allocation3 + $0x28] sm:$0xff]  }
 0x3bb   :  { %13505 = vmatmul.mubr.bf16.gmra.mxu0 %v5373_v4  ;;  %v13175_v3 = vpop.f32.mrf.mxu1  ;;  %v13242_v27 = vpop.f32.mrf.mxu0 }
 0x3bc   :  { %13508 = vmatprep.mubr.msk.bf16.mxu0 %vm15114_vm0, %v17116_v26  ;;  %13559 = vmatpush3.bf16.msra.mxu1 %v14695_v15  ;;  %v5376_v3 = vor.u32 %v5374_v59, %v5372_v41  ;;  %v5386_v27 = vshll.u32 %v17229_v1, 16  ;;  %v11305_v59 = vcombine.low %v16871_v51, %v16885_v23  ;;  %v14706_v51 = vld [vmem:[#allocation5 + $0x180] sm:$0xff]  }
 0x3bd   :  { %13625 = vmatpush3.bf16.msra.mxu0 %v14696_v13  ;;  %13560 = vmatprep.subr.bf16.mxu1 %v17116_v26  ;;  %v3862_v45 = vpop.f32.mrf.mxu1  ;;  %v4173_v4 = vpop.f32.mrf.mxu0 }
 0x3be   :  { %13626 = vmatprep.subr.bf16.mxu0 %v17116_v26  ;;  %v17232_v15 = vadd.f32 %v4173_v4, %v3857_v25  ;;  %v5381_v62 = vsel %vm1998_vm4, %v5376_v3, %v5380_v24  ;;  %v14705_v4 = vld [vmem:[#allocation5 + $0x1d0] sm:$0xff]   ;;  %v5382_v3 = vshrl.u32 %v17210_v32, 16  ;;  %v14707_v32 = vld [vmem:[#allocation5 + $0x1c8] sm:$0xff]  }
 0x3bf   :  { %13441 = vmatmul.mubr.bf16.gmra.mxu1 %v11304_v21  ;;  %v13178_v42 = vpop.f32.mrf.mxu1  ;;  %v13243_v2 = vpop.f32.mrf.mxu0 }
 0x3c0   :  { %13444 = vmatprep.mubr.msk.bf16.mxu1 %vm15114_vm0, %v17116_v26  ;;  %13561 = vmatpush3.bf16.msra.mxu1 %v14698_v46  ;;  %v14704_v46 = vld [vmem:[#allocation5 + $0x188] sm:$0xff]   ;;  %v5388_v2 = vrot.slane %v5386_v27, 1 }
 0x3c1   :  { %13627 = vmatpush3.bf16.msra.mxu0 %v14699_v49  ;;  %13562 = vmatprep.subr.bf16.mxu1 %v17116_v26  ;;  %v3865_v13 = vpop.f32.mrf.mxu1  ;;  %v4178_v25 = vpop.f32.mrf.mxu0 }
 0x3c2   :  { %13628 = vmatprep.subr.bf16.mxu0 %v17116_v26  ;;  %v17240_v41 = vadd.f32 %v4178_v25, %v3862_v45  ;;  %v14677_v45 = vld [vmem:[#allocation3 + $0x30] sm:$0xff]  }
 0x3c3   :  { %13509 = vmatmul.mubr.bf16.gmra.mxu0 %v5381_v62  ;;  %v13179_v21 = vpop.f32.mrf.mxu1  ;;  %v13246_v49 = vpop.f32.mrf.mxu0 }
 0x3c4   :  { %13512 = vmatprep.mubr.msk.bf16.mxu0 %vm15114_vm0, %v17116_v26  ;;  %13563 = vmatpush3.bf16.msra.mxu1 %v14701_v10  ;;  %v5384_v21 = vor.u32 %v5382_v3, %v5380_v24  ;;  %v5394_v49 = vshll.u32 %v14677_v45, 16  ;;  %v14710_v3 = vld [vmem:[#allocation5 + $0x1c0] sm:$0xff]  }
 0x3c5   :  { %13629 = vmatpush3.bf16.msra.mxu0 %v14702_v38  ;;  %13564 = vmatprep.subr.bf16.mxu1 %v17116_v26  ;;  %v3870_v42 = vpop.f32.mrf.mxu1  ;;  %v4181_v62 = vpop.f32.mrf.mxu0 }
 0x3c6   :  { %13630 = vmatprep.subr.bf16.mxu0 %v17116_v26  ;;  %v17249_v25 = vadd.f32 %v4181_v62, %v3865_v13  ;;  %v5389_v27 = vsel %vm1998_vm4, %v5384_v21, %v5388_v2  ;;  %v5396_v21 = vrot.slane %v5394_v49, 1 }
 0x3c7   :  { %13445 = vmatmul.mubr.bf16.gmra.mxu1 %v11305_v59  ;;  %v13182_v10 = vpop.f32.mrf.mxu1  ;;  %v13247_v23 = vpop.f32.mrf.mxu0 }
 0x3c8   :  { %13448 = vmatprep.mubr.msk.bf16.mxu1 %vm15114_vm0, %v17116_v26  ;;  %13565 = vmatpush3.bf16.msra.mxu1 %v14704_v46  ;;  %v5390_v10 = vshrl.u32 %v17229_v1, 16  ;;  %v14679_v23 = vld [vmem:[#allocation3 + $0x38] sm:$0xff]  }
 0x3c9   :  { %13631 = vmatpush3.bf16.msra.mxu0 %v14705_v4  ;;  %13566 = vmatprep.subr.bf16.mxu1 %v17116_v26  ;;  %v3873_v38 = vpop.f32.mrf.mxu1  ;;  %v4186_v13 = vpop.f32.mrf.mxu0  ;;  %v11306_v4 = vcombine.low %v16873_v60, %v16896_v44 }
 0x3ca   :  { %13632 = vmatprep.subr.bf16.mxu0 %v17116_v26  ;;  %v17256_v59 = vadd.f32 %v4186_v13, %v3870_v42  ;;  %v5392_v13 = vor.u32 %v5390_v10, %v5388_v2 }
 0x3cb   :  { %13513 = vmatmul.mubr.bf16.gmra.mxu0 %v5389_v27  ;;  %v13183_v24 = vpop.f32.mrf.mxu1  ;;  %v13250_v46 = vpop.f32.mrf.mxu0 }
 0x3cc   :  { %13516 = vmatprep.mubr.msk.bf16.mxu0 %vm15114_vm0, %v17116_v26  ;;  %13567 = vmatpush3.bf16.msra.mxu1 %v14706_v51  ;;  %v5402_v24 = vshll.u32 %v14679_v23, 16 }
 0x3cd   :  { %13633 = vmatpush3.bf16.msra.mxu0 %v14707_v32  ;;  %13688 = vmatprep.subr.bf16.mxu1 %v17116_v26  ;;  %v3878_v62 = vpop.f32.mrf.mxu1  ;;  %v4189_v42 = vpop.f32.mrf.mxu0  ;;  %v5397_v32 = vsel %vm1998_vm4, %v5392_v13, %v5396_v21 }
 0x3ce   :  { %13634 = vmatprep.subr.bf16.mxu0 %v17116_v26  ;;  %v17265_v27 = vadd.f32 %v4189_v42, %v3873_v38  ;;  %v11307_v38 = vcombine.low %v16891_v0, %v16913_v18  ;;  %v5404_v10 = vrot.slane %v5402_v24, 1  ;;  %v14682_v42 = vld [vmem:[#allocation3 + $0x40] sm:$0xff]   ;;  %v5406_v24 = vshrl.u32 %v14679_v23, 16 }
 0x3cf   :  { %13449 = vmatmul.mubr.bf16.gmra.mxu1 %v11306_v4  ;;  %v13186_v51 = vpop.f32.mrf.mxu1  ;;  %v13251_v60 = vpop.f32.mrf.mxu0 }
 0x3d0   :  { %13452 = vmatprep.mubr.msk.bf16.mxu1 %vm15114_vm0, %v17116_v26 }
 0x3d1   :  { %13635 = vmatpush3.bf16.msra.mxu0 %v14710_v3  ;;  %v3881_v44 = vpop.f32.mrf.mxu1  ;;  %v4194_v1 = vpop.f32.mrf.mxu0  ;;  %v5398_v3 = vshrl.u32 %v14677_v45, 16 }
 0x3d2   :  { %13756 = vmatprep.subr.bf16.mxu0 %v17116_v26  ;;  %v17271_v49 = vadd.f32 %v4194_v1, %v3878_v62 }
 0x3d3   :  { %13517 = vmatmul.mubr.bf16.gmra.mxu0 %v5397_v32  ;;  %v13187_v46 = vpop.f32.mrf.mxu1  ;;  %v13254_v2 = vpop.f32.mrf.mxu0  ;;  %v5400_v32 = vor.u32 %v5398_v3, %v5396_v21  ;;  %v11308_v21 = vcombine.low %v16915_v31, %v17095_v19  ;;  %v14684_v3 = vld [vmem:[#allocation3 + $0x48] sm:$0xff]  }
 0x3d4   :  { %13520 = vmatprep.mubr.msk.bf16.mxu0 %vm15114_vm0, %v17116_v26  ;;  %v5410_v2 = vshll.u32 %v14682_v42, 16 }
 0x3d5   :  { %v3886_v4 = vpop.f32.mrf.mxu1  ;;  %v4197_v51 = vpop.f32.mrf.mxu0  ;;  %v5405_v46 = vsel %vm1998_vm4, %v5400_v32, %v5404_v10 }
 0x3d6   :  { %v17277_v13 = vadd.f32 %v4197_v51, %v3881_v44 }
 0x3d7   :  { %13453 = vmatmul.mubr.bf16.gmra.mxu1 %v11307_v38  ;;  %v13190_v60 = vpop.f32.mrf.mxu1  ;;  %v13255_v62 = vpop.f32.mrf.mxu0  ;;  %v5412_v38 = vrot.slane %v5410_v2, 1  ;;  %v5414_v2 = vshrl.u32 %v14682_v42, 16 }
 0x3d8   :  { %13456 = vmatprep.mubr.msk.bf16.mxu1 %vm15114_vm0, %v17116_v26  ;;  %v5408_v62 = vor.u32 %v5406_v24, %v5404_v10  ;;  %v11309_v10 = vcombine.low %v17087_v48, %v17111_v11  ;;  %v14687_v24 = vld [vmem:[#allocation3 + $0x50] sm:$0xff]  }
 0x3d9   :  { %v3889_v1 = vpop.f32.mrf.mxu1  ;;  %v4202_v58 = vpop.f32.mrf.mxu0 }
 0x3da   :  { %v17282_v0 = vadd.f32 %v4202_v58, %v3886_v4 }
 0x3db   :  { %13521 = vmatmul.mubr.bf16.gmra.mxu0 %v5405_v46  ;;  %v13191_v18 = vpop.f32.mrf.mxu1  ;;  %v13258_v45 = vpop.f32.mrf.mxu0  ;;  %v5413_v46 = vsel %vm1998_vm4, %v5408_v62, %v5412_v38 }
 0x3dc   :  { %13524 = vmatprep.mubr.msk.bf16.mxu0 %vm15114_vm0, %v17116_v26  ;;  %v5418_v18 = vshll.u32 %v14684_v3, 16 }
 0x3dd   :  { %v3894_v44 = vpop.f32.mrf.mxu1  ;;  %v4205_v51 = vpop.f32.mrf.mxu0 }
 0x3de   :  { %v17288_v60 = vadd.f32 %v4205_v51, %v3889_v1 }
 0x3df   :  { %13457 = vmatmul.mubr.bf16.gmra.mxu1 %v11308_v21  ;;  %v13194_v32 = vpop.f32.mrf.mxu1  ;;  %v13259_v58 = vpop.f32.mrf.mxu0  ;;  %v5420_v21 = vrot.slane %v5418_v18, 1  ;;  %v5422_v18 = vshrl.u32 %v14684_v3, 16 }
 0x3e0   :  { %13460 = vmatprep.mubr.msk.bf16.mxu1 %vm15114_vm0, %v17116_v26  ;;  %v5416_v58 = vor.u32 %v5414_v2, %v5412_v38  ;;  %v11310_v38 = vcombine.low %v17107_v30, %v17125_v36  ;;  %v14690_v2 = vld [vmem:[#allocation3 + $0x58] sm:$0xff]  }
 0x3e1   :  { %v3897_v4 = vpop.f32.mrf.mxu1  ;;  %v4210_v45 = vpop.f32.mrf.mxu0 }
 0x3e2   :  { %v17293_v31 = vadd.f32 %v4210_v45, %v3894_v44  ;;  %v5421_v45 = vsel %vm1998_vm4, %v5416_v58, %v5420_v21 }
 0x3e3   :  { %13525 = vmatmul.mubr.bf16.gmra.mxu0 %v5413_v46  ;;  %v13195_v19 = vpop.f32.mrf.mxu1  ;;  %v13262_v23 = vpop.f32.mrf.mxu0 }
 0x3e4   :  { %13528 = vmatprep.mubr.msk.bf16.mxu0 %vm15114_vm0, %v17116_v26  ;;  %v5426_v19 = vshll.u32 %v14687_v24, 16 }
 0x3e5   :  { %v3902_v1 = vpop.f32.mrf.mxu1  ;;  %v4213_v51 = vpop.f32.mrf.mxu0 }
 0x3e6   :  { %v17299_v32 = vadd.f32 %v4213_v51, %v3897_v4 }
 0x3e7   :  { %13461 = vmatmul.mubr.bf16.gmra.mxu1 %v11309_v10  ;;  %v13198_v62 = vpop.f32.mrf.mxu1  ;;  %v13263_v44 = vpop.f32.mrf.mxu0  ;;  %v5428_v10 = vrot.slane %v5426_v19, 1 }
 0x3e8   :  { %13464 = vmatprep.mubr.msk.bf16.mxu1 %vm15114_vm0, %v17116_v26  ;;  %v5424_v44 = vor.u32 %v5422_v18, %v5420_v21  ;;  %v11311_v21 = vcombine.low %v17121_v28, %v17137_v50 }
 0x3e9   :  { %v3905_v46 = vpop.f32.mrf.mxu1  ;;  %v4218_v23 = vpop.f32.mrf.mxu0 }
 0x3ea   :  { %v17304_v48 = vadd.f32 %v4218_v23, %v3902_v1  ;;  %v5429_v23 = vsel %vm1998_vm4, %v5424_v44, %v5428_v10 }
 0x3eb   :  { %13529 = vmatmul.mubr.bf16.gmra.mxu0 %v5421_v45  ;;  %v13199_v11 = vpop.f32.mrf.mxu1  ;;  %v13266_v42 = vpop.f32.mrf.mxu0 }
 0x3ec   :  { %13532 = vmatprep.mubr.msk.bf16.mxu0 %vm15114_vm0, %v17116_v26  ;;  %v5434_v11 = vshll.u32 %v14690_v2, 16 }
 0x3ed   :  { %v3910_v4 = vpop.f32.mrf.mxu1  ;;  %v4221_v51 = vpop.f32.mrf.mxu0 }
 0x3ee   :  { %v17310_v62 = vadd.f32 %v4221_v51, %v3905_v46  ;;  %v5430_v46 = vshrl.u32 %v14687_v24, 16  ;;  %v5436_v19 = vrot.slane %v5434_v11, 1 }
 0x3ef   :  { %13465 = vmatmul.mubr.bf16.gmra.mxu1 %v11310_v38  ;;  %v13202_v58 = vpop.f32.mrf.mxu1  ;;  %v13267_v1 = vpop.f32.mrf.mxu0  ;;  %v14694_v38 = vld [vmem:[#allocation3 + $0x60] sm:$0xff]  }
 0x3f0   :  { %13468 = vmatprep.mubr.msk.bf16.mxu1 %vm15114_vm0, %v17116_v26  ;;  %v5432_v44 = vor.u32 %v5430_v46, %v5428_v10  ;;  %v11312_v10 = vcombine.low %v17132_v37, %v17149_v8 }
 0x3f1   :  { %v3913_v45 = vpop.f32.mrf.mxu1  ;;  %v4226_v42 = vpop.f32.mrf.mxu0 }
 0x3f2   :  { %v17315_v30 = vadd.f32 %v4226_v42, %v3910_v4  ;;  %v5442_v42 = vshll.u32 %v14694_v38, 16 }
 0x3f3   :  { %13533 = vmatmul.mubr.bf16.gmra.mxu0 %v5429_v23  ;;  %v13203_v36 = vpop.f32.mrf.mxu1  ;;  %v13270_v3 = vpop.f32.mrf.mxu0  ;;  %v5437_v23 = vsel %vm1998_vm4, %v5432_v44, %v5436_v19 }
 0x3f4   :  { %13536 = vmatprep.mubr.msk.bf16.mxu0 %vm15114_vm0, %v17116_v26  ;;  %v5444_v11 = vrot.slane %v5442_v42, 1  ;;  %v5446_v42 = vshrl.u32 %v14694_v38, 16 }
 0x3f5   :  { %v4229_v51 = vpop.f32.mrf.mxu0 }
 0x3f6   :  { %v17321_v58 = vadd.f32 %v4229_v51, %v3913_v45  ;;  %v5438_v45 = vshrl.u32 %v14690_v2, 16 }
 0x3f7   :  { %v3918_v18 = vpop.f32.mrf.mxu1  ;;  %13469 = vmatmul.mubr.bf16.gmra.mxu1 %v11311_v21  ;;  %v13271_v1 = vpop.f32.mrf.mxu0  ;;  %v14700_v21 = vld [vmem:[#allocation3 + $0x68] sm:$0x1f]  }
 0x3f8   :  { %13472 = vmatprep.mubr.msk.bf16.mxu1 %vm15114_vm0, %v17116_v26 }
 0x3f9   :  { %v13206_v4 = vpop.f32.mrf.mxu1 }
 0x3fa   :  { %v5440_v4 = vor.u32 %v5438_v45, %v5436_v19  ;;  %v11313_v19 = vcombine.low %v17145_v29, %v17163_v39 }
 0x3fb   :  { %v3921_v36 = vpop.f32.mrf.mxu1  ;;  %v4234_v3 = vpop.f32.mrf.mxu0  ;;  %13537 = vmatmul.mubr.bf16.gmra.mxu0 %v5437_v23 }
 0x3fc   :  { %v17326_v28 = vadd.f32 %v4234_v3, %v3918_v18  ;;  %13540 = vmatprep.mubr.msk.bf16.mxu0 %vm15114_vm0, %v17116_v26  ;;  %v5445_v23 = vsel %vm1998_vm4, %v5440_v4, %v5444_v11  ;;  %v5450_v3 = vshll.u32 %v14700_v21, 16 }
 0x3fd   :  { %v13207_v50 = vpop.f32.mrf.mxu1  ;;  %v13274_v24 = vpop.f32.mrf.mxu0 }
 0x3ff   :  { %v3926_v46 = vpop.f32.mrf.mxu1  ;;  %v4237_v51 = vpop.f32.mrf.mxu0  ;;  %13473 = vmatmul.mubr.bf16.gmra.mxu1 %v11312_v10 }
 0x400   :  { %v17332_v44 = vadd.f32 %v4237_v51, %v3921_v36  ;;  %13476 = vmatprep.mubr.msk.bf16.mxu1 %vm15114_vm0, %v17116_v26  ;;  %v5452_v36 = vrot.slane %v5450_v3, 1  ;;  %v5679_v51 = vld [vmem:[#allocation3 + $0xc] sm:$0xf] }
 0x401   :  { %v13210_v18 = vpop.f32.mrf.mxu1  ;;  %v13275_v1 = vpop.f32.mrf.mxu0 }
 0x402   :  { %v5448_v18 = vor.u32 %v5446_v42, %v5444_v11 }
 0x403   :  { %v3929_v50 = vpop.f32.mrf.mxu1  ;;  %v4242_v24 = vpop.f32.mrf.mxu0  ;;  %13541 = vmatmul.mubr.bf16.gmra.mxu0 %v5445_v23 }
 0x404   :  { %v17337_v37 = vadd.f32 %v4242_v24, %v3926_v46  ;;  %13544 = vmatprep.mubr.msk.bf16.mxu0 %vm15114_vm0, %v17116_v26  ;;  %v14964_v46 = vld [vmem:[#allocation3 + $0x10] sm:$0xf]  ;;  %v5453_v24 = vsel %vm1998_vm4, %v5448_v18, %v5452_v36 }
 0x405   :  { %v13211_v8 = vpop.f32.mrf.mxu1  ;;  %v13278_v2 = vpop.f32.mrf.mxu0  ;;  %v11344_v1 = vcombine.low %v5679_v51, %v14964_v46 }
 0x406   :  { %v11314_v2 = vcombine.low %v17158_v20, %v17158_v20 }
 0x407   :  { %v4245_v10 = vpop.f32.mrf.mxu0  ;;  %v4424_v45 = vpop.f32.mrf.mxu1  ;;  %13477 = vmatmul.mubr.bf16.gmra.mxu1 %v11313_v19 }
 0x408   :  { %v4526_v4 = vadd.f32 %v4424_v45, %v17180_v6  ;;  %13480 = vmatprep.mubr.msk.bf16.mxu1 %vm15114_vm0, %v17116_v26  ;;  %v5789_v6 = vshll.u32 %v11344_v1, 16  ;;  %v5454_v10 = vshrl.u32 %v14700_v21, 16 }
 0x409   :  { %v13279_v23 = vpop.f32.mrf.mxu0  ;;  %v13298_v50 = vpop.f32.mrf.mxu1 }
 0x40a   :  { %v5456_v46 = vor.u32 %v5454_v10, %v5452_v36  ;;  %v5787_v23 = vshrl.u32 %v11344_v1, 16  ;;  %v19350_v50 = vshll.u32 %v16902_v35, 16  ;;  %v14965_v1 = vld [vmem:[#allocation3 + $0x14] sm:$0xff]  }
 0x40b   :  { %v4427_v8 = vpop.f32.mrf.mxu1  ;;  %v4869_v29 = vpop.f32.mrf.mxu0  ;;  %13545 = vmatmul.mubr.bf16.gmra.mxu0 %v5453_v24 }
 0x40c   :  { %v4527_v39 = vadd.f32 %v4427_v8, %v17184_v7  ;;  %v17348_v38 = vadd.f32 %v4869_v29, %v4526_v4  ;;  %13548 = vmatprep.mubr.msk.bf16.mxu0 %vm15114_vm0, %v17116_v26  ;;  %v5791_v7 = vrot.slane %v5789_v6, 1  ;;  %v5796_v24 = vrot.slane %v19350_v50, 1 }
 0x40d   :  { %v13299_v11 = vpop.f32.mrf.mxu1  ;;  %v13366_v3 = vpop.f32.mrf.mxu0 }
 0x40e   :  { %v6132_v3 = vrot.slane %v14965_v1, 1 }
 0x40f   :  { %v4432_v19 = vpop.f32.mrf.mxu1  ;;  %v4872_v42 = vpop.f32.mrf.mxu0  ;;  %13481 = vmatmul.mubr.bf16.gmra.mxu1 %v11314_v2 }
 0x410   :  { %v4528_v45 = vadd.f32 %v4432_v19, %v17188_v14  ;;  %v17355_v51 = vadd.f32 %v4872_v42, %v4527_v39  ;;  %13568 = vmatprep.mubr.msk.bf16.mxu1 %vm15114_vm0, %v17116_v26  ;;  %v5792_v14 = vor.u32 %v5791_v7, %v5787_v23  ;;  %v14718_v39 = vld [vmem:[#allocation5 + $0x238] sm:$0xff]  }
 0x411   :  { %v13302_v4 = vpop.f32.mrf.mxu1  ;;  %v13367_v18 = vpop.f32.mrf.mxu0 }
 0x412   :  { %v5797_v36 = vsel %vm1998_vm4, %v5792_v14, %v5796_v24  ;;  %v14723_v14 = vld [vmem:[#allocation5 + $0x228] sm:$0xff]  }
 0x413   :  { %v4435_v20 = vpop.f32.mrf.mxu1  ;;  %v4877_v8 = vpop.f32.mrf.mxu0  ;;  %13549 = vmatmul.mubr.bf16.gmra.mxu0 %v5456_v46  ;;  %v19351_v46 = vshll.u32 %v16910_v63, 16 }
 0x414   :  { %v4529_v21 = vadd.f32 %v4435_v20, %v17196_v47  ;;  %v17362_v29 = vadd.f32 %v4877_v8, %v4528_v45  ;;  %13636 = vmatprep.mubr.msk.bf16.mxu0 %vm15114_vm0, %v17116_v26  ;;  %v6131_v47 = vrot.slane %v16949_v43, 1  ;;  %v14720_v45 = vld [vmem:[#allocation5 + $0x230] sm:$0xff]   ;;  %v19352_v8 = vshrl.u32 %v16902_v35, 16 }
 0x415   :  { %v13303_v6 = vpop.f32.mrf.mxu1  ;;  %v13370_v11 = vpop.f32.mrf.mxu0  ;;  %v5804_v23 = vrot.slane %v19351_v46, 1 }
 0x416   :  { %v6133_v18 = vsel %vm2776_vm5, %v6131_v47, %v6132_v3 }
 0x417   :  { %v4440_v2 = vpop.f32.mrf.mxu1  ;;  %v4880_v19 = vpop.f32.mrf.mxu0  ;;  %13569 = vmatmul.mubr.bf16.vlgmr.msra.gmra.mxu1 %v5797_v36  ;;  %v14966_v36 = vld [vmem:[#allocation3 + $0x1c] sm:$0xff]  }
 0x418   :  { %v4530_v42 = vadd.f32 %v4440_v2, %v17203_v5  ;;  %v17368_v10 = vadd.f32 %v4880_v19, %v4529_v21  ;;  %13572 = vmatprep.mubr.msk.bf16.mxu1 %vm15114_vm0, %v17116_v26  ;;  %13689 = vmatpush3.bf16.msra.mxu1 %v14718_v39  ;;  %v5800_v21 = vor.u32 %v19352_v8, %v5796_v24  ;;  %v6134_v1 = vrot.slane %v14966_v36, 1  ;;  %v14725_v24 = vld [vmem:[#allocation5 + $0x220] sm:$0xff]   ;;  %v14727_v8 = vld [vmem:[#allocation5 + $0x218] sm:$0xff]  }
 0x419   :  { %v13306_v7 = vpop.f32.mrf.mxu1  ;;  %v13371_v4 = vpop.f32.mrf.mxu0  ;;  %13690 = vmatprep.subr.bf16.mxu1 %v17116_v26 }
 0x41a   :  { %v5805_v11 = vsel %vm1998_vm4, %v5800_v21, %v5804_v23  ;;  %v19353_v7 = vshll.u32 %v16918_v22, 16 }
 0x41b   :  { %v4443_v50 = vpop.f32.mrf.mxu1  ;;  %v4885_v5 = vpop.f32.mrf.mxu0  ;;  %13637 = vmatmul.mubr.bf16.vlgmr.msra.gmra.mxu0 %v6133_v18 }
 0x41c   :  { %v4531_v20 = vadd.f32 %v4443_v50, %v17213_v56  ;;  %v17378_v43 = vadd.f32 %v4885_v5, %v4530_v42  ;;  %13640 = vmatprep.mubr.msk.bf16.mxu0 %vm15114_vm0, %v17116_v26  ;;  %13691 = vmatpush3.bf16.msra.mxu1 %v14720_v45  ;;  %v6135_v45 = vsel %vm2776_vm5, %v6132_v3, %v6134_v1  ;;  %v5812_v4 = vrot.slane %v19353_v7, 1 }
 0x41d   :  { %v13307_v39 = vpop.f32.mrf.mxu1  ;;  %v13374_v6 = vpop.f32.mrf.mxu0  ;;  %13692 = vmatprep.subr.bf16.mxu1 %v17116_v26  ;;  %v19354_v5 = vshrl.u32 %v16910_v63, 16 }
 0x41e   :  { %v14967_v39 = vld [vmem:[#allocation3 + $0x24] sm:$0xff]  }
 0x41f   :  { %v4448_v2 = vpop.f32.mrf.mxu1  ;;  %v4888_v56 = vpop.f32.mrf.mxu0  ;;  %13573 = vmatmul.mubr.bf16.gmra.mxu1 %v5805_v11  ;;  %v6136_v6 = vrot.slane %v14967_v39, 1  ;;  %v14730_v39 = vld [vmem:[#allocation5 + $0x200] sm:$0xff]  }
 0x420   :  { %v4532_v19 = vadd.f32 %v4448_v2, %v17221_v9  ;;  %v17387_v35 = vadd.f32 %v4888_v56, %v4531_v20  ;;  %13576 = vmatprep.mubr.msk.bf16.mxu1 %vm15114_vm0, %v17116_v26  ;;  %13693 = vmatpush3.bf16.msra.mxu1 %v14723_v14  ;;  %v5808_v20 = vor.u32 %v19354_v5, %v5804_v23  ;;  %v14728_v23 = vld [vmem:[#allocation5 + $0x210] sm:$0xff]  }
 0x421   :  { %v13310_v42 = vpop.f32.mrf.mxu1  ;;  %v13375_v47 = vpop.f32.mrf.mxu0  ;;  %13694 = vmatprep.subr.bf16.mxu1 %v17116_v26 }
 0x422   :  { %v5813_v14 = vsel %vm1998_vm4, %v5808_v20, %v5812_v4 }
 0x423   :  { %v4451_v18 = vpop.f32.mrf.mxu1  ;;  %v4893_v46 = vpop.f32.mrf.mxu0  ;;  %13641 = vmatmul.mubr.bf16.gmra.mxu0 %v6135_v45 }
 0x424   :  { %v4533_v9 = vadd.f32 %v4451_v18, %v17232_v15  ;;  %v17396_v50 = vadd.f32 %v4893_v46, %v4532_v19  ;;  %13644 = vmatprep.mubr.msk.bf16.mxu0 %vm15114_vm0, %v17116_v26  ;;  %13695 = vmatpush3.bf16.msra.mxu1 %v14725_v24  ;;  %v6137_v19 = vsel %vm2776_vm5, %v6134_v1, %v6136_v6  ;;  %v19355_v24 = vshll.u32 %v16922_v55, 16 }
 0x425   :  { %v13311_v21 = vpop.f32.mrf.mxu1  ;;  %v13378_v3 = vpop.f32.mrf.mxu0  ;;  %13696 = vmatprep.subr.bf16.mxu1 %v17116_v26  ;;  %v19356_v18 = vshrl.u32 %v16918_v22, 16 }
 0x426   :  { %v5820_v42 = vrot.slane %v19355_v24, 1  ;;  %v19358_v24 = vshrl.u32 %v16922_v55, 16 }
 0x427   :  { %v4456_v11 = vpop.f32.mrf.mxu1  ;;  %v4896_v15 = vpop.f32.mrf.mxu0  ;;  %13577 = vmatmul.mubr.bf16.gmra.mxu1 %v5813_v14  ;;  %v5816_v46 = vor.u32 %v19356_v18, %v5812_v4  ;;  %v17425_v4 = vld [vmem:[#allocation4] sm:$0xff] }
 0x428   :  { %v4534_v36 = vadd.f32 %v4456_v11, %v17240_v41  ;;  %v17405_v63 = vadd.f32 %v4896_v15, %v4533_v9  ;;  %13580 = vmatprep.mubr.msk.bf16.mxu1 %vm15114_vm0, %v17116_v26  ;;  %13697 = vmatpush3.bf16.msra.mxu1 %v14727_v8  ;;  %v14729_v9 = vld [vmem:[#allocation5 + $0x208] sm:$0xff]   ;;  %v14968_v8 = vld [vmem:[#allocation3 + $0x2c] sm:$0xff]   ;;  %v14970_v18 = vld [vmem:[#allocation3 + $0x34] sm:$0xff]  }
 0x429   :  { %v13314_v2 = vpop.f32.mrf.mxu1  ;;  %v13379_v56 = vpop.f32.mrf.mxu0  ;;  %13698 = vmatprep.subr.bf16.mxu1 %v17116_v26  ;;  %v5821_v20 = vsel %vm1998_vm4, %v5816_v46, %v5820_v42  ;;  %v6138_v21 = vrot.slane %v14968_v8, 1  ;;  %v6140_v46 = vrot.slane %v14970_v18, 1  ;;  %v19359_v8 = vshll.u32 %v16937_v54, 16 }
 0x42b   :  { %v4459_v47 = vpop.f32.mrf.mxu1  ;;  %v4901_v45 = vpop.f32.mrf.mxu0  ;;  %13645 = vmatmul.mubr.bf16.gmra.mxu0 %v6137_v19  ;;  %v6139_v15 = vsel %vm2776_vm5, %v6136_v6, %v6138_v21 }
 0x42c   :  { %v4535_v41 = vadd.f32 %v4459_v47, %v17249_v25  ;;  %v17414_v7 = vadd.f32 %v4901_v45, %v4534_v36  ;;  %13648 = vmatprep.mubr.msk.bf16.mxu0 %vm15114_vm0, %v17116_v26  ;;  %13699 = vmatpush3.bf16.msra.mxu1 %v14728_v23  ;;  %v19357_v36 = vshll.u32 %v16924_v57, 16  ;;  %v5824_v47 = vor.u32 %v19358_v24, %v5820_v42 }
 0x42d   :  { %v13315_v5 = vpop.f32.mrf.mxu1  ;;  %v13382_v1 = vpop.f32.mrf.mxu0  ;;  %13700 = vmatprep.subr.bf16.mxu1 %v17116_v26 }
 0x42e   :  { %v5828_v23 = vrot.slane %v19357_v36, 1 }
 0x42f   :  { %v4464_v3 = vpop.f32.mrf.mxu1  ;;  %v4904_v25 = vpop.f32.mrf.mxu0  ;;  %13581 = vmatmul.mubr.bf16.gmra.mxu1 %v5821_v20  ;;  %v6141_v20 = vsel %vm2776_vm5, %v6138_v21, %v6140_v46 }
 0x430   :  { %v4536_v14 = vadd.f32 %v4464_v3, %v17256_v59  ;;  %v17423_v22 = vadd.f32 %v4904_v25, %v4535_v41  ;;  %13584 = vmatprep.mubr.msk.bf16.mxu1 %vm15114_vm0, %v17425_v4  ;;  %13701 = vmatpush3.bf16.msra.mxu1 %v14729_v9  ;;  %v5829_v6 = vsel %vm1998_vm4, %v5824_v47, %v5828_v23  ;;  %v5836_v3 = vrot.slane %v19359_v8, 1  ;;  %v14972_v8 = vld [vmem:[#allocation3 + $0x44] sm:$0xff]  }
 0x431   :  { %v13318_v11 = vpop.f32.mrf.mxu1  ;;  %v13383_v26 = vpop.f32.mrf.mxu0  ;;  %13702 = vmatprep.subr.bf16.mxu1 %v17425_v4 }
 0x433   :  { %v4467_v2 = vpop.f32.mrf.mxu1  ;;  %v4909_v59 = vpop.f32.mrf.mxu0  ;;  %13649 = vmatmul.mubr.bf16.gmra.mxu0 %v6139_v15 }
 0x434   :  { %v4537_v56 = vadd.f32 %v4467_v2, %v17265_v27  ;;  %v17434_v19 = vadd.f32 %v4909_v59, %v4536_v14  ;;  %13652 = vmatprep.mubr.msk.bf16.mxu0 %vm15114_vm0, %v17425_v4  ;;  %13703 = vmatpush3.bf16.msra.mxu1 %v14730_v39  ;;  %v14971_v2 = vld [vmem:[#allocation3 + $0x3c] sm:$0xff]  }
 0x435   :  { %v13319_v45 = vpop.f32.mrf.mxu1  ;;  %v13386_v41 = vpop.f32.mrf.mxu0  ;;  %13824 = vmatprep.subr.bf16.mxu1 %v17425_v4  ;;  %v6142_v59 = vrot.slane %v14971_v2, 1 }
 0x436   :  { %v19361_v41 = vshll.u32 %v16939_v52, 16 }
 0x437   :  { %v4472_v9 = vpop.f32.mrf.mxu1  ;;  %v4912_v5 = vpop.f32.mrf.mxu0  ;;  %13585 = vmatmul.mubr.bf16.gmra.mxu1 %v5829_v6  ;;  %v6143_v45 = vsel %vm2776_vm5, %v6140_v46, %v6142_v59 }
 0x438   :  { %v4538_v27 = vadd.f32 %v4472_v9, %v17271_v49  ;;  %v17443_v1 = vadd.f32 %v4912_v5, %v4537_v56  ;;  %13588 = vmatprep.mubr.msk.bf16.mxu1 %vm15114_vm0, %v17425_v4  ;;  %v19360_v49 = vshrl.u32 %v16924_v57, 16  ;;  %v5844_v6 = vrot.slane %v19361_v41, 1 }
 0x439   :  { %v13322_v55 = vpop.f32.mrf.mxu1  ;;  %v13387_v42 = vpop.f32.mrf.mxu0 }
 0x43a   :  { %v5832_v26 = vor.u32 %v19360_v49, %v5828_v23 }
 0x43b   :  { %v4475_v25 = vpop.f32.mrf.mxu1  ;;  %v4917_v14 = vpop.f32.mrf.mxu0  ;;  %13653 = vmatmul.mubr.bf16.gmra.mxu0 %v6141_v20 }
 0x43c   :  { %v4539_v39 = vadd.f32 %v4475_v25, %v17277_v13  ;;  %v17451_v11 = vadd.f32 %v4917_v14, %v4538_v27  ;;  %13656 = vmatprep.mubr.msk.bf16.mxu0 %vm15114_vm0, %v17425_v4  ;;  %v5837_v21 = vsel %vm1998_vm4, %v5832_v26, %v5836_v3  ;;  %v6144_v25 = vrot.slane %v14972_v8, 1 }
 0x43d   :  { %v13323_v15 = vpop.f32.mrf.mxu1  ;;  %v13390_v36 = vpop.f32.mrf.mxu0 }
 0x43e   :  { %v6145_v26 = vsel %vm2776_vm5, %v6142_v59, %v6144_v25  ;;  %v19363_v15 = vshll.u32 %v16951_v17, 16 }
 0x43f   :  { %v4480_v56 = vpop.f32.mrf.mxu1  ;;  %v4920_v24 = vpop.f32.mrf.mxu0  ;;  %13589 = vmatmul.mubr.bf16.gmra.mxu1 %v5837_v21 }
 0x440   :  { %v4540_v47 = vadd.f32 %v4480_v56, %v17282_v0  ;;  %v17459_v13 = vadd.f32 %v4920_v24, %v4539_v39  ;;  %13592 = vmatprep.mubr.msk.bf16.mxu1 %vm15114_vm0, %v17425_v4  ;;  %v19362_v0 = vshrl.u32 %v16937_v54, 16  ;;  %v5852_v36 = vrot.slane %v19363_v15, 1 }
 0x441   :  { %v13326_v57 = vpop.f32.mrf.mxu1  ;;  %v13391_v23 = vpop.f32.mrf.mxu0 }
 0x442   :  { %v5840_v55 = vor.u32 %v19362_v0, %v5836_v3 }
 0x443   :  { %v4483_v18 = vpop.f32.mrf.mxu1  ;;  %v4925_v9 = vpop.f32.mrf.mxu0  ;;  %13657 = vmatmul.mubr.bf16.gmra.mxu0 %v6143_v45  ;;  %v14973_v45 = vld [vmem:[#allocation3 + $0x4c] sm:$0xff]  }
 0x444   :  { %v4541_v5 = vadd.f32 %v4483_v18, %v17288_v60  ;;  %v17467_v27 = vadd.f32 %v4925_v9, %v4540_v47  ;;  %13660 = vmatprep.mubr.msk.bf16.mxu0 %vm15114_vm0, %v17425_v4  ;;  %v5845_v46 = vsel %vm1998_vm4, %v5840_v55, %v5844_v6  ;;  %v6146_v41 = vrot.slane %v14973_v45, 1 }
 0x445   :  { %v13327_v42 = vpop.f32.mrf.mxu1  ;;  %v13394_v20 = vpop.f32.mrf.mxu0  ;;  %v19365_v55 = vshll.u32 %v16958_v53, 16 }
 0x446   :  { %v6147_v0 = vsel %vm2776_vm5, %v6144_v25, %v6146_v41 }
 0x447   :  { %v4488_v14 = vpop.f32.mrf.mxu1  ;;  %v4928_v39 = vpop.f32.mrf.mxu0  ;;  %13593 = vmatmul.mubr.bf16.gmra.mxu1 %v5845_v46  ;;  %v5860_v42 = vrot.slane %v19365_v55, 1 }
 0x448   :  { %v4542_v49 = vadd.f32 %v4488_v14, %v17293_v31  ;;  %v17475_v60 = vadd.f32 %v4928_v39, %v4541_v5  ;;  %13596 = vmatprep.mubr.msk.bf16.mxu1 %vm15114_vm0, %v17425_v4  ;;  %v19364_v31 = vshrl.u32 %v16939_v52, 16 }
 0x449   :  { %v13330_v54 = vpop.f32.mrf.mxu1  ;;  %v13395_v3 = vpop.f32.mrf.mxu0 }
 0x44a   :  { %v5848_v47 = vor.u32 %v19364_v31, %v5844_v6  ;;  %v14974_v3 = vld [vmem:[#allocation3 + $0x54] sm:$0xff]   ;;  %v19367_v31 = vshll.u32 %v16960_v33, 16 }
 0x44b   :  { %v4491_v21 = vpop.f32.mrf.mxu1  ;;  %v4933_v2 = vpop.f32.mrf.mxu0  ;;  %13661 = vmatmul.mubr.bf16.gmra.mxu0 %v6145_v26  ;;  %v6148_v26 = vrot.slane %v14974_v3, 1 }
 0x44c   :  { %v4543_v56 = vadd.f32 %v4491_v21, %v17299_v32  ;;  %v17483_v24 = vadd.f32 %v4933_v2, %v4542_v49  ;;  %13664 = vmatprep.mubr.msk.bf16.mxu0 %vm15114_vm0, %v17425_v4  ;;  %v5853_v59 = vsel %vm1998_vm4, %v5848_v47, %v5852_v36  ;;  %v5868_v47 = vrot.slane %v19367_v31, 1 }
 0x44d   :  { %v13331_v57 = vpop.f32.mrf.mxu1  ;;  %v13398_v23 = vpop.f32.mrf.mxu0 }
 0x44f   :  { %v4496_v18 = vpop.f32.mrf.mxu1  ;;  %v4936_v9 = vpop.f32.mrf.mxu0  ;;  %13597 = vmatmul.mubr.bf16.gmra.mxu1 %v5853_v59 }
 0x450   :  { %v4544_v5 = vadd.f32 %v4496_v18, %v17304_v48  ;;  %v17491_v32 = vadd.f32 %v4936_v9, %v4543_v56  ;;  %13600 = vmatprep.mubr.msk.bf16.mxu1 %vm15114_vm0, %v17425_v4  ;;  %v19366_v48 = vshrl.u32 %v16951_v17, 16  ;;  %v6149_v56 = vsel %vm2776_vm5, %v6146_v41, %v6148_v26 }
 0x451   :  { %v13334_v52 = vpop.f32.mrf.mxu1  ;;  %v13399_v6 = vpop.f32.mrf.mxu0 }
 0x452   :  { %v5856_v39 = vor.u32 %v19366_v48, %v5852_v36  ;;  %v14975_v52 = vld [vmem:[#allocation3 + $0x5c] sm:$0xff]   ;;  %v19369_v48 = vshll.u32 %v16973_v34, 16 }
 0x453   :  { %v4499_v20 = vpop.f32.mrf.mxu1  ;;  %v4941_v46 = vpop.f32.mrf.mxu0  ;;  %13665 = vmatmul.mubr.bf16.gmra.mxu0 %v6147_v0  ;;  %v6150_v6 = vrot.slane %v14975_v52, 1 }
 0x454   :  { %v4545_v8 = vadd.f32 %v4499_v20, %v17310_v62  ;;  %v17499_v14 = vadd.f32 %v4941_v46, %v4544_v5  ;;  %13668 = vmatprep.mubr.msk.bf16.mxu0 %vm15114_vm0, %v17425_v4  ;;  %v5861_v25 = vsel %vm1998_vm4, %v5856_v39, %v5860_v42  ;;  %v5704_v46 = vld [vmem:[#allocation3 + $0x70] sm:$0x1]  ;;  %v5876_v39 = vrot.slane %v19369_v48, 1 }
 0x455   :  { %v13335_v49 = vpop.f32.mrf.mxu1  ;;  %v13402_v54 = vpop.f32.mrf.mxu0 }
 0x457   :  { %v4504_v15 = vpop.f32.mrf.mxu1  ;;  %v4944_v21 = vpop.f32.mrf.mxu0  ;;  %13601 = vmatmul.mubr.bf16.gmra.mxu1 %v5861_v25 }
 0x458   :  { %v4546_v2 = vadd.f32 %v4504_v15, %v17315_v30  ;;  %v17507_v62 = vadd.f32 %v4944_v21, %v4545_v8  ;;  %13604 = vmatprep.mubr.msk.bf16.mxu1 %vm15114_vm0, %v17425_v4  ;;  %v19368_v30 = vshrl.u32 %v16958_v53, 16  ;;  %v6151_v8 = vsel %vm2776_vm5, %v6148_v26, %v6150_v6  ;;  %v14976_v21 = vld [vmem:[#allocation3 + $0x6c] sm:$0xf] }
 0x459   :  { %v13338_v17 = vpop.f32.mrf.mxu1  ;;  %v13403_v36 = vpop.f32.mrf.mxu0 }
 0x45a   :  { %v5864_v18 = vor.u32 %v19368_v30, %v5860_v42 }
 0x45b   :  { %v4507_v57 = vpop.f32.mrf.mxu1  ;;  %v4949_v23 = vpop.f32.mrf.mxu0  ;;  %13669 = vmatmul.mubr.bf16.gmra.mxu0 %v6149_v56  ;;  %v14977_v56 = vld [vmem:[#allocation3 + $0x64] sm:$0xff]  }
 0x45c   :  { %v4547_v59 = vadd.f32 %v4507_v57, %v17321_v58  ;;  %v17515_v45 = vadd.f32 %v4949_v23, %v4546_v2  ;;  %13672 = vmatprep.mubr.msk.bf16.mxu0 %vm15114_vm0, %v17425_v4  ;;  %v5869_v41 = vsel %vm1998_vm4, %v5864_v18, %v5868_v47  ;;  %v11356_v2 = vcombine.low %v14976_v21, %v5704_v46 }
 0x45d   :  { %v13339_v9 = vpop.f32.mrf.mxu1  ;;  %v13406_v5 = vpop.f32.mrf.mxu0  ;;  %v6152_v31 = vrot.slane %v14977_v56, 1 }
 0x45e   :  { %v5882_v57 = vshll.u32 %v11356_v2, 16  ;;  %v19371_v9 = vshrl.u32 %v16973_v34, 16 }
 0x45f   :  { %v4512_v0 = vpop.f32.mrf.mxu1  ;;  %v4952_v55 = vpop.f32.mrf.mxu0  ;;  %13605 = vmatmul.mubr.bf16.gmra.mxu1 %v5869_v41  ;;  %v6153_v18 = vsel %vm2776_vm5, %v6150_v6, %v6152_v31  ;;  %v5886_v6 = vshrl.u32 %v11356_v2, 16 }
 0x460   :  { %v4548_v20 = vadd.f32 %v4512_v0, %v17326_v28  ;;  %v17523_v58 = vadd.f32 %v4952_v55, %v4547_v59  ;;  %13608 = vmatprep.mubr.msk.bf16.mxu1 %vm15114_vm0, %v17425_v4  ;;  %v19370_v28 = vshrl.u32 %v16960_v33, 16  ;;  %v5880_v5 = vor.u32 %v19371_v9, %v5876_v39 }
 0x461   :  { %v13342_v53 = vpop.f32.mrf.mxu1  ;;  %v13407_v42 = vpop.f32.mrf.mxu0  ;;  %v5884_v41 = vrot.slane %v5882_v57, 1 }
 0x462   :  { %v5872_v15 = vor.u32 %v19370_v28, %v5868_v47  ;;  %v6154_v42 = vrot.slane %v11356_v2, 1 }
 0x463   :  { %v4515_v49 = vpop.f32.mrf.mxu1  ;;  %v4957_v54 = vpop.f32.mrf.mxu0  ;;  %13673 = vmatmul.mubr.bf16.gmra.mxu0 %v6151_v8  ;;  %v5885_v53 = vsel %vm1998_vm4, %v5880_v5, %v5884_v41  ;;  %v5888_v28 = vor.u32 %v5886_v6, %v5884_v41 }
 0x464   :  { %v4549_v25 = vadd.f32 %v4515_v49, %v17332_v44  ;;  %v17531_v3 = vadd.f32 %v4957_v54, %v4548_v20  ;;  %13676 = vmatprep.mubr.msk.bf16.mxu0 %vm15114_vm0, %v17425_v4  ;;  %v5877_v36 = vsel %vm1998_vm4, %v5872_v15, %v5876_v39  ;;  %v6155_v49 = vsel %vm2776_vm5, %v6152_v31, %v6154_v42 }
 0x465   :  { %v13343_v17 = vpop.f32.mrf.mxu1  ;;  %v13410_v26 = vpop.f32.mrf.mxu0 }
 0x467   :  { %v4520_v23 = vpop.f32.mrf.mxu1  ;;  %v4960_v59 = vpop.f32.mrf.mxu0  ;;  %13609 = vmatmul.mubr.bf16.gmra.mxu1 %v5877_v36 }
 0x468   :  { %v4550_v44 = vadd.f32 %v4520_v23, %v17337_v37  ;;  %v17539_v30 = vadd.f32 %v4960_v59, %v4549_v25  ;;  %13612 = vmatprep.mubr.msk.bf16.mxu1 %vm15114_vm0, %v17425_v4 }
 0x469   :  { %v13346_v33 = vpop.f32.mrf.mxu1  ;;  %v13411_v47 = vpop.f32.mrf.mxu0 }
 0x46b   :  { %v4523_v52 = vpop.f32.mrf.mxu1  ;;  %v4965_v0 = vpop.f32.mrf.mxu0  ;;  %13677 = vmatmul.mubr.bf16.gmra.mxu0 %v6153_v18 }
 0x46c   :  { %v17546_v55 = vadd.f32 %v4965_v0, %v4550_v44  ;;  %13680 = vmatprep.mubr.msk.bf16.mxu0 %vm15114_vm0, %v17425_v4 }
 0x46d   :  { %v13347_v37 = vpop.f32.mrf.mxu1  ;;  %v13414_v20 = vpop.f32.mrf.mxu0 }
 0x46f   :  { %v4968_v46 = vpop.f32.mrf.mxu0  ;;  %v5120_v8 = vpop.f32.mrf.mxu1  ;;  %13613 = vmatmul.mubr.bf16.gmra.mxu1 %v5885_v53 }
 0x470   :  { %v5222_v34 = vadd.f32 %v5120_v8, %v17348_v38  ;;  %13616 = vmatprep.mubr.msk.bf16.mxu1 %vm15114_vm0, %v17425_v4 }
 0x471   :  { %v13415_v48 = vpop.f32.mrf.mxu0  ;;  %v13434_v39 = vpop.f32.mrf.mxu1 }
 0x473   :  { %v5123_v54 = vpop.f32.mrf.mxu1  ;;  %v5552_v25 = vpop.f32.mrf.mxu0  ;;  %13681 = vmatmul.mubr.bf16.gmra.mxu0 %v6155_v49 }
 0x474   :  { %v5223_v15 = vadd.f32 %v5123_v54, %v17355_v51  ;;  %v17556_v21 = vadd.f32 %v5552_v25, %v5222_v34  ;;  %13684 = vmatprep.mubr.msk.bf16.mxu0 %vm15114_vm0, %v17425_v4 }
 0x475   :  { %v13435_v2 = vpop.f32.mrf.mxu1  ;;  %v13502_v38 = vpop.f32.mrf.mxu0 }
 0x476   :  { %v19373_v38 = vld [vmem:[#allocation17_spill] sm:$0xff] }
 0x477   :  { %v5128_v17 = vpop.f32.mrf.mxu1  ;;  %v5555_v26 = vpop.f32.mrf.mxu0  ;;  %13617 = vmatmul.mubr.bf16.gmra.mxu1 %v5888_v28 }
 0x478   :  { %v5224_v36 = vadd.f32 %v5128_v17, %v17362_v29  ;;  %v17561_v56 = vadd.f32 %v5555_v26, %v5223_v15  ;;  %13704 = vmatprep.mubr.msk.bf16.mxu1 %vm15114_vm0, %v17425_v4 }
 0x479   :  { %v13438_v31 = vpop.f32.mrf.mxu1  ;;  %v13503_v57 = vpop.f32.mrf.mxu0 }
 0x47b   :  { %v5131_v51 = vpop.f32.mrf.mxu1  ;;  %v5560_v23 = vpop.f32.mrf.mxu0  ;;  %13685 = vmatmul.mubr.bf16.gmra.mxu0 %v6154_v42 }
 0x47c   :  { %v5225_v59 = vadd.f32 %v5131_v51, %v17368_v10  ;;  %v17566_v44 = vadd.f32 %v5560_v23, %v5224_v36  ;;  %13772 = vmatprep.mubr.msk.bf16.mxu0 %vm15114_vm0, %v17425_v4 }
 0x47d   :  { %v13439_v33 = vpop.f32.mrf.mxu1  ;;  %v13506_v47 = vpop.f32.mrf.mxu0 }
 0x47f   :  { %v5136_v29 = vpop.f32.mrf.mxu1  ;;  %v5563_v18 = vpop.f32.mrf.mxu0  ;;  %13705 = vmatmul.mubr.bf16.vlgmr.msra.gmra.mxu1 %v17012_v61  ;;  %v19372_v61 = vld [vmem:[#allocation16_spill] sm:$0xff] }
 0x480   :  { %v5226_v9 = vadd.f32 %v5136_v29, %v17378_v43  ;;  %v17572_v5 = vadd.f32 %v5563_v18, %v5225_v59  ;;  %13708 = vmatprep.mubr.msk.bf16.mxu1 %vm15114_vm0, %v17425_v4  ;;  %v19374_v29 = vld [vmem:[#allocation18_spill] sm:$0xff] }
 0x481   :  { %v13442_v41 = vpop.f32.mrf.mxu1  ;;  %v13507_v10 = vpop.f32.mrf.mxu0 }
 0x483   :  { %v5139_v52 = vpop.f32.mrf.mxu1  ;;  %v5568_v0 = vpop.f32.mrf.mxu0 }
 0x484   :  { %v5227_v37 = vadd.f32 %v5139_v52, %v17387_v35  ;;  %v17577_v20 = vadd.f32 %v5568_v0, %v5226_v9 }
 0x485   :  { %v13443_v53 = vpop.f32.mrf.mxu1  ;;  %v13510_v42 = vpop.f32.mrf.mxu0 }
 0x487   :  { %v5144_v46 = vpop.f32.mrf.mxu1  ;;  %v5571_v8 = vpop.f32.mrf.mxu0  ;;  %13709 = vmatmul.mubr.bf16.gmra.mxu1 %v19372_v61 }
 0x488   :  { %v5228_v43 = vadd.f32 %v5144_v46, %v17396_v50  ;;  %v17581_v6 = vadd.f32 %v5571_v8, %v5227_v37  ;;  %13712 = vmatprep.mubr.msk.bf16.mxu1 %vm15114_vm0, %v17425_v4  ;;  %v19375_v8 = vld [vmem:[#allocation19_spill] sm:$0xff] }
 0x489   :  { %v13446_v34 = vpop.f32.mrf.mxu1  ;;  %v13511_v48 = vpop.f32.mrf.mxu0 }
 0x48a   :  { %v14732_v48 = vld [vmem:[#allocation7 + $0x78] sm:$0xff]  }
 0x48b   :  { %v5147_v39 = vpop.f32.mrf.mxu1  ;;  %v5576_v49 = vpop.f32.mrf.mxu0  ;;  %13757 = vmatpush3.bf16.msra.mxu0 %v14732_v48 }
 0x48c   :  { %v5229_v35 = vadd.f32 %v5147_v39, %v17405_v63  ;;  %v17586_v54 = vadd.f32 %v5576_v49, %v5228_v43  ;;  %13758 = vmatprep.subr.bf16.mxu0 %v17425_v4 }
 0x48d   :  { %v13447_v25 = vpop.f32.mrf.mxu1  ;;  %v13514_v28 = vpop.f32.mrf.mxu0 }
 0x48f   :  { %v5152_v15 = vpop.f32.mrf.mxu1  ;;  %v5579_v2 = vpop.f32.mrf.mxu0  ;;  %13713 = vmatmul.mubr.bf16.gmra.mxu1 %v19373_v38 }
 0x490   :  { %v5230_v50 = vadd.f32 %v5152_v15, %v17414_v7  ;;  %v17590_v17 = vadd.f32 %v5579_v2, %v5229_v35  ;;  %13716 = vmatprep.mubr.msk.bf16.mxu1 %vm15114_vm0, %v17425_v4 }
 0x491   :  { %v13450_v26 = vpop.f32.mrf.mxu1  ;;  %v13515_v36 = vpop.f32.mrf.mxu0 }
 0x493   :  { %v5155_v31 = vpop.f32.mrf.mxu1  ;;  %v5584_v57 = vpop.f32.mrf.mxu0 }
 0x494   :  { %v5231_v63 = vadd.f32 %v5155_v31, %v17423_v22  ;;  %v17595_v51 = vadd.f32 %v5584_v57, %v5230_v50 }
 0x495   :  { %v13451_v23 = vpop.f32.mrf.mxu1  ;;  %v13518_v59 = vpop.f32.mrf.mxu0 }
 0x497   :  { %v5160_v33 = vpop.f32.mrf.mxu1  ;;  %v5587_v47 = vpop.f32.mrf.mxu0  ;;  %13717 = vmatmul.mubr.bf16.gmra.mxu1 %v19374_v29 }
 0x498   :  { %v5232_v7 = vadd.f32 %v5160_v33, %v17434_v19  ;;  %v17599_v18 = vadd.f32 %v5587_v47, %v5231_v63  ;;  %13720 = vmatprep.mubr.msk.bf16.mxu1 %vm15114_vm0, %v17425_v4  ;;  %v14733_v47 = vld [vmem:[#allocation7 + $0x70] sm:$0xff]  }
 0x499   :  { %v13454_v9 = vpop.f32.mrf.mxu1  ;;  %v13519_v41 = vpop.f32.mrf.mxu0  ;;  %13759 = vmatpush3.bf16.msra.mxu0 %v14733_v47 }
 0x49a   :  { %13760 = vmatprep.subr.bf16.mxu0 %v17425_v4 }
 0x49b   :  { %v5163_v10 = vpop.f32.mrf.mxu1  ;;  %v5592_v52 = vpop.f32.mrf.mxu0 }
 0x49c   :  { %v5233_v22 = vadd.f32 %v5163_v10, %v17443_v1  ;;  %v17604_v0 = vadd.f32 %v5592_v52, %v5232_v7 }
 0x49d   :  { %v13455_v37 = vpop.f32.mrf.mxu1  ;;  %v13522_v53 = vpop.f32.mrf.mxu0 }
 0x49f   :  { %v5168_v42 = vpop.f32.mrf.mxu1  ;;  %v5595_v46 = vpop.f32.mrf.mxu0  ;;  %13721 = vmatmul.mubr.bf16.gmra.mxu1 %v19375_v8 }
 0x4a0   :  { %v5234_v19 = vadd.f32 %v5168_v42, %v17451_v11  ;;  %v17608_v61 = vadd.f32 %v5595_v46, %v5233_v22  ;;  %13724 = vmatprep.mubr.msk.bf16.mxu1 %vm15114_vm0, %v17425_v4 }
 0x4a1   :  { %v13458_v43 = vpop.f32.mrf.mxu1  ;;  %v13523_v34 = vpop.f32.mrf.mxu0 }
 0x4a2   :  { %v14734_v34 = vld [vmem:[#allocation7 + $0x68] sm:$0xff]  }
 0x4a3   :  { %v5171_v39 = vpop.f32.mrf.mxu1  ;;  %v5600_v1 = vpop.f32.mrf.mxu0  ;;  %13761 = vmatpush3.bf16.msra.mxu0 %v14734_v34 }
 0x4a4   :  { %v5235_v49 = vadd.f32 %v5171_v39, %v17459_v13  ;;  %v17613_v35 = vadd.f32 %v5600_v1, %v5234_v19  ;;  %13762 = vmatprep.subr.bf16.mxu0 %v17425_v4 }
 0x4a5   :  { %v13459_v25 = vpop.f32.mrf.mxu1  ;;  %v13526_v28 = vpop.f32.mrf.mxu0 }
 0x4a7   :  { %v5176_v11 = vpop.f32.mrf.mxu1  ;;  %v5603_v15 = vpop.f32.mrf.mxu0  ;;  %13725 = vmatmul.mubr.bf16.gmra.mxu1 %v17053_v40 }
 0x4a8   :  { %v5236_v2 = vadd.f32 %v5176_v11, %v17467_v27  ;;  %v17618_v38 = vadd.f32 %v5603_v15, %v5235_v49  ;;  %13728 = vmatprep.mubr.msk.bf16.mxu1 %vm15114_vm0, %v17425_v4 }
 0x4a9   :  { %v13462_v50 = vpop.f32.mrf.mxu1  ;;  %v13527_v26 = vpop.f32.mrf.mxu0 }
 0x4ab   :  { %v5179_v13 = vpop.f32.mrf.mxu1  ;;  %v5608_v36 = vpop.f32.mrf.mxu0 }
 0x4ac   :  { %v5237_v31 = vadd.f32 %v5179_v13, %v17475_v60  ;;  %v17623_v57 = vadd.f32 %v5608_v36, %v5236_v2  ;;  %v14735_v36 = vld [vmem:[#allocation7 + $0x38] sm:$0xff]  }
 0x4ad   :  { %v13463_v63 = vpop.f32.mrf.mxu1  ;;  %v13530_v23 = vpop.f32.mrf.mxu0  ;;  %13825 = vmatpush3.bf16.msra.mxu1 %v14735_v36 }
 0x4ae   :  { %v19377_v23 = vld [vmem:[#allocation21_spill] sm:$0xff]  ;;  %13826 = vmatprep.subr.bf16.mxu1 %v17425_v4 }
 0x4af   :  { %v5184_v59 = vpop.f32.mrf.mxu1  ;;  %v5611_v33 = vpop.f32.mrf.mxu0  ;;  %13729 = vmatmul.mubr.bf16.gmra.mxu1 %v17061_v16 }
 0x4b0   :  { %v5238_v40 = vadd.f32 %v5184_v59, %v17483_v24  ;;  %v17627_v27 = vadd.f32 %v5611_v33, %v5237_v31  ;;  %13732 = vmatprep.mubr.msk.bf16.mxu1 %vm15114_vm0, %v17425_v4 }
 0x4b1   :  { %v13466_v29 = vpop.f32.mrf.mxu1  ;;  %v13531_v7 = vpop.f32.mrf.mxu0 }
 0x4b3   :  { %v5187_v60 = vpop.f32.mrf.mxu1  ;;  %v5616_v9 = vpop.f32.mrf.mxu0 }
 0x4b4   :  { %v5239_v41 = vadd.f32 %v5187_v60, %v17491_v32  ;;  %v17633_v10 = vadd.f32 %v5616_v9, %v5238_v40 }
 0x4b5   :  { %v13467_v16 = vpop.f32.mrf.mxu1  ;;  %v13534_v52 = vpop.f32.mrf.mxu0 }
 0x4b7   :  { %v5192_v24 = vpop.f32.mrf.mxu1  ;;  %v5619_v22 = vpop.f32.mrf.mxu0  ;;  %13733 = vmatmul.mubr.bf16.gmra.mxu1 %v17067_v12 }
 0x4b8   :  { %v5240_v37 = vadd.f32 %v5192_v24, %v17499_v14  ;;  %v17637_v53 = vadd.f32 %v5619_v22, %v5239_v41  ;;  %13736 = vmatprep.mubr.msk.bf16.mxu1 %vm15114_vm0, %v17425_v4  ;;  %v19376_v14 = vld [vmem:[#allocation20_spill] sm:$0xff]  ;;  %v14736_v41 = vld [vmem:[#allocation7 + $0x30] sm:$0xff]  }
 0x4b9   :  { %v13470_v42 = vpop.f32.mrf.mxu1  ;;  %v13535_v46 = vpop.f32.mrf.mxu0  ;;  %v19378_v24 = vld [vmem:[#allocation22_spill] sm:$0xff]  ;;  %13827 = vmatpush3.bf16.msra.mxu1 %v14736_v41 }
 0x4ba   :  { %v14738_v42 = vld [vmem:[#allocation7 + $0x28] sm:$0xff]   ;;  %13828 = vmatprep.subr.bf16.mxu1 %v17425_v4 }
 0x4bb   :  { %v5195_v8 = vpop.f32.mrf.mxu1  ;;  %v5624_v19 = vpop.f32.mrf.mxu0 }
 0x4bc   :  { %v5241_v32 = vadd.f32 %v5195_v8, %v17507_v62  ;;  %v17642_v43 = vadd.f32 %v5624_v19, %v5240_v37 }
 0x4bd   :  { %v13471_v48 = vpop.f32.mrf.mxu1  ;;  %v13538_v39 = vpop.f32.mrf.mxu0  ;;  %13829 = vmatpush3.bf16.msra.mxu1 %v14738_v42 }
 0x4be   :  { %13830 = vmatprep.subr.bf16.mxu1 %v17425_v4  ;;  %v14739_v48 = vld [vmem:[#allocation7 + $0x58] sm:$0xff]   ;;  %v14740_v39 = vld [vmem:[#allocation7 + $0x20] sm:$0xff]  }
 0x4bf   :  { %v5200_v12 = vpop.f32.mrf.mxu1  ;;  %v5627_v1 = vpop.f32.mrf.mxu0  ;;  %13737 = vmatmul.mubr.bf16.gmra.mxu1 %v19376_v14  ;;  %v19379_v14 = vld [vmem:[#allocation24_spill] sm:$0xff] }
 0x4c0   :  { %v5242_v49 = vadd.f32 %v5200_v12, %v17515_v45  ;;  %v17647_v25 = vadd.f32 %v5627_v1, %v5241_v32  ;;  %13740 = vmatprep.mubr.msk.bf16.mxu1 %vm15114_vm0, %v17425_v4 }
 0x4c1   :  { %v13474_v62 = vpop.f32.mrf.mxu1  ;;  %v13539_v28 = vpop.f32.mrf.mxu0  ;;  %13831 = vmatpush3.bf16.msra.mxu1 %v14740_v39 }
 0x4c2   :  { %v14742_v28 = vld [vmem:[#allocation7 + $0x18] sm:$0xff]   ;;  %13832 = vmatprep.subr.bf16.mxu1 %v17425_v4 }
 0x4c3   :  { %v5203_v11 = vpop.f32.mrf.mxu1  ;;  %v5632_v15 = vpop.f32.mrf.mxu0 }
 0x4c4   :  { %v5243_v2 = vadd.f32 %v5203_v11, %v17523_v58  ;;  %v17652_v50 = vadd.f32 %v5632_v15, %v5242_v49  ;;  %v14741_v49 = vld [vmem:[#allocation7 + $0x50] sm:$0xff]  }
 0x4c5   :  { %v13475_v26 = vpop.f32.mrf.mxu1  ;;  %v13542_v13 = vpop.f32.mrf.mxu0  ;;  %13833 = vmatpush3.bf16.msra.mxu1 %v14742_v28 }
 0x4c6   :  { %13834 = vmatprep.subr.bf16.mxu1 %v17425_v4 }
 0x4c7   :  { %v5208_v31 = vpop.f32.mrf.mxu1  ;;  %v5635_v63 = vpop.f32.mrf.mxu0  ;;  %13741 = vmatmul.mubr.bf16.gmra.mxu1 %v19377_v23  ;;  %v14744_v23 = vld [vmem:[#allocation7 + $0x10] sm:$0xff]  }
 0x4c8   :  { %v5244_v45 = vadd.f32 %v5208_v31, %v17531_v3  ;;  %v17656_v59 = vadd.f32 %v5635_v63, %v5243_v2  ;;  %13744 = vmatprep.mubr.msk.bf16.mxu1 %vm15114_vm0, %v17425_v4  ;;  %v14737_v3 = vld [vmem:[#allocation7 + $0x60] sm:$0xff]   ;;  %v14743_v63 = vld [vmem:[#allocation7 + $0x48] sm:$0xff]  }
 0x4c9   :  { %v13478_v33 = vpop.f32.mrf.mxu1  ;;  %v13543_v40 = vpop.f32.mrf.mxu0  ;;  %13763 = vmatpush3.bf16.msra.mxu0 %v14737_v3  ;;  %13835 = vmatpush3.bf16.msra.mxu1 %v14744_v23 }
 0x4ca   :  { %13764 = vmatprep.subr.bf16.mxu0 %v17425_v4  ;;  %v19380_v40 = vld [vmem:[#allocation23_spill] sm:$0xff]  ;;  %13836 = vmatprep.subr.bf16.mxu1 %v17425_v4 }
 0x4cb   :  { %v5211_v58 = vpop.f32.mrf.mxu1  ;;  %v5640_v47 = vpop.f32.mrf.mxu0 }
 0x4cc   :  { %v5245_v29 = vadd.f32 %v5211_v58, %v17539_v30  ;;  %v17662_v7 = vadd.f32 %v5640_v47, %v5244_v45  ;;  %v14745_v58 = vld [vmem:[#allocation7 + $0x40] sm:$0xff]  }
 0x4cd   :  { %v13479_v60 = vpop.f32.mrf.mxu1  ;;  %v13546_v9 = vpop.f32.mrf.mxu0  ;;  %13765 = vmatpush3.bf16.msra.mxu0 %v14739_v48 }
 0x4ce   :  { %13766 = vmatprep.subr.bf16.mxu0 %v17425_v4 }
 0x4cf   :  { %v5216_v16 = vpop.f32.mrf.mxu1  ;;  %v5643_v52 = vpop.f32.mrf.mxu0  ;;  %13745 = vmatmul.mubr.bf16.gmra.mxu1 %v19378_v24 }
 0x4d0   :  { %v5246_v22 = vadd.f32 %v5216_v16, %v17546_v55  ;;  %v17666_v37 = vadd.f32 %v5643_v52, %v5245_v29  ;;  %13748 = vmatprep.mubr.msk.bf16.mxu1 %vm15114_vm0, %v17425_v4  ;;  %v14746_v29 = vld [vmem:[#allocation7 + $0x8] sm:$0xff]  }
 0x4d1   :  { %v13482_v30 = vpop.f32.mrf.mxu1  ;;  %v13547_v46 = vpop.f32.mrf.mxu0  ;;  %13767 = vmatpush3.bf16.msra.mxu0 %v14741_v49  ;;  %13837 = vmatpush3.bf16.msra.mxu1 %v14746_v29 }
 0x4d2   :  { %13768 = vmatprep.subr.bf16.mxu0 %v17425_v4  ;;  %13838 = vmatprep.subr.bf16.mxu1 %v17425_v4 }
 0x4d3   :  { %v5219_v8 = vpop.f32.mrf.mxu1  ;;  %v5648_v19 = vpop.f32.mrf.mxu0 }
 0x4d4   :  { %v17672_v32 = vadd.f32 %v5648_v19, %v5246_v22  ;;  %v14749_v22 = vld [vmem:[#allocation7] sm:$0xff]  }
 0x4d5   :  { %v13483_v55 = vpop.f32.mrf.mxu1  ;;  %v13550_v34 = vpop.f32.mrf.mxu0  ;;  %13769 = vmatpush3.bf16.msra.mxu0 %v14743_v63  ;;  %13839 = vmatpush3.bf16.msra.mxu1 %v14749_v22 }
 0x4d6   :  { %13770 = vmatprep.subr.bf16.mxu0 %v17425_v4  ;;  %13960 = vmatprep.subr.bf16.mxu1 %v17425_v4 }
 0x4d7   :  { %v5651_v12 = vpop.f32.mrf.mxu0  ;;  %v5984_v1 = vpop.f32.mrf.mxu1  ;;  %13749 = vmatmul.mubr.bf16.gmra.mxu1 %v19379_v14 }
 0x4d8   :  { %v6086_v62 = vadd.f32 %v5984_v1, %v17556_v21  ;;  %13752 = vmatprep.mubr.msk.bf16.mxu1 %vm15114_vm0, %v17425_v4 }
 0x4d9   :  { %v13551_v11 = vpop.f32.mrf.mxu0  ;;  %v13570_v15 = vpop.f32.mrf.mxu1  ;;  %13771 = vmatpush3.bf16.msra.mxu0 %v14745_v58 }
 0x4da   :  { %13892 = vmatprep.subr.bf16.mxu0 %v17425_v4 }
 0x4db   :  { %v5987_v2 = vpop.f32.mrf.mxu1  ;;  %v6251_v26 = vpop.f32.mrf.mxu0 }
 0x4dc   :  { %v6087_v13 = vadd.f32 %v5987_v2, %v17561_v56  ;;  %v17682_v36 = vadd.f32 %v6251_v26, %v6086_v62 }
 0x4dd   :  { %v13571_v21 = vpop.f32.mrf.mxu1  ;;  %v13638_v31 = vpop.f32.mrf.mxu0 }
 0x4df   :  { %v5992_v45 = vpop.f32.mrf.mxu1  ;;  %v6254_v33 = vpop.f32.mrf.mxu0  ;;  %13753 = vmatmul.mubr.bf16.gmra.mxu1 %v19380_v40 }
 0x4e0   :  { %v6088_v47 = vadd.f32 %v5992_v45, %v17566_v44  ;;  %v17688_v56 = vadd.f32 %v6254_v33, %v6087_v13  ;;  %13840 = vmatprep.mubr.msk.bf16.mxu1 %vm15114_vm0, %v17425_v4 }
 0x4e1   :  { %v13574_v60 = vpop.f32.mrf.mxu1  ;;  %v13639_v9 = vpop.f32.mrf.mxu0 }
 0x4e3   :  { %v5995_v41 = vpop.f32.mrf.mxu1  ;;  %v6259_v3 = vpop.f32.mrf.mxu0 }
 0x4e4   :  { %v6089_v16 = vadd.f32 %v5995_v41, %v17572_v5  ;;  %v17695_v52 = vadd.f32 %v6259_v3, %v6088_v47 }
 0x4e5   :  { %v13575_v44 = vpop.f32.mrf.mxu1  ;;  %v13642_v24 = vpop.f32.mrf.mxu0 }
 0x4e7   :  { %v6000_v42 = vpop.f32.mrf.mxu1  ;;  %v6262_v30 = vpop.f32.mrf.mxu0 }
 0x4e8   :  { %v6090_v46 = vadd.f32 %v6000_v42, %v17577_v20  ;;  %v17700_v8 = vadd.f32 %v6262_v30, %v6089_v16 }
 0x4e9   :  { %v13578_v19 = vpop.f32.mrf.mxu1  ;;  %v13643_v55 = vpop.f32.mrf.mxu0 }
 0x4eb   :  { %v6003_v5 = vpop.f32.mrf.mxu1  ;;  %v6267_v34 = vpop.f32.mrf.mxu0 }
 0x4ec   :  { %v6091_v48 = vadd.f32 %v6003_v5, %v17581_v6  ;;  %v17704_v39 = vadd.f32 %v6267_v34, %v6090_v46 }
 0x4ed   :  { %v13579_v12 = vpop.f32.mrf.mxu1  ;;  %v13646_v1 = vpop.f32.mrf.mxu0 }
 0x4ef   :  { %v6008_v14 = vpop.f32.mrf.mxu1  ;;  %v6270_v49 = vpop.f32.mrf.mxu0 }
 0x4f0   :  { %v6092_v62 = vadd.f32 %v6008_v14, %v17586_v54  ;;  %v17707_v20 = vadd.f32 %v6270_v49, %v6091_v48 }
 0x4f1   :  { %v13582_v28 = vpop.f32.mrf.mxu1  ;;  %v13647_v11 = vpop.f32.mrf.mxu0 }
 0x4f3   :  { %v6011_v15 = vpop.f32.mrf.mxu1  ;;  %v6275_v2 = vpop.f32.mrf.mxu0 }
 0x4f4   :  { %v6093_v4 = vadd.f32 %v6011_v15, %v17590_v17  ;;  %v17710_v26 = vadd.f32 %v6275_v2, %v6092_v62 }
 0x4f5   :  { %v13583_v13 = vpop.f32.mrf.mxu1  ;;  %v13650_v6 = vpop.f32.mrf.mxu0 }
 0x4f7   :  { %v6016_v21 = vpop.f32.mrf.mxu1  ;;  %v6278_v31 = vpop.f32.mrf.mxu0 }
 0x4f8   :  { %v6094_v63 = vadd.f32 %v6016_v21, %v17595_v51  ;;  %v17713_v23 = vadd.f32 %v6278_v31, %v6093_v4 }
 0x4f9   :  { %v13586_v45 = vpop.f32.mrf.mxu1  ;;  %v13651_v54 = vpop.f32.mrf.mxu0 }
 0x4fb   :  { %v6019_v33 = vpop.f32.mrf.mxu1  ;;  %v6283_v40 = vpop.f32.mrf.mxu0 }
 0x4fc   :  { %v6095_v58 = vadd.f32 %v6019_v33, %v17599_v18  ;;  %v17716_v47 = vadd.f32 %v6283_v40, %v6094_v63 }
 0x4fd   :  { %v13587_v29 = vpop.f32.mrf.mxu1  ;;  %v13654_v17 = vpop.f32.mrf.mxu0 }
 0x4ff   :  { %v6024_v60 = vpop.f32.mrf.mxu1  ;;  %v6286_v9 = vpop.f32.mrf.mxu0 }
 0x500   :  { %v6096_v41 = vadd.f32 %v6024_v60, %v17604_v0  ;;  %v17719_v3 = vadd.f32 %v6286_v9, %v6095_v58 }
 0x501   :  { %v13590_v16 = vpop.f32.mrf.mxu1  ;;  %v13655_v51 = vpop.f32.mrf.mxu0 }
 0x503   :  { %v6027_v44 = vpop.f32.mrf.mxu1  ;;  %v6291_v24 = vpop.f32.mrf.mxu0 }
 0x504   :  { %v6097_v22 = vadd.f32 %v6027_v44, %v17608_v61  ;;  %v17722_v42 = vadd.f32 %v6291_v24, %v6096_v41 }
 0x505   :  { %v13591_v30 = vpop.f32.mrf.mxu1  ;;  %v13658_v18 = vpop.f32.mrf.mxu0 }
 0x507   :  { %v6032_v46 = vpop.f32.mrf.mxu1  ;;  %v6294_v19 = vpop.f32.mrf.mxu0 }
 0x508   :  { %v6098_v55 = vadd.f32 %v6032_v46, %v17613_v35  ;;  %v17725_v5 = vadd.f32 %v6294_v19, %v6097_v22 }
 0x509   :  { %v13594_v34 = vpop.f32.mrf.mxu1  ;;  %v13659_v0 = vpop.f32.mrf.mxu0 }
 0x50b   :  { %v6035_v48 = vpop.f32.mrf.mxu1  ;;  %v6299_v12 = vpop.f32.mrf.mxu0 }
 0x50c   :  { %v6099_v1 = vadd.f32 %v6035_v48, %v17618_v38  ;;  %v17728_v14 = vadd.f32 %v6299_v12, %v6098_v55 }
 0x50d   :  { %v13595_v49 = vpop.f32.mrf.mxu1  ;;  %v13662_v61 = vpop.f32.mrf.mxu0 }
 0x50f   :  { %v6040_v62 = vpop.f32.mrf.mxu1  ;;  %v6302_v28 = vpop.f32.mrf.mxu0 }
 0x510   :  { %v6100_v11 = vadd.f32 %v6040_v62, %v17623_v57  ;;  %v17731_v15 = vadd.f32 %v6302_v28, %v6099_v1 }
 0x511   :  { %v13598_v2 = vpop.f32.mrf.mxu1  ;;  %v13663_v35 = vpop.f32.mrf.mxu0 }
 0x513   :  { %v6043_v4 = vpop.f32.mrf.mxu1  ;;  %v6307_v13 = vpop.f32.mrf.mxu0 }
 0x514   :  { %v6101_v6 = vadd.f32 %v6043_v4, %v17627_v27  ;;  %v17734_v21 = vadd.f32 %v6307_v13, %v6100_v11 }
 0x515   :  { %v13599_v31 = vpop.f32.mrf.mxu1  ;;  %v13666_v38 = vpop.f32.mrf.mxu0 }
 0x517   :  { %v6048_v63 = vpop.f32.mrf.mxu1  ;;  %v6310_v45 = vpop.f32.mrf.mxu0 }
 0x518   :  { %v6102_v54 = vadd.f32 %v6048_v63, %v17633_v10  ;;  %v17737_v33 = vadd.f32 %v6310_v45, %v6101_v6 }
 0x519   :  { %v13602_v40 = vpop.f32.mrf.mxu1  ;;  %v13667_v57 = vpop.f32.mrf.mxu0 }
 0x51b   :  { %v6051_v58 = vpop.f32.mrf.mxu1  ;;  %v6315_v29 = vpop.f32.mrf.mxu0 }
 0x51c   :  { %v6103_v17 = vadd.f32 %v6051_v58, %v17637_v53  ;;  %v17740_v60 = vadd.f32 %v6315_v29, %v6102_v54 }
 0x51d   :  { %v13603_v9 = vpop.f32.mrf.mxu1  ;;  %v13670_v27 = vpop.f32.mrf.mxu0 }
 0x51f   :  { %v6056_v41 = vpop.f32.mrf.mxu1  ;;  %v6318_v16 = vpop.f32.mrf.mxu0 }
 0x520   :  { %v6104_v51 = vadd.f32 %v6056_v41, %v17642_v43  ;;  %v17743_v44 = vadd.f32 %v6318_v16, %v6103_v17 }
 0x521   :  { %v13606_v24 = vpop.f32.mrf.mxu1  ;;  %v13671_v10 = vpop.f32.mrf.mxu0 }
 0x523   :  { %v6059_v22 = vpop.f32.mrf.mxu1  ;;  %v6323_v30 = vpop.f32.mrf.mxu0 }
 0x524   :  { %v6105_v18 = vadd.f32 %v6059_v22, %v17647_v25  ;;  %v17746_v46 = vadd.f32 %v6323_v30, %v6104_v51 }
 0x525   :  { %v13607_v19 = vpop.f32.mrf.mxu1  ;;  %v13674_v53 = vpop.f32.mrf.mxu0 }
 0x526   :  { %v6738_v19 = vld [vmem:[%s19257_s1] sm:$0xff] }
 0x527   :  { %v6064_v55 = vpop.f32.mrf.mxu1  ;;  %v6326_v34 = vpop.f32.mrf.mxu0  ;;  %vm6763_vm14 = vcmp.gt.f32.partialorder %v6738_v19, 0.0 }
 0x528   :  { %v6106_v0 = vadd.f32 %v6064_v55, %v17652_v50  ;;  %v17749_v48 = vadd.f32 %v6326_v34, %v6105_v18  ;;  %v6739_v55 = vld [vmem:[%s19257_s1 + $0x8] sm:$0xff] }
 0x529   :  { %v13610_v12 = vpop.f32.mrf.mxu1  ;;  %v13675_v43 = vpop.f32.mrf.mxu0  ;;  %vm6764_vm15 = vcmp.gt.f32.partialorder %v6739_v55, 0.0 }
 0x52b   :  { %v6067_v1 = vpop.f32.mrf.mxu1  ;;  %v6331_v49 = vpop.f32.mrf.mxu0 }
 0x52c   :  { %v6107_v61 = vadd.f32 %v6067_v1, %v17656_v59  ;;  %v17752_v62 = vadd.f32 %v6331_v49, %v6106_v0  ;;  %v6940_v49 = vld [vmem:[#allocation2 + $0x4] sm:$0xf] }
 0x52d   :  { %v13611_v28 = vpop.f32.mrf.mxu1  ;;  %v13678_v25 = vpop.f32.mrf.mxu0 }
 0x52f   :  { %v6072_v11 = vpop.f32.mrf.mxu1  ;;  %v6334_v2 = vpop.f32.mrf.mxu0 }
 0x530   :  { %v6108_v35 = vadd.f32 %v6072_v11, %v17662_v7  ;;  %v17755_v4 = vadd.f32 %v6334_v2, %v6107_v61  ;;  %v6939_v61 = vld [vmem:[#allocation2] sm:$0xc] }
 0x531   :  { %v13614_v13 = vpop.f32.mrf.mxu1  ;;  %v13679_v50 = vpop.f32.mrf.mxu0 }
 0x532   :  { %v11430_v13 = vcombine.low %v6939_v61, %v6940_v49  ;;  %v6740_v50 = vld [vmem:[%s19257_s1 + $0x10] sm:$0xff] }
 0x533   :  { %v6075_v6 = vpop.f32.mrf.mxu1  ;;  %v6339_v31 = vpop.f32.mrf.mxu0  ;;  %vm6765_vm7 = vcmp.gt.f32.partialorder %v6740_v50, 0.0 }
 0x534   :  { %v6109_v38 = vadd.f32 %v6075_v6, %v17666_v37  ;;  %v17758_v63 = vadd.f32 %v6339_v31, %v6108_v35  ;;  %v17768_v37 = vld [vmem:[%s19262_s6] ss:$0 sm:$0xff]  ;;  %v6981_v31 = vld [vmem:[#allocation2] sm:$0x8] }
 0x535   :  { %v13615_v45 = vpop.f32.mrf.mxu1  ;;  %v13682_v59 = vpop.f32.mrf.mxu0 }
 0x537   :  { %v6080_v54 = vpop.f32.mrf.mxu1  ;;  %v6342_v40 = vpop.f32.mrf.mxu0 }
 0x538   :  { %v6110_v57 = vadd.f32 %v6080_v54, %v17672_v32  ;;  %v17761_v58 = vadd.f32 %v6342_v40, %v6109_v38  ;;  %v17790_v40 = vcombine.low %v6981_v31, %v6940_v49 }
 0x539   :  { %v13618_v29 = vpop.f32.mrf.mxu1  ;;  %v13683_v7 = vpop.f32.mrf.mxu0 }
 0x53b   :  { %v6083_v17 = vpop.f32.mrf.mxu1  ;;  %v6347_v9 = vpop.f32.mrf.mxu0 }
 0x53c   :  { %v17763_v27 = vadd.f32 %v6347_v9, %v6110_v57  ;;  %v7289_v57 = vshrl.u32 %v11430_v13, 16 }
 0x53d   :  { %v13619_v41 = vpop.f32.mrf.mxu1  ;;  %v13686_v16 = vpop.f32.mrf.mxu0 }
 0x53f   :  { %v6554_v51 = vpop.f32.mrf.mxu1  ;;  %v6350_v24 = vpop.f32.mrf.mxu0 }
 0x540   :  { %v6656_v10 = vadd.f32 %v6554_v51, %v17682_v36  ;;  %v6742_v24 = vld [vmem:[%s19257_s1 + $0x20] sm:$0xff] }
 0x541   :  { %v13706_v32 = vpop.f32.mrf.mxu1  ;;  %v13687_v22 = vpop.f32.mrf.mxu0  ;;  %vm6767_vm9 = vcmp.gt.f32.partialorder %v6742_v24, 0.0 }
 0x542   :  { %v6688_v30 = vadd.f32 %v17768_v37, %v6656_v10  ;;  %v6743_v32 = vld [vmem:[%s19257_s1 + $0x28] sm:$0xff]  ;;  %v7063_v22 = vrot.slane %v17790_v40, 3 }
 0x543   :  { %v6557_v18 = vpop.f32.mrf.mxu1  ;;  %vm6768_vm10 = vcmp.gt.f32.partialorder %v6743_v32, 0.0 }
 0x544   :  { %v6657_v53 = vadd.f32 %v6557_v18, %v17688_v56  ;;  %v6713_v0 = vmax.f32 %v6688_v30, 0.0  ;;  %v7291_v30 = vrot.slane %v7289_v57, 2 }
 0x545   :  { %v13707_v34 = vpop.f32.mrf.mxu1 }
 0x546   :  { %v6689_v12 = vadd.f32 %v17768_v37, %v6657_v53  ;;  %v6788_v25 = vsel %vm6763_vm14, %v6713_v0, 0.0 }
 0x547   :  { %v6562_v36 = vpop.f32.mrf.mxu1 }
 0x548   :  { %v6714_v43 = vmax.f32 %v6689_v12, 0.0  ;;  %v6658_v1 = vadd.f32 %v6562_v36, %v17695_v52  ;;  %v6741_v52 = vld [vmem:[%s19257_s1 + $0x18] sm:$0xff] }
 0x549   :  { %v13710_v28 = vpop.f32.mrf.mxu1  ;;  %vm6766_vm8 = vcmp.gt.f32.partialorder %v6741_v52, 0.0 }
 0x54a   :  { %v6789_v11 = vsel %vm6764_vm15, %v6714_v43, 0.0  ;;  %v6690_v56 = vadd.f32 %v17768_v37, %v6658_v1  ;;  %v14757_v1 = vld [vmem:[#allocation7 + $0xb8] sm:$0xff]  }
 0x54b   :  { %v11778_v2 = vpack.c.bf16 %v6789_v11, %v6788_v25  ;;  %v6565_v35 = vpop.f32.mrf.mxu1 }
 0x54c   :  { %v6659_v6 = vadd.f32 %v6565_v35, %v17700_v8  ;;  %v6715_v45 = vmax.f32 %v6690_v56, 0.0  ;;  %v7292_v8 = vshll.u32 %v11430_v13, 16 }
 0x54d   :  { %11907 = vst [vmem:[#allocation2 + $0x8] sm:$0xff] %v11778_v2   ;;  %v13711_v38 = vpop.f32.mrf.mxu1 }
 0x54e   :  { %v6691_v59 = vadd.f32 %v17768_v37, %v6659_v6  ;;  %v6790_v9 = vsel %vm6765_vm7, %v6715_v45, 0.0  ;;  %v7294_v19 = vrot.slane %v7292_v8, 3  ;;  %v17817_v45 = vld [vmem:[#allocation4] sm:$0xff] }
 0x54f   :  { %v6570_v54 = vpop.f32.mrf.mxu1  ;;  %v14763_v8 = vld [vmem:[#allocation7 + $0xf8] sm:$0xff]  }
 0x550   :  { %v6716_v29 = vmax.f32 %v6691_v59, 0.0  ;;  %v6660_v7 = vadd.f32 %v6570_v54, %v17704_v39  ;;  %v7295_v35 = vor.u32 %v7294_v19, %v7291_v30  ;;  %v6744_v54 = vld [vmem:[%s19257_s1 + $0x30] sm:$0xff]  ;;  %v14762_v30 = vld [vmem:[#allocation7 + $0xa8] sm:$0xff]  }
 0x551   :  { %v13714_v17 = vpop.f32.mrf.mxu1  ;;  %vm6769_vm11 = vcmp.gt.f32.partialorder %v6744_v54, 0.0 }
 0x552   :  { %v6791_v41 = vsel %vm6766_vm8, %v6716_v29, 0.0  ;;  %v6692_v16 = vadd.f32 %v17768_v37, %v6660_v7  ;;  %v6745_v29 = vld [vmem:[%s19257_s1 + $0x38] sm:$0xff] }
 0x553   :  { %v11783_v51 = vpack.c.bf16 %v6791_v41, %v6790_v9  ;;  %v6573_v10 = vpop.f32.mrf.mxu1  ;;  %vm6770_vm12 = vcmp.gt.f32.partialorder %v6745_v29, 0.0 }
 0x554   :  { %v6661_v39 = vadd.f32 %v6573_v10, %v17707_v20  ;;  %v17802_v18 = vld [vmem:[#allocation2 + $0x8] sm:$0xff]   ;;  %v6717_v0 = vmax.f32 %v6692_v16, 0.0 }
 0x555   :  { %11908 = vst [vmem:[#allocation2 + $0x10] sm:$0xff] %v11783_v51   ;;  %v13715_v53 = vpop.f32.mrf.mxu1  ;;  %v17804_v55 = vld [vmem:[#allocation2 + $0x8] sm:$0xf]  ;;  %v17806_v34 = vld [vmem:[#allocation2 + $0xc] sm:$0xf]  ;;  %v7064_v36 = vrot.slane %v17802_v18, 3 }
 0x556   :  { %v6693_v12 = vadd.f32 %v17768_v37, %v6661_v39  ;;  %v7297_v43 = vshrl.u32 %v17802_v18, 16  ;;  %v7300_v49 = vshll.u32 %v17802_v18, 16  ;;  %v6792_v52 = vsel %vm6767_vm9, %v6717_v0, 0.0 }
 0x557   :  { %v6578_v20 = vpop.f32.mrf.mxu1  ;;  %v7065_v11 = vsel %vm351_vm1, %v7063_v22, %v7064_v36 }
 0x558   :  { %v6718_v28 = vmax.f32 %v6693_v12, 0.0  ;;  %v6662_v25 = vadd.f32 %v6578_v20, %v17710_v26  ;;  %v7299_v56 = vrot.slane %v7297_v43, 2  ;;  %13773 = vmatmul.mubr.bf16.vlgmr.msra.gmra.mxu0 %v7065_v11  ;;  %v7302_v13 = vrot.slane %v7300_v49, 3  ;;  %v14759_v26 = vld [vmem:[#allocation7 + $0xb0] sm:$0xff]   ;;  %v14766_v11 = vld [vmem:[#allocation7 + $0xa0] sm:$0xff]  }
 0x559   :  { %v13718_v2 = vpop.f32.mrf.mxu1  ;;  %v7629_v50 = vrot.slane %v7297_v43, 3  ;;  %v7630_v6 = vrot.slane %v7300_v49, 4  ;;  %13776 = vmatprep.mubr.msk.bf16.mxu0 %vm15114_vm0, %v17817_v45  ;;  %13893 = vmatpush3.bf16.msra.mxu0 %v14757_v1  ;;  %v14765_v12 = vld [vmem:[#allocation7 + $0xf0] sm:$0xff]  }
 0x55a   :  { %v6793_v31 = vsel %vm6768_vm10, %v6718_v28, 0.0  ;;  %v6694_v38 = vadd.f32 %v17768_v37, %v6662_v25  ;;  %v7303_v7 = vor.u32 %v7302_v13, %v7299_v56  ;;  %13894 = vmatprep.subr.bf16.mxu0 %v17817_v45  ;;  %v6746_v43 = vld [vmem:[%s19257_s1 + $0x40] sm:$0xff] }
 0x55b   :  { %v11788_v59 = vpack.c.bf16 %v6793_v31, %v6792_v52  ;;  %v6581_v57 = vpop.f32.mrf.mxu1  ;;  %v17828_v17 = vor.u32 %v7630_v6, %v7629_v50  ;;  %v6747_v50 = vld [vmem:[%s19257_s1 + $0x48] sm:$0xff]  ;;  %v14767_v52 = vld [vmem:[#allocation7 + $0xe8] sm:$0xff]   ;;  %vm6771_vm13 = vcmp.gt.f32.partialorder %v6746_v43, 0.0 }
 0x55c   :  { %v6663_v9 = vadd.f32 %v6581_v57, %v17713_v23  ;;  %v17831_v41 = vld [vmem:[#allocation2 + $0x10] sm:$0xff]   ;;  %v7304_v51 = vsel %vm577_vm2, %v7295_v35, %v7303_v7  ;;  %v6719_v24 = vmax.f32 %v6694_v38, 0.0  ;;  %vm6772_vm14 = vcmp.gt.f32.partialorder %v6747_v50, 0.0  ;;  %v6749_v43 = vld [vmem:[%s19257_s1 + $0x58] sm:$0xff] }
 0x55d   :  { %11909 = vst [vmem:[#allocation2 + $0x18] sm:$0xff] %v11788_v59   ;;  %v13719_v16 = vpop.f32.mrf.mxu1  ;;  %13841 = vmatmul.mubr.bf16.vlgmr.msra.gmra.mxu1 %v7304_v51  ;;  %v7066_v32 = vrot.slane %v17831_v41, 3  ;;  %v7306_v22 = vshrl.u32 %v17831_v41, 16  ;;  %13895 = vmatpush3.bf16.msra.mxu0 %v14759_v26  ;;  %v7309_v23 = vshll.u32 %v17831_v41, 16  ;;  %v17849_v49 = vld [vmem:[#allocation2 + $0x10] sm:$0xf] }
 0x55e   :  { %v6695_v10 = vadd.f32 %v17768_v37, %v6663_v9  ;;  %13844 = vmatprep.mubr.msk.bf16.mxu1 %vm15114_vm0, %v17817_v45  ;;  %13896 = vmatprep.subr.bf16.mxu0 %v17817_v45  ;;  %v17856_v2 = vld [vmem:[#allocation2 + $0x14] sm:$0xf]  ;;  %v14769_v16 = vld [vmem:[#allocation7 + $0x98] sm:$0xff]   ;;  %v14771_v41 = vld [vmem:[#allocation7 + $0x90] sm:$0xff]   ;;  %vm6774_vm7 = vcmp.gt.f32.partialorder %v6749_v43, 0.0 }
 0x55f   :  { %v6586_v39 = vpop.f32.mrf.mxu1  ;;  %v7067_v53 = vsel %vm351_vm1, %v7064_v36, %v7066_v32  ;;  %v7308_v0 = vrot.slane %v7306_v22, 2  ;;  %13961 = vmatpush3.bf16.msra.mxu1 %v14763_v8  ;;  %v7311_v20 = vrot.slane %v7309_v23, 3  ;;  %v7633_v28 = vrot.slane %v7306_v22, 3 }
 0x560   :  { %v6720_v18 = vmax.f32 %v6695_v10, 0.0  ;;  %v6664_v19 = vadd.f32 %v6586_v39, %v17716_v47  ;;  %13777 = vmatmul.mubr.bf16.gmra.mxu0 %v7067_v53  ;;  %13962 = vmatprep.subr.bf16.mxu1 %v17817_v45  ;;  %v6794_v47 = vsel %vm6769_vm11, %v6719_v24, 0.0  ;;  %v7634_v56 = vrot.slane %v7309_v23, 4  ;;  %v14770_v23 = vld [vmem:[#allocation7 + $0xe0] sm:$0xff]  }
 0x561   :  { %v13722_v1 = vpop.f32.mrf.mxu1  ;;  %13780 = vmatprep.mubr.msk.bf16.mxu0 %vm15114_vm0, %v17817_v45  ;;  %13897 = vmatpush3.bf16.msra.mxu0 %v14762_v30  ;;  %v7312_v6 = vor.u32 %v7311_v20, %v7308_v0 }
 0x562   :  { %v6795_v25 = vsel %vm6770_vm12, %v6720_v18, 0.0  ;;  %v6696_v36 = vadd.f32 %v17768_v37, %v6664_v19  ;;  %13898 = vmatprep.subr.bf16.mxu0 %v17817_v45  ;;  %v17865_v26 = vor.u32 %v7634_v56, %v7633_v28 }
 0x563   :  { %v11793_v35 = vpack.c.bf16 %v6795_v25, %v6794_v47  ;;  %v6589_v13 = vpop.f32.mrf.mxu1  ;;  %13963 = vmatpush3.bf16.msra.mxu1 %v14765_v12  ;;  %v7313_v54 = vsel %vm577_vm2, %v7303_v7, %v7312_v6  ;;  %v14772_v25 = vld [vmem:[#allocation7 + $0xd8] sm:$0xff]  }
 0x564   :  { %v6665_v31 = vadd.f32 %v6589_v13, %v17719_v3  ;;  %v17863_v38 = vld [vmem:[#allocation2 + $0x18] sm:$0xff]   ;;  %13964 = vmatprep.subr.bf16.mxu1 %v17817_v45  ;;  %v6721_v29 = vmax.f32 %v6696_v36, 0.0  ;;  %v17881_v24 = vsel %vm911_vm3, %v17828_v17, %v17865_v26 }
 0x565   :  { %11910 = vst [vmem:[#allocation2 + $0x20] sm:$0xff] %v11793_v35   ;;  %v13723_v59 = vpop.f32.mrf.mxu1  ;;  %13845 = vmatmul.mubr.bf16.gmra.mxu1 %v7313_v54  ;;  %v7068_v3 = vrot.slane %v17863_v38, 3  ;;  %v7315_v9 = vshrl.u32 %v17863_v38, 16  ;;  %13899 = vmatpush3.bf16.msra.mxu0 %v14766_v11  ;;  %v7318_v7 = vshll.u32 %v17863_v38, 16  ;;  %v14773_v38 = vld [vmem:[#allocation7 + $0x88] sm:$0xff]  }
 0x566   :  { %v6697_v8 = vadd.f32 %v17768_v37, %v6665_v31  ;;  %13848 = vmatprep.mubr.msk.bf16.mxu1 %vm15114_vm0, %v17817_v45  ;;  %13900 = vmatprep.subr.bf16.mxu0 %v17817_v45  ;;  %v6796_v0 = vsel %vm6771_vm13, %v6721_v29, 0.0 }
 0x567   :  { %v6594_v51 = vpop.f32.mrf.mxu1  ;;  %v7069_v30 = vsel %vm351_vm1, %v7066_v32, %v7068_v3  ;;  %v7317_v39 = vrot.slane %v7315_v9, 2  ;;  %13965 = vmatpush3.bf16.msra.mxu1 %v14767_v52  ;;  %v7320_v19 = vrot.slane %v7318_v7, 3  ;;  %v7637_v53 = vrot.slane %v7315_v9, 3 }
 0x568   :  { %v6722_v10 = vmax.f32 %v6697_v8, 0.0  ;;  %v6666_v22 = vadd.f32 %v6594_v51, %v17722_v42  ;;  %13781 = vmatmul.mubr.bf16.gmra.mxu0 %v7069_v30  ;;  %13966 = vmatprep.subr.bf16.mxu1 %v17817_v45  ;;  %v6748_v42 = vld [vmem:[%s19257_s1 + $0x50] sm:$0xff]  ;;  %v7638_v32 = vrot.slane %v7318_v7, 4  ;;  %v14774_v51 = vld [vmem:[#allocation7 + $0xd0] sm:$0xff]   ;;  %v17924_v30 = vld [vmem:[#allocation2 + $0x1c] sm:$0xf] }
 0x569   :  { %v13726_v18 = vpop.f32.mrf.mxu1  ;;  %13784 = vmatprep.mubr.msk.bf16.mxu0 %vm15114_vm0, %v17817_v45  ;;  %13901 = vmatpush3.bf16.msra.mxu0 %v14769_v16  ;;  %v7321_v47 = vor.u32 %v7320_v19, %v7317_v39  ;;  %vm6773_vm15 = vcmp.gt.f32.partialorder %v6748_v42, 0.0  ;;  %v14776_v42 = vld [vmem:[#allocation7 + $0xc8] sm:$0xff]  }
 0x56a   :  { %v6797_v12 = vsel %vm6772_vm14, %v6722_v10, 0.0  ;;  %v6698_v1 = vadd.f32 %v17768_v37, %v6666_v22  ;;  %13902 = vmatprep.subr.bf16.mxu0 %v17817_v45  ;;  %v17903_v56 = vor.u32 %v7638_v32, %v7637_v53  ;;  %v17922_v22 = vld [vmem:[#allocation2 + $0x18] sm:$0xf]  ;;  %v14775_v18 = vld [vmem:[#allocation7 + $0x80] sm:$0xff]  }
 0x56b   :  { %v11798_v20 = vpack.c.bf16 %v6797_v12, %v6796_v0  ;;  %v6597_v28 = vpop.f32.mrf.mxu1  ;;  %13967 = vmatpush3.bf16.msra.mxu1 %v14770_v23  ;;  %v7322_v13 = vsel %vm577_vm2, %v7312_v6, %v7321_v47  ;;  %v6751_v12 = vld [vmem:[%s19257_s1 + $0x68] sm:$0xff] }
 0x56c   :  { %v6667_v36 = vadd.f32 %v6597_v28, %v17725_v5  ;;  %v17901_v11 = vld [vmem:[#allocation2 + $0x20] sm:$0xff]   ;;  %13968 = vmatprep.subr.bf16.mxu1 %v17817_v45  ;;  %v6723_v50 = vmax.f32 %v6698_v1, 0.0  ;;  %v17917_v6 = vsel %vm911_vm3, %v17865_v26, %v17903_v56  ;;  %vm6776_vm9 = vcmp.gt.f32.partialorder %v6751_v12, 0.0 }
 0x56d   :  { %11911 = vst [vmem:[#allocation2 + $0x28] sm:$0xff] %v11798_v20   ;;  %v13727_v35 = vpop.f32.mrf.mxu1  ;;  %13849 = vmatmul.mubr.bf16.gmra.mxu1 %v7322_v13  ;;  %v7070_v31 = vrot.slane %v17901_v11, 3  ;;  %v7324_v5 = vshrl.u32 %v17901_v11, 16  ;;  %13903 = vmatpush3.bf16.msra.mxu0 %v14771_v41  ;;  %v7327_v54 = vshll.u32 %v17901_v11, 16 }
 0x56e   :  { %v6699_v52 = vadd.f32 %v17768_v37, %v6667_v36  ;;  %13852 = vmatprep.mubr.msk.bf16.mxu1 %vm15114_vm0, %v17817_v45  ;;  %13904 = vmatprep.subr.bf16.mxu0 %v17817_v45  ;;  %v6798_v26 = vsel %vm6773_vm15, %v6723_v50, 0.0 }
 0x56f   :  { %v6602_v59 = vpop.f32.mrf.mxu1  ;;  %v7071_v9 = vsel %vm351_vm1, %v7068_v3, %v7070_v31  ;;  %v7326_v16 = vrot.slane %v7324_v5, 2  ;;  %13969 = vmatpush3.bf16.msra.mxu1 %v14772_v25  ;;  %v7329_v10 = vrot.slane %v7327_v54, 3  ;;  %v7641_v39 = vrot.slane %v7324_v5, 3  ;;  %v6750_v3 = vld [vmem:[%s19257_s1 + $0x60] sm:$0xff] }
 0x570   :  { %v6724_v29 = vmax.f32 %v6699_v52, 0.0  ;;  %v6668_v8 = vadd.f32 %v6602_v59, %v17728_v14  ;;  %13785 = vmatmul.mubr.bf16.gmra.mxu0 %v7071_v9  ;;  %13970 = vmatprep.subr.bf16.mxu1 %v17817_v45  ;;  %v7642_v19 = vrot.slane %v7327_v54, 4  ;;  %vm6775_vm8 = vcmp.gt.f32.partialorder %v6750_v3, 0.0  ;;  %v14777_v54 = vld [vmem:[#allocation7 + $0xc0] sm:$0xff]   ;;  %v17959_v9 = vld [vmem:[#allocation2 + $0x20] sm:$0xf] }
 0x571   :  { %v13730_v7 = vpop.f32.mrf.mxu1  ;;  %13788 = vmatprep.mubr.msk.bf16.mxu0 %vm15114_vm0, %v17817_v45  ;;  %13905 = vmatpush3.bf16.msra.mxu0 %v14773_v38  ;;  %v7330_v1 = vor.u32 %v7329_v10, %v7326_v16  ;;  %19381 = vst [vmem:[#allocation16_spill] sm:$0xff] %v17959_v9 }
 0x572   :  { %v6799_v23 = vsel %vm6774_vm7, %v6724_v29, 0.0  ;;  %v6700_v14 = vadd.f32 %v17768_v37, %v6668_v8  ;;  %13906 = vmatprep.subr.bf16.mxu0 %v17817_v45  ;;  %v7643_v20 = vor.u32 %v7642_v19, %v7641_v39 }
 0x573   :  { %v11803_v53 = vpack.c.bf16 %v6799_v23, %v6798_v26  ;;  %v6605_v0 = vpop.f32.mrf.mxu1  ;;  %13971 = vmatpush3.bf16.msra.mxu1 %v14774_v51  ;;  %v7331_v25 = vsel %vm577_vm2, %v7321_v47, %v7330_v1  ;;  %v6753_v23 = vld [vmem:[%s19257_s1 + $0x78] sm:$0xff] }
 0x574   :  { %v6669_v41 = vadd.f32 %v6605_v0, %v17731_v15  ;;  %v17939_v32 = vld [vmem:[#allocation2 + $0x28] sm:$0xff]   ;;  %13972 = vmatprep.subr.bf16.mxu1 %v17817_v45  ;;  %v6725_v36 = vmax.f32 %v6700_v14, 0.0  ;;  %v17953_v47 = vsel %vm911_vm3, %v17903_v56, %v7643_v20  ;;  %vm6778_vm11 = vcmp.gt.f32.partialorder %v6753_v23, 0.0 }
 0x575   :  { %11912 = vst [vmem:[#allocation2 + $0x30] sm:$0xff] %v11803_v53   ;;  %v13731_v43 = vpop.f32.mrf.mxu1  ;;  %13853 = vmatmul.mubr.bf16.gmra.mxu1 %v7331_v25  ;;  %v7072_v15 = vrot.slane %v17939_v32, 3  ;;  %v7333_v35 = vshrl.u32 %v17939_v32, 16  ;;  %13907 = vmatpush3.bf16.msra.mxu0 %v14775_v18  ;;  %v7336_v50 = vshll.u32 %v17939_v32, 16 }
 0x576   :  { %v6701_v11 = vadd.f32 %v17768_v37, %v6669_v41  ;;  %13856 = vmatprep.mubr.msk.bf16.mxu1 %vm15114_vm0, %v17817_v45  ;;  %14028 = vmatprep.subr.bf16.mxu0 %v17817_v45  ;;  %v6800_v56 = vsel %vm6775_vm8, %v6725_v36, 0.0 }
 0x577   :  { %v6610_v13 = vpop.f32.mrf.mxu1  ;;  %v7073_v38 = vsel %vm351_vm1, %v7070_v31, %v7072_v15  ;;  %v7335_v59 = vrot.slane %v7333_v35, 2  ;;  %13973 = vmatpush3.bf16.msra.mxu1 %v14776_v42  ;;  %v7338_v8 = vrot.slane %v7336_v50, 3  ;;  %v7645_v16 = vrot.slane %v7333_v35, 3  ;;  %v17969_v31 = vld [vmem:[#allocation2 + $0x24] sm:$0xf] }
 0x578   :  { %v6726_v52 = vmax.f32 %v6701_v11, 0.0  ;;  %v6670_v5 = vadd.f32 %v6610_v13, %v17734_v21  ;;  %13789 = vmatmul.mubr.bf16.gmra.mxu0 %v7073_v38  ;;  %13974 = vmatprep.subr.bf16.mxu1 %v17817_v45  ;;  %v6752_v21 = vld [vmem:[%s19257_s1 + $0x70] sm:$0xff]  ;;  %19382 = vst [vmem:[#allocation17_spill] sm:$0xff] %v17969_v31  ;;  %v7646_v10 = vrot.slane %v7336_v50, 4 }
 0x579   :  { %v13734_v29 = vpop.f32.mrf.mxu1  ;;  %13792 = vmatprep.mubr.msk.bf16.mxu0 %vm15114_vm0, %v17817_v45  ;;  %v7339_v14 = vor.u32 %v7338_v8, %v7335_v59  ;;  %vm6777_vm10 = vcmp.gt.f32.partialorder %v6752_v21, 0.0  ;;  %v6755_v8 = vld [vmem:[%s19257_s1 + $0x88] sm:$0xff] }
 0x57a   :  { %v6801_v51 = vsel %vm6776_vm9, %v6726_v52, 0.0  ;;  %v6702_v7 = vadd.f32 %v17768_v37, %v6670_v5  ;;  %v7647_v19 = vor.u32 %v7646_v10, %v7645_v16  ;;  %vm6780_vm13 = vcmp.gt.f32.partialorder %v6755_v8, 0.0 }
 0x57b   :  { %v11808_v39 = vpack.c.bf16 %v6801_v51, %v6800_v56  ;;  %v6613_v26 = vpop.f32.mrf.mxu1  ;;  %13975 = vmatpush3.bf16.msra.mxu1 %v14777_v54  ;;  %v7340_v0 = vsel %vm577_vm2, %v7330_v1, %v7339_v14 }
 0x57c   :  { %v6671_v3 = vadd.f32 %v6613_v26, %v17737_v33  ;;  %v14755_v18 = vld [vmem:[#allocation2 + $0x30] sm:$0xff]   ;;  %14096 = vmatprep.subr.bf16.mxu1 %v17817_v45  ;;  %v6727_v42 = vmax.f32 %v6702_v7, 0.0  ;;  %v17983_v36 = vsel %vm911_vm3, %v7643_v20, %v7647_v19  ;;  %v6754_v20 = vld [vmem:[%s19257_s1 + $0x80] sm:$0xff] }
 0x57d   :  { %11913 = vst [vmem:[#allocation2 + $0x38] sm:$0xff] %v11808_v39   ;;  %v13735_v53 = vpop.f32.mrf.mxu1  ;;  %13857 = vmatmul.mubr.bf16.gmra.mxu1 %v7340_v0  ;;  %v7074_v32 = vrot.slane %v14755_v18, 3  ;;  %v7342_v43 = vshrl.u32 %v14755_v18, 16  ;;  %v7345_v25 = vshll.u32 %v14755_v18, 16  ;;  %vm6779_vm12 = vcmp.gt.f32.partialorder %v6754_v20, 0.0 }
 0x57e   :  { %v6703_v41 = vadd.f32 %v17768_v37, %v6671_v3  ;;  %13860 = vmatprep.mubr.msk.bf16.mxu1 %vm15114_vm0, %v17817_v45  ;;  %v6802_v38 = vsel %vm6777_vm10, %v6727_v42, 0.0 }
 0x57f   :  { %v6618_v33 = vpop.f32.mrf.mxu1  ;;  %v7075_v35 = vsel %vm351_vm1, %v7072_v15, %v7074_v32  ;;  %v7344_v13 = vrot.slane %v7342_v43, 2  ;;  %v7347_v52 = vrot.slane %v7345_v25, 3  ;;  %v7649_v5 = vrot.slane %v7342_v43, 3 }
 0x580   :  { %v6728_v1 = vmax.f32 %v6703_v41, 0.0  ;;  %v6672_v11 = vadd.f32 %v6618_v33, %v17740_v60  ;;  %13793 = vmatmul.mubr.bf16.gmra.mxu0 %v7075_v35  ;;  %v7650_v60 = vrot.slane %v7345_v25, 4  ;;  %v18007_v25 = vld [vmem:[#allocation2 + $0x28] sm:$0xf] }
 0x581   :  { %v13738_v50 = vpop.f32.mrf.mxu1  ;;  %13796 = vmatprep.mubr.msk.bf16.mxu0 %vm15114_vm0, %v17817_v45  ;;  %v7348_v16 = vor.u32 %v7347_v52, %v7344_v13  ;;  %19383 = vst [vmem:[#allocation18_spill] sm:$0xff] %v18007_v25 }
 0x582   :  { %v6803_v59 = vsel %vm6778_vm11, %v6728_v1, 0.0  ;;  %v6704_v54 = vadd.f32 %v17768_v37, %v6672_v11  ;;  %v7651_v7 = vor.u32 %v7650_v60, %v7649_v5  ;;  %v18009_v1 = vld [vmem:[#allocation2 + $0x2c] sm:$0xf]  ;;  %v6757_v5 = vld [vmem:[%s19257_s1 + $0x98] sm:$0xff] }
 0x583   :  { %v11813_v29 = vpack.c.bf16 %v6803_v59, %v6802_v38  ;;  %v6621_v15 = vpop.f32.mrf.mxu1  ;;  %v7349_v10 = vsel %vm577_vm2, %v7339_v14, %v7348_v16  ;;  %19384 = vst [vmem:[#allocation19_spill] sm:$0xff] %v18009_v1  ;;  %vm6782_vm15 = vcmp.gt.f32.partialorder %v6757_v5, 0.0 }
 0x584   :  { %v6673_v56 = vadd.f32 %v6621_v15, %v17743_v44  ;;  %v14756_v51 = vld [vmem:[#allocation2 + $0x38] sm:$0xff]   ;;  %v6729_v39 = vmax.f32 %v6704_v54, 0.0  ;;  %v18003_v44 = vsel %vm911_vm3, %v7647_v19, %v7651_v7 }
 0x585   :  { %11914 = vst [vmem:[#allocation2 + $0x40] sm:$0xff] %v11813_v29   ;;  %v13739_v21 = vpop.f32.mrf.mxu1  ;;  %13861 = vmatmul.mubr.bf16.gmra.mxu1 %v7349_v10  ;;  %v7076_v23 = vrot.slane %v14756_v51, 3  ;;  %v7351_v3 = vshrl.u32 %v14756_v51, 16  ;;  %v7354_v53 = vshll.u32 %v14756_v51, 16 }
 0x586   :  { %v6705_v26 = vadd.f32 %v17768_v37, %v6673_v56  ;;  %13864 = vmatprep.mubr.msk.bf16.mxu1 %vm15114_vm0, %v17817_v45  ;;  %v6804_v35 = vsel %vm6779_vm12, %v6729_v39, 0.0 }
 0x587   :  { %v6626_v18 = vpop.f32.mrf.mxu1  ;;  %v7077_v14 = vsel %vm351_vm1, %v7074_v32, %v7076_v23  ;;  %v7353_v41 = vrot.slane %v7351_v3, 2  ;;  %v7356_v33 = vrot.slane %v7354_v53, 3  ;;  %v7653_v11 = vrot.slane %v7351_v3, 3 }
 0x588   :  { %v6730_v0 = vmax.f32 %v6705_v26, 0.0  ;;  %v6674_v42 = vadd.f32 %v6626_v18, %v17746_v46  ;;  %13797 = vmatmul.mubr.bf16.gmra.mxu0 %v7077_v14  ;;  %v6756_v46 = vld [vmem:[%s19257_s1 + $0x90] sm:$0xff]  ;;  %v7654_v32 = vrot.slane %v7354_v53, 4 }
 0x589   :  { %v13742_v43 = vpop.f32.mrf.mxu1  ;;  %13800 = vmatprep.mubr.msk.bf16.mxu0 %vm15114_vm0, %v17817_v45  ;;  %v7357_v38 = vor.u32 %v7356_v33, %v7353_v41  ;;  %vm6781_vm14 = vcmp.gt.f32.partialorder %v6756_v46, 0.0 }
 0x58a   :  { %v6805_v13 = vsel %vm6780_vm13, %v6730_v0, 0.0  ;;  %v6706_v19 = vadd.f32 %v17768_v37, %v6674_v42  ;;  %v7655_v20 = vor.u32 %v7654_v32, %v7653_v11  ;;  %v18034_v42 = vld [vmem:[#allocation2 + $0x30] sm:$0xf] }
 0x58b   :  { %v11818_v50 = vpack.c.bf16 %v6805_v13, %v6804_v35  ;;  %v6629_v52 = vpop.f32.mrf.mxu1  ;;  %v7358_v15 = vsel %vm577_vm2, %v7348_v16, %v7357_v38  ;;  %19385 = vst [vmem:[#allocation20_spill] sm:$0xff] %v18034_v42  ;;  %v6759_v13 = vld [vmem:[%s19257_s1 + $0xa8] sm:$0xff] }
 0x58c   :  { %v6675_v59 = vadd.f32 %v6629_v52, %v17749_v48  ;;  %v14758_v54 = vld [vmem:[#allocation2 + $0x40] sm:$0xff]   ;;  %v6731_v8 = vmax.f32 %v6706_v19, 0.0  ;;  %v18030_v39 = vsel %vm911_vm3, %v7651_v7, %v7655_v20  ;;  %vm6784_vm8 = vcmp.gt.f32.partialorder %v6759_v13, 0.0 }
 0x58d   :  { %11915 = vst [vmem:[#allocation2 + $0x48] sm:$0xff] %v11818_v50   ;;  %v13743_v29 = vpop.f32.mrf.mxu1  ;;  %13865 = vmatmul.mubr.bf16.gmra.mxu1 %v7358_v15  ;;  %v7078_v51 = vrot.slane %v14758_v54, 3  ;;  %v7360_v21 = vshrl.u32 %v14758_v54, 16  ;;  %v7363_v48 = vshll.u32 %v14758_v54, 16  ;;  %v6758_v7 = vld [vmem:[%s19257_s1 + $0xa0] sm:$0xff] }
 0x58e   :  { %v6707_v56 = vadd.f32 %v17768_v37, %v6675_v59  ;;  %13868 = vmatprep.mubr.msk.bf16.mxu1 %vm15114_vm0, %v17817_v45  ;;  %v6806_v41 = vsel %vm6781_vm14, %v6731_v8, 0.0  ;;  %vm6783_vm7 = vcmp.gt.f32.partialorder %v6758_v7, 0.0 }
 0x58f   :  { %v6634_v10 = vpop.f32.mrf.mxu1  ;;  %v7079_v16 = vsel %vm351_vm1, %v7076_v23, %v7078_v51  ;;  %v7362_v18 = vrot.slane %v7360_v21, 2  ;;  %v7365_v0 = vrot.slane %v7363_v48, 3  ;;  %v7657_v14 = vrot.slane %v7360_v21, 3 }
 0x590   :  { %v6732_v26 = vmax.f32 %v6707_v56, 0.0  ;;  %v6676_v3 = vadd.f32 %v6634_v10, %v17752_v62  ;;  %13801 = vmatmul.mubr.bf16.gmra.mxu0 %v7079_v16  ;;  %v18043_v62 = vld [vmem:[#allocation2 + $0x34] sm:$0xf]  ;;  %v7658_v23 = vrot.slane %v7363_v48, 4 }
 0x591   :  { %v13746_v53 = vpop.f32.mrf.mxu1  ;;  %13804 = vmatprep.mubr.msk.bf16.mxu0 %vm15114_vm0, %v17817_v45  ;;  %19386 = vst [vmem:[#allocation21_spill] sm:$0xff] %v18043_v62  ;;  %v7366_v19 = vor.u32 %v7365_v0, %v7362_v18 }
 0x592   :  { %v6807_v43 = vsel %vm6782_vm15, %v6732_v26, 0.0  ;;  %v6708_v33 = vadd.f32 %v17768_v37, %v6676_v3  ;;  %v7659_v50 = vor.u32 %v7658_v23, %v7657_v14 }
 0x593   :  { %v11823_v11 = vpack.c.bf16 %v6807_v43, %v6806_v41  ;;  %v6637_v35 = vpop.f32.mrf.mxu1  ;;  %v7367_v5 = vsel %vm577_vm2, %v7357_v38, %v7366_v19 }
 0x594   :  { %v6677_v46 = vadd.f32 %v6637_v35, %v17755_v4  ;;  %v14760_v32 = vld [vmem:[#allocation2 + $0x48] sm:$0xff]   ;;  %v6733_v54 = vmax.f32 %v6708_v33, 0.0  ;;  %v18056_v21 = vsel %vm911_vm3, %v7655_v20, %v7659_v50  ;;  %v6760_v20 = vld [vmem:[%s19257_s1 + $0xb0] sm:$0xff] }
 0x595   :  { %11916 = vst [vmem:[#allocation2 + $0x50] sm:$0xff] %v11823_v11   ;;  %v13747_v52 = vpop.f32.mrf.mxu1  ;;  %13869 = vmatmul.mubr.bf16.gmra.mxu1 %v7367_v5  ;;  %v7080_v15 = vrot.slane %v14760_v32, 3  ;;  %v7369_v8 = vshrl.u32 %v14760_v32, 16  ;;  %v7372_v4 = vshll.u32 %v14760_v32, 16  ;;  %vm6785_vm9 = vcmp.gt.f32.partialorder %v6760_v20, 0.0 }
 0x596   :  { %v6709_v29 = vadd.f32 %v17768_v37, %v6677_v46  ;;  %13872 = vmatprep.mubr.msk.bf16.mxu1 %vm15114_vm0, %v17817_v45  ;;  %v6808_v53 = vsel %vm6783_vm7, %v6733_v54, 0.0 }
 0x597   :  { %v6642_v56 = vpop.f32.mrf.mxu1  ;;  %v7081_v48 = vsel %vm351_vm1, %v7078_v51, %v7080_v15  ;;  %v7371_v26 = vrot.slane %v7369_v8, 2  ;;  %v7374_v16 = vrot.slane %v7372_v4, 3  ;;  %v7661_v18 = vrot.slane %v7369_v8, 3  ;;  %v18078_v8 = vld [vmem:[#allocation2 + $0x38] sm:$0xf] }
 0x598   :  { %v6734_v10 = vmax.f32 %v6709_v29, 0.0  ;;  %v6678_v38 = vadd.f32 %v6642_v56, %v17758_v63  ;;  %13805 = vmatmul.mubr.bf16.gmra.mxu0 %v7081_v48  ;;  %v6761_v63 = vld [vmem:[%s19257_s1 + $0xb8] sm:$0xff]  ;;  %v7662_v51 = vrot.slane %v7372_v4, 4  ;;  %v6762_v29 = vld [vmem:[%s19257_s1 + $0xc0] sm:$0xff]  ;;  %19387 = vst [vmem:[#allocation22_spill] sm:$0xff] %v18078_v8 }
 0x599   :  { %v13750_v3 = vpop.f32.mrf.mxu1  ;;  %13808 = vmatprep.mubr.msk.bf16.mxu0 %vm15114_vm0, %v17817_v45  ;;  %v7375_v33 = vor.u32 %v7374_v16, %v7371_v26  ;;  %vm6786_vm10 = vcmp.gt.f32.partialorder %v6761_v63, 0.0  ;;  %v18080_v56 = vld [vmem:[#allocation2 + $0x3c] sm:$0xf]  ;;  %v18087_v48 = vld [vmem:[#allocation2 + $0x40] sm:$0xf]  ;;  %vm6787_vm11 = vcmp.gt.f32.partialorder %v6762_v29, 0.0 }
 0x59a   :  { %v6809_v0 = vsel %vm6784_vm8, %v6734_v10, 0.0  ;;  %v6710_v14 = vadd.f32 %v17768_v37, %v6678_v38  ;;  %v7663_v11 = vor.u32 %v7662_v51, %v7661_v18  ;;  %v18089_v3 = vld [vmem:[#allocation2 + $0x44] sm:$0xf]  ;;  %v14785_v63 = vld [vmem:[#allocation7 + $0x138] sm:$0xff]  }
 0x59b   :  { %v11828_v41 = vpack.c.bf16 %v6809_v0, %v6808_v53  ;;  %v6645_v43 = vpop.f32.mrf.mxu1  ;;  %v7376_v13 = vsel %vm577_vm2, %v7366_v19, %v7375_v33 }
 0x59c   :  { %v6679_v7 = vadd.f32 %v6645_v43, %v17761_v58  ;;  %v14761_v23 = vld [vmem:[#allocation2 + $0x50] sm:$0xff]   ;;  %v6735_v46 = vmax.f32 %v6710_v14, 0.0  ;;  %v18083_v19 = vsel %vm911_vm3, %v7659_v50, %v7663_v11  ;;  %v14979_v50 = vld [vmem:[%s19262_s6] ss:$0 sm:$0xff] }
 0x59d   :  { %11917 = vst [vmem:[#allocation2 + $0x58] sm:$0xff] %v11828_v41   ;;  %v13751_v35 = vpop.f32.mrf.mxu1  ;;  %13873 = vmatmul.mubr.bf16.gmra.mxu1 %v7376_v13  ;;  %v7082_v52 = vrot.slane %v14761_v23, 3  ;;  %v7378_v5 = vshrl.u32 %v14761_v23, 16  ;;  %v7381_v58 = vshll.u32 %v14761_v23, 16 }
 0x59e   :  { %v6711_v32 = vadd.f32 %v17768_v37, %v6679_v7  ;;  %13876 = vmatprep.mubr.msk.bf16.mxu1 %vm15114_vm0, %v17817_v45  ;;  %v6810_v53 = vsel %vm6785_vm9, %v6735_v46, 0.0 }
 0x59f   :  { %v6650_v54 = vpop.f32.mrf.mxu1  ;;  %v7083_v10 = vsel %vm351_vm1, %v7080_v15, %v7082_v52  ;;  %v7380_v38 = vrot.slane %v7378_v5, 2  ;;  %v7383_v26 = vrot.slane %v7381_v58, 3  ;;  %v7665_v16 = vrot.slane %v7378_v5, 3 }
 0x5a0   :  { %v6736_v37 = vmax.f32 %v6711_v32, 0.0  ;;  %v6680_v4 = vadd.f32 %v6650_v54, %v17763_v27  ;;  %13809 = vmatmul.mubr.bf16.gmra.mxu0 %v7083_v10  ;;  %v7666_v15 = vrot.slane %v7381_v58, 4  ;;  %v18105_v58 = vld [vmem:[#allocation2 + $0x48] sm:$0xf] }
 0x5a1   :  { %v13754_v18 = vpop.f32.mrf.mxu1  ;;  %13812 = vmatprep.mubr.msk.bf16.mxu0 %vm15114_vm0, %v17817_v45  ;;  %v7384_v51 = vor.u32 %v7383_v26, %v7380_v38 }
 0x5a2   :  { %v6811_v0 = vsel %vm6786_vm10, %v6736_v37, 0.0  ;;  %v6712_v27 = vadd.f32 %v14979_v50, %v6680_v4  ;;  %v7667_v23 = vor.u32 %v7666_v15, %v7665_v16  ;;  %v18107_v37 = vld [vmem:[#allocation2 + $0x4c] sm:$0xf]  ;;  %v18109_v4 = vld [vmem:[#allocation2 + $0x50] sm:$0xf] }
 0x5a3   :  { %v11833_v14 = vpack.c.bf16 %v6811_v0, %v6810_v53  ;;  %v6653_v41 = vpop.f32.mrf.mxu1  ;;  %v7385_v35 = vsel %vm577_vm2, %v7375_v33, %v7384_v51  ;;  %v18114_v33 = vld [vmem:[#allocation2 + $0x54] sm:$0xf] }
 0x5a4   :  { %v6737_v43 = vmax.f32 %v6712_v27, 0.0  ;;  %v14764_v7 = vld [vmem:[#allocation2 + $0x58] sm:$0xff]   ;;  %v18112_v10 = vsel %vm911_vm3, %v7663_v11, %v7667_v23 }
 0x5a5   :  { %11918 = vst [vmem:[#allocation2 + $0x60] sm:$0xff] %v11833_v14   ;;  %v13755_v13 = vpop.f32.mrf.mxu1  ;;  %13877 = vmatmul.mubr.bf16.gmra.mxu1 %v7385_v35  ;;  %v7084_v32 = vrot.slane %v14764_v7, 3  ;;  %v7387_v5 = vshrl.u32 %v14764_v7, 16  ;;  %v7390_v54 = vshll.u32 %v14764_v7, 16  ;;  %v18116_v38 = vld [vmem:[#allocation2 + $0x58] sm:$0xf] }
 0x5a6   :  { %v6812_v46 = vsel %vm6787_vm11, %v6737_v43, 0.0  ;;  %13880 = vmatprep.mubr.msk.bf16.mxu1 %vm15114_vm0, %v17817_v45  ;;  %v18119_v50 = vld [vmem:[#allocation2 + $0x5c] sm:$0xf]  ;;  %v14980_v43 = vld [vmem:[#allocation2 + $0xc] sm:$0xf]  ;;  %v18228_v57 = vld [vmem:[#allocation2 + $0x54] sm:$0xff]  }
 0x5a7   :  { %v11689_v29 = vpack.c.bf16 %v6812_v46, %v6812_v46  ;;  %v7085_v26 = vsel %vm351_vm1, %v7082_v52, %v7084_v32  ;;  %v7389_v16 = vrot.slane %v7387_v5, 2  ;;  %v7392_v18 = vrot.slane %v7390_v54, 3 }
 0x5a8   :  { %v7669_v53 = vrot.slane %v7387_v5, 3  ;;  %13813 = vmatmul.mubr.bf16.gmra.mxu0 %v7085_v26  ;;  %v7670_v0 = vrot.slane %v7390_v54, 4 }
 0x5a9   :  { %6938 = vst [vmem:[#allocation2 + $0x68] sm:$0xf] %v11689_v29  ;;  %v7393_v27 = vor.u32 %v7392_v18, %v7389_v16  ;;  %13816 = vmatprep.mubr.msk.bf16.mxu0 %vm15114_vm0, %v17817_v45 }
 0x5aa   :  { %v7671_v11 = vor.u32 %v7670_v0, %v7669_v53 }
 0x5ab   :  { %v7394_v15 = vsel %vm577_vm2, %v7384_v51, %v7393_v27 }
 0x5ac   :  { %v6963_v14 = vld [vmem:[#allocation2 + $0x60] sm:$0xf]  ;;  %v6964_v41 = vld [vmem:[#allocation2 + $0x64] sm:$0x7]  ;;  %v18131_v13 = vsel %vm911_vm3, %v7667_v23, %v7671_v11 }
 0x5ad   :  { %v11421_v35 = vcombine.low %v6963_v14, %v6964_v41  ;;  %v7601_v46 = vld [vmem:[#allocation2 + $0x64] sm:$0xf]  ;;  %13881 = vmatmul.mubr.bf16.gmra.mxu1 %v7394_v15  ;;  %v18230_v61 = vld [vmem:[#allocation2 + $0x5c] sm:$0xff]  }
 0x5ae   :  { %v11439_v5 = vcombine.low %v6963_v14, %v7601_v46  ;;  %13884 = vmatprep.mubr.msk.bf16.mxu1 %vm15114_vm0, %v17817_v45  ;;  %v7904_v15 = vld [vmem:[#allocation2 + $0x4] sm:$0x8] }
 0x5af   :  { %v7086_v54 = vrot.slane %v11421_v35, 3  ;;  %v7396_v51 = vshrl.u32 %v11421_v35, 16  ;;  %v7399_v29 = vshll.u32 %v11421_v35, 16  ;;  %v7622_v35 = vshrl.u32 %v17790_v40, 16 }
 0x5b0   :  { %v7674_v26 = vshrl.u32 %v11439_v5, 16  ;;  %v7677_v16 = vshll.u32 %v11439_v5, 16  ;;  %v7625_v5 = vshll.u32 %v17790_v40, 16 }
 0x5b1   :  { %v7087_v18 = vsel %vm351_vm1, %v7084_v32, %v7086_v54  ;;  %v7398_v53 = vrot.slane %v7396_v51, 2  ;;  %v7401_v0 = vrot.slane %v7399_v29, 3  ;;  %v11449_v32 = vcombine.low %v14980_v43, %v17849_v49  ;;  %v18144_v51 = vld [vmem:[#allocation2 + $0x60] sm:$0xf]  ;;  %v18146_v29 = vld [vmem:[#allocation2 + $0x64] sm:$0xf] }
 0x5b2   :  { %13817 = vmatmul.mubr.bf16.gmra.mxu0 %v7087_v18  ;;  %v7676_v41 = vrot.slane %v7674_v26, 3  ;;  %v7679_v7 = vrot.slane %v7677_v16, 4  ;;  %v14981_v26 = vld [vmem:[#allocation2 + $0x8] sm:$0xf]  ;;  %v7627_v43 = vrot.slane %v7625_v5, 4  ;;  %vm10480_vm1 = vcmask 588800  }
 0x5b3   :  { %v7402_v23 = vor.u32 %v7401_v0, %v7398_v53  ;;  %13820 = vmatprep.mubr.msk.bf16.mxu0 %vm15114_vm0, %v17817_v45  ;;  %v11448_v16 = vcombine.low %v7904_v15, %v14981_v26  ;;  %v8020_v18 = vshrl.u32 %v11449_v32, 16  ;;  %v8023_v53 = vshll.u32 %v11449_v32, 16 }
 0x5b4   :  { %v18138_v14 = vor.u32 %v7679_v7, %v7676_v41  ;;  %v18152_v7 = vld [vmem:[#allocation4] sm:$0xff]  ;;  %v11451_v15 = vcombine.low %v17924_v30, %v17959_v9 }
 0x5b5   :  { %v7403_v46 = vsel %vm577_vm2, %v7393_v27, %v7402_v23  ;;  %v7624_v27 = vrot.slane %v7622_v35, 3  ;;  %v8012_v0 = vshrl.u32 %v11448_v16, 16  ;;  %v8015_v41 = vshll.u32 %v11448_v16, 16 }
 0x5b6   :  { %13885 = vmatmul.mubr.bf16.gmra.mxu1 %v7403_v46  ;;  %v18150_v45 = vsel %vm911_vm3, %v7671_v11, %v18138_v14  ;;  %v11450_v11 = vcombine.low %v17856_v2, %v17922_v22  ;;  %v11452_v46 = vcombine.low %v17969_v31, %v18007_v25  ;;  %v8022_v35 = vrot.slane %v8020_v18, 3 }
 0x5b7   :  { %13888 = vmatprep.mubr.msk.bf16.mxu1 %vm15114_vm0, %v18152_v7  ;;  %v7628_v26 = vor.u32 %v7627_v43, %v7624_v27  ;;  %v8025_v5 = vrot.slane %v8023_v53, 4  ;;  %v8014_v32 = vrot.slane %v8012_v0, 3  ;;  %v8038_v52 = vshrl.u32 %v11451_v15, 16  ;;  %v14788_v53 = vld [vmem:[#allocation7 + $0x130] sm:$0xff]  }
 0x5b8   :  { %v8029_v40 = vshrl.u32 %v11450_v11, 16  ;;  %v8032_v16 = vshll.u32 %v11450_v11, 16  ;;  %v8041_v20 = vshll.u32 %v11451_v15, 16  ;;  %v8047_v59 = vshrl.u32 %v11452_v46, 16 }
 0x5b9   :  { %v8050_v60 = vshll.u32 %v11452_v46, 16  ;;  %v7632_v12 = vsel %vm911_vm3, %v7628_v26, %v17828_v17  ;;  %v8026_v28 = vor.u32 %v8025_v5, %v8022_v35  ;;  %v8040_v18 = vrot.slane %v8038_v52, 3  ;;  %v14792_v17 = vld [vmem:[#allocation7 + $0x178] sm:$0xff]   ;;  %v18176_v46 = vld [vmem:[#allocation2 + $0x14] sm:$0xff]   ;;  %v9033_v35 = vld [vmem:[#allocation2 + $0x10] sm:$0xf] }
 0x5ba   :  { %13821 = vmatmul.mubr.bf16.gmra.mxu0 %v7086_v54  ;;  %v8017_v54 = vrot.slane %v8015_v41, 4  ;;  %v8034_v43 = vrot.slane %v8032_v16, 4  ;;  %v8043_v0 = vrot.slane %v8041_v20, 4  ;;  %v8049_v41 = vrot.slane %v8047_v59, 3  ;;  %19388 = vst [vmem:[#allocation24_spill] sm:$0xff] %v18176_v46  ;;  %v18188_v16 = vld [vmem:[#allocation2 + $0x24] sm:$0xff]  }
 0x5bb   :  { %13908 = vmatprep.mubr.msk.bf16.mxu0 %vm15114_vm0, %v18152_v7  ;;  %v8052_v11 = vrot.slane %v8050_v60, 4  ;;  %v11453_v15 = vcombine.low %v18009_v1, %v18034_v42  ;;  %v9464_v5 = vld [vmem:[#allocation2 + $0xc] sm:$0xe]  ;;  %v19391_v42 = vshll.u32 %v18176_v46, 16 }
 0x5bc   :  { %v8018_v27 = vor.u32 %v8017_v54, %v8014_v32  ;;  %v8044_v20 = vor.u32 %v8043_v0, %v8040_v18  ;;  %v18185_v32 = vld [vmem:[#allocation2 + $0x1c] sm:$0xff]   ;;  %v19300_v54 = vshrl.u32 %v18176_v46, 16 }
 0x5bd   :  { %v18180_v59 = vor.u32 %v8052_v11, %v8049_v41  ;;  %v8056_v60 = vshrl.u32 %v11453_v15, 16  ;;  %v8059_v26 = vshll.u32 %v11453_v15, 16  ;;  %19389 = vst [vmem:[#allocation23_spill] sm:$0xff] %v18185_v32  ;;  %v14796_v41 = vld [vmem:[#allocation7 + $0x168] sm:$0xff]   ;;  %v18209_v15 = vld [vmem:[#allocation2 + $0x44] sm:$0xff]  }
 0x5be   :  { %13889 = vmatmul.mubr.bf16.gmra.mxu1 %v7402_v23  ;;  %v8031_v23 = vrot.slane %v8029_v40, 3  ;;  %v14793_v40 = vld [vmem:[#allocation7 + $0x170] sm:$0xff]  }
 0x5bf   :  { %13976 = vmatprep.mubr.msk.bf16.mxu1 %vm15114_vm0, %v18152_v7  ;;  %v18204_v0 = vrot.slane %v8056_v60, 3  ;;  %v18207_v11 = vld [vmem:[#allocation2 + $0x3c] sm:$0xff]   ;;  %v9759_v60 = vrot.slane %v19300_v54, 1 }
 0x5c0   :  { %v8035_v52 = vor.u32 %v8034_v43, %v8031_v23  ;;  %v18192_v23 = vld [vmem:[#allocation2 + $0x2c] sm:$0xff]   ;;  %v18194_v43 = vld [vmem:[#allocation2 + $0x34] sm:$0xff]  }
 0x5c1   :  { %v19396_v25 = vshrl.u32 %v18192_v23, 16 }
 0x5c2   :  { %13909 = vmatmul.mubr.bf16.vlgmr.msra.gmra.mxu0 %v7632_v12  ;;  %v8027_v12 = vsel %vm911_vm3, %v8018_v27, %v8026_v28  ;;  %v14795_v27 = vld [vmem:[#allocation7 + $0x120] sm:$0xff]   ;;  %v8036_v18 = vsel %vm911_vm3, %v8026_v28, %v8035_v52  ;;  %v18215_v28 = vcombine.low %v18043_v62, %v18078_v8  ;;  %v18243_v62 = vld [vmem:[#allocation2 + $0x64] sm:$0xff]  }
 0x5c3   :  { %13912 = vmatprep.mubr.msk.bf16.mxu0 %vm15114_vm0, %v18152_v7  ;;  %14029 = vmatpush3.bf16.msra.mxu0 %v14785_v63  ;;  %v14790_v63 = vld [vmem:[#allocation7 + $0x128] sm:$0xff]   ;;  %v14802_v8 = vld [vmem:[#allocation7 + $0x158] sm:$0xff]   ;;  %v9771_v31 = vrot.slane %v19396_v25, 1 }
 0x5c4   :  { %14030 = vmatprep.subr.bf16.mxu0 %v18152_v7 }
 0x5c6   :  { %13977 = vmatmul.mubr.bf16.vlgmr.msra.gmra.mxu1 %v8027_v12  ;;  %v19393_v12 = vshll.u32 %v18185_v32, 16 }
 0x5c7   :  { %13980 = vmatprep.mubr.msk.bf16.mxu1 %vm15114_vm0, %v18152_v7  ;;  %14031 = vmatpush3.bf16.msra.mxu0 %v14788_v53  ;;  %v18202_v53 = vsel %vm911_vm3, %v8044_v20, %v18180_v59 }
 0x5c8   :  { %14032 = vmatprep.subr.bf16.mxu0 %v18152_v7  ;;  %14097 = vmatpush3.bf16.msra.mxu1 %v14792_v17  ;;  %v18211_v17 = vrot.slane %v8059_v26, 4  ;;  %v14799_v26 = vld [vmem:[#allocation7 + $0x160] sm:$0xff]  }
 0x5c9   :  { %14098 = vmatprep.subr.bf16.mxu1 %v18152_v7 }
 0x5ca   :  { %13913 = vmatmul.mubr.bf16.gmra.mxu0 %v17881_v24  ;;  %v18198_v24 = vsel %vm911_vm3, %v8035_v52, %v8044_v20  ;;  %v18221_v52 = vld [vmem:[#allocation2 + $0x4c] sm:$0xff]  }
 0x5cb   :  { %13916 = vmatprep.mubr.msk.bf16.mxu0 %vm15114_vm0, %v18152_v7  ;;  %14033 = vmatpush3.bf16.msra.mxu0 %v14790_v63  ;;  %v18219_v63 = vcombine.low %v9464_v5, %v9033_v35  ;;  %v14798_v35 = vld [vmem:[#allocation7 + $0x118] sm:$0xff]  }
 0x5cc   :  { %14099 = vmatpush3.bf16.msra.mxu1 %v14793_v40  ;;  %14034 = vmatprep.subr.bf16.mxu0 %v18152_v7  ;;  %v19407_v40 = vshrl.u32 %v18221_v52, 16 }
 0x5cd   :  { %14100 = vmatprep.subr.bf16.mxu1 %v18152_v7  ;;  %19390 = vst [vmem:[#allocation25_spill] sm:$0xff] %v18219_v63  ;;  %v9755_v20 = vshll.u32 %v18219_v63, 16 }
 0x5ce   :  { %13981 = vmatmul.mubr.bf16.gmra.mxu1 %v8036_v18  ;;  %v14801_v18 = vld [vmem:[#allocation7 + $0x110] sm:$0xff]  }
 0x5cf   :  { %13984 = vmatprep.mubr.msk.bf16.mxu1 %vm15114_vm0, %v18152_v7  ;;  %14035 = vmatpush3.bf16.msra.mxu0 %v14795_v27  ;;  %v9757_v5 = vrot.slane %v9755_v20, 2 }
 0x5d0   :  { %14101 = vmatpush3.bf16.msra.mxu1 %v14796_v41  ;;  %14036 = vmatprep.subr.bf16.mxu0 %v18152_v7  ;;  %v9752_v41 = vshrl.u32 %v18219_v63, 16  ;;  %v9760_v63 = vrot.slane %v19391_v42, 2 }
 0x5d1   :  { %14102 = vmatprep.subr.bf16.mxu1 %v18152_v7 }
 0x5d2   :  { %13917 = vmatmul.mubr.bf16.gmra.mxu0 %v17917_v6  ;;  %v9754_v54 = vrot.slane %v9752_v41, 1  ;;  %v19392_v6 = vshrl.u32 %v18185_v32, 16  ;;  %v19394_v41 = vshrl.u32 %v18188_v16, 16  ;;  %v9761_v46 = vor.u32 %v9760_v63, %v9759_v60 }
 0x5d3   :  { %13920 = vmatprep.mubr.msk.bf16.mxu0 %vm15114_vm0, %v18152_v7  ;;  %14037 = vmatpush3.bf16.msra.mxu0 %v14798_v35  ;;  %v9764_v35 = vrot.slane %v19393_v12, 2  ;;  %v19397_v12 = vshll.u32 %v18192_v23, 16 }
 0x5d4   :  { %v9763_v1 = vrot.slane %v19392_v6, 1  ;;  %14103 = vmatpush3.bf16.msra.mxu1 %v14799_v26  ;;  %14038 = vmatprep.subr.bf16.mxu0 %v18152_v7  ;;  %v9767_v20 = vrot.slane %v19394_v41, 1  ;;  %v9758_v42 = vor.u32 %v9757_v5, %v9754_v54  ;;  %v19395_v6 = vshll.u32 %v18188_v16, 16  ;;  %v14803_v54 = vld [vmem:[#allocation7 + $0x108] sm:$0xff]  }
 0x5d5   :  { %14104 = vmatprep.subr.bf16.mxu1 %v18152_v7  ;;  %v9772_v32 = vrot.slane %v19397_v12, 2  ;;  %v19398_v41 = vshrl.u32 %v18194_v43, 16 }
 0x5d6   :  { %v9768_v26 = vrot.slane %v19395_v6, 2  ;;  %13985 = vmatmul.mubr.bf16.gmra.mxu1 %v18198_v24  ;;  %v9765_v27 = vor.u32 %v9764_v35, %v9763_v1  ;;  %v18282_v63 = vsel %vm3044_vm6, %v9758_v42, %v9761_v46  ;;  %v19400_v24 = vshll.u32 %v18194_v43, 16  ;;  %v14804_v35 = vld [vmem:[#allocation7 + $0x150] sm:$0xff]  }
 0x5d7   :  { %v9775_v9 = vrot.slane %v19398_v41, 1  ;;  %13988 = vmatprep.mubr.msk.bf16.mxu1 %vm15114_vm0, %v18152_v7  ;;  %14039 = vmatpush3.bf16.msra.mxu0 %v14801_v18  ;;  %19399 = vst [vmem:[#allocation26_spill] sm:$0xff] %v18282_v63  ;;  %v19401_v1 = vshrl.u32 %v18207_v11, 16  ;;  %v9773_v12 = vor.u32 %v9772_v32, %v9771_v31  ;;  %v19403_v18 = vshll.u32 %v18207_v11, 16  ;;  %v9056_v31 = vld [vmem:[#allocation2 + $0x6c] sm:$0xf] }
 0x5d8   :  { %v9769_v25 = vor.u32 %v9768_v26, %v9767_v20  ;;  %v9776_v60 = vrot.slane %v19400_v24, 2  ;;  %14105 = vmatpush3.bf16.msra.mxu1 %v14802_v8  ;;  %14040 = vmatprep.subr.bf16.mxu0 %v18152_v7  ;;  %v18290_v6 = vsel %vm3044_vm6, %v9761_v46, %v9765_v27  ;;  %v19404_v42 = vshrl.u32 %v18209_v15, 16 }
 0x5d9   :  { %v9779_v5 = vrot.slane %v19401_v1, 1  ;;  %19402 = vst [vmem:[#allocation27_spill] sm:$0xff] %v18290_v6  ;;  %v9780_v41 = vrot.slane %v19403_v18, 2  ;;  %14106 = vmatprep.subr.bf16.mxu1 %v18152_v7  ;;  %v19406_v8 = vshll.u32 %v18209_v15, 16  ;;  %v9787_v46 = vrot.slane %v19407_v40, 1 }
 0x5da   :  { %v9783_v20 = vrot.slane %v19404_v42, 1  ;;  %v18298_v26 = vsel %vm3044_vm6, %v9765_v27, %v9769_v25  ;;  %v9777_v24 = vor.u32 %v9776_v60, %v9775_v9  ;;  %13921 = vmatmul.mubr.bf16.gmra.mxu0 %v17953_v47  ;;  %v18306_v32 = vsel %vm3044_vm6, %v9769_v25, %v9773_v12  ;;  %v9731_v9 = vld [vmem:[#allocation2 + $0x70] sm:$0x3] }
 0x5db   :  { %19405 = vst [vmem:[#allocation28_spill] sm:$0xff] %v18298_v26  ;;  %v9784_v1 = vrot.slane %v19406_v8, 2  ;;  %19408 = vst [vmem:[#allocation29_spill] sm:$0xff] %v18306_v32  ;;  %v9781_v18 = vor.u32 %v9780_v41, %v9779_v5  ;;  %v19409_v42 = vshll.u32 %v18221_v52, 16  ;;  %v19410_v27 = vshrl.u32 %v18228_v57, 16  ;;  %13924 = vmatprep.mubr.msk.bf16.mxu0 %vm15114_vm0, %v18152_v7  ;;  %14041 = vmatpush3.bf16.msra.mxu0 %v14803_v54  ;;  %v14805_v60 = vld [vmem:[#allocation7 + $0x100] sm:$0xff]  }
 0x5dc   :  { %v18315_v40 = vsel %vm3044_vm6, %v9773_v12, %v9777_v24  ;;  %v19412_v25 = vshll.u32 %v18228_v57, 16  ;;  %v19413_v5 = vshrl.u32 %v18230_v61, 16  ;;  %14107 = vmatpush3.bf16.msra.mxu1 %v14804_v35  ;;  %14042 = vmatprep.subr.bf16.mxu0 %v18152_v7  ;;  %v19414_v54 = vshll.u32 %v18230_v61, 16 }
 0x5dd   :  { %v9788_v6 = vrot.slane %v19409_v42, 2  ;;  %v9791_v26 = vrot.slane %v19410_v27, 1  ;;  %19411 = vst [vmem:[#allocation30_spill] sm:$0xff] %v18315_v40  ;;  %v9785_v47 = vor.u32 %v9784_v1, %v9783_v20  ;;  %v14806_v42 = vld [vmem:[#allocation7 + $0x148] sm:$0xff]   ;;  %v18323_v27 = vsel %vm3044_vm6, %v9777_v24, %v9781_v18  ;;  %14108 = vmatprep.subr.bf16.mxu1 %v18152_v7 }
 0x5de   :  { %v9792_v8 = vrot.slane %v19412_v25, 2  ;;  %v9795_v41 = vrot.slane %v19413_v5, 1  ;;  %v9796_v63 = vrot.slane %v19414_v54, 2  ;;  %v19415_v12 = vshrl.u32 %v18243_v62, 16  ;;  %13989 = vmatmul.mubr.bf16.gmra.mxu1 %v18202_v53  ;;  %v14808_v53 = vld [vmem:[#allocation7 + $0x140] sm:$0xff]  }
 0x5df   :  { %v9789_v32 = vor.u32 %v9788_v6, %v9787_v46  ;;  %v18331_v1 = vsel %vm3044_vm6, %v9781_v18, %v9785_v47  ;;  %v19416_v35 = vshll.u32 %v18243_v62, 16  ;;  %v11541_v40 = vcombine.low %v9056_v31, %v9731_v9  ;;  %13992 = vmatprep.mubr.msk.bf16.mxu1 %vm15114_vm0, %v18152_v7  ;;  %14043 = vmatpush3.bf16.msra.mxu0 %v14805_v60 }
 0x5e0   :  { %v9799_v20 = vrot.slane %v19415_v12, 1  ;;  %v9793_v25 = vor.u32 %v9792_v8, %v9791_v26  ;;  %v9797_v24 = vor.u32 %v9796_v63, %v9795_v41  ;;  %v8062_v8 = vor.u32 %v18211_v17, %v18204_v0  ;;  %14109 = vmatpush3.bf16.msra.mxu1 %v14806_v42  ;;  %14164 = vmatprep.subr.bf16.mxu0 %v18152_v7 }
 0x5e1   :  { %v9800_v5 = vrot.slane %v19416_v35, 2  ;;  %v18337_v6 = vsel %vm3044_vm6, %v9785_v47, %v9789_v32  ;;  %v9804_v54 = vshrl.u32 %v11541_v40, 16  ;;  %v9807_v26 = vshll.u32 %v11541_v40, 16  ;;  %14110 = vmatprep.subr.bf16.mxu1 %v18152_v7 }
 0x5e2   :  { %v18342_v46 = vsel %vm3044_vm6, %v9789_v32, %v9793_v25  ;;  %v8065_v31 = vshrl.u32 %v18215_v28, 16  ;;  %v18349_v63 = vsel %vm3044_vm6, %v9793_v25, %v9797_v24  ;;  %v8068_v9 = vshll.u32 %v18215_v28, 16  ;;  %13925 = vmatmul.mubr.bf16.gmra.mxu0 %v17983_v36 }
 0x5e3   :  { %v9801_v18 = vor.u32 %v9800_v5, %v9799_v20  ;;  %v9806_v60 = vrot.slane %v9804_v54, 1  ;;  %v9809_v40 = vrot.slane %v9807_v26, 2  ;;  %13928 = vmatprep.mubr.msk.bf16.mxu0 %vm15114_vm0, %v18152_v7  ;;  %v8063_v17 = vsel %vm911_vm3, %v18180_v59, %v8062_v8 }
 0x5e4   :  { %14111 = vmatpush3.bf16.msra.mxu1 %v14808_v53  ;;  %v8067_v47 = vrot.slane %v8065_v31, 3  ;;  %v8070_v28 = vrot.slane %v8068_v9, 4  ;;  %v11455_v41 = vcombine.low %v18080_v56, %v18087_v48  ;;  %v11456_v5 = vcombine.low %v18089_v3, %v18105_v58 }
 0x5e5   :  { %v18354_v32 = vsel %vm3044_vm6, %v9797_v24, %v9801_v18  ;;  %v18359_v0 = vor.u32 %v9809_v40, %v9806_v60  ;;  %14232 = vmatprep.subr.bf16.mxu1 %v18152_v7  ;;  %v11457_v31 = vcombine.low %v18107_v37, %v18109_v4 }
 0x5e6   :  { %13993 = vmatmul.mubr.bf16.gmra.mxu1 %v8063_v17  ;;  %v8071_v36 = vor.u32 %v8070_v28, %v8067_v47  ;;  %v8074_v12 = vshrl.u32 %v11455_v41, 16  ;;  %v8077_v20 = vshll.u32 %v11455_v41, 16  ;;  %v8086_v54 = vshll.u32 %v11456_v5, 16 }
 0x5e7   :  { %19417 = vst [vmem:[#allocation31_spill] sm:$0xff] %v18359_v0  ;;  %v18368_v42 = vsel %vm3044_vm6, %v9801_v18, %v18359_v0  ;;  %13996 = vmatprep.mubr.msk.bf16.mxu1 %vm15114_vm0, %v18152_v7  ;;  %v8083_v18 = vshrl.u32 %v11456_v5, 16  ;;  %v8092_v9 = vshrl.u32 %v11457_v31, 16  ;;  %v8095_v60 = vshll.u32 %v11457_v31, 16 }
 0x5e8   :  { %v8072_v59 = vsel %vm911_vm3, %v8062_v8, %v8071_v36  ;;  %v8076_v25 = vrot.slane %v8074_v12, 3  ;;  %v8079_v35 = vrot.slane %v8077_v20, 4  ;;  %v8088_v8 = vrot.slane %v8086_v54, 4 }
 0x5e9   :  { %v8085_v26 = vrot.slane %v8083_v18, 3  ;;  %v8094_v40 = vrot.slane %v8092_v9, 3  ;;  %v8097_v17 = vrot.slane %v8095_v60, 4  ;;  %v11458_v47 = vcombine.low %v18114_v33, %v18116_v38 }
 0x5ea   :  { %13929 = vmatmul.mubr.bf16.gmra.mxu0 %v18003_v44  ;;  %v8080_v24 = vor.u32 %v8079_v35, %v8076_v25 }
 0x5eb   :  { %13932 = vmatprep.mubr.msk.bf16.mxu0 %vm15114_vm0, %v18152_v7  ;;  %v8089_v53 = vor.u32 %v8088_v8, %v8085_v26  ;;  %v8098_v28 = vor.u32 %v8097_v17, %v8094_v40  ;;  %v8101_v41 = vshrl.u32 %v11458_v47, 16 }
 0x5ec   :  { %v8081_v44 = vsel %vm911_vm3, %v8071_v36, %v8080_v24  ;;  %v8104_v36 = vshll.u32 %v11458_v47, 16 }
 0x5ed   :  { %v8103_v12 = vrot.slane %v8101_v41, 3 }
 0x5ee   :  { %13997 = vmatmul.mubr.bf16.gmra.mxu1 %v8072_v59  ;;  %v8106_v20 = vrot.slane %v8104_v36, 4  ;;  %v11459_v59 = vcombine.low %v18119_v50, %v18144_v51  ;;  %v14809_v36 = vld [vmem:[#allocation2 + $0x8] sm:$0xff]  }
 0x5ef   :  { %14000 = vmatprep.mubr.msk.bf16.mxu1 %vm15114_vm0, %v18152_v7 }
 0x5f0   :  { %v8107_v25 = vor.u32 %v8106_v20, %v8103_v12  ;;  %v8110_v35 = vshrl.u32 %v11459_v59, 16  ;;  %v8113_v5 = vshll.u32 %v11459_v59, 16  ;;  %v14810_v20 = vld [vmem:[#allocation2 + $0x10] sm:$0xff]  }
 0x5f2   :  { %13933 = vmatmul.mubr.bf16.gmra.mxu0 %v18030_v39  ;;  %v8090_v39 = vsel %vm911_vm3, %v8080_v24, %v8089_v53  ;;  %v8108_v24 = vsel %vm911_vm3, %v8098_v28, %v8107_v25  ;;  %v8112_v18 = vrot.slane %v8110_v35, 3  ;;  %v8115_v54 = vrot.slane %v8113_v5, 4 }
 0x5f3   :  { %13936 = vmatprep.mubr.msk.bf16.mxu0 %vm15114_vm0, %v18152_v7  ;;  %v8710_v35 = vshll.u32 %v14809_v36, 16 }
 0x5f4   :  { %v8116_v26 = vor.u32 %v8115_v54, %v8112_v18  ;;  %v8715_v18 = vshll.u32 %v14810_v20, 16 }
 0x5f6   :  { %14001 = vmatmul.mubr.bf16.gmra.mxu1 %v8081_v44 }
 0x5f7   :  { %14004 = vmatprep.mubr.msk.bf16.mxu1 %vm15114_vm0, %v18152_v7 }
 0x5fa   :  { %13937 = vmatmul.mubr.bf16.gmra.mxu0 %v18056_v21  ;;  %v8099_v21 = vsel %vm911_vm3, %v8089_v53, %v8098_v28 }
 0x5fb   :  { %13940 = vmatprep.mubr.msk.bf16.mxu0 %vm15114_vm0, %v18152_v7 }
 0x5fe   :  { %14005 = vmatmul.mubr.bf16.gmra.mxu1 %v8090_v39 }
 0x5ff   :  { %14008 = vmatprep.mubr.msk.bf16.mxu1 %vm15114_vm0, %v18152_v7 }
 0x602   :  { %13941 = vmatmul.mubr.bf16.gmra.mxu0 %v18083_v19  ;;  %v18405_v19 = vld [vmem:[#allocation2 + $0x68] sm:$0xf] }
 0x603   :  { %13944 = vmatprep.mubr.msk.bf16.mxu0 %vm15114_vm0, %v18152_v7  ;;  %v11460_v44 = vcombine.low %v18146_v29, %v18405_v19 }
 0x605   :  { %v8119_v8 = vshrl.u32 %v11460_v44, 16  ;;  %v8122_v31 = vshll.u32 %v11460_v44, 16 }
 0x606   :  { %14009 = vmatmul.mubr.bf16.gmra.mxu1 %v8099_v21 }
 0x607   :  { %14012 = vmatprep.mubr.msk.bf16.mxu1 %vm15114_vm0, %v18152_v7  ;;  %v8121_v53 = vrot.slane %v8119_v8, 3  ;;  %v8124_v9 = vrot.slane %v8122_v31, 4  ;;  %v8712_v8 = vrot.slane %v8710_v35, 1 }
 0x609   :  { %v8125_v39 = vor.u32 %v8124_v9, %v8121_v53  ;;  %v8708_v53 = vshrl.u32 %v14809_v36, 16  ;;  %v8717_v9 = vrot.slane %v8715_v18, 1  ;;  %v14832_v36 = vld [vmem:[#allocation7 + $0x1f8] sm:$0xff]   ;;  %v14834_v18 = vld [vmem:[#allocation7 + $0x1f0] sm:$0xff]  }
 0x60a   :  { %13945 = vmatmul.mubr.bf16.gmra.mxu0 %v18112_v10  ;;  %v8117_v10 = vsel %vm911_vm3, %v8107_v25, %v8116_v26 }
 0x60b   :  { %13948 = vmatprep.mubr.msk.bf16.mxu0 %vm15114_vm0, %v18152_v7  ;;  %v8126_v17 = vsel %vm911_vm3, %v8116_v26, %v8125_v39 }
 0x60e   :  { %14013 = vmatmul.mubr.bf16.gmra.mxu1 %v8108_v24 }
 0x60f   :  { %14016 = vmatprep.mubr.msk.bf16.mxu1 %vm15114_vm0, %v18152_v7 }
 0x612   :  { %13949 = vmatmul.mubr.bf16.gmra.mxu0 %v18131_v13 }
 0x613   :  { %13952 = vmatprep.mubr.msk.bf16.mxu0 %vm15114_vm0, %v18152_v7 }
 0x616   :  { %14017 = vmatmul.mubr.bf16.gmra.mxu1 %v8117_v10 }
 0x617   :  { %14020 = vmatprep.mubr.msk.bf16.mxu1 %vm15114_vm0, %v18152_v7 }
 0x618   :  { %v7183_v60 = vpop.f32.mrf.mxu0 }
 0x61a   :  { %13953 = vmatmul.mubr.bf16.gmra.mxu0 %v18150_v45  ;;  %v13774_v40 = vpop.f32.mrf.mxu0 }
 0x61b   :  { %13956 = vmatprep.mubr.msk.bf16.mxu0 %vm15114_vm0, %v18152_v7 }
 0x61c   :  { %v7186_v13 = vpop.f32.mrf.mxu0 }
 0x61d   :  { %v7499_v47 = vpop.f32.mrf.mxu1 }
 0x61e   :  { %14021 = vmatmul.mubr.bf16.gmra.mxu1 %v8126_v17  ;;  %v18424_v28 = vadd.f32 %v7499_v47, %v7183_v60  ;;  %v13775_v41 = vpop.f32.mrf.mxu0  ;;  %v18437_v60 = vld [vmem:[#allocation2 + $0x18] sm:$0xff]   ;;  %v8713_v47 = vor.u32 %v8712_v8, %v8708_v53 }
 0x61f   :  { %14024 = vmatprep.mubr.msk.bf16.mxu1 %vm15114_vm0, %v18152_v7  ;;  %v13842_v21 = vpop.f32.mrf.mxu1  ;;  %v14826_v41 = vld [vmem:[#allocation7 + $0x1b0] sm:$0xff]  }
 0x620   :  { %v7191_v12 = vpop.f32.mrf.mxu0 }
 0x621   :  { %v7502_v45 = vpop.f32.mrf.mxu1 }
 0x622   :  { %13957 = vmatmul.mubr.bf16.gmra.mxu0 %v18138_v14  ;;  %v18429_v59 = vadd.f32 %v7502_v45, %v7186_v13  ;;  %v13778_v25 = vpop.f32.mrf.mxu0  ;;  %v14822_v14 = vld [vmem:[#allocation7 + $0x1b8] sm:$0xff]   ;;  %v19418_v13 = vcombine.low %v17804_v55, %v17806_v34  ;;  %v8718_v45 = vsel %vm1998_vm4, %v8713_v47, %v8717_v9  ;;  %v14837_v47 = vld [vmem:[#allocation7 + $0x1e8] sm:$0xff]  }
 0x623   :  { %14044 = vmatprep.mubr.msk.bf16.mxu0 %vm15114_vm0, %v18152_v7  ;;  %v13843_v5 = vpop.f32.mrf.mxu1  ;;  %v8723_v25 = vshll.u32 %v18437_v60, 16 }
 0x624   :  { %v7194_v24 = vpop.f32.mrf.mxu0  ;;  %v14830_v5 = vld [vmem:[#allocation7 + $0x1a8] sm:$0xff]  }
 0x625   :  { %v7507_v54 = vpop.f32.mrf.mxu1  ;;  %v8725_v8 = vrot.slane %v8723_v25, 1  ;;  %v14840_v25 = vld [vmem:[#allocation7 + $0x1e0] sm:$0xff]  }
 0x626   :  { %14025 = vmatmul.mubr.bf16.gmra.mxu1 %v8125_v39  ;;  %v18433_v44 = vadd.f32 %v7507_v54, %v7191_v12  ;;  %v13779_v26 = vpop.f32.mrf.mxu0 }
 0x627   :  { %14112 = vmatprep.mubr.msk.bf16.mxu1 %vm15114_vm0, %v18152_v7  ;;  %v13846_v31 = vpop.f32.mrf.mxu1  ;;  %v8719_v26 = vshrl.u32 %v14810_v20, 16 }
 0x628   :  { %v7199_v10 = vpop.f32.mrf.mxu0 }
 0x629   :  { %v7510_v40 = vpop.f32.mrf.mxu1 }
 0x62a   :  { %14045 = vmatmul.mubr.bf16.vlgmr.msra.gmra.mxu0 %v19418_v13  ;;  %v18442_v39 = vadd.f32 %v7510_v40, %v7194_v24  ;;  %v13782_v17 = vpop.f32.mrf.mxu0  ;;  %v8721_v13 = vor.u32 %v8719_v26, %v8717_v9 }
 0x62b   :  { %14048 = vmatprep.mubr.msk.bf16.mxu0 %vm15114_vm0, %v18152_v7  ;;  %14165 = vmatpush3.bf16.msra.mxu0 %v14822_v14  ;;  %v13847_v21 = vpop.f32.mrf.mxu1  ;;  %v18454_v14 = vld [vmem:[#allocation2 + $0x20] sm:$0xff]   ;;  %v14836_v17 = vld [vmem:[#allocation7 + $0x1a0] sm:$0xff]  }
 0x62c   :  { %14166 = vmatprep.subr.bf16.mxu0 %v18152_v7  ;;  %v7202_v12 = vpop.f32.mrf.mxu0  ;;  %v8726_v21 = vsel %vm1998_vm4, %v8721_v13, %v8725_v8  ;;  %v14843_v13 = vld [vmem:[#allocation7 + $0x1d8] sm:$0xff]  }
 0x62d   :  { %v7515_v55 = vpop.f32.mrf.mxu1 }
 0x62e   :  { %14113 = vmatmul.mubr.bf16.vlgmr.msra.gmra.mxu1 %v8718_v45  ;;  %v18449_v34 = vadd.f32 %v7515_v55, %v7199_v10  ;;  %v13783_v35 = vpop.f32.mrf.mxu0  ;;  %v19419_v10 = vcombine.low %v17849_v49, %v17856_v2  ;;  %v8731_v49 = vshll.u32 %v18454_v14, 16 }
 0x62f   :  { %14116 = vmatprep.mubr.msk.bf16.mxu1 %vm15114_vm0, %v18152_v7  ;;  %14167 = vmatpush3.bf16.msra.mxu0 %v14826_v41  ;;  %v13850_v24 = vpop.f32.mrf.mxu1  ;;  %v8727_v35 = vshrl.u32 %v18437_v60, 16 }
 0x630   :  { %14168 = vmatprep.subr.bf16.mxu0 %v18152_v7  ;;  %14233 = vmatpush3.bf16.msra.mxu1 %v14832_v36  ;;  %v7207_v54 = vpop.f32.mrf.mxu0  ;;  %v18474_v24 = vld [vmem:[#allocation2 + $0x28] sm:$0xff]  }
 0x631   :  { %14234 = vmatprep.subr.bf16.mxu1 %v18152_v7  ;;  %v7518_v31 = vpop.f32.mrf.mxu1 }
 0x632   :  { %14049 = vmatmul.mubr.bf16.gmra.mxu0 %v19419_v10  ;;  %v18460_v53 = vadd.f32 %v7518_v31, %v7202_v12  ;;  %v13786_v40 = vpop.f32.mrf.mxu0  ;;  %v14839_v12 = vld [vmem:[#allocation7 + $0x198] sm:$0xff]   ;;  %v8729_v10 = vor.u32 %v8727_v35, %v8725_v8  ;;  %v19422_v35 = vld [vmem:[#allocation17_spill] sm:$0xff] }
 0x633   :  { %14052 = vmatprep.mubr.msk.bf16.mxu0 %vm15114_vm0, %v18152_v7  ;;  %14169 = vmatpush3.bf16.msra.mxu0 %v14830_v5  ;;  %v13851_v20 = vpop.f32.mrf.mxu1  ;;  %v8733_v5 = vrot.slane %v8731_v49, 1  ;;  %v14842_v40 = vld [vmem:[#allocation7 + $0x190] sm:$0xff]  }
 0x634   :  { %14235 = vmatpush3.bf16.msra.mxu1 %v14834_v18  ;;  %14170 = vmatprep.subr.bf16.mxu0 %v18152_v7  ;;  %v7210_v41 = vpop.f32.mrf.mxu0  ;;  %v14846_v49 = vld [vmem:[#allocation7 + $0x1d0] sm:$0xff]  }
 0x635   :  { %14236 = vmatprep.subr.bf16.mxu1 %v18152_v7  ;;  %v7523_v2 = vpop.f32.mrf.mxu1  ;;  %v8734_v20 = vsel %vm1998_vm4, %v8729_v10, %v8733_v5 }
 0x636   :  { %14117 = vmatmul.mubr.bf16.gmra.mxu1 %v8726_v21  ;;  %v18468_v9 = vadd.f32 %v7523_v2, %v7207_v54  ;;  %v13787_v36 = vpop.f32.mrf.mxu0  ;;  %v19420_v54 = vcombine.low %v17922_v22, %v17924_v30  ;;  %v8739_v22 = vshll.u32 %v18474_v24, 16 }
 0x637   :  { %14120 = vmatprep.mubr.msk.bf16.mxu1 %vm15114_vm0, %v18152_v7  ;;  %14171 = vmatpush3.bf16.msra.mxu0 %v14836_v17  ;;  %v13854_v45 = vpop.f32.mrf.mxu1  ;;  %v8735_v36 = vshrl.u32 %v18454_v14, 16  ;;  %v14848_v14 = vld [vmem:[#allocation7 + $0x1c8] sm:$0xff]  }
 0x638   :  { %14237 = vmatpush3.bf16.msra.mxu1 %v14837_v47  ;;  %14172 = vmatprep.subr.bf16.mxu0 %v18152_v7  ;;  %v7215_v55 = vpop.f32.mrf.mxu0  ;;  %v14818_v45 = vld [vmem:[#allocation2 + $0x30] sm:$0xff]  }
 0x639   :  { %14238 = vmatprep.subr.bf16.mxu1 %v18152_v7  ;;  %v7526_v18 = vpop.f32.mrf.mxu1  ;;  %v8737_v10 = vor.u32 %v8735_v36, %v8733_v5 }
 0x63a   :  { %14053 = vmatmul.mubr.bf16.gmra.mxu0 %v19420_v54  ;;  %v18480_v26 = vadd.f32 %v7526_v18, %v7210_v41  ;;  %v13790_v31 = vpop.f32.mrf.mxu0  ;;  %v14845_v41 = vld [vmem:[#allocation7 + $0x188] sm:$0xff]  }
 0x63b   :  { %14056 = vmatprep.mubr.msk.bf16.mxu0 %vm15114_vm0, %v18152_v7  ;;  %14173 = vmatpush3.bf16.msra.mxu0 %v14839_v12  ;;  %v13855_v60 = vpop.f32.mrf.mxu1  ;;  %v8741_v12 = vrot.slane %v8739_v22, 1  ;;  %v8747_v22 = vshll.u32 %v14818_v45, 16 }
 0x63c   :  { %14239 = vmatpush3.bf16.msra.mxu1 %v14840_v25  ;;  %14174 = vmatprep.subr.bf16.mxu0 %v18152_v7  ;;  %v7218_v17 = vpop.f32.mrf.mxu0 }
 0x63d   :  { %14240 = vmatprep.subr.bf16.mxu1 %v18152_v7  ;;  %v7531_v30 = vpop.f32.mrf.mxu1  ;;  %v8749_v36 = vrot.slane %v8747_v22, 1  ;;  %v19427_v22 = vmov 0  }
 0x63e   :  { %14121 = vmatmul.mubr.bf16.gmra.mxu1 %v8734_v20  ;;  %v18488_v8 = vadd.f32 %v7531_v30, %v7215_v55  ;;  %v13791_v47 = vpop.f32.mrf.mxu0  ;;  %v19421_v55 = vld [vmem:[#allocation16_spill] sm:$0xff]  ;;  %v8742_v20 = vsel %vm1998_vm4, %v8737_v10, %v8741_v12 }
 0x63f   :  { %14124 = vmatprep.mubr.msk.bf16.mxu1 %vm15114_vm0, %v18152_v7  ;;  %14175 = vmatpush3.bf16.msra.mxu0 %v14842_v40  ;;  %v13858_v21 = vpop.f32.mrf.mxu1  ;;  %v19423_v18 = vcombine.low %v19421_v55, %v19422_v35  ;;  %v14847_v40 = vld [vmem:[#allocation7 + $0x180] sm:$0xff]   ;;  %v19425_v35 = vld [vmem:[#allocation19_spill] sm:$0xff] }
 0x640   :  { %14241 = vmatpush3.bf16.msra.mxu1 %v14843_v13  ;;  %14176 = vmatprep.subr.bf16.mxu0 %v18152_v7  ;;  %v7223_v2 = vpop.f32.mrf.mxu0 }
 0x641   :  { %14242 = vmatprep.subr.bf16.mxu1 %v18152_v7  ;;  %v7534_v25 = vpop.f32.mrf.mxu1 }
 0x642   :  { %14057 = vmatmul.mubr.bf16.gmra.mxu0 %v19423_v18  ;;  %v18498_v54 = vadd.f32 %v7534_v25, %v7218_v17  ;;  %v13794_v31 = vpop.f32.mrf.mxu0  ;;  %v14820_v25 = vld [vmem:[#allocation2 + $0x38] sm:$0xff]  }
 0x643   :  { %14060 = vmatprep.mubr.msk.bf16.mxu0 %vm15114_vm0, %v18152_v7  ;;  %14177 = vmatpush3.bf16.msra.mxu0 %v14845_v41  ;;  %v13859_v60 = vpop.f32.mrf.mxu1  ;;  %v14851_v41 = vld [vmem:[#allocation7 + $0x1c0] sm:$0xff]  }
 0x644   :  { %14243 = vmatpush3.bf16.msra.mxu1 %v14846_v49  ;;  %14178 = vmatprep.subr.bf16.mxu0 %v18152_v7  ;;  %v7226_v13 = vpop.f32.mrf.mxu0  ;;  %v8743_v49 = vshrl.u32 %v18474_v24, 16 }
 0x645   :  { %14244 = vmatprep.subr.bf16.mxu1 %v18152_v7  ;;  %v7539_v17 = vpop.f32.mrf.mxu1 }
 0x646   :  { %14125 = vmatmul.mubr.bf16.gmra.mxu1 %v8742_v20  ;;  %v18505_v30 = vadd.f32 %v7539_v17, %v7223_v2  ;;  %v13795_v5 = vpop.f32.mrf.mxu0  ;;  %v19424_v2 = vld [vmem:[#allocation18_spill] sm:$0xff]  ;;  %v8755_v20 = vshll.u32 %v14820_v25, 16 }
 0x647   :  { %14128 = vmatprep.mubr.msk.bf16.mxu1 %vm15114_vm0, %v18152_v7  ;;  %14179 = vmatpush3.bf16.msra.mxu0 %v14847_v40  ;;  %v13862_v47 = vpop.f32.mrf.mxu1  ;;  %v19426_v18 = vcombine.low %v19424_v2, %v19425_v35  ;;  %v8745_v40 = vor.u32 %v8743_v49, %v8741_v12  ;;  %v8751_v49 = vshrl.u32 %v14818_v45, 16  ;;  %v14823_v2 = vld [vmem:[#allocation2 + $0x40] sm:$0xff]   ;;  %v19428_v35 = vld [vmem:[#allocation20_spill] sm:$0xff] }
 0x648   :  { %14245 = vmatpush3.bf16.msra.mxu1 %v14848_v14  ;;  %14300 = vmatprep.subr.bf16.mxu0 %v18152_v7  ;;  %v7231_v21 = vpop.f32.mrf.mxu0 }
 0x649   :  { %14246 = vmatprep.subr.bf16.mxu1 %v18152_v7  ;;  %v7542_v55 = vpop.f32.mrf.mxu1  ;;  %v8750_v24 = vsel %vm1998_vm4, %v8745_v40, %v8749_v36 }
 0x64a   :  { %14061 = vmatmul.mubr.bf16.gmra.mxu0 %v19426_v18  ;;  %v18515_v31 = vadd.f32 %v7542_v55, %v7226_v13  ;;  %v13798_v10 = vpop.f32.mrf.mxu0  ;;  %v8757_v55 = vrot.slane %v8755_v20, 1  ;;  %v19429_v18 = vld [vmem:[#allocation21_spill] sm:$0xff] }
 0x64b   :  { %14064 = vmatprep.mubr.msk.bf16.mxu0 %vm15114_vm0, %v18152_v7  ;;  %v13863_v60 = vpop.f32.mrf.mxu1  ;;  %v19430_v10 = vcombine.low %v19428_v35, %v19429_v18  ;;  %v8759_v35 = vshrl.u32 %v14820_v25, 16 }
 0x64c   :  { %14247 = vmatpush3.bf16.msra.mxu1 %v14851_v41  ;;  %v7234_v14 = vpop.f32.mrf.mxu0 }
 0x64d   :  { %10509 = vmatprep.subr.bf16.mxu1 %v19427_v22  ;;  %v7547_v17 = vpop.f32.mrf.mxu1 }
 0x64e   :  { %14129 = vmatmul.mubr.bf16.gmra.mxu1 %v8750_v24  ;;  %v18521_v5 = vadd.f32 %v7547_v17, %v7231_v21  ;;  %v13799_v47 = vpop.f32.mrf.mxu0  ;;  %v8753_v24 = vor.u32 %v8751_v49, %v8749_v36  ;;  %v14825_v49 = vld [vmem:[#allocation2 + $0x48] sm:$0xff]  }
 0x64f   :  { %14132 = vmatprep.mubr.msk.bf16.mxu1 %vm15114_vm0, %v18152_v7  ;;  %v13866_v12 = vpop.f32.mrf.mxu1 }
 0x650   :  { %v7239_v13 = vpop.f32.mrf.mxu0  ;;  %v8758_v47 = vsel %vm1998_vm4, %v8753_v24, %v8757_v55  ;;  %v8763_v12 = vshll.u32 %v14823_v2, 16 }
 0x651   :  { %v7550_v41 = vpop.f32.mrf.mxu1 }
 0x652   :  { %14065 = vmatmul.mubr.bf16.gmra.mxu0 %v19430_v10  ;;  %v18528_v40 = vadd.f32 %v7550_v41, %v7234_v14  ;;  %v13802_v60 = vpop.f32.mrf.mxu0  ;;  %v8765_v36 = vrot.slane %v8763_v12, 1  ;;  %v19431_v10 = vld [vmem:[#allocation22_spill] sm:$0xff] }
 0x653   :  { %14068 = vmatprep.mubr.msk.bf16.mxu0 %vm15114_vm0, %v18152_v7  ;;  %v13867_v21 = vpop.f32.mrf.mxu1  ;;  %v19432_v60 = vcombine.low %v19431_v10, %v18080_v56 }
 0x654   :  { %v7242_v17 = vpop.f32.mrf.mxu0 }
 0x655   :  { %v7555_v45 = vpop.f32.mrf.mxu1 }
 0x656   :  { %14133 = vmatmul.mubr.bf16.gmra.mxu1 %v8758_v47  ;;  %v18533_v20 = vadd.f32 %v7555_v45, %v7239_v13  ;;  %v13803_v22 = vpop.f32.mrf.mxu0  ;;  %v8761_v47 = vor.u32 %v8759_v35, %v8757_v55  ;;  %v14828_v35 = vld [vmem:[#allocation2 + $0x50] sm:$0xff]  }
 0x657   :  { %14136 = vmatprep.mubr.msk.bf16.mxu1 %vm15114_vm0, %v18152_v7  ;;  %v13870_v14 = vpop.f32.mrf.mxu1 }
 0x658   :  { %v7247_v41 = vpop.f32.mrf.mxu0  ;;  %v8766_v45 = vsel %vm1998_vm4, %v8761_v47, %v8765_v36  ;;  %v8771_v14 = vshll.u32 %v14825_v49, 16 }
 0x659   :  { %v7558_v18 = vpop.f32.mrf.mxu1 }
 0x65a   :  { %14069 = vmatmul.mubr.bf16.gmra.mxu0 %v19432_v60  ;;  %v18540_v24 = vadd.f32 %v7558_v18, %v7242_v17  ;;  %v13806_v21 = vpop.f32.mrf.mxu0  ;;  %v8767_v18 = vshrl.u32 %v14823_v2, 16  ;;  %v8773_v55 = vrot.slane %v8771_v14, 1  ;;  %v19433_v60 = vcombine.low %v18087_v48, %v18089_v3 }
 0x65b   :  { %14072 = vmatprep.mubr.msk.bf16.mxu0 %vm15114_vm0, %v18152_v7  ;;  %v13871_v22 = vpop.f32.mrf.mxu1 }
 0x65c   :  { %v7250_v13 = vpop.f32.mrf.mxu0  ;;  %v8769_v22 = vor.u32 %v8767_v18, %v8765_v36  ;;  %v14831_v18 = vld [vmem:[#allocation2 + $0x58] sm:$0xff]  }
 0x65d   :  { %v7563_v25 = vpop.f32.mrf.mxu1 }
 0x65e   :  { %14137 = vmatmul.mubr.bf16.gmra.mxu1 %v8766_v45  ;;  %v18545_v12 = vadd.f32 %v7563_v25, %v7247_v41  ;;  %v13807_v0 = vpop.f32.mrf.mxu0  ;;  %v18554_v41 = vld [vmem:[#allocation4] sm:$0xff]  ;;  %v8774_v2 = vsel %vm1998_vm4, %v8769_v22, %v8773_v55  ;;  %v8779_v45 = vshll.u32 %v14828_v35, 16 }
 0x65f   :  { %14140 = vmatprep.mubr.msk.bf16.mxu1 %vm15114_vm0, %v18152_v7  ;;  %v13874_v56 = vpop.f32.mrf.mxu1 }
 0x660   :  { %v7255_v17 = vpop.f32.mrf.mxu0  ;;  %v8781_v56 = vrot.slane %v8779_v45, 1 }
 0x661   :  { %v7566_v10 = vpop.f32.mrf.mxu1 }
 0x662   :  { %14073 = vmatmul.mubr.bf16.gmra.mxu0 %v19433_v60  ;;  %v18552_v21 = vadd.f32 %v7566_v10, %v7250_v13  ;;  %v13810_v47 = vpop.f32.mrf.mxu0  ;;  %v8775_v13 = vshrl.u32 %v14825_v49, 16  ;;  %v19434_v60 = vcombine.low %v18105_v58, %v18107_v37  ;;  %v8783_v37 = vshrl.u32 %v14828_v35, 16 }
 0x663   :  { %14076 = vmatprep.mubr.msk.bf16.mxu0 %vm15114_vm0, %v18554_v41  ;;  %v13875_v7 = vpop.f32.mrf.mxu1 }
 0x664   :  { %v7258_v0 = vpop.f32.mrf.mxu0  ;;  %v8777_v7 = vor.u32 %v8775_v13, %v8773_v55  ;;  %v14835_v55 = vld [vmem:[#allocation2 + $0x60] sm:$0xff]  }
 0x665   :  { %v7571_v14 = vpop.f32.mrf.mxu1 }
 0x666   :  { %14141 = vmatmul.mubr.bf16.gmra.mxu1 %v8774_v2  ;;  %v18559_v25 = vadd.f32 %v7571_v14, %v7255_v17  ;;  %v13811_v48 = vpop.f32.mrf.mxu0  ;;  %v8782_v14 = vsel %vm1998_vm4, %v8777_v7, %v8781_v56  ;;  %v8785_v7 = vor.u32 %v8783_v37, %v8781_v56 }
 0x667   :  { %14144 = vmatprep.mubr.msk.bf16.mxu1 %vm15114_vm0, %v18554_v41  ;;  %v13878_v3 = vpop.f32.mrf.mxu1  ;;  %v8787_v48 = vshll.u32 %v14831_v18, 16 }
 0x668   :  { %v7263_v36 = vpop.f32.mrf.mxu0 }
 0x669   :  { %v7574_v10 = vpop.f32.mrf.mxu1 }
 0x66a   :  { %14077 = vmatmul.mubr.bf16.gmra.mxu0 %v19434_v60  ;;  %v18566_v47 = vadd.f32 %v7574_v10, %v7258_v0  ;;  %v13814_v22 = vpop.f32.mrf.mxu0  ;;  %v8789_v0 = vrot.slane %v8787_v48, 1  ;;  %v19435_v60 = vcombine.low %v18109_v4, %v18114_v33 }
 0x66b   :  { %14080 = vmatprep.mubr.msk.bf16.mxu0 %vm15114_vm0, %v18554_v41  ;;  %v13879_v17 = vpop.f32.mrf.mxu1 }
 0x66c   :  { %v7266_v2 = vpop.f32.mrf.mxu0 }
 0x66d   :  { %v7579_v49 = vpop.f32.mrf.mxu1 }
 0x66e   :  { %14145 = vmatmul.mubr.bf16.gmra.mxu1 %v8782_v14  ;;  %v18571_v45 = vadd.f32 %v7579_v49, %v7263_v36  ;;  %v13815_v3 = vpop.f32.mrf.mxu0  ;;  %v8790_v14 = vsel %vm1998_vm4, %v8785_v7, %v8789_v0  ;;  %v8795_v49 = vshll.u32 %v14835_v55, 16 }
 0x66f   :  { %14148 = vmatprep.mubr.msk.bf16.mxu1 %vm15114_vm0, %v18554_v41  ;;  %v13882_v58 = vpop.f32.mrf.mxu1 }
 0x670   :  { %v8797_v56 = vrot.slane %v8795_v49, 1  ;;  %v14841_v58 = vld [vmem:[#allocation2 + $0x68] sm:$0x1f]  }
 0x671   :  { %v7582_v10 = vpop.f32.mrf.mxu1 }
 0x672   :  { %v7271_v13 = vpop.f32.mrf.mxu0  ;;  %14081 = vmatmul.mubr.bf16.gmra.mxu0 %v19435_v60  ;;  %v18578_v22 = vadd.f32 %v7582_v10, %v7266_v2  ;;  %v8791_v2 = vshrl.u32 %v14831_v18, 16  ;;  %v19436_v60 = vcombine.low %v18116_v38, %v18119_v50 }
 0x673   :  { %14084 = vmatprep.mubr.msk.bf16.mxu0 %vm15114_vm0, %v18554_v41  ;;  %v13883_v17 = vpop.f32.mrf.mxu1 }
 0x674   :  { %v13818_v36 = vpop.f32.mrf.mxu0 }
 0x675   :  { %v8793_v36 = vor.u32 %v8791_v2, %v8789_v0 }
 0x676   :  { %v7274_v35 = vpop.f32.mrf.mxu0  ;;  %v7587_v48 = vpop.f32.mrf.mxu1  ;;  %14149 = vmatmul.mubr.bf16.gmra.mxu1 %v8790_v14 }
 0x677   :  { %v18583_v3 = vadd.f32 %v7587_v48, %v7271_v13  ;;  %14152 = vmatprep.mubr.msk.bf16.mxu1 %vm15114_vm0, %v18554_v41  ;;  %v8798_v14 = vsel %vm1998_vm4, %v8793_v36, %v8797_v56  ;;  %v8803_v48 = vshll.u32 %v14841_v58, 16 }
 0x678   :  { %v13819_v4 = vpop.f32.mrf.mxu0  ;;  %v13886_v33 = vpop.f32.mrf.mxu1 }
 0x679   :  { %v8805_v0 = vrot.slane %v8803_v48, 1 }
 0x67a   :  { %v7279_v37 = vpop.f32.mrf.mxu0  ;;  %v7590_v10 = vpop.f32.mrf.mxu1  ;;  %14085 = vmatmul.mubr.bf16.gmra.mxu0 %v19436_v60  ;;  %v9032_v60 = vld [vmem:[#allocation2 + $0xc] sm:$0xf] }
 0x67b   :  { %v18590_v7 = vadd.f32 %v7590_v10, %v7274_v35  ;;  %14088 = vmatprep.mubr.msk.bf16.mxu0 %vm15114_vm0, %v18554_v41  ;;  %v8799_v35 = vshrl.u32 %v14835_v55, 16  ;;  %v19437_v10 = vcombine.low %v18144_v51, %v18146_v29 }
 0x67c   :  { %v13822_v13 = vpop.f32.mrf.mxu0  ;;  %v13887_v17 = vpop.f32.mrf.mxu1 }
 0x67d   :  { %v8801_v13 = vor.u32 %v8799_v35, %v8797_v56 }
 0x67e   :  { %v7282_v18 = vpop.f32.mrf.mxu0  ;;  %v7595_v49 = vpop.f32.mrf.mxu1  ;;  %14153 = vmatmul.mubr.bf16.gmra.mxu1 %v8798_v14 }
 0x67f   :  { %v18595_v4 = vadd.f32 %v7595_v49, %v7279_v37  ;;  %14156 = vmatprep.mubr.msk.bf16.mxu1 %vm15114_vm0, %v18554_v41  ;;  %v14984_v37 = vld [vmem:[#allocation2 + $0x10] sm:$0xf]  ;;  %v8806_v55 = vsel %vm1998_vm4, %v8801_v13, %v8805_v0 }
 0x680   :  { %v13823_v38 = vpop.f32.mrf.mxu0  ;;  %v13890_v50 = vpop.f32.mrf.mxu1  ;;  %v11511_v17 = vcombine.low %v9032_v60, %v14984_v37 }
 0x681   :  { %v11481_v50 = vcombine.low %v18405_v19, %v18405_v19 }
 0x682   :  { %v7598_v33 = vpop.f32.mrf.mxu1  ;;  %v7777_v2 = vpop.f32.mrf.mxu0  ;;  %14089 = vmatmul.mubr.bf16.gmra.mxu0 %v19437_v10  ;;  %v9142_v29 = vshll.u32 %v11511_v17, 16 }
 0x683   :  { %v7879_v36 = vadd.f32 %v7777_v2, %v18424_v28  ;;  %14092 = vmatprep.mubr.msk.bf16.mxu0 %vm15114_vm0, %v18554_v41  ;;  %v8807_v2 = vshrl.u32 %v14841_v58, 16 }
 0x684   :  { %v13891_v14 = vpop.f32.mrf.mxu1  ;;  %v13910_v18 = vpop.f32.mrf.mxu0 }
 0x685   :  { %v8809_v37 = vor.u32 %v8807_v2, %v8805_v0  ;;  %v9140_v14 = vshrl.u32 %v11511_v17, 16  ;;  %v19438_v18 = vld [vmem:[#allocation24_spill] sm:$0xff] }
 0x686   :  { %v7780_v48 = vpop.f32.mrf.mxu0  ;;  %v8222_v49 = vpop.f32.mrf.mxu1  ;;  %14157 = vmatmul.mubr.bf16.gmra.mxu1 %v8806_v55  ;;  %v19439_v55 = vshll.u32 %v19438_v18, 16  ;;  %v14985_v17 = vld [vmem:[#allocation2 + $0x14] sm:$0xff]  }
 0x687   :  { %v7880_v38 = vadd.f32 %v7780_v48, %v18429_v59  ;;  %v18607_v51 = vadd.f32 %v8222_v49, %v7879_v36  ;;  %14160 = vmatprep.mubr.msk.bf16.mxu1 %vm15114_vm0, %v18554_v41  ;;  %v9144_v59 = vrot.slane %v9142_v29, 1 }
 0x688   :  { %v13911_v28 = vpop.f32.mrf.mxu0  ;;  %v13978_v56 = vpop.f32.mrf.mxu1  ;;  %v9149_v48 = vrot.slane %v19439_v55, 1  ;;  %v19441_v55 = vld [vmem:[#allocation23_spill] sm:$0xff] }
 0x68a   :  { %v7785_v35 = vpop.f32.mrf.mxu0  ;;  %v8225_v33 = vpop.f32.mrf.mxu1  ;;  %14093 = vmatmul.mubr.bf16.gmra.mxu0 %v11481_v50  ;;  %v9485_v50 = vrot.slane %v14985_v17, 1 }
 0x68b   :  { %v7881_v10 = vadd.f32 %v7785_v35, %v18433_v44  ;;  %v18614_v60 = vadd.f32 %v8225_v33, %v7880_v38  ;;  %14180 = vmatprep.mubr.msk.bf16.mxu0 %vm15114_vm0, %v18554_v41  ;;  %v9145_v44 = vor.u32 %v9144_v59, %v9140_v14  ;;  %v14859_v38 = vld [vmem:[#allocation7 + $0x238] sm:$0xff]   ;;  %v14861_v59 = vld [vmem:[#allocation7 + $0x230] sm:$0xff]  }
 0x68c   :  { %v13914_v36 = vpop.f32.mrf.mxu0  ;;  %v13979_v13 = vpop.f32.mrf.mxu1 }
 0x68d   :  { %v9150_v0 = vsel %vm1998_vm4, %v9145_v44, %v9149_v48 }
 0x68e   :  { %v7788_v19 = vpop.f32.mrf.mxu0  ;;  %v8230_v49 = vpop.f32.mrf.mxu1  ;;  %14161 = vmatmul.mubr.bf16.gmra.mxu1 %v8809_v37 }
 0x68f   :  { %v7882_v58 = vadd.f32 %v7788_v19, %v18442_v39  ;;  %v18621_v28 = vadd.f32 %v8230_v49, %v7881_v10  ;;  %14248 = vmatprep.mubr.msk.bf16.mxu1 %vm15114_vm0, %v18554_v41  ;;  %v19440_v39 = vld [vmem:[#allocation25_spill] sm:$0xff]  ;;  %v19442_v19 = vshll.u32 %v19441_v55, 16 }
 0x690   :  { %v13915_v29 = vpop.f32.mrf.mxu0  ;;  %v13982_v56 = vpop.f32.mrf.mxu1  ;;  %v9484_v10 = vrot.slane %v19440_v39, 1  ;;  %v14986_v39 = vld [vmem:[#allocation2 + $0x1c] sm:$0xff]  }
 0x691   :  { %v9157_v49 = vrot.slane %v19442_v19, 1  ;;  %v19443_v56 = vshrl.u32 %v19438_v18, 16  ;;  %v19444_v19 = vshll.u32 %v18188_v16, 16 }
 0x692   :  { %v7793_v35 = vpop.f32.mrf.mxu0  ;;  %v8233_v33 = vpop.f32.mrf.mxu1  ;;  %14181 = vmatmul.mubr.bf16.vlgmr.msra.gmra.mxu0 %v9150_v0  ;;  %v9486_v14 = vsel %vm2776_vm5, %v9484_v10, %v9485_v50  ;;  %v14864_v0 = vld [vmem:[#allocation7 + $0x228] sm:$0xff]   ;;  %v9487_v10 = vrot.slane %v14986_v39, 1  ;;  %v14987_v39 = vld [vmem:[#allocation2 + $0x24] sm:$0xff]  }
 0x693   :  { %v7883_v2 = vadd.f32 %v7793_v35, %v18449_v34  ;;  %v18627_v36 = vadd.f32 %v8233_v33, %v7882_v58  ;;  %14184 = vmatprep.mubr.msk.bf16.mxu0 %vm15114_vm0, %v18554_v41  ;;  %14301 = vmatpush3.bf16.msra.mxu0 %v14859_v38  ;;  %v9153_v38 = vor.u32 %v19443_v56, %v9149_v48  ;;  %v14866_v48 = vld [vmem:[#allocation7 + $0x220] sm:$0xff]  }
 0x694   :  { %v13918_v13 = vpop.f32.mrf.mxu0  ;;  %v13983_v37 = vpop.f32.mrf.mxu1  ;;  %14302 = vmatprep.subr.bf16.mxu0 %v18554_v41 }
 0x695   :  { %v9158_v33 = vsel %vm1998_vm4, %v9153_v38, %v9157_v49  ;;  %v19445_v38 = vshrl.u32 %v19441_v55, 16 }
 0x696   :  { %v7796_v44 = vpop.f32.mrf.mxu0  ;;  %v8238_v34 = vpop.f32.mrf.mxu1  ;;  %14249 = vmatmul.mubr.bf16.vlgmr.msra.gmra.mxu1 %v9486_v14  ;;  %v9488_v14 = vsel %vm2776_vm5, %v9485_v50, %v9487_v10 }
 0x697   :  { %v7884_v58 = vadd.f32 %v7796_v44, %v18460_v53  ;;  %v18637_v29 = vadd.f32 %v8238_v34, %v7883_v2  ;;  %14252 = vmatprep.mubr.msk.bf16.mxu1 %vm15114_vm0, %v18554_v41  ;;  %14303 = vmatpush3.bf16.msra.mxu0 %v14861_v59  ;;  %v9165_v44 = vrot.slane %v19444_v19, 1 }
 0x698   :  { %v13919_v17 = vpop.f32.mrf.mxu0  ;;  %v13986_v35 = vpop.f32.mrf.mxu1  ;;  %14304 = vmatprep.subr.bf16.mxu0 %v18554_v41 }
 0x699   :  { %v14868_v17 = vld [vmem:[#allocation7 + $0x218] sm:$0xff]  }
 0x69a   :  { %v7801_v13 = vpop.f32.mrf.mxu0  ;;  %v8241_v53 = vpop.f32.mrf.mxu1  ;;  %14185 = vmatmul.mubr.bf16.gmra.mxu0 %v9158_v33 }
 0x69b   :  { %v7885_v2 = vadd.f32 %v7801_v13, %v18468_v9  ;;  %v18646_v18 = vadd.f32 %v8241_v53, %v7884_v58  ;;  %14188 = vmatprep.mubr.msk.bf16.mxu0 %vm15114_vm0, %v18554_v41  ;;  %14305 = vmatpush3.bf16.msra.mxu0 %v14864_v0  ;;  %v9161_v0 = vor.u32 %v19445_v38, %v9157_v49  ;;  %v9489_v13 = vrot.slane %v14987_v39, 1  ;;  %v14869_v49 = vld [vmem:[#allocation7 + $0x210] sm:$0xff]  }
 0x69c   :  { %v13922_v59 = vpop.f32.mrf.mxu0  ;;  %v13987_v37 = vpop.f32.mrf.mxu1  ;;  %14306 = vmatprep.subr.bf16.mxu0 %v18554_v41  ;;  %v19447_v38 = vshrl.u32 %v18188_v16, 16 }
 0x69d   :  { %v9166_v33 = vsel %vm1998_vm4, %v9161_v0, %v9165_v44  ;;  %v9490_v37 = vsel %vm2776_vm5, %v9487_v10, %v9489_v13 }
 0x69e   :  { %v7804_v34 = vpop.f32.mrf.mxu0  ;;  %v8246_v56 = vpop.f32.mrf.mxu1  ;;  %14253 = vmatmul.mubr.bf16.gmra.mxu1 %v9488_v14  ;;  %v19446_v14 = vshll.u32 %v18192_v23, 16  ;;  %v9169_v0 = vor.u32 %v19447_v38, %v9165_v44  ;;  %v14871_v44 = vld [vmem:[#allocation7 + $0x200] sm:$0xff]  }
 0x69f   :  { %v7886_v9 = vadd.f32 %v7804_v34, %v18480_v26  ;;  %v18655_v58 = vadd.f32 %v8246_v56, %v7885_v2  ;;  %14256 = vmatprep.mubr.msk.bf16.mxu1 %vm15114_vm0, %v18554_v41  ;;  %14307 = vmatpush3.bf16.msra.mxu0 %v14866_v48 }
 0x6a0   :  { %v13923_v35 = vpop.f32.mrf.mxu0  ;;  %v13990_v50 = vpop.f32.mrf.mxu1  ;;  %14308 = vmatprep.subr.bf16.mxu0 %v18554_v41  ;;  %v9173_v19 = vrot.slane %v19446_v14, 1 }
 0x6a2   :  { %v7809_v53 = vpop.f32.mrf.mxu0  ;;  %v8249_v26 = vpop.f32.mrf.mxu1  ;;  %14189 = vmatmul.mubr.bf16.gmra.mxu0 %v9166_v33  ;;  %v9174_v50 = vsel %vm1998_vm4, %v9169_v0, %v9173_v19  ;;  %v14988_v33 = vld [vmem:[#allocation2 + $0x2c] sm:$0xff]  }
 0x6a3   :  { %v7887_v2 = vadd.f32 %v7809_v53, %v18488_v8  ;;  %v18664_v55 = vadd.f32 %v8249_v26, %v7886_v9  ;;  %14192 = vmatprep.mubr.msk.bf16.mxu0 %vm15114_vm0, %v18554_v41  ;;  %14309 = vmatpush3.bf16.msra.mxu0 %v14868_v17  ;;  %v14870_v17 = vld [vmem:[#allocation7 + $0x208] sm:$0xff]   ;;  %v9491_v39 = vrot.slane %v14988_v33, 1 }
 0x6a4   :  { %v13926_v48 = vpop.f32.mrf.mxu0  ;;  %v13991_v59 = vpop.f32.mrf.mxu1  ;;  %14310 = vmatprep.subr.bf16.mxu0 %v18554_v41 }
 0x6a5   :  { %v9492_v48 = vsel %vm2776_vm5, %v9489_v13, %v9491_v39  ;;  %v19448_v59 = vshll.u32 %v18194_v43, 16 }
 0x6a6   :  { %v7812_v34 = vpop.f32.mrf.mxu0  ;;  %v8254_v56 = vpop.f32.mrf.mxu1  ;;  %14257 = vmatmul.mubr.bf16.gmra.mxu1 %v9490_v37 }
 0x6a7   :  { %v7888_v8 = vadd.f32 %v7812_v34, %v18498_v54  ;;  %v18673_v9 = vadd.f32 %v8254_v56, %v7887_v2  ;;  %14260 = vmatprep.mubr.msk.bf16.mxu1 %vm15114_vm0, %v18554_v41  ;;  %14311 = vmatpush3.bf16.msra.mxu0 %v14869_v49  ;;  %v9181_v37 = vrot.slane %v19448_v59, 1 }
 0x6a8   :  { %v13927_v35 = vpop.f32.mrf.mxu0  ;;  %v13994_v10 = vpop.f32.mrf.mxu1  ;;  %14312 = vmatprep.subr.bf16.mxu0 %v18554_v41 }
 0x6a9   :  { %v14989_v35 = vld [vmem:[#allocation2 + $0x34] sm:$0xff]  }
 0x6aa   :  { %v7817_v53 = vpop.f32.mrf.mxu0  ;;  %v8257_v54 = vpop.f32.mrf.mxu1  ;;  %14193 = vmatmul.mubr.bf16.gmra.mxu0 %v9174_v50  ;;  %v9493_v10 = vrot.slane %v14989_v35, 1 }
 0x6ab   :  { %v7889_v26 = vadd.f32 %v7817_v53, %v18505_v30  ;;  %v18682_v16 = vadd.f32 %v8257_v54, %v7888_v8  ;;  %14196 = vmatprep.mubr.msk.bf16.mxu0 %vm15114_vm0, %v18554_v41  ;;  %14313 = vmatpush3.bf16.msra.mxu0 %v14870_v17  ;;  %v19449_v8 = vshrl.u32 %v18192_v23, 16 }
 0x6ac   :  { %v13930_v2 = vpop.f32.mrf.mxu0  ;;  %v13995_v49 = vpop.f32.mrf.mxu1  ;;  %14314 = vmatprep.subr.bf16.mxu0 %v18554_v41  ;;  %v9494_v54 = vsel %vm2776_vm5, %v9491_v39, %v9493_v10 }
 0x6ad   :  { %v9177_v38 = vor.u32 %v19449_v8, %v9173_v19  ;;  %v14990_v8 = vld [vmem:[#allocation2 + $0x3c] sm:$0xff]  }
 0x6ae   :  { %v7820_v14 = vpop.f32.mrf.mxu0  ;;  %v8262_v34 = vpop.f32.mrf.mxu1  ;;  %14261 = vmatmul.mubr.bf16.gmra.mxu1 %v9492_v48 }
 0x6af   :  { %v7890_v30 = vadd.f32 %v7820_v14, %v18515_v31  ;;  %v18691_v56 = vadd.f32 %v8262_v34, %v7889_v26  ;;  %14264 = vmatprep.mubr.msk.bf16.mxu1 %vm15114_vm0, %v18554_v41  ;;  %14315 = vmatpush3.bf16.msra.mxu0 %v14871_v44  ;;  %v9182_v13 = vsel %vm1998_vm4, %v9177_v38, %v9181_v37  ;;  %v19450_v26 = vshll.u32 %v18207_v11, 16 }
 0x6b0   :  { %v13931_v0 = vpop.f32.mrf.mxu0  ;;  %v13998_v17 = vpop.f32.mrf.mxu1  ;;  %14420 = vmatprep.subr.bf16.mxu0 %v18554_v41  ;;  %v9495_v38 = vrot.slane %v14990_v8, 1  ;;  %v19454_v8 = vshll.u32 %v18221_v52, 16 }
 0x6b1   :  { %v9189_v44 = vrot.slane %v19450_v26, 1 }
 0x6b2   :  { %v7825_v50 = vpop.f32.mrf.mxu0  ;;  %v8265_v33 = vpop.f32.mrf.mxu1  ;;  %14197 = vmatmul.mubr.bf16.gmra.mxu0 %v9182_v13  ;;  %v9496_v35 = vsel %vm2776_vm5, %v9493_v10, %v9495_v38 }
 0x6b3   :  { %v7891_v31 = vadd.f32 %v7825_v50, %v18521_v5  ;;  %v18700_v53 = vadd.f32 %v8265_v33, %v7890_v30  ;;  %14200 = vmatprep.mubr.msk.bf16.mxu0 %vm15114_vm0, %v18554_v41  ;;  %v19451_v5 = vshrl.u32 %v18194_v43, 16  ;;  %v19452_v50 = vshll.u32 %v18209_v15, 16 }
 0x6b4   :  { %v13934_v23 = vpop.f32.mrf.mxu0  ;;  %v13999_v19 = vpop.f32.mrf.mxu1 }
 0x6b5   :  { %v9185_v14 = vor.u32 %v19451_v5, %v9181_v37  ;;  %v9197_v33 = vrot.slane %v19452_v50, 1 }
 0x6b6   :  { %v7828_v2 = vpop.f32.mrf.mxu0  ;;  %v8270_v49 = vpop.f32.mrf.mxu1  ;;  %14265 = vmatmul.mubr.bf16.gmra.mxu1 %v9494_v54 }
 0x6b7   :  { %v7892_v48 = vadd.f32 %v7828_v2, %v18528_v40  ;;  %v18708_v59 = vadd.f32 %v8270_v49, %v7891_v31  ;;  %14268 = vmatprep.mubr.msk.bf16.mxu1 %vm15114_vm0, %v18554_v41  ;;  %v9190_v39 = vsel %vm1998_vm4, %v9185_v14, %v9189_v44 }
 0x6b8   :  { %v13935_v34 = vpop.f32.mrf.mxu0  ;;  %v14002_v30 = vpop.f32.mrf.mxu1 }
 0x6ba   :  { %v7833_v0 = vpop.f32.mrf.mxu0  ;;  %v8273_v17 = vpop.f32.mrf.mxu1  ;;  %14201 = vmatmul.mubr.bf16.gmra.mxu0 %v9190_v39 }
 0x6bb   :  { %v7893_v13 = vadd.f32 %v7833_v0, %v18533_v20  ;;  %v18716_v40 = vadd.f32 %v8273_v17, %v7892_v48  ;;  %14204 = vmatprep.mubr.msk.bf16.mxu0 %vm15114_vm0, %v18554_v41  ;;  %v19453_v20 = vshrl.u32 %v18207_v11, 16  ;;  %v14991_v48 = vld [vmem:[#allocation2 + $0x44] sm:$0xff]   ;;  %v9205_v0 = vrot.slane %v19454_v8, 1 }
 0x6bc   :  { %v13938_v43 = vpop.f32.mrf.mxu0  ;;  %v14003_v37 = vpop.f32.mrf.mxu1  ;;  %v9497_v5 = vrot.slane %v14991_v48, 1 }
 0x6bd   :  { %v9193_v26 = vor.u32 %v19453_v20, %v9189_v44 }
 0x6be   :  { %v7836_v31 = vpop.f32.mrf.mxu0  ;;  %v8278_v23 = vpop.f32.mrf.mxu1  ;;  %14269 = vmatmul.mubr.bf16.gmra.mxu1 %v9496_v35  ;;  %v9498_v39 = vsel %vm2776_vm5, %v9495_v38, %v9497_v5 }
 0x6bf   :  { %v7894_v19 = vadd.f32 %v7836_v31, %v18540_v24  ;;  %v18724_v54 = vadd.f32 %v8278_v23, %v7893_v13  ;;  %14272 = vmatprep.mubr.msk.bf16.mxu1 %vm15114_vm0, %v18554_v41  ;;  %v9198_v10 = vsel %vm1998_vm4, %v9193_v26, %v9197_v33  ;;  %v14992_v23 = vld [vmem:[#allocation2 + $0x4c] sm:$0xff]  }
 0x6c0   :  { %v13939_v2 = vpop.f32.mrf.mxu0  ;;  %v14006_v49 = vpop.f32.mrf.mxu1 }
 0x6c2   :  { %v7841_v14 = vpop.f32.mrf.mxu0  ;;  %v8281_v34 = vpop.f32.mrf.mxu1  ;;  %14205 = vmatmul.mubr.bf16.gmra.mxu0 %v9198_v10  ;;  %v19456_v10 = vshll.u32 %v18228_v57, 16 }
 0x6c3   :  { %v7895_v30 = vadd.f32 %v7841_v14, %v18545_v12  ;;  %v18732_v24 = vadd.f32 %v8281_v34, %v7894_v19  ;;  %14208 = vmatprep.mubr.msk.bf16.mxu0 %vm15114_vm0, %v18554_v41  ;;  %v19455_v12 = vshrl.u32 %v18209_v15, 16  ;;  %v9499_v19 = vrot.slane %v14992_v23, 1 }
 0x6c4   :  { %v13942_v11 = vpop.f32.mrf.mxu0  ;;  %v14007_v44 = vpop.f32.mrf.mxu1  ;;  %v9213_v48 = vrot.slane %v19456_v10, 1  ;;  %v14994_v10 = vld [vmem:[#allocation2 + $0x5c] sm:$0xff]  }
 0x6c5   :  { %v9201_v35 = vor.u32 %v19455_v12, %v9197_v33  ;;  %v9500_v49 = vsel %vm2776_vm5, %v9497_v5, %v9499_v19 }
 0x6c6   :  { %v7844_v17 = vpop.f32.mrf.mxu0  ;;  %v8286_v13 = vpop.f32.mrf.mxu1  ;;  %14273 = vmatmul.mubr.bf16.gmra.mxu1 %v9498_v39 }
 0x6c7   :  { %v7896_v43 = vadd.f32 %v7844_v17, %v18552_v21  ;;  %v18740_v37 = vadd.f32 %v8286_v13, %v7895_v30  ;;  %14276 = vmatprep.mubr.msk.bf16.mxu1 %vm15114_vm0, %v18554_v41  ;;  %v9206_v38 = vsel %vm1998_vm4, %v9201_v35, %v9205_v0  ;;  %v14993_v17 = vld [vmem:[#allocation2 + $0x54] sm:$0xff]  }
 0x6c8   :  { %v13943_v50 = vpop.f32.mrf.mxu0  ;;  %v14010_v31 = vpop.f32.mrf.mxu1  ;;  %v9501_v13 = vrot.slane %v14993_v17, 1 }
 0x6c9   :  { %v19458_v31 = vshll.u32 %v18230_v61, 16 }
 0x6ca   :  { %v7849_v20 = vpop.f32.mrf.mxu0  ;;  %v8289_v26 = vpop.f32.mrf.mxu1  ;;  %14209 = vmatmul.mubr.bf16.gmra.mxu0 %v9206_v38  ;;  %v9502_v50 = vsel %vm2776_vm5, %v9499_v19, %v9501_v13 }
 0x6cb   :  { %v7897_v2 = vadd.f32 %v7849_v20, %v18559_v25  ;;  %v18748_v21 = vadd.f32 %v8289_v26, %v7896_v43  ;;  %14212 = vmatprep.mubr.msk.bf16.mxu0 %vm15114_vm0, %v18554_v41  ;;  %v19457_v25 = vshrl.u32 %v18221_v52, 16  ;;  %v9221_v38 = vrot.slane %v19458_v31, 1 }
 0x6cc   :  { %v13946_v15 = vpop.f32.mrf.mxu0  ;;  %v14011_v33 = vpop.f32.mrf.mxu1 }
 0x6cd   :  { %v9209_v44 = vor.u32 %v19457_v25, %v9205_v0 }
 0x6ce   :  { %v7852_v14 = vpop.f32.mrf.mxu0  ;;  %v8294_v34 = vpop.f32.mrf.mxu1  ;;  %14277 = vmatmul.mubr.bf16.gmra.mxu1 %v9500_v49 }
 0x6cf   :  { %v7898_v30 = vadd.f32 %v7852_v14, %v18566_v47  ;;  %v18756_v11 = vadd.f32 %v8294_v34, %v7897_v2  ;;  %14280 = vmatprep.mubr.msk.bf16.mxu1 %vm15114_vm0, %v18554_v41  ;;  %v9214_v5 = vsel %vm1998_vm4, %v9209_v44, %v9213_v48  ;;  %v9503_v14 = vrot.slane %v14994_v10, 1  ;;  %v9057_v44 = vld [vmem:[#allocation2 + $0x70] sm:$0x1] }
 0x6d0   :  { %v13947_v39 = vpop.f32.mrf.mxu0  ;;  %v14014_v8 = vpop.f32.mrf.mxu1  ;;  %v19462_v10 = vshrl.u32 %v18243_v62, 16 }
 0x6d1   :  { %v9504_v39 = vsel %vm2776_vm5, %v9501_v13, %v9503_v14  ;;  %v19460_v8 = vshll.u32 %v18243_v62, 16 }
 0x6d2   :  { %v7857_v43 = vpop.f32.mrf.mxu0  ;;  %v8297_v12 = vpop.f32.mrf.mxu1  ;;  %14213 = vmatmul.mubr.bf16.gmra.mxu0 %v9214_v5 }
 0x6d3   :  { %v7899_v35 = vadd.f32 %v7857_v43, %v18571_v45  ;;  %v18764_v47 = vadd.f32 %v8297_v12, %v7898_v30  ;;  %14216 = vmatprep.mubr.msk.bf16.mxu0 %vm15114_vm0, %v18554_v41  ;;  %v19459_v45 = vshrl.u32 %v18228_v57, 16  ;;  %v9229_v5 = vrot.slane %v19460_v8, 1 }
 0x6d4   :  { %v13950_v52 = vpop.f32.mrf.mxu0  ;;  %v14015_v0 = vpop.f32.mrf.mxu1 }
 0x6d5   :  { %v9217_v15 = vor.u32 %v19459_v45, %v9213_v48  ;;  %v14995_v0 = vld [vmem:[#allocation2 + $0x6c] sm:$0xf] }
 0x6d6   :  { %v7860_v23 = vpop.f32.mrf.mxu0  ;;  %v8302_v20 = vpop.f32.mrf.mxu1  ;;  %14281 = vmatmul.mubr.bf16.gmra.mxu1 %v9502_v50  ;;  %v11523_v50 = vcombine.low %v14995_v0, %v9057_v44 }
 0x6d7   :  { %v7900_v26 = vadd.f32 %v7860_v23, %v18578_v22  ;;  %v18772_v2 = vadd.f32 %v8302_v20, %v7899_v35  ;;  %14284 = vmatprep.mubr.msk.bf16.mxu1 %vm15114_vm0, %v18554_v41  ;;  %v9222_v19 = vsel %vm1998_vm4, %v9217_v15, %v9221_v38  ;;  %v14996_v20 = vld [vmem:[#allocation2 + $0x64] sm:$0xff]  }
 0x6d8   :  { %v13951_v33 = vpop.f32.mrf.mxu0  ;;  %v14018_v49 = vpop.f32.mrf.mxu1  ;;  %v9235_v45 = vshll.u32 %v11523_v50, 16  ;;  %v9507_v8 = vrot.slane %v11523_v50, 1 }
 0x6da   :  { %v7865_v34 = vpop.f32.mrf.mxu0  ;;  %v8305_v30 = vpop.f32.mrf.mxu1  ;;  %14217 = vmatmul.mubr.bf16.gmra.mxu0 %v9222_v19 }
 0x6db   :  { %v7901_v25 = vadd.f32 %v7865_v34, %v18583_v3  ;;  %v18780_v22 = vadd.f32 %v8305_v30, %v7900_v26  ;;  %14220 = vmatprep.mubr.msk.bf16.mxu0 %vm15114_vm0, %v18554_v41  ;;  %v19461_v3 = vshrl.u32 %v18230_v61, 16  ;;  %v9505_v26 = vrot.slane %v14996_v20, 1 }
 0x6dc   :  { %v13954_v57 = vpop.f32.mrf.mxu0  ;;  %v14019_v48 = vpop.f32.mrf.mxu1  ;;  %v9233_v34 = vor.u32 %v19462_v10, %v9229_v5  ;;  %v9237_v30 = vrot.slane %v9235_v45, 1 }
 0x6dd   :  { %v9225_v52 = vor.u32 %v19461_v3, %v9221_v38  ;;  %v9506_v19 = vsel %vm2776_vm5, %v9503_v14, %v9505_v26  ;;  %v9239_v14 = vshrl.u32 %v11523_v50, 16  ;;  %v9508_v3 = vsel %vm2776_vm5, %v9505_v26, %v9507_v8 }
 0x6de   :  { %v7868_v17 = vpop.f32.mrf.mxu0  ;;  %v8310_v43 = vpop.f32.mrf.mxu1  ;;  %14285 = vmatmul.mubr.bf16.gmra.mxu1 %v9504_v39  ;;  %v9238_v39 = vsel %vm1998_vm4, %v9233_v34, %v9237_v30 }
 0x6df   :  { %v7902_v12 = vadd.f32 %v7868_v17, %v18590_v7  ;;  %v18788_v35 = vadd.f32 %v8310_v43, %v7901_v25  ;;  %14288 = vmatprep.mubr.msk.bf16.mxu1 %vm15114_vm0, %v18554_v41  ;;  %v9230_v23 = vsel %vm1998_vm4, %v9225_v52, %v9229_v5 }
 0x6e0   :  { %v13955_v31 = vpop.f32.mrf.mxu0  ;;  %v14022_v13 = vpop.f32.mrf.mxu1 }
 0x6e1   :  { %v9241_v31 = vor.u32 %v9239_v14, %v9237_v30 }
 0x6e2   :  { %v7873_v15 = vpop.f32.mrf.mxu0  ;;  %v8313_v33 = vpop.f32.mrf.mxu1  ;;  %14221 = vmatmul.mubr.bf16.gmra.mxu0 %v9230_v23 }
 0x6e3   :  { %v7903_v7 = vadd.f32 %v7873_v15, %v18595_v4  ;;  %v18796_v49 = vadd.f32 %v8313_v33, %v7902_v12  ;;  %14224 = vmatprep.mubr.msk.bf16.mxu0 %vm15114_vm0, %v18554_v41 }
 0x6e4   :  { %v13958_v61 = vpop.f32.mrf.mxu0  ;;  %v14023_v38 = vpop.f32.mrf.mxu1 }
 0x6e6   :  { %v7876_v25 = vpop.f32.mrf.mxu0  ;;  %v8318_v57 = vpop.f32.mrf.mxu1  ;;  %14289 = vmatmul.mubr.bf16.gmra.mxu1 %v9506_v19 }
 0x6e7   :  { %v18803_v48 = vadd.f32 %v8318_v57, %v7903_v7  ;;  %14292 = vmatprep.mubr.msk.bf16.mxu1 %vm15114_vm0, %v18554_v41  ;;  %v19463_v57 = vld [vmem:[#allocation26_spill] sm:$0xff] }
 0x6e8   :  { %v13959_v4 = vpop.f32.mrf.mxu0  ;;  %v14026_v44 = vpop.f32.mrf.mxu1 }
 0x6ea   :  { %v8321_v17 = vpop.f32.mrf.mxu1  ;;  %v8473_v43 = vpop.f32.mrf.mxu0  ;;  %14225 = vmatmul.mubr.bf16.gmra.mxu0 %v9238_v39 }
 0x6eb   :  { %v8575_v62 = vadd.f32 %v8473_v43, %v18607_v51  ;;  %14228 = vmatprep.mubr.msk.bf16.mxu0 %vm15114_vm0, %v18554_v41 }
 0x6ec   :  { %v14027_v5 = vpop.f32.mrf.mxu1  ;;  %v14046_v12 = vpop.f32.mrf.mxu0 }
 0x6ee   :  { %v8476_v52 = vpop.f32.mrf.mxu0  ;;  %v8905_v0 = vpop.f32.mrf.mxu1  ;;  %14293 = vmatmul.mubr.bf16.gmra.mxu1 %v9508_v3  ;;  %v19464_v3 = vld [vmem:[#allocation27_spill] sm:$0xff] }
 0x6ef   :  { %v8576_v13 = vadd.f32 %v8476_v52, %v18614_v60  ;;  %v18813_v23 = vadd.f32 %v8905_v0, %v8575_v62  ;;  %14296 = vmatprep.mubr.msk.bf16.mxu1 %vm15114_vm0, %v18554_v41 }
 0x6f0   :  { %v14047_v50 = vpop.f32.mrf.mxu0  ;;  %v14114_v51 = vpop.f32.mrf.mxu1 }
 0x6f2   :  { %v8481_v20 = vpop.f32.mrf.mxu0  ;;  %v8908_v45 = vpop.f32.mrf.mxu1  ;;  %14229 = vmatmul.mubr.bf16.gmra.mxu0 %v9241_v31 }
 0x6f3   :  { %v8577_v15 = vadd.f32 %v8481_v20, %v18621_v28  ;;  %v18818_v33 = vadd.f32 %v8908_v45, %v8576_v13  ;;  %14316 = vmatprep.mubr.msk.bf16.mxu0 %vm15114_vm0, %v18554_v41 }
 0x6f4   :  { %v14050_v26 = vpop.f32.mrf.mxu0  ;;  %v14115_v7 = vpop.f32.mrf.mxu1 }
 0x6f5   :  { %v19465_v7 = vld [vmem:[#allocation28_spill] sm:$0xff] }
 0x6f6   :  { %v8484_v60 = vpop.f32.mrf.mxu0  ;;  %v8913_v61 = vpop.f32.mrf.mxu1  ;;  %14297 = vmatmul.mubr.bf16.gmra.mxu1 %v9507_v8 }
 0x6f7   :  { %v8578_v38 = vadd.f32 %v8484_v60, %v18627_v36  ;;  %v18823_v19 = vadd.f32 %v8913_v61, %v8577_v15 }
 0x6f8   :  { %v14051_v10 = vpop.f32.mrf.mxu0  ;;  %v14118_v34 = vpop.f32.mrf.mxu1 }
 0x6fa   :  { %v8489_v30 = vpop.f32.mrf.mxu0  ;;  %v8916_v25 = vpop.f32.mrf.mxu1  ;;  %14317 = vmatmul.mubr.bf16.vlgmr.msra.gmra.mxu0 %v19463_v57 }
 0x6fb   :  { %v8579_v28 = vadd.f32 %v8489_v30, %v18637_v29  ;;  %v18827_v4 = vadd.f32 %v8916_v25, %v8578_v38  ;;  %14320 = vmatprep.mubr.msk.bf16.mxu0 %vm15114_vm0, %v18554_v41 }
 0x6fc   :  { %v14054_v44 = vpop.f32.mrf.mxu0  ;;  %v14119_v39 = vpop.f32.mrf.mxu1 }
 0x6fd   :  { %v19466_v39 = vld [vmem:[#allocation29_spill] sm:$0xff] }
 0x6fe   :  { %v8492_v8 = vpop.f32.mrf.mxu0  ;;  %v8921_v17 = vpop.f32.mrf.mxu1 }
 0x6ff   :  { %v8580_v36 = vadd.f32 %v8492_v8, %v18646_v18  ;;  %v18832_v43 = vadd.f32 %v8921_v17, %v8579_v28 }
 0x700   :  { %v14055_v14 = vpop.f32.mrf.mxu0  ;;  %v14122_v62 = vpop.f32.mrf.mxu1 }
 0x702   :  { %v8497_v5 = vpop.f32.mrf.mxu0  ;;  %v8924_v12 = vpop.f32.mrf.mxu1  ;;  %14321 = vmatmul.mubr.bf16.gmra.mxu0 %v19464_v3 }
 0x703   :  { %v8581_v29 = vadd.f32 %v8497_v5, %v18655_v58  ;;  %v18836_v52 = vadd.f32 %v8924_v12, %v8580_v36  ;;  %14324 = vmatprep.mubr.msk.bf16.mxu0 %vm15114_vm0, %v18554_v41 }
 0x704   :  { %v14058_v0 = vpop.f32.mrf.mxu0  ;;  %v14123_v31 = vpop.f32.mrf.mxu1 }
 0x705   :  { %v19467_v31 = vld [vmem:[#allocation30_spill] sm:$0xff] }
 0x706   :  { %v8500_v13 = vpop.f32.mrf.mxu0  ;;  %v8929_v50 = vpop.f32.mrf.mxu1 }
 0x707   :  { %v8582_v18 = vadd.f32 %v8500_v13, %v18664_v55  ;;  %v18841_v51 = vadd.f32 %v8929_v50, %v8581_v29 }
 0x708   :  { %v14059_v20 = vpop.f32.mrf.mxu0  ;;  %v14126_v45 = vpop.f32.mrf.mxu1 }
 0x70a   :  { %v8505_v15 = vpop.f32.mrf.mxu0  ;;  %v8932_v26 = vpop.f32.mrf.mxu1  ;;  %14325 = vmatmul.mubr.bf16.gmra.mxu0 %v19465_v7 }
 0x70b   :  { %v8583_v58 = vadd.f32 %v8505_v15, %v18673_v9  ;;  %v18845_v60 = vadd.f32 %v8932_v26, %v8582_v18  ;;  %14328 = vmatprep.mubr.msk.bf16.mxu0 %vm15114_vm0, %v18554_v41 }
 0x70c   :  { %v14062_v61 = vpop.f32.mrf.mxu0  ;;  %v14127_v38 = vpop.f32.mrf.mxu1 }
 0x70e   :  { %v8508_v10 = vpop.f32.mrf.mxu0  ;;  %v8937_v34 = vpop.f32.mrf.mxu1 }
 0x70f   :  { %v8584_v55 = vadd.f32 %v8508_v10, %v18682_v16  ;;  %v18850_v30 = vadd.f32 %v8937_v34, %v8583_v58 }
 0x710   :  { %v14063_v25 = vpop.f32.mrf.mxu0  ;;  %v14130_v57 = vpop.f32.mrf.mxu1 }
 0x712   :  { %v8513_v28 = vpop.f32.mrf.mxu0  ;;  %v8940_v44 = vpop.f32.mrf.mxu1  ;;  %14329 = vmatmul.mubr.bf16.gmra.mxu0 %v19466_v39 }
 0x713   :  { %v8585_v9 = vadd.f32 %v8513_v28, %v18691_v56  ;;  %v18854_v8 = vadd.f32 %v8940_v44, %v8584_v55  ;;  %14332 = vmatprep.mubr.msk.bf16.mxu0 %vm15114_vm0, %v18554_v41 }
 0x714   :  { %v14066_v17 = vpop.f32.mrf.mxu0  ;;  %v14131_v36 = vpop.f32.mrf.mxu1 }
 0x716   :  { %v8516_v14 = vpop.f32.mrf.mxu0  ;;  %v8945_v62 = vpop.f32.mrf.mxu1 }
 0x717   :  { %v8586_v16 = vadd.f32 %v8516_v14, %v18700_v53  ;;  %v18859_v5 = vadd.f32 %v8945_v62, %v8585_v9 }
 0x718   :  { %v14067_v12 = vpop.f32.mrf.mxu0  ;;  %v14134_v3 = vpop.f32.mrf.mxu1 }
 0x71a   :  { %v8521_v29 = vpop.f32.mrf.mxu0  ;;  %v8948_v0 = vpop.f32.mrf.mxu1  ;;  %14333 = vmatmul.mubr.bf16.gmra.mxu0 %v19467_v31  ;;  %v18892_v31 = vld [vmem:[#allocation4] sm:$0xff] }
 0x71b   :  { %v8587_v56 = vadd.f32 %v8521_v29, %v18708_v59  ;;  %v18863_v13 = vadd.f32 %v8948_v0, %v8586_v16  ;;  %14336 = vmatprep.mubr.msk.bf16.mxu0 %vm15114_vm0, %v18554_v41 }
 0x71c   :  { %v14070_v50 = vpop.f32.mrf.mxu0  ;;  %v14135_v18 = vpop.f32.mrf.mxu1 }
 0x71e   :  { %v8524_v20 = vpop.f32.mrf.mxu0  ;;  %v8953_v45 = vpop.f32.mrf.mxu1 }
 0x71f   :  { %v8588_v53 = vadd.f32 %v8524_v20, %v18716_v40  ;;  %v18868_v15 = vadd.f32 %v8953_v45, %v8587_v56 }
 0x720   :  { %v14071_v26 = vpop.f32.mrf.mxu0  ;;  %v14138_v7 = vpop.f32.mrf.mxu1 }
 0x722   :  { %v8529_v58 = vpop.f32.mrf.mxu0  ;;  %v8956_v61 = vpop.f32.mrf.mxu1  ;;  %14337 = vmatmul.mubr.bf16.gmra.mxu0 %v18323_v27 }
 0x723   :  { %v8589_v59 = vadd.f32 %v8529_v58, %v18724_v54  ;;  %v18872_v38 = vadd.f32 %v8956_v61, %v8588_v53  ;;  %14340 = vmatprep.mubr.msk.bf16.mxu0 %vm15114_vm0, %v18554_v41 }
 0x724   :  { %v14074_v10 = vpop.f32.mrf.mxu0  ;;  %v14139_v34 = vpop.f32.mrf.mxu1 }
 0x726   :  { %v8532_v55 = vpop.f32.mrf.mxu0  ;;  %v8961_v25 = vpop.f32.mrf.mxu1 }
 0x727   :  { %v8590_v40 = vadd.f32 %v8532_v55, %v18732_v24  ;;  %v18877_v57 = vadd.f32 %v8961_v25, %v8589_v59 }
 0x728   :  { %v14075_v28 = vpop.f32.mrf.mxu0  ;;  %v14142_v44 = vpop.f32.mrf.mxu1 }
 0x72a   :  { %v8537_v39 = vpop.f32.mrf.mxu0  ;;  %v8964_v9 = vpop.f32.mrf.mxu1  ;;  %14341 = vmatmul.mubr.bf16.gmra.mxu0 %v18331_v1 }
 0x72b   :  { %v8591_v27 = vadd.f32 %v8537_v39, %v18740_v37  ;;  %v18881_v54 = vadd.f32 %v8964_v9, %v8590_v40  ;;  %14344 = vmatprep.mubr.msk.bf16.mxu0 %vm15114_vm0, %v18554_v41 }
 0x72c   :  { %v14078_v17 = vpop.f32.mrf.mxu0  ;;  %v14143_v36 = vpop.f32.mrf.mxu1 }
 0x72e   :  { %v8540_v14 = vpop.f32.mrf.mxu0  ;;  %v8969_v62 = vpop.f32.mrf.mxu1 }
 0x72f   :  { %v8592_v24 = vadd.f32 %v8540_v14, %v18748_v21  ;;  %v18886_v16 = vadd.f32 %v8969_v62, %v8591_v27 }
 0x730   :  { %v14079_v12 = vpop.f32.mrf.mxu0  ;;  %v14146_v3 = vpop.f32.mrf.mxu1 }
 0x732   :  { %v8545_v29 = vpop.f32.mrf.mxu0  ;;  %v8972_v0 = vpop.f32.mrf.mxu1  ;;  %14345 = vmatmul.mubr.bf16.gmra.mxu0 %v18337_v6 }
 0x733   :  { %v8593_v1 = vadd.f32 %v8545_v29, %v18756_v11  ;;  %v18890_v37 = vadd.f32 %v8972_v0, %v8592_v24  ;;  %14348 = vmatprep.mubr.msk.bf16.mxu0 %vm15114_vm0, %v18892_v31 }
 0x734   :  { %v14082_v41 = vpop.f32.mrf.mxu0  ;;  %v14147_v56 = vpop.f32.mrf.mxu1 }
 0x736   :  { %v8548_v21 = vpop.f32.mrf.mxu0  ;;  %v8977_v50 = vpop.f32.mrf.mxu1 }
 0x737   :  { %v8594_v18 = vadd.f32 %v8548_v21, %v18764_v47  ;;  %v18897_v20 = vadd.f32 %v8977_v50, %v8593_v1 }
 0x738   :  { %v14083_v45 = vpop.f32.mrf.mxu0  ;;  %v14150_v53 = vpop.f32.mrf.mxu1 }
 0x73a   :  { %v8553_v6 = vpop.f32.mrf.mxu0  ;;  %v8980_v26 = vpop.f32.mrf.mxu1  ;;  %14349 = vmatmul.mubr.bf16.gmra.mxu0 %v18342_v46 }
 0x73b   :  { %v8595_v11 = vadd.f32 %v8553_v6, %v18772_v2  ;;  %v18901_v7 = vadd.f32 %v8980_v26, %v8594_v18  ;;  %14352 = vmatprep.mubr.msk.bf16.mxu0 %vm15114_vm0, %v18892_v31 }
 0x73c   :  { %v14086_v58 = vpop.f32.mrf.mxu0  ;;  %v14151_v61 = vpop.f32.mrf.mxu1 }
 0x73e   :  { %v8556_v59 = vpop.f32.mrf.mxu0  ;;  %v8985_v10 = vpop.f32.mrf.mxu1 }
 0x73f   :  { %v8596_v47 = vadd.f32 %v8556_v59, %v18780_v22  ;;  %v18906_v34 = vadd.f32 %v8985_v10, %v8595_v11  ;;  %v19468_v59 = vld [vmem:[#allocation31_spill] sm:$0xff] }
 0x740   :  { %v14087_v55 = vpop.f32.mrf.mxu0  ;;  %v14154_v25 = vpop.f32.mrf.mxu1 }
 0x742   :  { %v8561_v40 = vpop.f32.mrf.mxu0  ;;  %v8988_v28 = vpop.f32.mrf.mxu1  ;;  %14353 = vmatmul.mubr.bf16.gmra.mxu0 %v18349_v63 }
 0x743   :  { %v8597_v46 = vadd.f32 %v8561_v40, %v18788_v35  ;;  %v18910_v2 = vadd.f32 %v8988_v28, %v8596_v47  ;;  %14356 = vmatprep.mubr.msk.bf16.mxu0 %vm15114_vm0, %v18892_v31 }
 0x744   :  { %v14090_v44 = vpop.f32.mrf.mxu0  ;;  %v14155_v39 = vpop.f32.mrf.mxu1 }
 0x746   :  { %v8564_v9 = vpop.f32.mrf.mxu0  ;;  %v8993_v27 = vpop.f32.mrf.mxu1 }
 0x747   :  { %v8598_v22 = vadd.f32 %v8564_v9, %v18796_v49  ;;  %v18915_v17 = vadd.f32 %v8993_v27, %v8597_v46 }
 0x748   :  { %v14091_v36 = vpop.f32.mrf.mxu0  ;;  %v14158_v14 = vpop.f32.mrf.mxu1 }
 0x74a   :  { %v8569_v62 = vpop.f32.mrf.mxu0  ;;  %v8996_v24 = vpop.f32.mrf.mxu1  ;;  %14357 = vmatmul.mubr.bf16.gmra.mxu0 %v18354_v32 }
 0x74b   :  { %v8599_v63 = vadd.f32 %v8569_v62, %v18803_v48  ;;  %v18919_v35 = vadd.f32 %v8996_v24, %v8598_v22  ;;  %14360 = vmatprep.mubr.msk.bf16.mxu0 %vm15114_vm0, %v18892_v31 }
 0x74c   :  { %v14094_v12 = vpop.f32.mrf.mxu0  ;;  %v14159_v3 = vpop.f32.mrf.mxu1 }
 0x74e   :  { %v8572_v29 = vpop.f32.mrf.mxu0  ;;  %v9001_v0 = vpop.f32.mrf.mxu1 }
 0x74f   :  { %v18923_v49 = vadd.f32 %v9001_v0, %v8599_v63 }
 0x750   :  { %v14095_v1 = vpop.f32.mrf.mxu0  ;;  %v14162_v41 = vpop.f32.mrf.mxu1 }
 0x752   :  { %v9004_v56 = vpop.f32.mrf.mxu1  ;;  %v9337_v21 = vpop.f32.mrf.mxu0  ;;  %14361 = vmatmul.mubr.bf16.gmra.mxu0 %v18368_v42 }
 0x753   :  { %v9439_v32 = vadd.f32 %v9337_v21, %v18813_v23  ;;  %14364 = vmatprep.mubr.msk.bf16.mxu0 %vm15114_vm0, %v18892_v31 }
 0x754   :  { %v14163_v48 = vpop.f32.mrf.mxu1  ;;  %v14182_v50 = vpop.f32.mrf.mxu0 }
 0x756   :  { %v9340_v18 = vpop.f32.mrf.mxu0  ;;  %v9604_v45 = vpop.f32.mrf.mxu1 }
 0x757   :  { %v9440_v53 = vadd.f32 %v9340_v18, %v18818_v33  ;;  %v18930_v6 = vadd.f32 %v9604_v45, %v9439_v32 }
 0x758   :  { %v14183_v26 = vpop.f32.mrf.mxu0  ;;  %v14250_v11 = vpop.f32.mrf.mxu1 }
 0x75a   :  { %v9345_v58 = vpop.f32.mrf.mxu0  ;;  %v9607_v61 = vpop.f32.mrf.mxu1  ;;  %14365 = vmatmul.mubr.bf16.gmra.mxu0 %v19468_v59 }
 0x75b   :  { %v9441_v42 = vadd.f32 %v9345_v58, %v18823_v19  ;;  %v18934_v23 = vadd.f32 %v9607_v61, %v9440_v53  ;;  %14436 = vmatprep.mubr.msk.bf16.mxu0 %vm15114_vm0, %v18892_v31 }
 0x75c   :  { %v14186_v10 = vpop.f32.mrf.mxu0  ;;  %v14251_v47 = vpop.f32.mrf.mxu1 }
 0x75e   :  { %v9348_v55 = vpop.f32.mrf.mxu0  ;;  %v9612_v25 = vpop.f32.mrf.mxu1 }
 0x75f   :  { %v9442_v33 = vadd.f32 %v9348_v55, %v18827_v4  ;;  %v18939_v40 = vadd.f32 %v9612_v25, %v9441_v42 }
 0x760   :  { %v14187_v28 = vpop.f32.mrf.mxu0  ;;  %v14254_v46 = vpop.f32.mrf.mxu1 }
 0x762   :  { %v9353_v44 = vpop.f32.mrf.mxu0  ;;  %v9615_v39 = vpop.f32.mrf.mxu1 }
 0x763   :  { %v9443_v9 = vadd.f32 %v9353_v44, %v18832_v43  ;;  %v18942_v19 = vadd.f32 %v9615_v39, %v9442_v33 }
 0x764   :  { %v14190_v27 = vpop.f32.mrf.mxu0  ;;  %v14255_v22 = vpop.f32.mrf.mxu1 }
 0x766   :  { %v9356_v36 = vpop.f32.mrf.mxu0  ;;  %v9620_v31 = vpop.f32.mrf.mxu1 }
 0x767   :  { %v9444_v14 = vadd.f32 %v9356_v36, %v18836_v52  ;;  %v18945_v62 = vadd.f32 %v9620_v31, %v9443_v9 }
 0x768   :  { %v14191_v24 = vpop.f32.mrf.mxu0  ;;  %v14258_v4 = vpop.f32.mrf.mxu1 }
 0x76a   :  { %v9361_v63 = vpop.f32.mrf.mxu0  ;;  %v9623_v12 = vpop.f32.mrf.mxu1 }
 0x76b   :  { %v9445_v3 = vadd.f32 %v9361_v63, %v18841_v51  ;;  %v18948_v29 = vadd.f32 %v9623_v12, %v9444_v14 }
 0x76c   :  { %v14194_v0 = vpop.f32.mrf.mxu0  ;;  %v14259_v43 = vpop.f32.mrf.mxu1 }
 0x76e   :  { %v9364_v1 = vpop.f32.mrf.mxu0  ;;  %v9628_v41 = vpop.f32.mrf.mxu1 }
 0x76f   :  { %v9446_v56 = vadd.f32 %v9364_v1, %v18845_v60  ;;  %v18951_v21 = vadd.f32 %v9628_v41, %v9445_v3 }
 0x770   :  { %v14195_v32 = vpop.f32.mrf.mxu0  ;;  %v14262_v52 = vpop.f32.mrf.mxu1 }
 0x772   :  { %v9369_v48 = vpop.f32.mrf.mxu0  ;;  %v9631_v50 = vpop.f32.mrf.mxu1 }
 0x773   :  { %v9447_v18 = vadd.f32 %v9369_v48, %v18850_v30  ;;  %v18954_v45 = vadd.f32 %v9631_v50, %v9446_v56 }
 0x774   :  { %v14198_v53 = vpop.f32.mrf.mxu0  ;;  %v14263_v51 = vpop.f32.mrf.mxu1 }
 0x776   :  { %v9372_v26 = vpop.f32.mrf.mxu0  ;;  %v9636_v11 = vpop.f32.mrf.mxu1 }
 0x777   :  { %v9448_v58 = vadd.f32 %v9372_v26, %v18854_v8  ;;  %v18957_v61 = vadd.f32 %v9636_v11, %v9447_v18 }
 0x778   :  { %v14199_v59 = vpop.f32.mrf.mxu0  ;;  %v14266_v60 = vpop.f32.mrf.mxu1 }
 0x77a   :  { %v9377_v42 = vpop.f32.mrf.mxu0  ;;  %v9639_v10 = vpop.f32.mrf.mxu1 }
 0x77b   :  { %v9449_v47 = vadd.f32 %v9377_v42, %v18859_v5  ;;  %v18960_v55 = vadd.f32 %v9639_v10, %v9448_v58 }
 0x77c   :  { %v14202_v25 = vpop.f32.mrf.mxu0  ;;  %v14267_v30 = vpop.f32.mrf.mxu1 }
 0x77e   :  { %v9380_v33 = vpop.f32.mrf.mxu0  ;;  %v9644_v28 = vpop.f32.mrf.mxu1 }
 0x77f   :  { %v9450_v46 = vadd.f32 %v9380_v33, %v18863_v13  ;;  %v18963_v44 = vadd.f32 %v9644_v28, %v9449_v47 }
 0x780   :  { %v14203_v39 = vpop.f32.mrf.mxu0  ;;  %v14270_v8 = vpop.f32.mrf.mxu1 }
 0x782   :  { %v9385_v9 = vpop.f32.mrf.mxu0  ;;  %v9647_v27 = vpop.f32.mrf.mxu1 }
 0x783   :  { %v9451_v22 = vadd.f32 %v9385_v9, %v18868_v15  ;;  %v18966_v36 = vadd.f32 %v9647_v27, %v9450_v46 }
 0x784   :  { %v14206_v31 = vpop.f32.mrf.mxu0  ;;  %v14271_v5 = vpop.f32.mrf.mxu1 }
 0x786   :  { %v9388_v14 = vpop.f32.mrf.mxu0  ;;  %v9652_v24 = vpop.f32.mrf.mxu1 }
 0x787   :  { %v9452_v4 = vadd.f32 %v9388_v14, %v18872_v38  ;;  %v18969_v63 = vadd.f32 %v9652_v24, %v9451_v22 }
 0x788   :  { %v14207_v12 = vpop.f32.mrf.mxu0  ;;  %v14274_v13 = vpop.f32.mrf.mxu1 }
 0x78a   :  { %v9393_v3 = vpop.f32.mrf.mxu0  ;;  %v9655_v0 = vpop.f32.mrf.mxu1 }
 0x78b   :  { %v9453_v43 = vadd.f32 %v9393_v3, %v18877_v57  ;;  %v18972_v1 = vadd.f32 %v9655_v0, %v9452_v4 }
 0x78c   :  { %v14210_v41 = vpop.f32.mrf.mxu0  ;;  %v14275_v15 = vpop.f32.mrf.mxu1 }
 0x78e   :  { %v9396_v56 = vpop.f32.mrf.mxu0  ;;  %v9660_v32 = vpop.f32.mrf.mxu1 }
 0x78f   :  { %v9454_v52 = vadd.f32 %v9396_v56, %v18881_v54  ;;  %v18975_v48 = vadd.f32 %v9660_v32, %v9453_v43 }
 0x790   :  { %v14211_v50 = vpop.f32.mrf.mxu0  ;;  %v14278_v38 = vpop.f32.mrf.mxu1 }
 0x792   :  { %v9401_v18 = vpop.f32.mrf.mxu0  ;;  %v9663_v53 = vpop.f32.mrf.mxu1 }
 0x793   :  { %v9455_v51 = vadd.f32 %v9401_v18, %v18886_v16  ;;  %v18978_v26 = vadd.f32 %v9663_v53, %v9454_v52 }
 0x794   :  { %v14214_v11 = vpop.f32.mrf.mxu0  ;;  %v14279_v57 = vpop.f32.mrf.mxu1 }
 0x796   :  { %v9404_v58 = vpop.f32.mrf.mxu0  ;;  %v9668_v59 = vpop.f32.mrf.mxu1 }
 0x797   :  { %v9456_v60 = vadd.f32 %v9404_v58, %v18890_v37  ;;  %v18981_v42 = vadd.f32 %v9668_v59, %v9455_v51 }
 0x798   :  { %v14215_v10 = vpop.f32.mrf.mxu0  ;;  %v14282_v54 = vpop.f32.mrf.mxu1 }
 0x79a   :  { %v9409_v47 = vpop.f32.mrf.mxu0  ;;  %v9671_v25 = vpop.f32.mrf.mxu1 }
 0x79b   :  { %v9457_v30 = vadd.f32 %v9409_v47, %v18897_v20  ;;  %v18984_v33 = vadd.f32 %v9671_v25, %v9456_v60 }
 0x79c   :  { %v14218_v28 = vpop.f32.mrf.mxu0  ;;  %v14283_v16 = vpop.f32.mrf.mxu1 }
 0x79e   :  { %v9412_v46 = vpop.f32.mrf.mxu0  ;;  %v9676_v39 = vpop.f32.mrf.mxu1 }
 0x79f   :  { %v9458_v8 = vadd.f32 %v9412_v46, %v18901_v7  ;;  %v18987_v9 = vadd.f32 %v9676_v39, %v9457_v30 }
 0x7a0   :  { %v14219_v27 = vpop.f32.mrf.mxu0  ;;  %v14286_v37 = vpop.f32.mrf.mxu1 }
 0x7a1   :  { %v14888_v27 = vld [vmem:[%s19258_s2 + $0x4] ss:$8 sps:$4 sm:$0xff]  }
 0x7a2   :  { %v9417_v22 = vpop.f32.mrf.mxu0  ;;  %v9679_v31 = vpop.f32.mrf.mxu1  ;;  %v10091_v37 = vld [vmem:[%s19257_s1] sm:$0xff]  ;;  %11605 = vmatprep.mubr.msk.bf16.mxu1 %vm10480_vm1, %v14888_v27 }
 0x7a3   :  { %v9459_v5 = vadd.f32 %v9417_v22, %v18906_v34  ;;  %v18990_v14 = vadd.f32 %v9679_v31, %v9458_v8  ;;  %vm10116_vm2 = vcmp.gt.f32.partialorder %v10091_v37, 0.0  ;;  %v10097_v37 = vld [vmem:[%s19257_s1 + $0x30] sm:$0xff] }
 0x7a4   :  { %v14222_v24 = vpop.f32.mrf.mxu0  ;;  %v14287_v20 = vpop.f32.mrf.mxu1  ;;  %vm10122_vm13 = vcmp.gt.f32.partialorder %v10097_v37, 0.0 }
 0x7a6   :  { %v9420_v4 = vpop.f32.mrf.mxu0  ;;  %v9684_v12 = vpop.f32.mrf.mxu1 }
 0x7a7   :  { %v9460_v13 = vadd.f32 %v9420_v4, %v18910_v2  ;;  %v18993_v3 = vadd.f32 %v9684_v12, %v9459_v5 }
 0x7a8   :  { %v14223_v0 = vpop.f32.mrf.mxu0  ;;  %v14290_v7 = vpop.f32.mrf.mxu1 }
 0x7aa   :  { %v9425_v43 = vpop.f32.mrf.mxu0  ;;  %v9687_v41 = vpop.f32.mrf.mxu1 }
 0x7ab   :  { %v9461_v15 = vadd.f32 %v9425_v43, %v18915_v17  ;;  %v18996_v56 = vadd.f32 %v9687_v41, %v9460_v13 }
 0x7ac   :  { %v14226_v32 = vpop.f32.mrf.mxu0  ;;  %v14291_v34 = vpop.f32.mrf.mxu1 }
 0x7ad   :  { %v10094_v34 = vld [vmem:[%s19257_s1 + $0x18] sm:$0xff] }
 0x7ae   :  { %v9428_v52 = vpop.f32.mrf.mxu0  ;;  %v9692_v50 = vpop.f32.mrf.mxu1  ;;  %vm10119_vm5 = vcmp.gt.f32.partialorder %v10094_v34, 0.0 }
 0x7af   :  { %v9462_v38 = vadd.f32 %v9428_v52, %v18919_v35  ;;  %v18999_v18 = vadd.f32 %v9692_v50, %v9461_v15  ;;  %v19009_v35 = vld [vmem:[%s19264_s8] ss:$0 sm:$0xff]  ;;  %v10093_v15 = vld [vmem:[%s19257_s1 + $0x10] sm:$0xff] }
 0x7b0   :  { %v14227_v53 = vpop.f32.mrf.mxu0  ;;  %v14294_v2 = vpop.f32.mrf.mxu1  ;;  %vm10118_vm4 = vcmp.gt.f32.partialorder %v10093_v15, 0.0 }
 0x7b2   :  { %v9433_v51 = vpop.f32.mrf.mxu0  ;;  %v9695_v11 = vpop.f32.mrf.mxu1 }
 0x7b3   :  { %v9463_v57 = vadd.f32 %v9433_v51, %v18923_v49  ;;  %v19002_v58 = vadd.f32 %v9695_v11, %v9462_v38 }
 0x7b4   :  { %v14230_v59 = vpop.f32.mrf.mxu0  ;;  %v14295_v17 = vpop.f32.mrf.mxu1 }
 0x7b5   :  { %v10095_v17 = vld [vmem:[%s19257_s1 + $0x20] sm:$0xff] }
 0x7b6   :  { %v9436_v60 = vpop.f32.mrf.mxu0  ;;  %v9700_v10 = vpop.f32.mrf.mxu1  ;;  %vm10120_vm6 = vcmp.gt.f32.partialorder %v10095_v17, 0.0  ;;  %v10102_v17 = vld [vmem:[%s19257_s1 + $0x58] sm:$0xff] }
 0x7b7   :  { %v19004_v54 = vadd.f32 %v9700_v10, %v9463_v57  ;;  %vm10127_vm9 = vcmp.gt.f32.partialorder %v10102_v17, 0.0 }
 0x7b8   :  { %v14231_v47 = vpop.f32.mrf.mxu0  ;;  %v14298_v25 = vpop.f32.mrf.mxu1 }
 0x7b9   :  { %v10096_v47 = vld [vmem:[%s19257_s1 + $0x28] sm:$0xff] }
 0x7ba   :  { %v9907_v30 = vpop.f32.mrf.mxu0  ;;  %v9703_v28 = vpop.f32.mrf.mxu1  ;;  %vm10121_vm12 = vcmp.gt.f32.partialorder %v10096_v47, 0.0 }
 0x7bb   :  { %v10009_v16 = vadd.f32 %v9907_v30, %v18930_v6  ;;  %v10092_v6 = vld [vmem:[%s19257_s1 + $0x8] sm:$0xff] }
 0x7bc   :  { %v14318_v49 = vpop.f32.mrf.mxu0  ;;  %v14299_v46 = vpop.f32.mrf.mxu1  ;;  %vm10117_vm3 = vcmp.gt.f32.partialorder %v10092_v6, 0.0 }
 0x7bd   :  { %v10041_v39 = vadd.f32 %v19009_v35, %v10009_v16 }
 0x7be   :  { %v9910_v8 = vpop.f32.mrf.mxu0 }
 0x7bf   :  { %v10010_v22 = vadd.f32 %v9910_v8, %v18934_v23  ;;  %v10066_v5 = vmax.f32 %v10041_v39, 0.0 }
 0x7c0   :  { %v14319_v31 = vpop.f32.mrf.mxu0 }
 0x7c1   :  { %v10042_v24 = vadd.f32 %v19009_v35, %v10010_v22  ;;  %v10141_v0 = vsel %vm10116_vm2, %v10066_v5, 0.0  ;;  %v10098_v31 = vld [vmem:[%s19257_s1 + $0x38] sm:$0xff] }
 0x7c2   :  { %v9915_v20 = vpop.f32.mrf.mxu0  ;;  %vm10123_vm14 = vcmp.gt.f32.partialorder %v10098_v31, 0.0 }
 0x7c3   :  { %v10067_v4 = vmax.f32 %v10042_v24, 0.0  ;;  %v10011_v12 = vadd.f32 %v9915_v20, %v18939_v40 }
 0x7c4   :  { %v14322_v13 = vpop.f32.mrf.mxu0 }
 0x7c5   :  { %v10142_v7 = vsel %vm10117_vm3, %v10067_v4, 0.0  ;;  %v10043_v23 = vadd.f32 %v19009_v35, %v10011_v12 }
 0x7c6   :  { %v11838_v43 = vpack.c.bf16 %v10142_v7, %v10141_v0  ;;  %v9918_v41 = vpop.f32.mrf.mxu0 }
 0x7c7   :  { %v10012_v32 = vadd.f32 %v9918_v41, %v18942_v19  ;;  %v10068_v40 = vmax.f32 %v10043_v23, 0.0 }
 0x7c8   :  { %11919 = vst [vmem:[#allocation3 + $0x8] sm:$0xff] %v11838_v43   ;;  %v14323_v52 = vpop.f32.mrf.mxu0  ;;  %v10099_v43 = vld [vmem:[%s19257_s1 + $0x40] sm:$0xff] }
 0x7c9   :  { %v10044_v50 = vadd.f32 %v19009_v35, %v10012_v32  ;;  %v10143_v11 = vsel %vm10118_vm4, %v10068_v40, 0.0  ;;  %v10100_v32 = vld [vmem:[%s19257_s1 + $0x48] sm:$0xff]  ;;  %vm10124_vm15 = vcmp.gt.f32.partialorder %v10099_v43, 0.0 }
 0x7ca   :  { %v9923_v38 = vpop.f32.mrf.mxu0  ;;  %vm10125_vm7 = vcmp.gt.f32.partialorder %v10100_v32, 0.0 }
 0x7cb   :  { %v10069_v53 = vmax.f32 %v10044_v50, 0.0  ;;  %v10013_v2 = vadd.f32 %v9923_v38, %v18945_v62 }
 0x7cc   :  { %v14326_v51 = vpop.f32.mrf.mxu0 }
 0x7cd   :  { %v10144_v57 = vsel %vm10119_vm5, %v10069_v53, 0.0  ;;  %v10045_v19 = vadd.f32 %v19009_v35, %v10013_v2 }
 0x7ce   :  { %v11843_v59 = vpack.c.bf16 %v10144_v57, %v10143_v11  ;;  %v9926_v60 = vpop.f32.mrf.mxu0  ;;  %v10101_v57 = vld [vmem:[%s19257_s1 + $0x50] sm:$0xff] }
 0x7cf   :  { %v10014_v10 = vadd.f32 %v9926_v60, %v18948_v29  ;;  %v10070_v62 = vmax.f32 %v10045_v19, 0.0  ;;  %vm10126_vm8 = vcmp.gt.f32.partialorder %v10101_v57, 0.0 }
 0x7d0   :  { %11920 = vst [vmem:[#allocation3 + $0x10] sm:$0xff] %v11843_v59   ;;  %v14327_v25 = vpop.f32.mrf.mxu0 }
 0x7d1   :  { %v10046_v30 = vadd.f32 %v19009_v35, %v10014_v10  ;;  %v10145_v39 = vsel %vm10120_vm6, %v10070_v62, 0.0 }
 0x7d2   :  { %v9931_v28 = vpop.f32.mrf.mxu0 }
 0x7d3   :  { %v10071_v16 = vmax.f32 %v10046_v30, 0.0  ;;  %v10015_v49 = vadd.f32 %v9931_v28, %v18951_v21 }
 0x7d4   :  { %v14330_v46 = vpop.f32.mrf.mxu0 }
 0x7d5   :  { %v10146_v8 = vsel %vm10121_vm12, %v10071_v16, 0.0  ;;  %v10047_v29 = vadd.f32 %v19009_v35, %v10015_v49  ;;  %v10103_v46 = vld [vmem:[%s19257_s1 + $0x60] sm:$0xff] }
 0x7d6   :  { %v11848_v27 = vpack.c.bf16 %v10146_v8, %v10145_v39  ;;  %v9934_v22 = vpop.f32.mrf.mxu0  ;;  %vm10128_vm10 = vcmp.gt.f32.partialorder %v10103_v46, 0.0 }
 0x7d7   :  { %v10016_v6 = vadd.f32 %v9934_v22, %v18954_v45  ;;  %v10072_v21 = vmax.f32 %v10047_v29, 0.0  ;;  %v10104_v29 = vld [vmem:[%s19257_s1 + $0x68] sm:$0xff] }
 0x7d8   :  { %11921 = vst [vmem:[#allocation3 + $0x18] sm:$0xff] %v11848_v27   ;;  %v14331_v5 = vpop.f32.mrf.mxu0  ;;  %vm10129_vm11 = vcmp.gt.f32.partialorder %v10104_v29, 0.0 }
 0x7d9   :  { %v10048_v24 = vadd.f32 %v19009_v35, %v10016_v6  ;;  %v10147_v0 = vsel %vm10122_vm13, %v10072_v21, 0.0 }
 0x7da   :  { %v9939_v20 = vpop.f32.mrf.mxu0 }
 0x7db   :  { %v10073_v4 = vmax.f32 %v10048_v24, 0.0  ;;  %v10017_v12 = vadd.f32 %v9939_v20, %v18957_v61 }
 0x7dc   :  { %v14334_v13 = vpop.f32.mrf.mxu0 }
 0x7dd   :  { %v10148_v7 = vsel %vm10123_vm14, %v10073_v4, 0.0  ;;  %v10049_v45 = vadd.f32 %v19009_v35, %v10017_v12  ;;  %v10105_v4 = vld [vmem:[%s19257_s1 + $0x70] sm:$0xff] }
 0x7de   :  { %v11853_v23 = vpack.c.bf16 %v10148_v7, %v10147_v0  ;;  %v9942_v41 = vpop.f32.mrf.mxu0  ;;  %v10106_v0 = vld [vmem:[%s19257_s1 + $0x78] sm:$0xff]  ;;  %vm10130_vm2 = vcmp.gt.f32.partialorder %v10105_v4, 0.0 }
 0x7df   :  { %v10018_v15 = vadd.f32 %v9942_v41, %v18960_v55  ;;  %v10074_v61 = vmax.f32 %v10049_v45, 0.0  ;;  %vm10131_vm3 = vcmp.gt.f32.partialorder %v10106_v0, 0.0 }
 0x7e0   :  { %11922 = vst [vmem:[#allocation3 + $0x20] sm:$0xff] %v11853_v23   ;;  %v14335_v34 = vpop.f32.mrf.mxu0 }
 0x7e1   :  { %v10050_v52 = vadd.f32 %v19009_v35, %v10018_v15  ;;  %v10149_v2 = vsel %vm10124_vm15, %v10074_v61, 0.0 }
 0x7e2   :  { %v9947_v40 = vpop.f32.mrf.mxu0 }
 0x7e3   :  { %v10075_v50 = vmax.f32 %v10050_v52, 0.0  ;;  %v10019_v38 = vadd.f32 %v9947_v40, %v18963_v44  ;;  %v10107_v52 = vld [vmem:[%s19257_s1 + $0x80] sm:$0xff] }
 0x7e4   :  { %v14338_v53 = vpop.f32.mrf.mxu0  ;;  %vm10132_vm4 = vcmp.gt.f32.partialorder %v10107_v52, 0.0  ;;  %v10115_v52 = vld [vmem:[%s19257_s1 + $0xc0] sm:$0xff] }
 0x7e5   :  { %v10150_v51 = vsel %vm10125_vm7, %v10075_v50, 0.0  ;;  %v10051_v55 = vadd.f32 %v19009_v35, %v10019_v38  ;;  %v10108_v38 = vld [vmem:[%s19257_s1 + $0x88] sm:$0xff] }
 0x7e6   :  { %v11858_v11 = vpack.c.bf16 %v10150_v51, %v10149_v2  ;;  %v9950_v19 = vpop.f32.mrf.mxu0  ;;  %vm10133_vm5 = vcmp.gt.f32.partialorder %v10108_v38, 0.0 }
 0x7e7   :  { %v10020_v59 = vadd.f32 %v9950_v19, %v18966_v36  ;;  %v10076_v44 = vmax.f32 %v10051_v55, 0.0 }
 0x7e8   :  { %11923 = vst [vmem:[#allocation3 + $0x28] sm:$0xff] %v11858_v11   ;;  %v14339_v60 = vpop.f32.mrf.mxu0 }
 0x7e9   :  { %v10052_v10 = vadd.f32 %v19009_v35, %v10020_v59  ;;  %v10151_v28 = vsel %vm10126_vm8, %v10076_v44, 0.0  ;;  %v10109_v60 = vld [vmem:[%s19257_s1 + $0x90] sm:$0xff]  ;;  %vm10140_vm8 = vcmp.gt.f32.partialorder %v10115_v52, 0.0 }
 0x7ea   :  { %v9955_v47 = vpop.f32.mrf.mxu0  ;;  %vm10134_vm6 = vcmp.gt.f32.partialorder %v10109_v60, 0.0 }
 0x7eb   :  { %v10077_v25 = vmax.f32 %v10052_v10, 0.0  ;;  %v10021_v62 = vadd.f32 %v9955_v47, %v18969_v63  ;;  %v10110_v10 = vld [vmem:[%s19257_s1 + $0x98] sm:$0xff] }
 0x7ec   :  { %v14342_v30 = vpop.f32.mrf.mxu0  ;;  %vm10135_vm12 = vcmp.gt.f32.partialorder %v10110_v10, 0.0 }
 0x7ed   :  { %v10152_v16 = vsel %vm10127_vm9, %v10077_v25, 0.0  ;;  %v10053_v36 = vadd.f32 %v19009_v35, %v10021_v62  ;;  %vm10505_vm9 = vcmask 1043456  }
 0x7ee   :  { %v11863_v49 = vpack.c.bf16 %v10152_v16, %v10151_v28  ;;  %v9958_v39 = vpop.f32.mrf.mxu0  ;;  %v19469_v16 = vmov 0  }
 0x7ef   :  { %v10022_v8 = vadd.f32 %v9958_v39, %v18972_v1  ;;  %v10078_v63 = vmax.f32 %v10053_v36, 0.0  ;;  %v14876_v4 = vld [vmem:[#allocation3 + $0x28] sm:$0xff]  }
 0x7f0   :  { %11924 = vst [vmem:[#allocation3 + $0x30] sm:$0xff] %v11863_v49   ;;  %v14343_v27 = vpop.f32.mrf.mxu0 }
 0x7f1   :  { %v10054_v37 = vadd.f32 %v19009_v35, %v10022_v8  ;;  %v10153_v21 = vsel %vm10128_vm10, %v10078_v63, 0.0  ;;  %v10111_v63 = vld [vmem:[%s19257_s1 + $0xa0] sm:$0xff] }
 0x7f2   :  { %v9963_v22 = vpop.f32.mrf.mxu0  ;;  %vm10136_vm13 = vcmp.gt.f32.partialorder %v10111_v63, 0.0  ;;  %v14904_v63 = vld [vmem:[%s19258_s2 + $0x64] ss:$8 sps:$4 sm:$0xff]  }
 0x7f3   :  { %v10079_v6 = vmax.f32 %v10054_v37, 0.0  ;;  %v10023_v31 = vadd.f32 %v9963_v22, %v18975_v48  ;;  %v10112_v22 = vld [vmem:[%s19257_s1 + $0xa8] sm:$0xff] }
 0x7f4   :  { %v14346_v5 = vpop.f32.mrf.mxu0  ;;  %vm10137_vm14 = vcmp.gt.f32.partialorder %v10112_v22, 0.0  ;;  %v14907_v22 = vld [vmem:[%s19258_s2 + $0x74] ss:$8 sps:$4 sm:$0xff]  }
 0x7f5   :  { %v10154_v24 = vsel %vm10129_vm11, %v10079_v6, 0.0  ;;  %v10055_v1 = vadd.f32 %v19009_v35, %v10023_v31 }
 0x7f6   :  { %v11868_v20 = vpack.c.bf16 %v10154_v24, %v10153_v21  ;;  %v9966_v12 = vpop.f32.mrf.mxu0 }
 0x7f7   :  { %v10024_v13 = vadd.f32 %v9966_v12, %v18978_v26  ;;  %v10080_v48 = vmax.f32 %v10055_v1, 0.0  ;;  %v14875_v6 = vld [vmem:[#allocation3 + $0x30] sm:$0xff]  }
 0x7f8   :  { %11925 = vst [vmem:[#allocation3 + $0x38] sm:$0xff] %v11868_v20   ;;  %v14347_v7 = vpop.f32.mrf.mxu0 }
 0x7f9   :  { %v10056_v45 = vadd.f32 %v19009_v35, %v10024_v13  ;;  %v10155_v32 = vsel %vm10130_vm2, %v10080_v48, 0.0  ;;  %v10113_v48 = vld [vmem:[%s19257_s1 + $0xb0] sm:$0xff] }
 0x7fa   :  { %v9971_v23 = vpop.f32.mrf.mxu0  ;;  %vm10138_vm15 = vcmp.gt.f32.partialorder %v10113_v48, 0.0 }
 0x7fb   :  { %v10081_v43 = vmax.f32 %v10056_v45, 0.0  ;;  %v10025_v41 = vadd.f32 %v9971_v23, %v18981_v42  ;;  %v10114_v23 = vld [vmem:[%s19257_s1 + $0xb8] sm:$0xff] }
 0x7fc   :  { %v14350_v15 = vpop.f32.mrf.mxu0  ;;  %vm10139_vm7 = vcmp.gt.f32.partialorder %v10114_v23, 0.0 }
 0x7fd   :  { %v10156_v34 = vsel %vm10131_vm3, %v10081_v43, 0.0  ;;  %v10057_v26 = vadd.f32 %v19009_v35, %v10025_v41  ;;  %v14877_v43 = vld [vmem:[#allocation3 + $0x20] sm:$0xff]  }
 0x7fe   :  { %v11873_v61 = vpack.c.bf16 %v10156_v34, %v10155_v32  ;;  %v9974_v40 = vpop.f32.mrf.mxu0 }
 0x7ff   :  { %v10026_v50 = vadd.f32 %v9974_v40, %v18984_v33  ;;  %v10082_v42 = vmax.f32 %v10057_v26, 0.0  ;;  %v14874_v46 = vld [vmem:[#allocation3 + $0x38] sm:$0xff]  }
 0x800   :  { %11926 = vst [vmem:[#allocation3 + $0x40] sm:$0xff] %v11873_v61   ;;  %v14351_v53 = vpop.f32.mrf.mxu0 }
 0x801   :  { %v10058_v2 = vadd.f32 %v19009_v35, %v10026_v50  ;;  %v10157_v19 = vsel %vm10132_vm4, %v10082_v42, 0.0 }
 0x802   :  { %v9979_v51 = vpop.f32.mrf.mxu0 }
 0x803   :  { %v10083_v55 = vmax.f32 %v10058_v2, 0.0  ;;  %v10027_v11 = vadd.f32 %v9979_v51, %v18987_v9 }
 0x804   :  { %v14354_v57 = vpop.f32.mrf.mxu0 }
 0x805   :  { %v10158_v59 = vsel %vm10133_vm5, %v10083_v55, 0.0  ;;  %v10059_v33 = vadd.f32 %v19009_v35, %v10027_v11  ;;  %v14879_v55 = vld [vmem:[#allocation3 + $0x10] sm:$0xff]  }
 0x806   :  { %v11878_v17 = vpack.c.bf16 %v10158_v59, %v10157_v19  ;;  %v9982_v44 = vpop.f32.mrf.mxu0  ;;  %v14880_v19 = vld [vmem:[#allocation3 + $0x8] sm:$0xff]  }
 0x807   :  { %v10028_v47 = vadd.f32 %v9982_v44, %v18990_v14  ;;  %v14873_v25 = vld [vmem:[#allocation3 + $0x40] sm:$0xff]   ;;  %v10084_v62 = vmax.f32 %v10059_v33, 0.0  ;;  %v14910_v44 = vld [vmem:[#allocation9 + $0x38] sm:$0xff]  }
 0x808   :  { %11927 = vst [vmem:[#allocation3 + $0x48] sm:$0xff] %v11878_v17   ;;  %v14355_v9 = vpop.f32.mrf.mxu0  ;;  %10510 = vmatpush1.bf16.msra.mxu1 %v14873_v25  ;;  %v14889_v25 = vld [vmem:[%s19258_s2 + $0x14] ss:$8 sps:$4 sm:$0xff]  }
 0x809   :  { %v10060_v30 = vadd.f32 %v19009_v35, %v10028_v47  ;;  %10511 = vmatprep.subr.bf16.mxu1 %v19469_v16  ;;  %v10159_v8 = vsel %vm10134_vm6, %v10084_v62, 0.0  ;;  %v14886_v47 = vld [vmem:[%s19258_s2] ss:$8 sps:$4 sm:$0xff]   ;;  %v14912_v62 = vld [vmem:[#allocation9 + $0x28] sm:$0xff]  }
 0x80a   :  { %v9987_v28 = vpop.f32.mrf.mxu0  ;;  %v14911_v9 = vld [vmem:[#allocation9 + $0x30] sm:$0xff]  }
 0x80b   :  { %v10085_v36 = vmax.f32 %v10060_v30, 0.0  ;;  %v10029_v49 = vadd.f32 %v9987_v28, %v18993_v3  ;;  %v14891_v30 = vld [vmem:[%s19258_s2 + $0x10] ss:$8 sps:$4 sm:$0xff]   ;;  %v14892_v28 = vld [vmem:[%s19258_s2 + $0x24] ss:$8 sps:$4 sm:$0xff]  }
 0x80c   :  { %v14358_v39 = vpop.f32.mrf.mxu0  ;;  %10512 = vmatpush1.bf16.msra.mxu1 %v14874_v46  ;;  %v14895_v46 = vld [vmem:[%s19258_s2 + $0x34] ss:$8 sps:$4 sm:$0xff]  }
 0x80d   :  { %v10160_v29 = vsel %vm10135_vm12, %v10085_v36, 0.0  ;;  %v10061_v14 = vadd.f32 %v19009_v35, %v10029_v49  ;;  %10513 = vmatprep.subr.bf16.mxu1 %v19469_v16  ;;  %v14914_v36 = vld [vmem:[#allocation9 + $0x18] sm:$0xff]   ;;  %v14897_v39 = vld [vmem:[%s19258_s2 + $0x30] ss:$8 sps:$4 sm:$0xff]  }
 0x80e   :  { %v11883_v27 = vpack.c.bf16 %v10160_v29, %v10159_v8  ;;  %v9990_v37 = vpop.f32.mrf.mxu0  ;;  %v14894_v49 = vld [vmem:[%s19258_s2 + $0x20] ss:$8 sps:$4 sm:$0xff]   ;;  %v14898_v8 = vld [vmem:[%s19258_s2 + $0x44] ss:$8 sps:$4 sm:$0xff]  }
 0x80f   :  { %v10030_v3 = vadd.f32 %v9990_v37, %v18996_v56  ;;  %v10086_v5 = vmax.f32 %v10061_v14, 0.0  ;;  %v14885_v10 = vld [vmem:[#allocation3 + $0x48] sm:$0xff]  }
 0x810   :  { %11928 = vst [vmem:[#allocation3 + $0x50] sm:$0xff] %v11883_v27   ;;  %v14359_v31 = vpop.f32.mrf.mxu0  ;;  %10514 = vmatpush1.bf16.msra.mxu1 %v14875_v6  ;;  %v14900_v29 = vld [vmem:[%s19258_s2 + $0x40] ss:$8 sps:$4 sm:$0xff]   ;;  %v14901_v14 = vld [vmem:[%s19258_s2 + $0x54] ss:$8 sps:$4 sm:$0xff]  }
 0x811   :  { %v10062_v21 = vadd.f32 %v19009_v35, %v10030_v3  ;;  %10515 = vmatprep.subr.bf16.mxu1 %v19469_v16  ;;  %v10161_v13 = vsel %vm10136_vm13, %v10086_v5, 0.0  ;;  %v14903_v27 = vld [vmem:[%s19258_s2 + $0x50] ss:$8 sps:$4 sm:$0xff]   ;;  %v14906_v37 = vld [vmem:[%s19258_s2 + $0x60] ss:$8 sps:$4 sm:$0xff]  }
 0x812   :  { %v9995_v24 = vpop.f32.mrf.mxu0  ;;  %v14909_v3 = vld [vmem:[%s19258_s2 + $0x70] ss:$8 sps:$4 sm:$0xff]   ;;  %v14915_v6 = vld [vmem:[#allocation9 + $0x10] sm:$0xff]  }
 0x813   :  { %v10087_v1 = vmax.f32 %v10062_v21, 0.0  ;;  %v10031_v20 = vadd.f32 %v9995_v24, %v18999_v18  ;;  %v14916_v31 = vld [vmem:[#allocation9 + $0x8] sm:$0xff]   ;;  %v14917_v5 = vld [vmem:[#allocation9] sm:$0xff]   ;;  %v19204_v21 = vld [vmem:[#allocation4] sm:$0xff] }
 0x814   :  { %v14362_v12 = vpop.f32.mrf.mxu0  ;;  %10516 = vmatpush1.bf16.msra.mxu1 %v14876_v4 }
 0x815   :  { %v10162_v0 = vsel %vm10137_vm14, %v10087_v1, 0.0  ;;  %v10063_v56 = vadd.f32 %v19009_v35, %v10031_v20  ;;  %10517 = vmatprep.subr.bf16.mxu1 %v19469_v16 }
 0x816   :  { %v11888_v7 = vpack.c.bf16 %v10162_v0, %v10161_v13  ;;  %v9998_v45 = vpop.f32.mrf.mxu0 }
 0x817   :  { %v10032_v18 = vadd.f32 %v9998_v45, %v19002_v58  ;;  %v10088_v15 = vmax.f32 %v10063_v56, 0.0  ;;  %v14878_v58 = vld [vmem:[#allocation3 + $0x18] sm:$0xff]   ;;  %v14884_v60 = vld [vmem:[#allocation3 + $0x50] sm:$0xff]  }
 0x818   :  { %11929 = vst [vmem:[#allocation3 + $0x58] sm:$0xff] %v11888_v7   ;;  %v14363_v41 = vpop.f32.mrf.mxu0  ;;  %10518 = vmatpush1.bf16.msra.mxu1 %v14877_v43 }
 0x819   :  { %v10064_v32 = vadd.f32 %v19009_v35, %v10032_v18  ;;  %10519 = vmatprep.subr.bf16.mxu1 %v19469_v16  ;;  %v10163_v50 = vsel %vm10138_vm15, %v10088_v15, 0.0 }
 0x81a   :  { %v10003_v34 = vpop.f32.mrf.mxu0 }
 0x81b   :  { %v10089_v26 = vmax.f32 %v10064_v32, 0.0  ;;  %v10033_v61 = vadd.f32 %v10003_v34, %v19004_v54 }
 0x81c   :  { %v14366_v40 = vpop.f32.mrf.mxu0  ;;  %10520 = vmatpush1.bf16.msra.mxu1 %v14878_v58 }
 0x81d   :  { %v10164_v38 = vsel %vm10139_vm7, %v10089_v26, 0.0  ;;  %v10065_v53 = vadd.f32 %v19009_v35, %v10033_v61  ;;  %10521 = vmatprep.subr.bf16.mxu1 %v19469_v16 }
 0x81e   :  { %v11893_v42 = vpack.c.bf16 %v10164_v38, %v10163_v50  ;;  %v10006_v2 = vpop.f32.mrf.mxu0 }
 0x81f   :  { %v10090_v51 = vmax.f32 %v10065_v53, 0.0  ;;  %v14883_v17 = vld [vmem:[#allocation3 + $0x58] sm:$0xff]  }
 0x820   :  { %11930 = vst [vmem:[#allocation3 + $0x60] sm:$0xff] %v11893_v42   ;;  %v14367_v54 = vpop.f32.mrf.mxu0  ;;  %10522 = vmatpush1.bf16.msra.mxu1 %v14879_v55 }
 0x821   :  { %v10165_v11 = vsel %vm10140_vm8, %v10090_v51, 0.0  ;;  %10523 = vmatprep.subr.bf16.mxu1 %v19469_v16 }
 0x822   :  { %v11714_v57 = vpack.c.bf16 %v10165_v11, %v10165_v11 }
 0x824   :  { %10291 = vst [vmem:[#allocation3 + $0x68] sm:$0xf] %v11714_v57  ;;  %10524 = vmatpush1.bf16.msra.mxu1 %v14880_v19 }
 0x825   :  { %10531 = vmatprep.subr.bf16.mxu1 %v19469_v16 }
 0x827   :  { %v14882_v33 = vld [vmem:[#allocation3 + $0x60] sm:$0xff]  }
 0x82b   :  { %v14881_v35 = vld [vmem:[#allocation3 + $0x68] ss:$0 sps:$4 sm:$0xff]  }
 0x82c   :  { %v10507_v59 = vsel %vm10505_vm9, %v14881_v35, 0 }
 0x82d   :  { %10532 = vmatpush2.bf16.msra.mxu1 %v10507_v59 }
 0x82e   :  { %10533 = vmatprep.subr.bf16.mxu1 %v19469_v16 }
 0x831   :  { %10534 = vmatpush2.bf16.msra.mxu1 %v14882_v33 }
 0x832   :  { %10535 = vmatprep.subr.bf16.mxu1 %v19469_v16 }
 0x835   :  { %10536 = vmatpush2.bf16.msra.mxu1 %v14883_v17 }
 0x836   :  { %10537 = vmatprep.subr.bf16.mxu1 %v19469_v16 }
 0x839   :  { %10538 = vmatpush2.bf16.msra.mxu1 %v14884_v60 }
 0x83a   :  { %10539 = vmatprep.subr.bf16.mxu1 %v19469_v16  ;;  %v14913_v16 = vld [vmem:[#allocation9 + $0x20] sm:$0xff]  }
 0x83d   :  { %10540 = vmatpush2.bf16.msra.mxu1 %v14885_v10 }
 0x83e   :  { %14368 = vmatprep.subr.bf16.mxu1 %v14910_v44 }
 0x840   :  { %10542 = vmatmul.mubr.bf16.vlgmr.msra.gmra.mxu1 %v14886_v47  ;;  %v19212_v47 = vld [vmem:[%s19266_s10] ss:$0 sm:$0xff] }
 0x841   :  { %11606 = vmatprep.mubr.msk.bf16.mxu1 %vm10480_vm1, %v14889_v25  ;;  %14369 = vmatpush3.bf16.msra.mxu1 %v14910_v44 }
 0x842   :  { %14370 = vmatprep.subr.bf16.mxu1 %v14911_v9 }
 0x845   :  { %14371 = vmatpush3.bf16.msra.mxu1 %v14911_v9 }
 0x846   :  { %14372 = vmatprep.subr.bf16.mxu1 %v14912_v62 }
 0x848   :  { %10550 = vmatmul.mubr.bf16.gmra.mxu1 %v14891_v30  ;;  %v14918_v30 = vld [vmem:[#allocation10 + $0x38] sm:$0xff]  }
 0x849   :  { %11607 = vmatprep.mubr.msk.bf16.mxu1 %vm10480_vm1, %v14892_v28  ;;  %14373 = vmatpush3.bf16.msra.mxu1 %v14912_v62 }
 0x84a   :  { %14374 = vmatprep.subr.bf16.mxu1 %v14913_v16 }
 0x84d   :  { %14375 = vmatpush3.bf16.msra.mxu1 %v14913_v16 }
 0x84e   :  { %14376 = vmatprep.subr.bf16.mxu1 %v14914_v36 }
 0x850   :  { %10558 = vmatmul.mubr.bf16.gmra.mxu1 %v14894_v49 }
 0x851   :  { %11608 = vmatprep.mubr.msk.bf16.mxu1 %vm10480_vm1, %v14895_v46  ;;  %14377 = vmatpush3.bf16.msra.mxu1 %v14914_v36  ;;  %v14919_v36 = vld [vmem:[#allocation10 + $0x30] sm:$0xff]  }
 0x852   :  { %14378 = vmatprep.subr.bf16.mxu1 %v14915_v6 }
 0x855   :  { %14379 = vmatpush3.bf16.msra.mxu1 %v14915_v6 }
 0x856   :  { %14380 = vmatprep.subr.bf16.mxu1 %v14916_v31 }
 0x858   :  { %10566 = vmatmul.mubr.bf16.gmra.mxu1 %v14897_v39 }
 0x859   :  { %11609 = vmatprep.mubr.msk.bf16.mxu1 %vm10480_vm1, %v14898_v8  ;;  %14381 = vmatpush3.bf16.msra.mxu1 %v14916_v31  ;;  %v14920_v8 = vld [vmem:[#allocation10 + $0x28] sm:$0xff]  }
 0x85a   :  { %14382 = vmatprep.subr.bf16.mxu1 %v14917_v5 }
 0x85d   :  { %14383 = vmatpush3.bf16.msra.mxu1 %v14917_v5 }
 0x85e   :  { %14400 = vmatprep.subr.bf16.mxu1 %v19204_v21 }
 0x860   :  { %10574 = vmatmul.mubr.bf16.gmra.mxu1 %v14900_v29 }
 0x861   :  { %11610 = vmatprep.mubr.msk.bf16.mxu1 %vm10480_vm1, %v14901_v14 }
 0x868   :  { %10582 = vmatmul.mubr.bf16.gmra.mxu1 %v14903_v27  ;;  %v14921_v27 = vld [vmem:[#allocation10 + $0x20] sm:$0xff]  }
 0x869   :  { %11611 = vmatprep.mubr.msk.bf16.mxu1 %vm10480_vm1, %v14904_v63 }
 0x870   :  { %10590 = vmatmul.mubr.bf16.gmra.mxu1 %v14906_v37 }
 0x871   :  { %11612 = vmatprep.mubr.msk.bf16.mxu1 %vm10480_vm1, %v14907_v22  ;;  %vm10837_vm1 = vcmask 1041921  }
 0x878   :  { %10598 = vmatmul.mubr.bf16.gmra.mxu1 %v14909_v3  ;;  %v14922_v3 = vld [vmem:[#allocation10 + $0x18] sm:$0xff]  }
 0x900   :  { %v10543_v24 = vpop.f32.mrf.mxu1 }
 0x902   :  { %v10545_v1 = vpop.f32.mrf.mxu1 }
 0x904   :  { %v10546_v20 = vpop.f32.mrf.mxu1 }
 0x905   :  { %v10606_v4 = vpack.c.bf16 %v10546_v20, %v10543_v24 }
 0x906   :  { %v10548_v12 = vpop.f32.mrf.mxu1 }
 0x907   :  { %14384 = vmatprep.mubr.bf16.mxu1 %v10606_v4 }
 0x908   :  { %v10551_v13 = vpop.f32.mrf.mxu1 }
 0x90a   :  { %v10553_v0 = vpop.f32.mrf.mxu1 }
 0x90c   :  { %v10554_v56 = vpop.f32.mrf.mxu1 }
 0x90d   :  { %v10607_v7 = vpack.c.bf16 %v10554_v56, %v10551_v13 }
 0x90e   :  { %v10556_v48 = vpop.f32.mrf.mxu1 }
 0x90f   :  { %14385 = vmatmul.mubr.bf16.vlgmr.msra.gmra.mxu1 %v10607_v7 }
 0x910   :  { %v10559_v45 = vpop.f32.mrf.mxu1  ;;  %14401 = vmatpush3.bf16.msra.mxu1 %v14918_v30  ;;  %v14933_v30 = vld [vmem:[#allocation12] sm:$0xff]  }
 0x911   :  { %14402 = vmatprep.subr.bf16.mxu1 %v19204_v21 }
 0x912   :  { %v10561_v23 = vpop.f32.mrf.mxu1 }
 0x914   :  { %v10562_v18 = vpop.f32.mrf.mxu1  ;;  %14403 = vmatpush3.bf16.msra.mxu1 %v14919_v36 }
 0x915   :  { %v10608_v43 = vpack.c.bf16 %v10562_v18, %v10559_v45  ;;  %14404 = vmatprep.subr.bf16.mxu1 %v19204_v21 }
 0x916   :  { %v10564_v41 = vpop.f32.mrf.mxu1 }
 0x917   :  { %14388 = vmatprep.mubr.bf16.mxu1 %v10608_v43 }
 0x918   :  { %v10567_v15 = vpop.f32.mrf.mxu1  ;;  %14405 = vmatpush3.bf16.msra.mxu1 %v14920_v8 }
 0x919   :  { %14406 = vmatprep.subr.bf16.mxu1 %v19204_v21 }
 0x91a   :  { %v10569_v32 = vpop.f32.mrf.mxu1 }
 0x91c   :  { %v10570_v34 = vpop.f32.mrf.mxu1  ;;  %14407 = vmatpush3.bf16.msra.mxu1 %v14921_v27 }
 0x91d   :  { %v10609_v26 = vpack.c.bf16 %v10570_v34, %v10567_v15  ;;  %14408 = vmatprep.subr.bf16.mxu1 %v19204_v21 }
 0x91e   :  { %v10572_v61 = vpop.f32.mrf.mxu1 }
 0x91f   :  { %14389 = vmatmul.mubr.bf16.gmra.mxu1 %v10609_v26 }
 0x920   :  { %v10575_v52 = vpop.f32.mrf.mxu1  ;;  %14409 = vmatpush3.bf16.msra.mxu1 %v14922_v3 }
 0x921   :  { %14410 = vmatprep.subr.bf16.mxu1 %v19204_v21 }
 0x922   :  { %v10577_v58 = vpop.f32.mrf.mxu1 }
 0x924   :  { %v10578_v40 = vpop.f32.mrf.mxu1 }
 0x925   :  { %v10610_v50 = vpack.c.bf16 %v10578_v40, %v10575_v52 }
 0x926   :  { %v10580_v38 = vpop.f32.mrf.mxu1 }
 0x927   :  { %14392 = vmatprep.mubr.bf16.mxu1 %v10610_v50 }
 0x928   :  { %v10583_v53 = vpop.f32.mrf.mxu1 }
 0x92a   :  { %v10585_v42 = vpop.f32.mrf.mxu1 }
 0x92c   :  { %v10586_v2 = vpop.f32.mrf.mxu1 }
 0x92d   :  { %v10611_v51 = vpack.c.bf16 %v10586_v2, %v10583_v53 }
 0x92e   :  { %v10588_v55 = vpop.f32.mrf.mxu1 }
 0x92f   :  { %14393 = vmatmul.mubr.bf16.gmra.mxu1 %v10611_v51 }
 0x930   :  { %v10591_v54 = vpop.f32.mrf.mxu1 }
 0x932   :  { %v10593_v11 = vpop.f32.mrf.mxu1 }
 0x933   :  { %v14923_v11 = vld [vmem:[#allocation10 + $0x10] sm:$0xff]  }
 0x934   :  { %v10594_v57 = vpop.f32.mrf.mxu1  ;;  %14411 = vmatpush3.bf16.msra.mxu1 %v14923_v11 }
 0x935   :  { %v10612_v19 = vpack.c.bf16 %v10594_v57, %v10591_v54  ;;  %v14924_v57 = vld [vmem:[#allocation10 + $0x8] sm:$0xff]   ;;  %14412 = vmatprep.subr.bf16.mxu1 %v19204_v21 }
 0x936   :  { %v10596_v35 = vpop.f32.mrf.mxu1 }
 0x937   :  { %14396 = vmatprep.mubr.bf16.mxu1 %v10612_v19  ;;  %v14925_v19 = vld [vmem:[#allocation10] sm:$0xff]   ;;  %v14926_v35 = vld [vmem:[#allocation12 + $0x38] sm:$0xff]  }
 0x938   :  { %v10599_v59 = vpop.f32.mrf.mxu1  ;;  %14413 = vmatpush3.bf16.msra.mxu1 %v14924_v57  ;;  %14421 = vmatpush3.bf16.msra.mxu0 %v14926_v35 }
 0x939   :  { %14414 = vmatprep.subr.bf16.mxu1 %v19204_v21  ;;  %14422 = vmatprep.subr.bf16.mxu0 %v19204_v21 }
 0x93a   :  { %v10601_v33 = vpop.f32.mrf.mxu1 }
 0x93b   :  { %v14927_v33 = vld [vmem:[#allocation12 + $0x30] sm:$0xff]  }
 0x93c   :  { %v10602_v17 = vpop.f32.mrf.mxu1  ;;  %14415 = vmatpush3.bf16.msra.mxu1 %v14925_v19  ;;  %14423 = vmatpush3.bf16.msra.mxu0 %v14927_v33 }
 0x93d   :  { %v10613_v60 = vpack.c.bf16 %v10602_v17, %v10599_v59  ;;  %v14928_v17 = vld [vmem:[#allocation12 + $0x28] sm:$0xff]   ;;  %14424 = vmatprep.subr.bf16.mxu0 %v19204_v21 }
 0x93e   :  { %v10604_v44 = vpop.f32.mrf.mxu1 }
 0x93f   :  { %14397 = vmatmul.mubr.bf16.gmra.mxu1 %v10613_v60  ;;  %v14929_v60 = vld [vmem:[#allocation12 + $0x20] sm:$0xff]   ;;  %v14930_v44 = vld [vmem:[#allocation12 + $0x18] sm:$0xff]  }
 0x940   :  { %14416 = vmatprep.mubr.msk.bf16.mxu1 %vm15114_vm0, %v19204_v21  ;;  %vm10831_vm0 = vcmask 516096   ;;  %14425 = vmatpush3.bf16.msra.mxu0 %v14928_v17 }
 0x941   :  { %14426 = vmatprep.subr.bf16.mxu0 %v19204_v21 }
 0x944   :  { %14427 = vmatpush3.bf16.msra.mxu0 %v14929_v60 }
 0x945   :  { %14428 = vmatprep.subr.bf16.mxu0 %v19204_v21 }
 0x948   :  { %14429 = vmatpush3.bf16.msra.mxu0 %v14930_v44 }
 0x949   :  { %14430 = vmatprep.subr.bf16.mxu0 %v19204_v21 }
 0x9cf   :  { %v14386_v10 = vpop.f32.mrf.mxu1 }
 0x9d0   :  { %v10728_v46 = vadd.f32 %v14386_v10, %v19212_v47  ;;  %v14931_v10 = vld [vmem:[#allocation12 + $0x10] sm:$0xff]  }
 0x9d1   :  { %v10719_v25 = vpop.f32.mrf.mxu1  ;;  %14431 = vmatpush3.bf16.msra.mxu0 %v14931_v10 }
 0x9d2   :  { %v10720_v9 = vadd.f32 %v19212_v47, %v10719_v25  ;;  %v10784_v29 = vmax.f32 %v10728_v46, 0.0  ;;  %14432 = vmatprep.subr.bf16.mxu0 %v19204_v21 }
 0x9d3   :  { %v14387_v62 = vpop.f32.mrf.mxu1 }
 0x9d4   :  { %v10782_v28 = vmax.f32 %v10720_v9, 0.0  ;;  %v10731_v14 = vadd.f32 %v14387_v62, %v19212_v47  ;;  %v14932_v62 = vld [vmem:[#allocation12 + $0x8] sm:$0xff]  }
 0x9d5   :  { %v10722_v16 = vpop.f32.mrf.mxu1  ;;  %14433 = vmatpush3.bf16.msra.mxu0 %v14932_v62 }
 0x9d6   :  { %v10723_v49 = vadd.f32 %v19212_v47, %v10722_v16  ;;  %10798 = vxpose.xlu0.b32.start [1/16] (narrow) %v10782_v28, 8  ;;  %v10785_v37 = vmax.f32 %v10731_v14, 0.0  ;;  %14434 = vmatprep.subr.bf16.mxu0 %v19204_v21  ;;  %v11622_v28 = vld [vmem:[%s19268_s12] ss:$0 sm:$0xff] }
 0x9d7   :  { %v11631_v14 = vld [vmem:[%s19270_s14] ss:$0 sm:$0xff] }
 0x9d8   :  { %v10783_v39 = vmax.f32 %v10723_v49, 0.0 }
 0x9d9   :  { %14435 = vmatpush3.bf16.msra.mxu0 %v14933_v30 }
 0x9da   :  { %10799 = vxpose.xlu0.b32.cont [2/16] (narrow) %v10783_v39, 8 }
 0x9de   :  { %10800 = vxpose.xlu0.b32.cont [3/16] (narrow) %v10784_v29, 8 }
 0x9df   :  { %v14390_v63 = vpop.f32.mrf.mxu1 }
 0x9e0   :  { %v10744_v20 = vadd.f32 %v14390_v63, %v19212_v47 }
 0x9e1   :  { %v10735_v22 = vpop.f32.mrf.mxu1 }
 0x9e2   :  { %v10736_v6 = vadd.f32 %v19212_v47, %v10735_v22  ;;  %10801 = vxpose.xlu0.b32.cont [4/16] (narrow) %v10785_v37, 8  ;;  %v10788_v12 = vmax.f32 %v10744_v20, 0.0 }
 0x9e3   :  { %v14391_v31 = vpop.f32.mrf.mxu1 }
 0x9e4   :  { %v10786_v5 = vmax.f32 %v10736_v6, 0.0  ;;  %v10747_v13 = vadd.f32 %v14391_v31, %v19212_v47 }
 0x9e5   :  { %v10738_v24 = vpop.f32.mrf.mxu1 }
 0x9e6   :  { %v10739_v1 = vadd.f32 %v19212_v47, %v10738_v24  ;;  %10802 = vxpose.xlu0.b32.cont [5/16] (narrow) %v10786_v5, 8  ;;  %v10789_v56 = vmax.f32 %v10747_v13, 0.0 }
 0x9e8   :  { %v10787_v4 = vmax.f32 %v10739_v1, 0.0 }
 0x9ea   :  { %10803 = vxpose.xlu0.b32.cont [6/16] (narrow) %v10787_v4, 8 }
 0x9ee   :  { %10804 = vxpose.xlu0.b32.cont [7/16] (narrow) %v10788_v12, 8 }
 0x9ef   :  { %v14394_v0 = vpop.f32.mrf.mxu1 }
 0x9f0   :  { %v10760_v41 = vadd.f32 %v14394_v0, %v19212_v47 }
 0x9f1   :  { %v10751_v7 = vpop.f32.mrf.mxu1 }
 0x9f2   :  { %v10752_v48 = vadd.f32 %v19212_v47, %v10751_v7  ;;  %10805 = vxpose.xlu0.b32.cont [8/16] (narrow) %v10789_v56, 8  ;;  %v10792_v32 = vmax.f32 %v10760_v41, 0.0 }
 0x9f3   :  { %v14395_v45 = vpop.f32.mrf.mxu1 }
 0x9f4   :  { %v10790_v23 = vmax.f32 %v10752_v48, 0.0  ;;  %v10763_v34 = vadd.f32 %v14395_v45, %v19212_v47 }
 0x9f5   :  { %v10754_v18 = vpop.f32.mrf.mxu1 }
 0x9f6   :  { %v10755_v43 = vadd.f32 %v19212_v47, %v10754_v18  ;;  %10806 = vxpose.xlu0.b32.cont [9/16] (narrow) %v10790_v23, 8  ;;  %v10793_v61 = vmax.f32 %v10763_v34, 0.0 }
 0x9f8   :  { %v10791_v15 = vmax.f32 %v10755_v43, 0.0 }
 0x9fa   :  { %10807 = vxpose.xlu0.b32.cont [10/16] (narrow) %v10791_v15, 8 }
 0x9fe   :  { %10808 = vxpose.xlu0.b32.cont [11/16] (narrow) %v10792_v32, 8 }
 0x9ff   :  { %v14398_v26 = vpop.f32.mrf.mxu1 }
 0xa00   :  { %v10776_v42 = vadd.f32 %v14398_v26, %v19212_v47 }
 0xa01   :  { %v10767_v52 = vpop.f32.mrf.mxu1 }
 0xa02   :  { %v10768_v58 = vadd.f32 %v19212_v47, %v10767_v52  ;;  %10809 = vxpose.xlu0.b32.cont [12/16] (narrow) %v10793_v61, 8  ;;  %v10796_v51 = vmax.f32 %v10776_v42, 0.0 }
 0xa03   :  { %v14399_v40 = vpop.f32.mrf.mxu1 }
 0xa04   :  { %v10794_v50 = vmax.f32 %v10768_v58, 0.0  ;;  %v10779_v55 = vadd.f32 %v14399_v40, %v19212_v47 }
 0xa05   :  { %v10770_v38 = vpop.f32.mrf.mxu1 }
 0xa06   :  { %v10771_v53 = vadd.f32 %v19212_v47, %v10770_v38  ;;  %10810 = vxpose.xlu0.b32.cont [13/16] (narrow) %v10794_v50, 8  ;;  %v10797_v54 = vmax.f32 %v10779_v55, 0.0 }
 0xa08   :  { %v10795_v2 = vmax.f32 %v10771_v53, 0.0 }
 0xa0a   :  { %10811 = vxpose.xlu0.b32.cont [14/16] (narrow) %v10795_v2, 8 }
 0xa0e   :  { %10812 = vxpose.xlu0.b32.cont [15/16] (narrow) %v10796_v51, 8 }
 0xa12   :  { %10813 = vxpose.xlu0.b32.end [16/16] (narrow) %v10797_v54, 8 }
 0xa52   :  { %v10814_v59 = vpop.trf.xlu0 }
 0xa53   :  { %10832 = vst.msk [vmem:[#allocation4] sm:$0x1] %vm10831_vm0, %v10814_v59  ;;  %10834 = vrot.lane.b32.xlu1 %v10814_v59, %s15107_s23 }
 0xac5   :  { %v10835_v47 = vpop.permute.xlu1 %10834 }
 0xac6   :  { %10838 = vst.msk [vmem:[#allocation4 - $0x1] sm:$0x2] %vm10837_vm1, %v10835_v47 }
 0xac7   :  { %10839 = vst.msk [vmem:[#allocation4 + $0x1] sm:$0x1] %vm10831_vm0, %v10835_v47 }
 0xac8   :  { %10840 = vst.msk [vmem:[#allocation4] sm:$0x2] %vm10837_vm1, %v10814_v59 }
 0xacf   :  { %v10841_v25 = vld [vmem:[#allocation4] sm:$0xff] }
 0xad0   :  { %v10842_v9 = vpack.c.bf16 %v10841_v25, %v10841_v25 }
 0xad2   :  { %14417 = vmatmul.mubr.bf16.vlgmr.msra.gmra.mxu1 %v10842_v9 }
 0xb92   :  { %v10948_v16 = vpop.f32.mrf.mxu1 }
 0xb93   :  { %v10949_v36 = vadd.f32 %v11622_v28, %v10948_v16 }
 0xb94   :  { %v14418_v49 = vpop.f32.mrf.mxu1 }
 0xb95   :  { %v10954_v46 = vmax.f32 %v10949_v36, 0.0 }
 0xb96   :  { %v10951_v39 = vpop.f32.mrf.mxu1 }
 0xb97   :  { %v10955_v8 = vpack.c.bf16 %v10954_v46, %v10954_v46 }
 0xb98   :  { %v14419_v29 = vpop.f32.mrf.mxu1 }
 0xb99   :  { %14437 = vmatmul.mubr.bf16.vlgmr.msra.gmra.mxu0 %v10955_v8 }
 0xc59   :  { %v11061_v27 = vpop.f32.mrf.mxu0 }
 0xc5a   :  { %v11062_v63 = vadd.f32 %v11631_v14, %v11061_v27 }
 0xc5b   :  { %v14438_v21 = vpop.f32.mrf.mxu0 }
 0xc5c   :  { %11067 = vst [vmem:[%s19271_s15] sm:$0xff] %v11062_v63 }
 0xc5d   :  { %v11064_v37 = vpop.f32.mrf.mxu0 }
 0xc5f   :  { %v14439_v22 = vpop.f32.mrf.mxu0 }
 0xc60   :  { %11072 = vsyncpa [#allocation6], 1 }
 0xc61   :  { %11073 = vsyncpa [#allocation8], 1 }
 0xc62   :  { %11074 = vsyncpa [#allocation11], 1 }

</bundles_post_ra>
